<compile_context>
chip_gen: v6e
topology: v6e:2x2x1
jax: 0.10.0
libtpu: 0.0.40
codegen_flags: <defaults>
</compile_context>

<pallas_src>
import functools

import jax
import jax.numpy as jnp
from jax.experimental import pallas as pl
from jax.experimental.pallas import tpu as pltpu


# ---------------------------------------------------------------------------
# Pallas kernels
# ---------------------------------------------------------------------------

def _conv_bn_kernel(x_ref, w_ref, b_ref, o_ref, *, relu):
  """out = maybe_relu(x @ w + bias).  BN scale is pre-folded into w."""
  acc = jnp.dot(x_ref[...], w_ref[...], preferred_element_type=jnp.float32)
  y = acc + b_ref[...]
  if relu:
    y = jnp.maximum(y, 0.0)
  o_ref[...] = y.astype(o_ref.dtype)


def _conv_bn_shortcut_relu_kernel(x_ref, w_ref, b_ref, d_ref, w1_ref, b1_ref,
                                  o_ref):
  """Fused tail (Cin != Cout): out = relu(x @ w + b + d @ w1 + b1).

  Both matmuls run on the MXU inside one pass; conv2 never touches HBM.
  """
  acc = jnp.dot(x_ref[...], w_ref[...], preferred_element_type=jnp.float32)
  sc = jnp.dot(d_ref[...], w1_ref[...], preferred_element_type=jnp.float32)
  y = acc + b_ref[...] + sc + b1_ref[...]
  o_ref[...] = jnp.maximum(y, 0.0).astype(o_ref.dtype)


def _conv_bn_residual_relu_kernel(x_ref, w_ref, b_ref, r_ref, o_ref):
  """Fused tail (Cin == Cout): out = relu(x @ w + b + residual).

  Residual is added on the VPU in f32 — no identity matmul.
  """
  acc = jnp.dot(x_ref[...], w_ref[...], preferred_element_type=jnp.float32)
  y = acc + b_ref[...] + r_ref[...].astype(jnp.float32)
  o_ref[...] = jnp.maximum(y, 0.0).astype(o_ref.dtype)


def _compiler_params(vmem_limit_bytes=None):
  # Row grid axis is embarrassingly parallel -> shard across TensorCores.
  return pltpu.CompilerParams(
      dimension_semantics=("parallel",),
      vmem_limit_bytes=vmem_limit_bytes)


# ---------------------------------------------------------------------------
# pallas_call wrappers
# ---------------------------------------------------------------------------

def conv_bn(x, w, bias, *, relu, tile_n=256, out_dtype=None,
            vmem_limit_bytes=None):
  """Fused (x @ w) + bias [+ relu], tiled over rows of x."""
  N, K = x.shape
  Kw, Cout = w.shape
  assert K == Kw and N % tile_n == 0
  out_dtype = out_dtype or x.dtype
  kernel = functools.partial(_conv_bn_kernel, relu=relu)
  # Note: the weight / bias blocks have constant index maps and stay resident;
  # (a pl.Buffered(1) pipeline_mode could reclaim their second buffer on
  #  VMEM-tight configs).
  return pl.pallas_call(
      kernel,
      out_shape=jax.ShapeDtypeStruct((N, Cout), out_dtype),
      grid_spec=pltpu.PrefetchScalarGridSpec(
          num_scalar_prefetch=0,
          grid=(N // tile_n,),
          in_specs=[
              pl.BlockSpec((tile_n, K), lambda i: (i, 0)),
              pl.BlockSpec((K, Cout), lambda i: (0, 0)),
              pl.BlockSpec((1, Cout), lambda i: (0, 0)),
          ],
          out_specs=pl.BlockSpec((tile_n, Cout), lambda i: (i, 0)),
      ),
      compiler_params=_compiler_params(vmem_limit_bytes),
  )(x, w, bias)


def conv_bn_conv1x1_add_relu(x, w, b, d, w1, b1, *, tile_n=256,
                             out_dtype=jnp.float32, vmem_limit_bytes=None):
  """Fused conv3x3b+BN + conv1x1+BN shortcut + add + ReLU."""
  N, K = x.shape
  Kw, Cout = w.shape
  Nd, Cin = d.shape
  assert K == Kw and N == Nd and N % tile_n == 0
  assert w1.shape == (Cin, Cout)
  return pl.pallas_call(
      _conv_bn_shortcut_relu_kernel,
      out_shape=jax.ShapeDtypeStruct((N, Cout), out_dtype),
      grid_spec=pltpu.PrefetchScalarGridSpec(
          num_scalar_prefetch=0,
          grid=(N // tile_n,),
          in_specs=[
              pl.BlockSpec((tile_n, K), lambda i: (i, 0)),
              pl.BlockSpec((K, Cout), lambda i: (0, 0)),
              pl.BlockSpec((1, Cout), lambda i: (0, 0)),
              pl.BlockSpec((tile_n, Cin), lambda i: (i, 0)),
              pl.BlockSpec((Cin, Cout), lambda i: (0, 0)),
              pl.BlockSpec((1, Cout), lambda i: (0, 0)),
          ],
          out_specs=pl.BlockSpec((tile_n, Cout), lambda i: (i, 0)),
      ),
      compiler_params=_compiler_params(vmem_limit_bytes),
  )(x, w, b, d, w1, b1)


def conv_bn_add_relu(x, w, b, residual, *, tile_n=256, out_dtype=jnp.float32,
                     vmem_limit_bytes=None):
  """Fused conv3x3b+BN + identity residual add + ReLU (no eye matmul)."""
  N, K = x.shape
  Kw, Cout = w.shape
  assert K == Kw and N % tile_n == 0
  assert residual.shape == (N, Cout)
  return pl.pallas_call(
      _conv_bn_residual_relu_kernel,
      out_shape=jax.ShapeDtypeStruct((N, Cout), out_dtype),
      grid_spec=pltpu.PrefetchScalarGridSpec(
          num_scalar_prefetch=0,
          grid=(N // tile_n,),
          in_specs=[
              pl.BlockSpec((tile_n, K), lambda i: (i, 0)),
              pl.BlockSpec((K, Cout), lambda i: (0, 0)),
              pl.BlockSpec((1, Cout), lambda i: (0, 0)),
              pl.BlockSpec((tile_n, Cout), lambda i: (i, 0)),
          ],
          out_specs=pl.BlockSpec((tile_n, Cout), lambda i: (i, 0)),
      ),
      compiler_params=_compiler_params(vmem_limit_bytes),
  )(x, w, b, residual)


# ---------------------------------------------------------------------------
# Glue: octree neighbour gather (index plumbing, plain JAX)
# ---------------------------------------------------------------------------

def octree_gather(data, neigh):
  """Gather 27 neighbours per node.  neigh: [N, 27] int32, -1 => zero feature.

  Returns [N, 27 * C] with (kernel_tap, channel) ordering, matching a
  [27, Cin, Cout] conv weight flattened to [27*Cin, Cout].
  """
  N, C = data.shape
  padded = jnp.concatenate([data, jnp.zeros((1, C), data.dtype)], axis=0)
  idx = jnp.where(neigh < 0, N, neigh)      # map -1 -> appended zero row
  gathered = padded[idx]                    # [N, 27, C]
  return gathered.reshape(neigh.shape[0], 27 * C)


# ---------------------------------------------------------------------------
# Parameters: raw (torch-module-like) and kernel-ready (folded/padded/bf16)
# ---------------------------------------------------------------------------

def _round_up(x, m):
  return (x + m - 1) // m * m


def make_raw_params(key, in_channels, out_channels, bottleneck=1):
  """Deterministic raw parameters mimicking the torch module (inference BN)."""
  cb = out_channels // bottleneck
  ks = jax.random.split(key, 6)

  def bn_init(k, c):
    k1, k2, k3, k4 = jax.random.split(k, 4)
    gamma = 1.0 + 0.1 * jax.random.normal(k1, (c,), jnp.float32)
    beta = 0.1 * jax.random.normal(k2, (c,), jnp.float32)
    mean = 0.05 * jax.random.normal(k3, (c,), jnp.float32)
    var = 1.0 + 0.1 * jnp.abs(jax.random.normal(k4, (c,), jnp.float32))
    return gamma, beta, mean, var

  return {
      "w_a": 0.1 * jax.random.normal(ks[0], (27, in_channels, cb), jnp.float32),
      "bn_a": bn_init(ks[1], cb),
      "w_b": 0.1 * jax.random.normal(ks[2], (27, cb, out_channels), jnp.float32),
      "bn_b": bn_init(ks[3], out_channels),
      "w_1": 0.1 * jax.random.normal(ks[4], (in_channels, out_channels),
                                     jnp.float32),
      "bn_1": bn_init(ks[5], out_channels),
  }


def prepare_params(raw, in_channels, out_channels, bottleneck=1, lane=128,
                   eps=1e-5):
  """Fold BN scale into weights, pad channel dims to lane multiples, cast bf16.

  Padded weight/bias entries are zero, so padded channels carry exact zeros
  and are sliced off at the end — semantics are unchanged.
  """
  cb = out_channels // bottleneck
  cbp = _round_up(cb, lane)
  coutp = _round_up(out_channels, lane)

  def fold(gamma, beta, mean, var):
    scale = gamma / jnp.sqrt(var + eps)
    return scale, beta - mean * scale

  p = {}
  # conv3x3a: [27, Cin, Cb] -> fold BN scale -> [27*Cin, Cbp]
  sa, ba = fold(*raw["bn_a"])
  wa = (raw["w_a"] * sa).reshape(27 * in_channels, cb)
  p["w_a"] = jnp.pad(wa, ((0, 0), (0, cbp - cb))).astype(jnp.bfloat16)
  p["b_a"] = jnp.pad(ba, (0, cbp - cb)).reshape(1, cbp).astype(jnp.float32)

  # conv3x3b: [27, Cb, Cout] -> pad input channels interleaved per tap,
  # fold BN scale, pad output channels -> [27*Cbp, Coutp]
  sb, bb = fold(*raw["bn_b"])
  wb = raw["w_b"] * sb
  wb = jnp.pad(wb, ((0, 0), (0, cbp - cb), (0, coutp - out_channels)))
  p["w_b"] = wb.reshape(27 * cbp, coutp).astype(jnp.bfloat16)
  p["b_b"] = jnp.pad(bb, (0, coutp - out_channels)).reshape(1, coutp).astype(
      jnp.float32)

  if in_channels != out_channels:
    s1, b1 = fold(*raw["bn_1"])
    w1 = jnp.pad(raw["w_1"] * s1, ((0, 0), (0, coutp - out_channels)))
    p["w_1"] = w1.astype(jnp.bfloat16)
    p["b_1"] = jnp.pad(b1, (0, coutp - out_channels)).reshape(1, coutp).astype(
        jnp.float32)
  return p


# ---------------------------------------------------------------------------
# OctreeResBlock2 forward
# ---------------------------------------------------------------------------

def octree_resblock2(data, neigh, kparams, in_channels, out_channels,
                     stride=1, tile_n=256, vmem_limit_bytes=None):
  """Forward pass of OctreeResBlock2 (stride == 1 path)."""
  assert stride == 1  # TODO(synk): stride==2 requires OctreeMaxPool.
  N, cin = data.shape
  assert cin == in_channels
  cbp = kparams["w_a"].shape[1]
  coutp = kparams["w_b"].shape[1]

  # Arbitrary N: pad rows to a multiple of tile_n (pad neigh rows with -1 so
  # padded nodes gather zeros); padded rows are sliced off at the end.
  n_pad = (-N) % tile_n
  if n_pad:
    data = jnp.pad(data, ((0, n_pad), (0, 0)))
    neigh = jnp.pad(neigh, ((0, n_pad), (0, 0)), constant_values=-1)

  data_bf16 = data.astype(jnp.bfloat16)

  # conv3x3a -> BN -> ReLU   (BN scale folded into weight; bf16 operands)
  ga = octree_gather(data_bf16, neigh)                 # [Np, 27*Cin] bf16
  conv1 = conv_bn(ga, kparams["w_a"], kparams["b_a"], relu=True,
                  tile_n=tile_n, out_dtype=jnp.bfloat16,
                  vmem_limit_bytes=vmem_limit_bytes)   # [Np, Cbp] bf16

  # conv3x3b -> BN, fused with the shortcut branch + residual add + ReLU.
  gb = octree_gather(conv1, neigh)                     # [Np, 27*Cbp] bf16
  if in_channels != out_channels:
    out = conv_bn_conv1x1_add_relu(
        gb, kparams["w_b"], kparams["b_b"],
        data_bf16, kparams["w_1"], kparams["b_1"],
        tile_n=tile_n, out_dtype=jnp.float32,
        vmem_limit_bytes=vmem_limit_bytes)
  else:
    residual = data                                    # f32 identity residual
    if coutp != out_channels:
      residual = jnp.pad(residual, ((0, 0), (0, coutp - out_channels)))
    out = conv_bn_add_relu(
        gb, kparams["w_b"], kparams["b_b"], residual,
        tile_n=tile_n, out_dtype=jnp.float32,
        vmem_limit_bytes=vmem_limit_bytes)

  return out[:N, :out_channels]


# ---------------------------------------------------------------------------
# References
# ---------------------------------------------------------------------------

def reference_kernel_numerics(data, neigh, kp, in_channels, out_channels):
  """Mirrors the kernel's numerics (folded params, bf16 operands, f32 acc)."""
  data_bf16 = data.astype(jnp.bfloat16)
  ga = octree_gather(data_bf16, neigh)
  c1 = jnp.maximum(
      jnp.dot(ga, kp["w_a"], preferred_element_type=jnp.float32) + kp["b_a"],
      0.0).astype(jnp.bfloat16)
  gb = octree_gather(c1, neigh)
  c2 = jnp.dot(gb, kp["w_b"], preferred_element_type=jnp.float32) + kp["b_b"]
  if in_channels != out_channels:
    sc = (jnp.dot(data_bf16, kp["w_1"], preferred_element_type=jnp.float32)
          + kp["b_1"])
  else:
    coutp = kp["w_b"].shape[1]
    sc = jnp.pad(data, ((0, 0), (0, coutp - out_channels)))
  return jnp.maximum(c2 + sc, 0.0)[:, :out_channels]


def reference_f32(data, neigh, raw, in_channels, out_channels, eps=1e-5):
  """Plain f32 reference from raw (unfolded, unpadded) parameters."""
  def bn(x, p):
    gamma, beta, mean, var = p
    return (x - mean) * (gamma / jnp.sqrt(var + eps)) + beta

  cb = raw["w_a"].shape[2]
  ga = octree_gather(data, neigh)
  conv1 = jnp.maximum(
      bn(ga @ raw["w_a"].reshape(27 * in_channels, cb), raw["bn_a"]), 0.0)
  gb = octree_gather(conv1, neigh)
  conv2 = bn(gb @ raw["w_b"].reshape(27 * cb, out_channels), raw["bn_b"])
  if in_channels != out_channels:
    shortcut = bn(data @ raw["w_1"], raw["bn_1"])
  else:
    shortcut = data
  return jnp.maximum(conv2 + shortcut, 0.0)


# ---------------------------------------------------------------------------

if __name__ == "__main__":
  key = jax.random.PRNGKey(0)
  TILE_N = 256

  # (N, Cin, Cout): first case exercises the fused conv1x1-shortcut kernel,
  # second case exercises the fused identity-residual kernel (no eye matmul).
  # N is intentionally not a multiple of tile_n to exercise row padding.
  cases = [(1000, 64, 128), (1000, 128, 128)]

  for case_idx, (N, CIN, COUT) in enumerate(cases):
    k_data, k_neigh, k_param = jax.random.split(
        jax.random.fold_in(key, case_idx), 3)

    data = jax.random.normal(k_data, (N, CIN), jnp.float32)

    # Synthetic octree neighbourhood table: [N, 27], -1 == empty neighbour,
    # centre entry (index 13) is the node itself.
    neigh = jax.random.randint(k_neigh, (N, 27), minval=-8, maxval=N,
                               dtype=jnp.int32)
    neigh = jnp.where(neigh < 0, -1, neigh)
    neigh = neigh.at[:, 13].set(jnp.arange(N, dtype=jnp.int32))

    raw = make_raw_params(k_param, CIN, COUT)
    kparams = prepare_params(raw, CIN, COUT)

    fwd = jax.jit(functools.partial(
        octree_resblock2, in_channels=CIN, out_channels=COUT,
        stride=1, tile_n=TILE_N))
    out = jax.block_until_ready(fwd(data, neigh, kparams))
    assert out.shape == (N, COUT)

    # Tight check against a reference that mirrors the kernel numerics.
    ref_k = reference_kernel_numerics(data, neigh, kparams, CIN, COUT)
    assert jnp.allclose(out, ref_k, atol=2e-2, rtol=2e-2), (
        f"case {case_idx}: mismatch vs kernel-numerics reference")

    # Loose structural check against the plain-f32 raw-parameter reference
    # (bf16 operands introduce a small, bounded error).
    ref32 = reference_f32(data, neigh, raw, CIN, COUT)
    assert jnp.allclose(out, ref32, atol=1.0, rtol=0.05), (
        f"case {case_idx}: mismatch vs f32 reference")

  print("KERNEL_OK")
</pallas_src>

<mosaic_0001>
module attributes {stable_mosaic.version = 11 : i64} {
  func.func @_conv_bn_kernel(%arg0: i32, %arg1: memref<256x1728xbf16, #tpu.memory_space<vmem>>, %arg2: memref<1728x128xbf16, #tpu.memory_space<vmem>>, %arg3: memref<1x128xf32, #tpu.memory_space<vmem>>, %arg4: memref<256x128xbf16, #tpu.memory_space<vmem>>) attributes {dimension_semantics = [#tpu.dimension_semantics<parallel>], iteration_bounds = array<i64: 4>, scalar_prefetch = 0 : i64, scratch_operands = 0 : i64, tpu.core_type = #tpu.core_type<tc>, window_params = [{transform_indices = @transform_0, window_bounds = array<i64: 256, 1728>}, {pipeline_mode = #tpu.pipeline_mode<synchronous>, transform_indices = @transform_1, window_bounds = array<i64: 1728, 128>}, {pipeline_mode = #tpu.pipeline_mode<synchronous>, transform_indices = @transform_2, window_bounds = array<i64: 1, 128>}, {transform_indices = @transform_3, window_bounds = array<i64: 256, 128>}]} {
    %c0 = arith.constant 0 : index
    %c0_0 = arith.constant 0 : index
    %0 = vector.load %arg1[%c0, %c0_0] : memref<256x1728xbf16, #tpu.memory_space<vmem>>, vector<256x1728xbf16>
    %c0_1 = arith.constant 0 : index
    %c0_2 = arith.constant 0 : index
    %1 = vector.load %arg2[%c0_1, %c0_2] : memref<1728x128xbf16, #tpu.memory_space<vmem>>, vector<1728x128xbf16>
    %cst = arith.constant dense<0.000000e+00> : vector<256x128xf32>
    %2 = tpu.matmul %0, %1, %cst {dimension_numbers = #tpu.dot_dimension_numbers<[1], [0], [0], [1], [0, 0, 1, 1], [], []>} : vector<256x1728xbf16>, vector<1728x128xbf16>, vector<256x128xf32> -> vector<256x128xf32>
    %c0_3 = arith.constant 0 : index
    %c0_4 = arith.constant 0 : index
    %3 = vector.load %arg3[%c0_3, %c0_4] : memref<1x128xf32, #tpu.memory_space<vmem>>, vector<1x128xf32>
    %4 = vector.broadcast %3 : vector<1x128xf32> to vector<256x128xf32>
    %5 = arith.addf %2, %4 : vector<256x128xf32>
    %cst_5 = arith.constant 0.000000e+00 : f32
    %6 = vector.broadcast %cst_5 : f32 to vector<256x128xf32>
    %7 = arith.maximumf %5, %6 : vector<256x128xf32>
    %8 = arith.truncf %7 : vector<256x128xf32> to vector<256x128xbf16>
    %c0_6 = arith.constant 0 : index
    %c0_7 = arith.constant 0 : index
    %9 = vector.load %arg4[%c0_6, %c0_7] : memref<256x128xbf16, #tpu.memory_space<vmem>>, vector<256x128xbf16>
    tpu.vector_store %arg4[%c0_6, %c0_7], %8 {strides = array<i32>} : memref<256x128xbf16, #tpu.memory_space<vmem>>, vector<256x128xbf16>,
    return
  }
  func.func @transform_0(%arg0: i32) -> (i32, i32) {
    %c0_i32 = arith.constant 0 : i32
    %c0_i32_0 = arith.constant 0 : i32
    return %arg0, %c0_i32 : i32, i32
  }
  func.func @transform_1(%arg0: i32) -> (i32, i32) {
    %c0_i32 = arith.constant 0 : i32
    %c0_i32_0 = arith.constant 0 : i32
    %c0_i32_1 = arith.constant 0 : i32
    return %c0_i32, %c0_i32_0 : i32, i32
  }
  func.func @transform_2(%arg0: i32) -> (i32, i32) {
    %c0_i32 = arith.constant 0 : i32
    %c0_i32_0 = arith.constant 0 : i32
    %c0_i32_1 = arith.constant 0 : i32
    return %c0_i32, %c0_i32_0 : i32, i32
  }
  func.func @transform_3(%arg0: i32) -> (i32, i32) {
    %c0_i32 = arith.constant 0 : i32
    %c0_i32_0 = arith.constant 0 : i32
    return %arg0, %c0_i32 : i32, i32
  }
}

module attributes {stable_mosaic.version = 11 : i64} {
  func.func @_conv_bn_shortcut_relu_kernel(%arg0: i32, %arg1: memref<256x3456xbf16, #tpu.memory_space<vmem>>, %arg2: memref<3456x128xbf16, #tpu.memory_space<vmem>>, %arg3: memref<1x128xf32, #tpu.memory_space<vmem>>, %arg4: memref<256x64xbf16, #tpu.memory_space<vmem>>, %arg5: memref<64x128xbf16, #tpu.memory_space<vmem>>, %arg6: memref<1x128xf32, #tpu.memory_space<vmem>>, %arg7: memref<256x128xf32, #tpu.memory_space<vmem>>) attributes {dimension_semantics = [#tpu.dimension_semantics<parallel>], iteration_bounds = array<i64: 4>, scalar_prefetch = 0 : i64, scratch_operands = 0 : i64, tpu.core_type = #tpu.core_type<tc>, window_params = [{transform_indices = @transform_0, window_bounds = array<i64: 256, 3456>}, {pipeline_mode = #tpu.pipeline_mode<synchronous>, transform_indices = @transform_1, window_bounds = array<i64: 3456, 128>}, {pipeline_mode = #tpu.pipeline_mode<synchronous>, transform_indices = @transform_2, window_bounds = array<i64: 1, 128>}, {transform_indices = @transform_3, window_bounds = array<i64: 256, 64>}, {pipeline_mode = #tpu.pipeline_mode<synchronous>, transform_indices = @transform_4, window_bounds = array<i64: 64, 128>}, {pipeline_mode = #tpu.pipeline_mode<synchronous>, transform_indices = @transform_5, window_bounds = array<i64: 1, 128>}, {transform_indices = @transform_6, window_bounds = array<i64: 256, 128>}]} {
    %c0 = arith.constant 0 : index
    %c0_0 = arith.constant 0 : index
    %0 = vector.load %arg1[%c0, %c0_0] : memref<256x3456xbf16, #tpu.memory_space<vmem>>, vector<256x3456xbf16>
    %c0_1 = arith.constant 0 : index
    %c0_2 = arith.constant 0 : index
    %1 = vector.load %arg2[%c0_1, %c0_2] : memref<3456x128xbf16, #tpu.memory_space<vmem>>, vector<3456x128xbf16>
    %cst = arith.constant dense<0.000000e+00> : vector<256x128xf32>
    %2 = tpu.matmul %0, %1, %cst {dimension_numbers = #tpu.dot_dimension_numbers<[1], [0], [0], [1], [0, 0, 1, 1], [], []>} : vector<256x3456xbf16>, vector<3456x128xbf16>, vector<256x128xf32> -> vector<256x128xf32>
    %c0_3 = arith.constant 0 : index
    %c0_4 = arith.constant 0 : index
    %3 = vector.load %arg4[%c0_3, %c0_4] : memref<256x64xbf16, #tpu.memory_space<vmem>>, vector<256x64xbf16>
    %c0_5 = arith.constant 0 : index
    %c0_6 = arith.constant 0 : index
    %4 = vector.load %arg5[%c0_5, %c0_6] : memref<64x128xbf16, #tpu.memory_space<vmem>>, vector<64x128xbf16>
    %cst_7 = arith.constant dense<0.000000e+00> : vector<256x128xf32>
    %5 = tpu.matmul %3, %4, %cst_7 {dimension_numbers = #tpu.dot_dimension_numbers<[1], [0], [0], [1], [0, 0, 1, 1], [], []>} : vector<256x64xbf16>, vector<64x128xbf16>, vector<256x128xf32> -> vector<256x128xf32>
    %c0_8 = arith.constant 0 : index
    %c0_9 = arith.constant 0 : index
    %6 = vector.load %arg3[%c0_8, %c0_9] : memref<1x128xf32, #tpu.memory_space<vmem>>, vector<1x128xf32>
    %7 = vector.broadcast %6 : vector<1x128xf32> to vector<256x128xf32>
    %8 = arith.addf %2, %7 : vector<256x128xf32>
    %9 = arith.addf %8, %5 : vector<256x128xf32>
    %c0_10 = arith.constant 0 : index
    %c0_11 = arith.constant 0 : index
    %10 = vector.load %arg6[%c0_10, %c0_11] : memref<1x128xf32, #tpu.memory_space<vmem>>, vector<1x128xf32>
    %11 = vector.broadcast %10 : vector<1x128xf32> to vector<256x128xf32>
    %12 = arith.addf %9, %11 : vector<256x128xf32>
    %cst_12 = arith.constant 0.000000e+00 : f32
    %13 = vector.broadcast %cst_12 : f32 to vector<256x128xf32>
    %14 = arith.maximumf %12, %13 : vector<256x128xf32>
    %c0_13 = arith.constant 0 : index
    %c0_14 = arith.constant 0 : index
    %15 = vector.load %arg7[%c0_13, %c0_14] : memref<256x128xf32, #tpu.memory_space<vmem>>, vector<256x128xf32>
    tpu.vector_store %arg7[%c0_13, %c0_14], %14 {strides = array<i32>} : memref<256x128xf32, #tpu.memory_space<vmem>>, vector<256x128xf32>,
    return
  }
  func.func @transform_0(%arg0: i32) -> (i32, i32) {
    %c0_i32 = arith.constant 0 : i32
    %c0_i32_0 = arith.constant 0 : i32
    return %arg0, %c0_i32 : i32, i32
  }
  func.func @transform_1(%arg0: i32) -> (i32, i32) {
    %c0_i32 = arith.constant 0 : i32
    %c0_i32_0 = arith.constant 0 : i32
    %c0_i32_1 = arith.constant 0 : i32
    return %c0_i32, %c0_i32_0 : i32, i32
  }
  func.func @transform_2(%arg0: i32) -> (i32, i32) {
    %c0_i32 = arith.constant 0 : i32
    %c0_i32_0 = arith.constant 0 : i32
    %c0_i32_1 = arith.constant 0 : i32
    return %c0_i32, %c0_i32_0 : i32, i32
  }
  func.func @transform_3(%arg0: i32) -> (i32, i32) {
    %c0_i32 = arith.constant 0 : i32
    %c0_i32_0 = arith.constant 0 : i32
    return %arg0, %c0_i32 : i32, i32
  }
  func.func @transform_4(%arg0: i32) -> (i32, i32) {
    %c0_i32 = arith.constant 0 : i32
    %c0_i32_0 = arith.constant 0 : i32
    %c0_i32_1 = arith.constant 0 : i32
    return %c0_i32, %c0_i32_0 : i32, i32
  }
  func.func @transform_5(%arg0: i32) -> (i32, i32) {
    %c0_i32 = arith.constant 0 : i32
    %c0_i32_0 = arith.constant 0 : i32
    %c0_i32_1 = arith.constant 0 : i32
    return %c0_i32, %c0_i32_0 : i32, i32
  }
  func.func @transform_6(%arg0: i32) -> (i32, i32) {
    %c0_i32 = arith.constant 0 : i32
    %c0_i32_0 = arith.constant 0 : i32
    return %arg0, %c0_i32 : i32, i32
  }
}

</mosaic_0001>

<bundles_post_ra>
// kernel: octree_resblock2.2
= control target key start
LH: loop header
LB: loop body
LE: loop exit
PB: predicated region body
PF: predicated region fallthrough
CT: control target
= control target key end

     0   :  { %s5491_s12 = smov 0   ;;  %s6433_s0 = inlined_call_operand.vmem [shape: bf16[1024,1728], index: 0, kind: input, shape index: {}]   ;;  %s6434_s1 = inlined_call_operand.vmem [shape: bf16[1728,128], index: 1, kind: input, shape index: {}]   ;;  %s6435_s2 = inlined_call_operand.vmem [shape: f32[1,128], index: 2, kind: input, shape index: {}]   ;;  %s6436_s3 = inlined_call_operand.vmem [shape: bf16[1024,128], index: 3, kind: output, shape index: {}]  }
   0x1 LB: > { %s3801_s13 = sadd.s32 4294967295, %s5468_s12   ;;  %p3805_p0 = scmp.ge.s32.totalorder %s5468_s12, 1  ;;  %s5468_s12 = sphi %s5491_s12, %s13_s12  }
   0x2   : > { %p139_p1 = scmp.lt.s32.totalorder %s5468_s12, 5 }
   0x4   : > { %p140_p2 = pnand %p3805_p0, %p139_p1 }
   0x5   : > { %s3806_s16 = sshll.u32 (!%p140_p2), %s3801_s13, 5 }
   0x6   : > { %143 = sbr.rel (%p140_p2) target bundleno = 694 (0x2b6), region = 32  ;;  %p165_p3 = scmp.lt.s32.totalorder (!%p140_p2), %s3806_s16, 127 }
   0xb   : > { %v5018_v0 = vld [vmem:[%s6434_s1 + $0x78] sm:$0xff]   ;;  %v5020_v2 = vld [vmem:[%s6434_s1 + $0x70] sm:$0xff]   ;;  %v5022_v4 = vld [vmem:[%s6434_s1 + $0x68] sm:$0xff]   ;;  %s6438_s16 = smov (!%p165_p3, %s3806_s16), 127  ;;  %vm2377_vm0 = vcmask 523264  }
   0xc   : > { %v5019_v1 = vld [vmem:[%s6434_s1 + $0x38] sm:$0xff]   ;;  %4992 = vmatprep.subr.bf16.mxu1 %v5018_v0  ;;  %4320 = vmatprep.subr.bf16.mxu0 %v5018_v0  ;;  %v5021_v3 = vld [vmem:[%s6434_s1 + $0x30] sm:$0xff]   ;;  %v5023_v5 = vld [vmem:[%s6434_s1 + $0x28] sm:$0xff]   ;;  %s5008_s29 = smul.u32 56, %s6438_s16 }
   0xd   : > { %5000 = vmatpush3.bf16.msra.mxu1 %v5019_v1  ;;  %4321 = vmatpush3.bf16.msra.mxu0 %v5019_v1  ;;  %v5024_v6 = vld [vmem:[%s6434_s1 + $0x60] sm:$0xff]   ;;  %v5026_v8 = vld [vmem:[%s6434_s1 + $0x58] sm:$0xff]   ;;  %v5028_v10 = vld [vmem:[%s6434_s1 + $0x50] sm:$0xff]  }
   0xe   : > { %4993 = vmatprep.subr.bf16.mxu1 %v5020_v2  ;;  %4322 = vmatprep.subr.bf16.mxu0 %v5020_v2  ;;  %v5025_v7 = vld [vmem:[%s6434_s1 + $0x20] sm:$0xff]   ;;  %s5532_s9 = scalar_lea.vmem %s6433_s0, %s5008_s29  ;;  %v5027_v9 = vld [vmem:[%s6434_s1 + $0x18] sm:$0xff]   ;;  %v5029_v13 = vld [vmem:[%s6434_s1 + $0x10] sm:$0xff]  }
   0xf   : > { %v5036_v11 = vld [vmem:[%s5532_s9 + $0x384] ss:$56 sps:$4 sm:$0xff]   ;;  %v5030_v14 = vld [vmem:[%s6434_s1 + $0x48] sm:$0xff]   ;;  %v5034_v19 = vld [vmem:[%s5532_s9 + $0x380] ss:$56 sps:$4 sm:$0xff]  }
  0x10   : > { %v5039_v12 = vld [vmem:[%s5532_s9 + $0x4] ss:$56 sps:$4 sm:$0xff]   ;;  %2522 = vmatprep.mubr.bf16.mxu1 %v5036_v11  ;;  %v5031_v15 = vld [vmem:[%s6434_s1 + $0x8] sm:$0xff]   ;;  %v5037_v21 = vld [vmem:[%s5532_s9] ss:$56 sps:$4 sm:$0xff]  }
  0x11   : > { %5001 = vmatpush3.bf16.msra.mxu1 %v5021_v3  ;;  %4323 = vmatpush3.bf16.msra.mxu0 %v5021_v3  ;;  %v5032_v16 = vld [vmem:[%s6434_s1 + $0x40] sm:$0xff]   ;;  %v5040_v18 = vld [vmem:[%s6434_s1 + $0xf8] sm:$0xff]   ;;  %v5043_v23 = vld [vmem:[%s5532_s9 + $0x3f4] ss:$56 sps:$4 sm:$0xff]  }
  0x12   : > { %4994 = vmatprep.subr.bf16.mxu1 %v5022_v4  ;;  %4324 = vmatprep.subr.bf16.mxu0 %v5022_v4  ;;  %v5033_v17 = vld [vmem:[%s6434_s1] sm:$0xff]   ;;  %v5042_v20 = vld [vmem:[%s6434_s1 + $0x178] sm:$0xff]   ;;  %v5046_v25 = vld [vmem:[%s5532_s9 + $0x74] ss:$56 sps:$4 sm:$0xff]  }
  0x13   : > { %2458 = vmatprep.mubr.bf16.mxu0 %v5039_v12  ;;  %v5041_v22 = vld [vmem:[%s6434_s1 + $0xb8] sm:$0xff]   ;;  %v5049_v26 = vld [vmem:[%s6434_s1 + $0xf0] sm:$0xff]   ;;  %v5059_v32 = vld [vmem:[%s6434_s1 + $0xe8] sm:$0xff]  }
  0x14   : > { %v5045_v24 = vld [vmem:[%s6434_s1 + $0x138] sm:$0xff]   ;;  %v5052_v27 = vld [vmem:[%s6434_s1 + $0x170] sm:$0xff]   ;;  %v5062_v34 = vld [vmem:[%s6434_s1 + $0x168] sm:$0xff]  }
  0x15   : > { %5002 = vmatpush3.bf16.msra.mxu1 %v5023_v5  ;;  %4325 = vmatpush3.bf16.msra.mxu0 %v5023_v5  ;;  %v5051_v28 = vld [vmem:[%s6434_s1 + $0xb0] sm:$0xff]   ;;  %v5053_v33 = vld [vmem:[%s5532_s9 + $0x464] ss:$56 sps:$4 sm:$0xff]   ;;  %v5061_v36 = vld [vmem:[%s6434_s1 + $0xa8] sm:$0xff]  }
  0x16   : > { %4995 = vmatprep.subr.bf16.mxu1 %v5024_v6  ;;  %4326 = vmatprep.subr.bf16.mxu0 %v5024_v6  ;;  %v5055_v29 = vld [vmem:[%s6434_s1 + $0x130] sm:$0xff]   ;;  %v5056_v35 = vld [vmem:[%s5532_s9 + $0xe4] ss:$56 sps:$4 sm:$0xff]   ;;  %v5065_v37 = vld [vmem:[%s6434_s1 + $0x128] sm:$0xff]  }
  0x17   : > { %v5048_v30 = vld [vmem:[%s5532_s9 + $0x3f0] ss:$56 sps:$4 sm:$0xff]   ;;  %v5069_v38 = vld [vmem:[%s6434_s1 + $0xe0] sm:$0xff]   ;;  %v5063_v44 = vld [vmem:[%s5532_s9 + $0x4d4] ss:$56 sps:$4 sm:$0xff]  }
  0x18   : > { %v5050_v31 = vld [vmem:[%s5532_s9 + $0x70] ss:$56 sps:$4 sm:$0xff]   ;;  %v5072_v39 = vld [vmem:[%s6434_s1 + $0x160] sm:$0xff]   ;;  %v5079_v45 = vld [vmem:[%s6434_s1 + $0xd8] sm:$0xff]  }
  0x19   : > { %5003 = vmatpush3.bf16.msra.mxu1 %v5025_v7  ;;  %4327 = vmatpush3.bf16.msra.mxu0 %v5025_v7  ;;  %v5058_v40 = vld [vmem:[%s5532_s9 + $0x460] ss:$56 sps:$4 sm:$0xff]   ;;  %v5066_v46 = vld [vmem:[%s5532_s9 + $0x154] ss:$56 sps:$4 sm:$0xff]   ;;  %v5068_v50 = vld [vmem:[%s5532_s9 + $0x4d0] ss:$56 sps:$4 sm:$0xff]  }
  0x1a   : > { %4996 = vmatprep.subr.bf16.mxu1 %v5026_v8  ;;  %4328 = vmatprep.subr.bf16.mxu0 %v5026_v8  ;;  %v5060_v41 = vld [vmem:[%s5532_s9 + $0xe0] ss:$56 sps:$4 sm:$0xff]   ;;  %v5070_v51 = vld [vmem:[%s5532_s9 + $0x150] ss:$56 sps:$4 sm:$0xff]   ;;  %v5073_v53 = vld [vmem:[%s5532_s9 + $0x544] ss:$56 sps:$4 sm:$0xff]  }
  0x1b   : > { %v5071_v42 = vld [vmem:[%s6434_s1 + $0xa0] sm:$0xff]   ;;  %v5081_v47 = vld [vmem:[%s6434_s1 + $0x98] sm:$0xff]   ;;  %v5089_v52 = vld [vmem:[%s6434_s1 + $0xd0] sm:$0xff]  }
  0x1c   : > { %v5075_v43 = vld [vmem:[%s6434_s1 + $0x120] sm:$0xff]   ;;  %v5082_v48 = vld [vmem:[%s6434_s1 + $0x158] sm:$0xff]   ;;  %v5091_v54 = vld [vmem:[%s6434_s1 + $0x90] sm:$0xff]  }
  0x1d   : > { %5004 = vmatpush3.bf16.msra.mxu1 %v5027_v9  ;;  %4329 = vmatpush3.bf16.msra.mxu0 %v5027_v9  ;;  %v5085_v49 = vld [vmem:[%s6434_s1 + $0x118] sm:$0xff]   ;;  %v5092_v55 = vld [vmem:[%s6434_s1 + $0x150] sm:$0xff]   ;;  %v5099_v58 = vld [vmem:[%s6434_s1 + $0xc8] sm:$0xff]  }
  0x1e   : > { %4997 = vmatprep.subr.bf16.mxu1 %v5028_v10  ;;  %4330 = vmatprep.subr.bf16.mxu0 %v5028_v10  ;;  %v5076_v56 = vld [vmem:[%s5532_s9 + $0x1c4] ss:$56 sps:$4 sm:$0xff]   ;;  %v5095_v57 = vld [vmem:[%s6434_s1 + $0x110] sm:$0xff]   ;;  %v5078_v59 = vld [vmem:[%s5532_s9 + $0x540] ss:$56 sps:$4 sm:$0xff]  }
  0x1f   : > { %v5080_v60 = vld [vmem:[%s5532_s9 + $0x1c0] ss:$56 sps:$4 sm:$0xff]   ;;  %v5101_v61 = vld [vmem:[%s6434_s1 + $0x88] sm:$0xff]   ;;  %v5093_v8 = vld [vmem:[%s5532_s9 + $0x624] ss:$56 sps:$4 sm:$0xff]  }
  0x20   : > { %v5083_v62 = vld [vmem:[%s5532_s9 + $0x5b4] ss:$56 sps:$4 sm:$0xff]   ;;  %v5109_v2 = vld [vmem:[%s6434_s1 + $0xc0] sm:$0xff]   ;;  %v5088_v6 = vld [vmem:[%s5532_s9 + $0x5b0] ss:$56 sps:$4 sm:$0xff]  }
  0x21   : > { %5005 = vmatpush3.bf16.msra.mxu1 %v5029_v13  ;;  %4331 = vmatpush3.bf16.msra.mxu0 %v5029_v13  ;;  %v5102_v63 = vld [vmem:[%s6434_s1 + $0x148] sm:$0xff]   ;;  %v5111_v3 = vld [vmem:[%s6434_s1 + $0x80] sm:$0xff]   ;;  %v5120_v10 = vld [vmem:[%s6434_s1 + $0x1f8] sm:$0xff]  }
  0x22   : > { %4998 = vmatprep.subr.bf16.mxu1 %v5030_v14  ;;  %4332 = vmatprep.subr.bf16.mxu0 %v5030_v14  ;;  %v5086_v0 = vld [vmem:[%s5532_s9 + $0x234] ss:$56 sps:$4 sm:$0xff]   ;;  %v5112_v4 = vld [vmem:[%s6434_s1 + $0x140] sm:$0xff]   ;;  %v5090_v7 = vld [vmem:[%s5532_s9 + $0x230] ss:$56 sps:$4 sm:$0xff]  }
  0x23   : > { %v5105_v1 = vld [vmem:[%s6434_s1 + $0x108] sm:$0xff]   ;;  %v5113_v5 = vld [vmem:[%s6434_s1 + $0x100] sm:$0xff]   ;;  %v5122_v11 = vld [vmem:[%s6434_s1 + $0x278] sm:$0xff]  }
  0x24   : > { %v5096_v9 = vld [vmem:[%s5532_s9 + $0x2a4] ss:$56 sps:$4 sm:$0xff]   ;;  %v5098_v12 = vld [vmem:[%s5532_s9 + $0x620] ss:$56 sps:$4 sm:$0xff]   ;;  %v5103_v14 = vld [vmem:[%s5532_s9 + $0x694] ss:$56 sps:$4 sm:$0xff]  }
  0x25   : > { %5006 = vmatpush3.bf16.msra.mxu1 %v5031_v15  ;;  %4333 = vmatpush3.bf16.msra.mxu0 %v5031_v15  ;;  %v5100_v13 = vld [vmem:[%s5532_s9 + $0x2a0] ss:$56 sps:$4 sm:$0xff]   ;;  %v5106_v15 = vld [vmem:[%s5532_s9 + $0x314] ss:$56 sps:$4 sm:$0xff]  }
  0x26   : > { %4999 = vmatprep.subr.bf16.mxu1 %v5032_v16  ;;  %4334 = vmatprep.subr.bf16.mxu0 %v5032_v16  ;;  %v5108_v16 = vld [vmem:[%s5532_s9 + $0x690] ss:$56 sps:$4 sm:$0xff]  }
  0x29   : > { %5007 = vmatpush3.bf16.msra.mxu1 %v5033_v17  ;;  %4335 = vmatpush3.bf16.msra.mxu0 %v5033_v17  ;;  %v5110_v17 = vld [vmem:[%s5532_s9 + $0x310] ss:$56 sps:$4 sm:$0xff]  }
  0x2a   : > { %4432 = vmatprep.subr.bf16.mxu1 %v5040_v18  ;;  %4544 = vmatprep.subr.bf16.mxu0 %v5042_v20  ;;  %v5116_v18 = vld [vmem:[%s5532_s9 + $0xc] ss:$56 sps:$4 sm:$0xff]   ;;  %v5114_v20 = vld [vmem:[%s5532_s9 + $0x8] ss:$56 sps:$4 sm:$0xff]  }
  0x2c   : > { %2523 = vmatmul.mubr.bf16.vlgmr.msra.gmra.mxu1 %v5034_v19  ;;  %2459 = vmatmul.mubr.bf16.vlgmr.msra.gmra.mxu0 %v5037_v21  ;;  %v5119_v19 = vld [vmem:[%s5532_s9 + $0x14] ss:$56 sps:$4 sm:$0xff]   ;;  %v5117_v21 = vld [vmem:[%s5532_s9 + $0x10] ss:$56 sps:$4 sm:$0xff]  }
  0x2d   : > { %4433 = vmatpush3.bf16.msra.mxu1 %v5041_v22  ;;  %2530 = vmatprep.mubr.bf16.mxu1 %v5043_v23  ;;  %v5121_v22 = vld [vmem:[%s6434_s1 + $0x1b8] sm:$0xff]  }
  0x2e   : > { %4545 = vmatpush3.bf16.msra.mxu0 %v5045_v24  ;;  %2466 = vmatprep.mubr.bf16.mxu0 %v5046_v25  ;;  %v5123_v23 = vld [vmem:[%s5532_s9 + $0x7c] ss:$56 sps:$4 sm:$0xff]  }
  0x2f   : > { %4434 = vmatprep.subr.bf16.mxu1 %v5049_v26  ;;  %4546 = vmatprep.subr.bf16.mxu0 %v5052_v27  ;;  %v5125_v24 = vld [vmem:[%s6434_s1 + $0x238] sm:$0xff]   ;;  %v5135_v26 = vld [vmem:[%s6434_s1 + $0x1f0] sm:$0xff]  }
  0x30   : > { %v5127_v25 = vld [vmem:[%s5532_s9 + $0x84] ss:$56 sps:$4 sm:$0xff]   ;;  %v5138_v27 = vld [vmem:[%s6434_s1 + $0x270] sm:$0xff]  }
  0x31   : > { %4435 = vmatpush3.bf16.msra.mxu1 %v5051_v28  ;;  %v5137_v28 = vld [vmem:[%s6434_s1 + $0x1b0] sm:$0xff]  }
  0x32   : > { %4547 = vmatpush3.bf16.msra.mxu0 %v5055_v29  ;;  %4436 = vmatprep.subr.bf16.mxu1 %v5059_v32  ;;  %v5126_v29 = vld [vmem:[%s5532_s9 + $0x78] ss:$56 sps:$4 sm:$0xff]   ;;  %v5151_v32 = vld [vmem:[%s6434_s1 + $0x1e8] sm:$0xff]  }
  0x33   : > { %4548 = vmatprep.subr.bf16.mxu0 %v5062_v34  ;;  %v5133_v34 = vld [vmem:[%s5532_s9 + $0xf4] ss:$56 sps:$4 sm:$0xff]  }
  0x34   : > { %2531 = vmatmul.mubr.bf16.gmra.mxu1 %v5048_v30  ;;  %2467 = vmatmul.mubr.bf16.gmra.mxu0 %v5050_v31  ;;  %v5129_v30 = vld [vmem:[%s5532_s9 + $0x80] ss:$56 sps:$4 sm:$0xff]   ;;  %v5141_v31 = vld [vmem:[%s6434_s1 + $0x230] sm:$0xff]  }
  0x35   : > { %2538 = vmatprep.mubr.bf16.mxu1 %v5053_v33  ;;  %2474 = vmatprep.mubr.bf16.mxu0 %v5056_v35  ;;  %v5130_v33 = vld [vmem:[%s5532_s9 + $0xec] ss:$56 sps:$4 sm:$0xff]  }
  0x36   : > { %4437 = vmatpush3.bf16.msra.mxu1 %v5061_v36  ;;  %4549 = vmatpush3.bf16.msra.mxu0 %v5065_v37  ;;  %v5154_v35 = vld [vmem:[%s6434_s1 + $0x268] sm:$0xff]  }
  0x37   : > { %4438 = vmatprep.subr.bf16.mxu1 %v5069_v38  ;;  %4550 = vmatprep.subr.bf16.mxu0 %v5072_v39  ;;  %v5153_v36 = vld [vmem:[%s6434_s1 + $0x1a8] sm:$0xff]   ;;  %v5167_v38 = vld [vmem:[%s6434_s1 + $0x1e0] sm:$0xff]  }
  0x38   : > { %v5157_v37 = vld [vmem:[%s6434_s1 + $0x228] sm:$0xff]   ;;  %v5170_v39 = vld [vmem:[%s6434_s1 + $0x260] sm:$0xff]  }
  0x3a   : > { %4439 = vmatpush3.bf16.msra.mxu1 %v5071_v42  ;;  %4551 = vmatpush3.bf16.msra.mxu0 %v5075_v43  ;;  %v5136_v42 = vld [vmem:[%s5532_s9 + $0xf0] ss:$56 sps:$4 sm:$0xff]   ;;  %v5173_v43 = vld [vmem:[%s6434_s1 + $0x220] sm:$0xff]  }
  0x3b   : > { %4440 = vmatprep.subr.bf16.mxu1 %v5079_v45  ;;  %4552 = vmatprep.subr.bf16.mxu0 %v5082_v48  ;;  %v5183_v45 = vld [vmem:[%s6434_s1 + $0x1d8] sm:$0xff]  }
  0x3c   : > { %2539 = vmatmul.mubr.bf16.gmra.mxu1 %v5058_v40  ;;  %2475 = vmatmul.mubr.bf16.gmra.mxu0 %v5060_v41  ;;  %v5169_v40 = vld [vmem:[%s6434_s1 + $0x1a0] sm:$0xff]   ;;  %v5186_v48 = vld [vmem:[%s6434_s1 + $0x258] sm:$0xff]  }
  0x3d   : > { %2546 = vmatprep.mubr.bf16.mxu1 %v5063_v44  ;;  %2482 = vmatprep.mubr.bf16.mxu0 %v5066_v46  ;;  %v5132_v41 = vld [vmem:[%s5532_s9 + $0xe8] ss:$56 sps:$4 sm:$0xff]   ;;  %v5139_v44 = vld [vmem:[%s5532_s9 + $0x15c] ss:$56 sps:$4 sm:$0xff]  }
  0x3e   : > { %4441 = vmatpush3.bf16.msra.mxu1 %v5081_v47  ;;  %4553 = vmatpush3.bf16.msra.mxu0 %v5085_v49  ;;  %v5143_v46 = vld [vmem:[%s5532_s9 + $0x164] ss:$56 sps:$4 sm:$0xff]  }
  0x3f   : > { %4442 = vmatprep.subr.bf16.mxu1 %v5089_v52  ;;  %4554 = vmatprep.subr.bf16.mxu0 %v5092_v55  ;;  %v5185_v47 = vld [vmem:[%s6434_s1 + $0x198] sm:$0xff]   ;;  %v5146_v52 = vld [vmem:[%s5532_s9 + $0x1cc] ss:$56 sps:$4 sm:$0xff]   ;;  %v5201_v55 = vld [vmem:[%s6434_s1 + $0x190] sm:$0xff]  }
  0x40   : > { %v5189_v49 = vld [vmem:[%s6434_s1 + $0x218] sm:$0xff]  }
  0x42   : > { %4443 = vmatpush3.bf16.msra.mxu1 %v5091_v54  ;;  %4555 = vmatpush3.bf16.msra.mxu0 %v5095_v57  ;;  %v5199_v54 = vld [vmem:[%s6434_s1 + $0x1d0] sm:$0xff]  }
  0x43   : > { %4444 = vmatprep.subr.bf16.mxu1 %v5099_v58  ;;  %4556 = vmatprep.subr.bf16.mxu0 %v5102_v63  ;;  %v5205_v57 = vld [vmem:[%s6434_s1 + $0x210] sm:$0xff]   ;;  %v5148_v58 = vld [vmem:[%s5532_s9 + $0x1c8] ss:$56 sps:$4 sm:$0xff]  }
  0x44   : > { %2547 = vmatmul.mubr.bf16.gmra.mxu1 %v5068_v50  ;;  %2483 = vmatmul.mubr.bf16.gmra.mxu0 %v5070_v51  ;;  %v5142_v50 = vld [vmem:[%s5532_s9 + $0x158] ss:$56 sps:$4 sm:$0xff]   ;;  %v5217_v63 = vld [vmem:[%s6434_s1 + $0x188] sm:$0xff]  }
  0x45   : > { %2554 = vmatprep.mubr.bf16.mxu1 %v5073_v53  ;;  %2490 = vmatprep.mubr.bf16.mxu0 %v5076_v56  ;;  %v5145_v51 = vld [vmem:[%s5532_s9 + $0x160] ss:$56 sps:$4 sm:$0xff]   ;;  %v5149_v53 = vld [vmem:[%s5532_s9 + $0x1d4] ss:$56 sps:$4 sm:$0xff]  }
  0x46   : > { %4445 = vmatpush3.bf16.msra.mxu1 %v5101_v61  ;;  %4557 = vmatpush3.bf16.msra.mxu0 %v5105_v1  ;;  %v5202_v56 = vld [vmem:[%s6434_s1 + $0x250] sm:$0xff]   ;;  %v5159_v61 = vld [vmem:[%s5532_s9 + $0x244] ss:$56 sps:$4 sm:$0xff]   ;;  %v5221_v1 = vld [vmem:[%s6434_s1 + $0x208] sm:$0xff]  }
  0x47   : > { %4446 = vmatprep.subr.bf16.mxu1 %v5109_v2  ;;  %4558 = vmatprep.subr.bf16.mxu0 %v5112_v4  ;;  %v5158_v2 = vld [vmem:[%s5532_s9 + $0x238] ss:$56 sps:$4 sm:$0xff]   ;;  %v5162_v4 = vld [vmem:[%s5532_s9 + $0x2ac] ss:$56 sps:$4 sm:$0xff]  }
  0x4a   : > { %4447 = vmatpush3.bf16.msra.mxu1 %v5111_v3  ;;  %4559 = vmatpush3.bf16.msra.mxu0 %v5113_v5  ;;  %v5161_v3 = vld [vmem:[%s5532_s9 + $0x240] ss:$56 sps:$4 sm:$0xff]   ;;  %v5165_v5 = vld [vmem:[%s5532_s9 + $0x2b4] ss:$56 sps:$4 sm:$0xff]  }
  0x4b   : > { %4656 = vmatprep.subr.bf16.mxu1 %v5120_v10  ;;  %4768 = vmatprep.subr.bf16.mxu0 %v5122_v11  ;;  %v5168_v10 = vld [vmem:[%s5532_s9 + $0x2b0] ss:$56 sps:$4 sm:$0xff]   ;;  %v5237_v11 = vld [vmem:[%s6434_s1 + $0x200] sm:$0xff]  }
  0x4c   : > { %2555 = vmatmul.mubr.bf16.gmra.mxu1 %v5078_v59  ;;  %2491 = vmatmul.mubr.bf16.gmra.mxu0 %v5080_v60  ;;  %v5152_v59 = vld [vmem:[%s5532_s9 + $0x1d0] ss:$56 sps:$4 sm:$0xff]   ;;  %v5155_v60 = vld [vmem:[%s5532_s9 + $0x23c] ss:$56 sps:$4 sm:$0xff]  }
  0x4d   : > { %2562 = vmatprep.mubr.bf16.mxu1 %v5083_v62  ;;  %2498 = vmatprep.mubr.bf16.mxu0 %v5086_v0  ;;  %v5215_v62 = vld [vmem:[%s6434_s1 + $0x1c8] sm:$0xff]  }
  0x4e   : > { %v5218_v0 = vld [vmem:[%s6434_s1 + $0x248] sm:$0xff]  }
  0x54   : > { %2563 = vmatmul.mubr.bf16.gmra.mxu1 %v5088_v6  ;;  %2499 = vmatmul.mubr.bf16.gmra.mxu0 %v5090_v7  ;;  %v5231_v6 = vld [vmem:[%s6434_s1 + $0x1c0] sm:$0xff]  }
  0x55   : > { %2570 = vmatprep.mubr.bf16.mxu1 %v5093_v8  ;;  %2506 = vmatprep.mubr.bf16.mxu0 %v5096_v9  ;;  %v5233_v7 = vld [vmem:[%s6434_s1 + $0x180] sm:$0xff]  }
  0x56   : > { %v5234_v8 = vld [vmem:[%s6434_s1 + $0x240] sm:$0xff]  }
  0x57   : > { %v5164_v9 = vld [vmem:[%s5532_s9 + $0x2a8] ss:$56 sps:$4 sm:$0xff]  }
  0x5c   : > { %2571 = vmatmul.mubr.bf16.gmra.mxu1 %v5098_v12  ;;  %2507 = vmatmul.mubr.bf16.gmra.mxu0 %v5100_v13  ;;  %v5171_v12 = vld [vmem:[%s5532_s9 + $0x31c] ss:$56 sps:$4 sm:$0xff]  }
  0x5d   : > { %2578 = vmatprep.mubr.bf16.mxu1 %v5103_v14  ;;  %2514 = vmatprep.mubr.bf16.mxu0 %v5106_v15  ;;  %v5175_v13 = vld [vmem:[%s5532_s9 + $0x324] ss:$56 sps:$4 sm:$0xff]   ;;  %v5470_v14 = vmov 0  }
  0x5e   : > { %v5248_v15 = vld [vmem:[%s6434_s1 + $0x2f8] sm:$0xff]  }
  0x64   : > { %2579 = vmatmul.mubr.bf16.gmra.mxu1 %v5108_v16  ;;  %2515 = vmatmul.mubr.bf16.gmra.mxu0 %v5110_v17  ;;  %v5174_v16 = vld [vmem:[%s5532_s9 + $0x318] ss:$56 sps:$4 sm:$0xff]  }
  0x65   : > { %2619 = vmatprep.mubr.bf16.mxu1 %v5116_v18  ;;  %2780 = vmatprep.mubr.bf16.mxu0 %v5119_v19  ;;  %v5177_v17 = vld [vmem:[%s5532_s9 + $0x320] ss:$56 sps:$4 sm:$0xff]   ;;  %v5178_v18 = vld [vmem:[%s5532_s9 + $0x38c] ss:$56 sps:$4 sm:$0xff]  }
  0x66   : > { %v5181_v19 = vld [vmem:[%s5532_s9 + $0x394] ss:$56 sps:$4 sm:$0xff]  }
  0x6c   : > { %2620 = vmatmul.mubr.bf16.vlgmr.msra.gmra.mxu1 %v5114_v20  ;;  %2781 = vmatmul.mubr.bf16.vlgmr.msra.gmra.mxu0 %v5117_v21  ;;  %v5180_v20 = vld [vmem:[%s5532_s9 + $0x388] ss:$56 sps:$4 sm:$0xff]  }
  0x6d   : > { %4657 = vmatpush3.bf16.msra.mxu1 %v5121_v22  ;;  %2627 = vmatprep.mubr.bf16.mxu1 %v5123_v23  ;;  %v5184_v21 = vld [vmem:[%s5532_s9 + $0x390] ss:$56 sps:$4 sm:$0xff]   ;;  %v5187_v22 = vld [vmem:[%s5532_s9 + $0x3fc] ss:$56 sps:$4 sm:$0xff]  }
  0x6e   : > { %4769 = vmatpush3.bf16.msra.mxu0 %v5125_v24  ;;  %2788 = vmatprep.mubr.bf16.mxu0 %v5127_v25  ;;  %v5191_v23 = vld [vmem:[%s5532_s9 + $0x404] ss:$56 sps:$4 sm:$0xff]   ;;  %v5190_v24 = vld [vmem:[%s5532_s9 + $0x3f8] ss:$56 sps:$4 sm:$0xff]  }
  0x6f   : > { %4658 = vmatprep.subr.bf16.mxu1 %v5135_v26  ;;  %4770 = vmatprep.subr.bf16.mxu0 %v5138_v27  ;;  %v5193_v25 = vld [vmem:[%s5532_s9 + $0x400] ss:$56 sps:$4 sm:$0xff]   ;;  %v5194_v26 = vld [vmem:[%s5532_s9 + $0x46c] ss:$56 sps:$4 sm:$0xff]  }
  0x70   : > { %v5197_v27 = vld [vmem:[%s5532_s9 + $0x474] ss:$56 sps:$4 sm:$0xff]  }
  0x71   : > { %4659 = vmatpush3.bf16.msra.mxu1 %v5137_v28  ;;  %v5196_v28 = vld [vmem:[%s5532_s9 + $0x468] ss:$56 sps:$4 sm:$0xff]  }
  0x72   : > { %4771 = vmatpush3.bf16.msra.mxu0 %v5141_v31  ;;  %4660 = vmatprep.subr.bf16.mxu1 %v5151_v32  ;;  %v5207_v31 = vld [vmem:[%s5532_s9 + $0x4e4] ss:$56 sps:$4 sm:$0xff]   ;;  %v5206_v32 = vld [vmem:[%s5532_s9 + $0x4d8] ss:$56 sps:$4 sm:$0xff]  }
  0x73   : > { %4772 = vmatprep.subr.bf16.mxu0 %v5154_v35  ;;  %v5213_v35 = vld [vmem:[%s5532_s9 + $0x554] ss:$56 sps:$4 sm:$0xff]  }
  0x74   : > { %2628 = vmatmul.mubr.bf16.gmra.mxu1 %v5126_v29  ;;  %2789 = vmatmul.mubr.bf16.gmra.mxu0 %v5129_v30  ;;  %v5200_v29 = vld [vmem:[%s5532_s9 + $0x470] ss:$56 sps:$4 sm:$0xff]   ;;  %v5203_v30 = vld [vmem:[%s5532_s9 + $0x4dc] ss:$56 sps:$4 sm:$0xff]  }
  0x75   : > { %2635 = vmatprep.mubr.bf16.mxu1 %v5130_v33  ;;  %2796 = vmatprep.mubr.bf16.mxu0 %v5133_v34  ;;  %v5209_v33 = vld [vmem:[%s5532_s9 + $0x4e0] ss:$56 sps:$4 sm:$0xff]   ;;  %v5210_v34 = vld [vmem:[%s5532_s9 + $0x54c] ss:$56 sps:$4 sm:$0xff]  }
  0x76   : > { %4661 = vmatpush3.bf16.msra.mxu1 %v5153_v36  ;;  %4773 = vmatpush3.bf16.msra.mxu0 %v5157_v37  ;;  %v5212_v36 = vld [vmem:[%s5532_s9 + $0x548] ss:$56 sps:$4 sm:$0xff]  }
  0x77   : > { %4662 = vmatprep.subr.bf16.mxu1 %v5167_v38  ;;  %4774 = vmatprep.subr.bf16.mxu0 %v5170_v39  ;;  %v5216_v37 = vld [vmem:[%s5532_s9 + $0x550] ss:$56 sps:$4 sm:$0xff]   ;;  %v5219_v38 = vld [vmem:[%s5532_s9 + $0x5bc] ss:$56 sps:$4 sm:$0xff]  }
  0x78   : > { %v5223_v39 = vld [vmem:[%s5532_s9 + $0x5c4] ss:$56 sps:$4 sm:$0xff]  }
  0x7a   : > { %4663 = vmatpush3.bf16.msra.mxu1 %v5169_v40  ;;  %4775 = vmatpush3.bf16.msra.mxu0 %v5173_v43  ;;  %v5222_v40 = vld [vmem:[%s5532_s9 + $0x5b8] ss:$56 sps:$4 sm:$0xff]   ;;  %v5229_v43 = vld [vmem:[%s5532_s9 + $0x634] ss:$56 sps:$4 sm:$0xff]  }
  0x7b   : > { %4664 = vmatprep.subr.bf16.mxu1 %v5183_v45  ;;  %4776 = vmatprep.subr.bf16.mxu0 %v5186_v48  ;;  %v5232_v45 = vld [vmem:[%s5532_s9 + $0x630] ss:$56 sps:$4 sm:$0xff]  }
  0x7c   : > { %2636 = vmatmul.mubr.bf16.gmra.mxu1 %v5132_v41  ;;  %2797 = vmatmul.mubr.bf16.gmra.mxu0 %v5136_v42  ;;  %v5225_v41 = vld [vmem:[%s5532_s9 + $0x5c0] ss:$56 sps:$4 sm:$0xff]   ;;  %v5226_v42 = vld [vmem:[%s5532_s9 + $0x62c] ss:$56 sps:$4 sm:$0xff]  }
  0x7d   : > { %2643 = vmatprep.mubr.bf16.mxu1 %v5139_v44  ;;  %2804 = vmatprep.mubr.bf16.mxu0 %v5143_v46  ;;  %v5228_v44 = vld [vmem:[%s5532_s9 + $0x628] ss:$56 sps:$4 sm:$0xff]   ;;  %v5235_v46 = vld [vmem:[%s5532_s9 + $0x69c] ss:$56 sps:$4 sm:$0xff]   ;;  %v5238_v48 = vld [vmem:[%s5532_s9 + $0x698] ss:$56 sps:$4 sm:$0xff]  }
  0x7e   : > { %4665 = vmatpush3.bf16.msra.mxu1 %v5185_v47  ;;  %4777 = vmatpush3.bf16.msra.mxu0 %v5189_v49  ;;  %v5239_v47 = vld [vmem:[%s5532_s9 + $0x6a4] ss:$56 sps:$4 sm:$0xff]   ;;  %v5241_v49 = vld [vmem:[%s5532_s9 + $0x6a0] ss:$56 sps:$4 sm:$0xff]  }
  0x7f   : > { %4666 = vmatprep.subr.bf16.mxu1 %v5199_v54  ;;  %4778 = vmatprep.subr.bf16.mxu0 %v5202_v56  ;;  %v5249_v54 = vld [vmem:[%s6434_s1 + $0x2b8] sm:$0xff]  }
  0x80   : > { %v5252_v56 = vld [vmem:[%s6434_s1 + $0x338] sm:$0xff]  }
  0x82   : > { %4667 = vmatpush3.bf16.msra.mxu1 %v5201_v55  ;;  %4779 = vmatpush3.bf16.msra.mxu0 %v5205_v57  ;;  %v5250_v55 = vld [vmem:[%s5532_s9 + $0x8c] ss:$56 sps:$4 sm:$0xff]  }
  0x83   : > { %4668 = vmatprep.subr.bf16.mxu1 %v5215_v62  ;;  %4780 = vmatprep.subr.bf16.mxu0 %v5218_v0  ;;  %v5254_v57 = vld [vmem:[%s5532_s9 + $0x94] ss:$56 sps:$4 sm:$0xff]   ;;  %v5868_v62 = vld [vmem:[%s6435_s2] ss:$0 sm:$0xff] }
  0x84   : > { %2644 = vmatmul.mubr.bf16.gmra.mxu1 %v5142_v50  ;;  %2805 = vmatmul.mubr.bf16.gmra.mxu0 %v5145_v51  ;;  %v5244_v50 = vld [vmem:[%s5532_s9 + $0x1c] ss:$56 sps:$4 sm:$0xff]   ;;  %v5279_v0 = vld [vmem:[%s6434_s1 + $0x2e8] sm:$0xff]  }
  0x85   : > { %2651 = vmatprep.mubr.bf16.mxu1 %v5146_v52  ;;  %2812 = vmatprep.mubr.bf16.mxu0 %v5149_v53  ;;  %v5247_v51 = vld [vmem:[%s5532_s9 + $0x24] ss:$56 sps:$4 sm:$0xff]   ;;  %v5242_v52 = vld [vmem:[%s5532_s9 + $0x18] ss:$56 sps:$4 sm:$0xff]  }
  0x86   : > { %4669 = vmatpush3.bf16.msra.mxu1 %v5217_v63  ;;  %4781 = vmatpush3.bf16.msra.mxu0 %v5221_v1  ;;  %v5245_v53 = vld [vmem:[%s5532_s9 + $0x20] ss:$56 sps:$4 sm:$0xff]   ;;  %v5265_v63 = vld [vmem:[%s6434_s1 + $0x330] sm:$0xff]  }
  0x87   : > { %4670 = vmatprep.subr.bf16.mxu1 %v5231_v6  ;;  %4782 = vmatprep.subr.bf16.mxu0 %v5234_v8 }
  0x8a   : > { %4671 = vmatpush3.bf16.msra.mxu1 %v5233_v7  ;;  %4783 = vmatpush3.bf16.msra.mxu0 %v5237_v11  ;;  %v5257_v7 = vld [vmem:[%s5532_s9 + $0xfc] ss:$56 sps:$4 sm:$0xff]  }
  0x8b   : > { %3392 = vmatprep.subr.bf16.mxu0 %v5470_v14  ;;  %4880 = vmatprep.subr.bf16.mxu1 %v5248_v15  ;;  %v5260_v11 = vld [vmem:[%s5532_s9 + $0x104] ss:$56 sps:$4 sm:$0xff]  }
  0x8c   : > { %2652 = vmatmul.mubr.bf16.gmra.mxu1 %v5148_v58  ;;  %2813 = vmatmul.mubr.bf16.gmra.mxu0 %v5152_v59  ;;  %v5262_v58 = vld [vmem:[%s6434_s1 + $0x2f0] sm:$0xff]  }
  0x8d   : > { %2659 = vmatprep.mubr.bf16.mxu1 %v5155_v60  ;;  %2820 = vmatprep.mubr.bf16.mxu0 %v5159_v61  ;;  %v5264_v59 = vld [vmem:[%s6434_s1 + $0x2b0] sm:$0xff]  }
  0x94   : > { %2660 = vmatmul.mubr.bf16.gmra.mxu1 %v5158_v2  ;;  %2821 = vmatmul.mubr.bf16.gmra.mxu0 %v5161_v3  ;;  %v5253_v3 = vld [vmem:[%s5532_s9 + $0x88] ss:$56 sps:$4 sm:$0xff]  }
  0x95   : > { %2667 = vmatprep.mubr.bf16.mxu1 %v5162_v4  ;;  %2828 = vmatprep.mubr.bf16.mxu0 %v5165_v5  ;;  %v5256_v4 = vld [vmem:[%s5532_s9 + $0x90] ss:$56 sps:$4 sm:$0xff]  }
  0x9c   : > { %2668 = vmatmul.mubr.bf16.gmra.mxu1 %v5164_v9  ;;  %2829 = vmatmul.mubr.bf16.gmra.mxu0 %v5168_v10 }
  0x9d   : > { %2675 = vmatprep.mubr.bf16.mxu1 %v5171_v12  ;;  %2836 = vmatprep.mubr.bf16.mxu0 %v5175_v13  ;;  %v5272_v12 = vld [vmem:[%s6434_s1 + $0x328] sm:$0xff]  }
  0xa4   : > { %2676 = vmatmul.mubr.bf16.gmra.mxu1 %v5174_v16  ;;  %2837 = vmatmul.mubr.bf16.gmra.mxu0 %v5177_v17  ;;  %v5280_v16 = vld [vmem:[%s6434_s1 + $0x2a8] sm:$0xff]   ;;  %v5294_v17 = vld [vmem:[%s6434_s1 + $0x2e0] sm:$0xff]  }
  0xa5   : > { %2683 = vmatprep.mubr.bf16.mxu1 %v5178_v18  ;;  %2844 = vmatprep.mubr.bf16.mxu0 %v5181_v19 }
  0xac   : > { %2684 = vmatmul.mubr.bf16.gmra.mxu1 %v5180_v20  ;;  %2845 = vmatmul.mubr.bf16.gmra.mxu0 %v5184_v21 }
  0xad   : > { %2691 = vmatprep.mubr.bf16.mxu1 %v5187_v22  ;;  %2852 = vmatprep.mubr.bf16.mxu0 %v5191_v23  ;;  %v5284_v22 = vld [vmem:[%s6434_s1 + $0x320] sm:$0xff]  }
  0xae   : > { %v5295_v23 = vld [vmem:[%s6434_s1 + $0x2a0] sm:$0xff]  }
  0xb4   : > { %2692 = vmatmul.mubr.bf16.gmra.mxu1 %v5190_v24  ;;  %2853 = vmatmul.mubr.bf16.gmra.mxu0 %v5193_v25  ;;  %v5310_v25 = vld [vmem:[%s6434_s1 + $0x2d8] sm:$0xff]  }
  0xb5   : > { %2699 = vmatprep.mubr.bf16.mxu1 %v5194_v26  ;;  %2860 = vmatprep.mubr.bf16.mxu0 %v5197_v27 }
  0xbc   : > { %2700 = vmatmul.mubr.bf16.gmra.mxu1 %v5196_v28  ;;  %2861 = vmatmul.mubr.bf16.gmra.mxu0 %v5200_v29  ;;  %v5259_v28 = vld [vmem:[%s5532_s9 + $0xf8] ss:$56 sps:$4 sm:$0xff]  }
  0xbd   : > { %2707 = vmatprep.mubr.bf16.mxu1 %v5203_v30  ;;  %2868 = vmatprep.mubr.bf16.mxu0 %v5207_v31  ;;  %v5263_v29 = vld [vmem:[%s5532_s9 + $0x100] ss:$56 sps:$4 sm:$0xff]  }
  0xc4   : > { %2708 = vmatmul.mubr.bf16.gmra.mxu1 %v5206_v32  ;;  %2869 = vmatmul.mubr.bf16.gmra.mxu0 %v5209_v33 }
  0xc5   : > { %2715 = vmatprep.mubr.bf16.mxu1 %v5210_v34  ;;  %2876 = vmatprep.mubr.bf16.mxu0 %v5213_v35  ;;  %v5266_v35 = vld [vmem:[%s5532_s9 + $0x16c] ss:$56 sps:$4 sm:$0xff]  }
  0xcc   : > { %2716 = vmatmul.mubr.bf16.gmra.mxu1 %v5212_v36  ;;  %2877 = vmatmul.mubr.bf16.gmra.mxu0 %v5216_v37  ;;  %v5269_v36 = vld [vmem:[%s5532_s9 + $0x174] ss:$56 sps:$4 sm:$0xff]  }
  0xcd   : > { %2723 = vmatprep.mubr.bf16.mxu1 %v5219_v38  ;;  %2884 = vmatprep.mubr.bf16.mxu0 %v5223_v39  ;;  %v5296_v39 = vld [vmem:[%s6434_s1 + $0x318] sm:$0xff]  }
  0xd4   : > { %2724 = vmatmul.mubr.bf16.gmra.mxu1 %v5222_v40  ;;  %2885 = vmatmul.mubr.bf16.gmra.mxu0 %v5225_v41  ;;  %v5311_v40 = vld [vmem:[%s6434_s1 + $0x298] sm:$0xff]  }
  0xd5   : > { %2731 = vmatprep.mubr.bf16.mxu1 %v5226_v42  ;;  %2892 = vmatprep.mubr.bf16.mxu0 %v5229_v43  ;;  %v5325_v43 = vld [vmem:[%s6434_s1 + $0x2d0] sm:$0xff]  }
  0xdc   : > { %2732 = vmatmul.mubr.bf16.gmra.mxu1 %v5228_v44  ;;  %2893 = vmatmul.mubr.bf16.gmra.mxu0 %v5232_v45 }
  0xdd   : > { %2739 = vmatprep.mubr.bf16.mxu1 %v5235_v46  ;;  %2900 = vmatprep.mubr.bf16.mxu0 %v5239_v47 }
  0xe4   : > { %2740 = vmatmul.mubr.bf16.gmra.mxu1 %v5238_v48  ;;  %2901 = vmatmul.mubr.bf16.gmra.mxu0 %v5241_v49  ;;  %v5303_v49 = vld [vmem:[%s6434_s1 + $0x310] sm:$0xff]  }
  0xe5   : > { %2941 = vmatprep.mubr.bf16.mxu1 %v5244_v50  ;;  %3102 = vmatprep.mubr.bf16.mxu0 %v5247_v51  ;;  %v5326_v50 = vld [vmem:[%s6434_s1 + $0x290] sm:$0xff]  }
  0xec   : > { %v4384_v60 = vpop.f32.mrf.mxu1  ;;  %2942 = vmatmul.mubr.bf16.vlgmr.msra.gmra.mxu1 %v5242_v52  ;;  %v4336_v61 = vpop.f32.mrf.mxu0  ;;  %3103 = vmatmul.mubr.bf16.vlgmr.msra.gmra.mxu0 %v5245_v53  ;;  %v5341_v53 = vld [vmem:[%s6434_s1 + $0x2c8] sm:$0xff]  }
  0xed   : > { %4881 = vmatpush3.bf16.msra.mxu1 %v5249_v54  ;;  %2949 = vmatprep.mubr.bf16.mxu1 %v5250_v55 }
  0xee   : > { %v4385_v1 = vpop.f32.mrf.mxu1  ;;  %v4337_v2 = vpop.f32.mrf.mxu0  ;;  %3393 = vmatpush1.bf16.msra.mxu0 %v5252_v56  ;;  %3110 = vmatprep.mubr.bf16.mxu0 %v5254_v57  ;;  %v5268_v56 = vld [vmem:[%s5532_s9 + $0x168] ss:$56 sps:$4 sm:$0xff]  }
  0xef   : > { %v4386_v5 = vadd.f32 %v4385_v1, %v4384_v60  ;;  %v5878_v6 = vadd.f32 %v4337_v2, %v4336_v61  ;;  %4882 = vmatprep.subr.bf16.mxu1 %v5262_v58  ;;  %3394 = vmatprep.subr.bf16.mxu0 %v5470_v14  ;;  %v5271_v57 = vld [vmem:[%s5532_s9 + $0x170] ss:$56 sps:$4 sm:$0xff]   ;;  %v5278_v60 = vld [vmem:[%s5532_s9 + $0x1e4] ss:$56 sps:$4 sm:$0xff]  }
  0xf0   : > { %v4387_v8 = vpop.f32.mrf.mxu1  ;;  %v4339_v9 = vpop.f32.mrf.mxu0  ;;  %v5342_v1 = vld [vmem:[%s6434_s1 + $0x288] sm:$0xff]  }
  0xf1   : > { %v5883_v10 = vadd.f32 %v4386_v5, %v5868_v62  ;;  %4883 = vmatpush3.bf16.msra.mxu1 %v5264_v59  ;;  %v5275_v59 = vld [vmem:[%s5532_s9 + $0x1dc] ss:$56 sps:$4 sm:$0xff]  }
  0xf2   : > { %v4388_v13 = vpop.f32.mrf.mxu1  ;;  %v4340_v15 = vpop.f32.mrf.mxu0  ;;  %3395 = vmatpush1.bf16.msra.mxu0 %v5265_v63  ;;  %4884 = vmatprep.subr.bf16.mxu1 %v5279_v0  ;;  %v5315_v0 = vld [vmem:[%s6434_s1 + $0x308] sm:$0xff]  }
  0xf3   : > { %v4389_v18 = vadd.f32 %v4388_v13, %v4387_v8  ;;  %v5895_v19 = vadd.f32 %v4340_v15, %v4339_v9  ;;  %3396 = vmatprep.subr.bf16.mxu0 %v5470_v14  ;;  %v5357_v13 = vld [vmem:[%s6434_s1 + $0x280] sm:$0xff]  }
  0xf4   : > { %v4390_v20 = vpop.f32.mrf.mxu1  ;;  %2950 = vmatmul.mubr.bf16.gmra.mxu1 %v5253_v3  ;;  %v4342_v21 = vpop.f32.mrf.mxu0  ;;  %3111 = vmatmul.mubr.bf16.gmra.mxu0 %v5256_v4  ;;  %v5356_v4 = vld [vmem:[%s6434_s1 + $0x2c0] sm:$0xff]  }
  0xf5   : > { %v5905_v24 = vadd.f32 %v4389_v18, %v5868_v62  ;;  %2957 = vmatprep.mubr.bf16.mxu1 %v5257_v7  ;;  %3118 = vmatprep.mubr.bf16.mxu0 %v5260_v11 }
  0xf6   : > { %v4391_v26 = vpop.f32.mrf.mxu1  ;;  %v4343_v27 = vpop.f32.mrf.mxu0  ;;  %3397 = vmatpush1.bf16.msra.mxu0 %v5272_v12  ;;  %4885 = vmatpush3.bf16.msra.mxu1 %v5280_v16  ;;  %v5327_v12 = vld [vmem:[%s6434_s1 + $0x300] sm:$0xff]  }
  0xf7   : > { %v4392_v30 = vadd.f32 %v4391_v26, %v4390_v20  ;;  %v5912_v31 = vadd.f32 %v4343_v27, %v4342_v21  ;;  %3398 = vmatprep.subr.bf16.mxu0 %v5470_v14  ;;  %4886 = vmatprep.subr.bf16.mxu1 %v5294_v17  ;;  %v5273_v20 = vld [vmem:[%s5532_s9 + $0x1d8] ss:$56 sps:$4 sm:$0xff]  }
  0xf8   : > { %v4393_v32 = vpop.f32.mrf.mxu1  ;;  %v4345_v33 = vpop.f32.mrf.mxu0  ;;  %v5276_v21 = vld [vmem:[%s5532_s9 + $0x1e0] ss:$56 sps:$4 sm:$0xff]  }
  0xf9   : > { %v5916_v34 = vadd.f32 %v4392_v30, %v5868_v62 }
  0xfa   : > { %v4394_v37 = vpop.f32.mrf.mxu1  ;;  %v4346_v38 = vpop.f32.mrf.mxu0  ;;  %3399 = vmatpush1.bf16.msra.mxu0 %v5284_v22  ;;  %4887 = vmatpush3.bf16.msra.mxu1 %v5295_v23  ;;  %v5283_v23 = vld [vmem:[%s5532_s9 + $0x24c] ss:$56 sps:$4 sm:$0xff]  }
  0xfb   : > { %v4395_v41 = vadd.f32 %v4394_v37, %v4393_v32  ;;  %v5926_v42 = vadd.f32 %v4346_v38, %v4345_v33  ;;  %3400 = vmatprep.subr.bf16.mxu0 %v5470_v14  ;;  %4888 = vmatprep.subr.bf16.mxu1 %v5310_v25  ;;  %v5287_v25 = vld [vmem:[%s5532_s9 + $0x254] ss:$56 sps:$4 sm:$0xff]  }
  0xfc   : > { %v4396_v44 = vpop.f32.mrf.mxu1  ;;  %2958 = vmatmul.mubr.bf16.gmra.mxu1 %v5259_v28  ;;  %v4348_v45 = vpop.f32.mrf.mxu0  ;;  %3119 = vmatmul.mubr.bf16.gmra.mxu0 %v5263_v29  ;;  %v5334_v28 = vld [vmem:[%s6434_s1 + $0x358] sm:$0xff]   ;;  %v5346_v38 = vld [vmem:[%s6434_s1 + $0x350] sm:$0xff]  }
  0xfd   : > { %v5933_v46 = vadd.f32 %v4395_v41, %v5868_v62  ;;  %2965 = vmatprep.mubr.bf16.mxu1 %v5266_v35  ;;  %3126 = vmatprep.mubr.bf16.mxu0 %v5269_v36 }
  0xfe   : > { %v4397_v47 = vpop.f32.mrf.mxu1  ;;  %v4349_v48 = vpop.f32.mrf.mxu0  ;;  %3401 = vmatpush1.bf16.msra.mxu0 %v5296_v39  ;;  %4889 = vmatpush3.bf16.msra.mxu1 %v5311_v40 }
  0xff   : > { %v4398_v51 = vadd.f32 %v4397_v47, %v4396_v44  ;;  %v5941_v52 = vadd.f32 %v4349_v48, %v4348_v45  ;;  %3402 = vmatprep.subr.bf16.mxu0 %v5470_v14  ;;  %4890 = vmatprep.subr.bf16.mxu1 %v5325_v43  ;;  %v5281_v44 = vld [vmem:[%s5532_s9 + $0x248] ss:$56 sps:$4 sm:$0xff]   ;;  %v5290_v48 = vld [vmem:[%s5532_s9 + $0x2bc] ss:$56 sps:$4 sm:$0xff]  }
 0x100   : > { %v4399_v54 = vpop.f32.mrf.mxu1  ;;  %v4351_v55 = vpop.f32.mrf.mxu0  ;;  %v5285_v45 = vld [vmem:[%s5532_s9 + $0x250] ss:$56 sps:$4 sm:$0xff]  }
 0x101   : > { %v5950_v58 = vadd.f32 %v4398_v51, %v5868_v62 }
 0x102   : > { %v4400_v61 = vpop.f32.mrf.mxu1  ;;  %v4352_v63 = vpop.f32.mrf.mxu0  ;;  %3403 = vmatpush1.bf16.msra.mxu0 %v5303_v49  ;;  %4891 = vmatpush3.bf16.msra.mxu1 %v5326_v50  ;;  %v5293_v49 = vld [vmem:[%s5532_s9 + $0x2c4] ss:$56 sps:$4 sm:$0xff]  }
 0x103   : > { %v4401_v2 = vadd.f32 %v4400_v61, %v4399_v54  ;;  %v5960_v3 = vadd.f32 %v4352_v63, %v4351_v55  ;;  %3404 = vmatprep.subr.bf16.mxu0 %v5470_v14  ;;  %4892 = vmatprep.subr.bf16.mxu1 %v5341_v53  ;;  %v5358_v53 = vld [vmem:[%s6434_s1 + $0x348] sm:$0xff]   ;;  %v5365_v63 = vld [vmem:[%s6434_s1 + $0x340] sm:$0xff]  }
 0x104   : > { %v4402_v5 = vpop.f32.mrf.mxu1  ;;  %2966 = vmatmul.mubr.bf16.gmra.mxu1 %v5268_v56  ;;  %v4354_v7 = vpop.f32.mrf.mxu0  ;;  %3127 = vmatmul.mubr.bf16.gmra.mxu0 %v5271_v57 }
 0x105   : > { %v5967_v8 = vadd.f32 %v4401_v2, %v5868_v62  ;;  %2973 = vmatprep.mubr.bf16.mxu1 %v5275_v59  ;;  %3134 = vmatprep.mubr.bf16.mxu0 %v5278_v60 }
 0x106   : > { %v4403_v9 = vpop.f32.mrf.mxu1  ;;  %v4355_v11 = vpop.f32.mrf.mxu0  ;;  %3405 = vmatpush1.bf16.msra.mxu0 %v5315_v0  ;;  %4893 = vmatpush3.bf16.msra.mxu1 %v5342_v1 }
 0x107   : > { %v4404_v15 = vadd.f32 %v4403_v9, %v4402_v5  ;;  %v5975_v16 = vadd.f32 %v4355_v11, %v4354_v7  ;;  %3406 = vmatprep.subr.bf16.mxu0 %v5470_v14  ;;  %4894 = vmatprep.subr.bf16.mxu1 %v5356_v4  ;;  %v5288_v5 = vld [vmem:[%s5532_s9 + $0x2b8] ss:$56 sps:$4 sm:$0xff]   ;;  %v5299_v11 = vld [vmem:[%s5532_s9 + $0x32c] ss:$56 sps:$4 sm:$0xff]  }
 0x108   : > { %v4405_v17 = vpop.f32.mrf.mxu1  ;;  %v4357_v18 = vpop.f32.mrf.mxu0  ;;  %v5291_v7 = vld [vmem:[%s5532_s9 + $0x2c0] ss:$56 sps:$4 sm:$0xff]  }
 0x109   : > { %v5981_v22 = vadd.f32 %v4404_v15, %v5868_v62 }
 0x10a   : > { %v4406_v26 = vpop.f32.mrf.mxu1  ;;  %v4358_v27 = vpop.f32.mrf.mxu0  ;;  %3407 = vmatpush1.bf16.msra.mxu0 %v5327_v12  ;;  %4895 = vmatpush3.bf16.msra.mxu1 %v5357_v13  ;;  %v5302_v12 = vld [vmem:[%s5532_s9 + $0x334] ss:$56 sps:$4 sm:$0xff]  }
 0x10b   : > { %v4407_v29 = vadd.f32 %v4406_v26, %v4405_v17  ;;  %v5988_v30 = vadd.f32 %v4358_v27, %v4357_v18  ;;  %3416 = vmatprep.subr.bf16.mxu0 %v5470_v14 }
 0x10c   : > { %v4408_v32 = vpop.f32.mrf.mxu1  ;;  %2974 = vmatmul.mubr.bf16.gmra.mxu1 %v5273_v20  ;;  %v4360_v33 = vpop.f32.mrf.mxu0  ;;  %3135 = vmatmul.mubr.bf16.gmra.mxu0 %v5276_v21 }
 0x10d   : > { %v5992_v35 = vadd.f32 %v4407_v29, %v5868_v62  ;;  %2981 = vmatprep.mubr.bf16.mxu1 %v5283_v23  ;;  %3142 = vmatprep.mubr.bf16.mxu0 %v5287_v25 }
 0x10e   : > { %v4409_v36 = vpop.f32.mrf.mxu1  ;;  %v4361_v37 = vpop.f32.mrf.mxu0  ;;  %3417 = vmatpush2.bf16.msra.mxu0 %v5334_v28 }
 0x10f   : > { %v4410_v39 = vadd.f32 %v4409_v36, %v4408_v32  ;;  %v5997_v40 = vadd.f32 %v4361_v37, %v4360_v33  ;;  %3418 = vmatprep.subr.bf16.mxu0 %v5470_v14  ;;  %v5297_v32 = vld [vmem:[%s5532_s9 + $0x328] ss:$56 sps:$4 sm:$0xff]   ;;  %v5306_v37 = vld [vmem:[%s5532_s9 + $0x39c] ss:$56 sps:$4 sm:$0xff]  }
 0x110   : > { %v4411_v41 = vpop.f32.mrf.mxu1  ;;  %v4363_v43 = vpop.f32.mrf.mxu0  ;;  %v5300_v33 = vld [vmem:[%s5532_s9 + $0x330] ss:$56 sps:$4 sm:$0xff]  }
 0x111   : > { %v6003_v47 = vadd.f32 %v4410_v39, %v5868_v62 }
 0x112   : > { %v4412_v50 = vpop.f32.mrf.mxu1  ;;  %v4364_v51 = vpop.f32.mrf.mxu0  ;;  %3419 = vmatpush2.bf16.msra.mxu0 %v5346_v38  ;;  %v5309_v38 = vld [vmem:[%s5532_s9 + $0x3a4] ss:$56 sps:$4 sm:$0xff]  }
 0x113   : > { %v4413_v54 = vadd.f32 %v4412_v50, %v4411_v41  ;;  %v6010_v55 = vadd.f32 %v4364_v51, %v4363_v43  ;;  %3420 = vmatprep.subr.bf16.mxu0 %v5470_v14 }
 0x114   : > { %v4414_v56 = vpop.f32.mrf.mxu1  ;;  %2982 = vmatmul.mubr.bf16.gmra.mxu1 %v5281_v44  ;;  %v4366_v57 = vpop.f32.mrf.mxu0  ;;  %3143 = vmatmul.mubr.bf16.gmra.mxu0 %v5285_v45 }
 0x115   : > { %v6014_v59 = vadd.f32 %v4413_v54, %v5868_v62  ;;  %2989 = vmatprep.mubr.bf16.mxu1 %v5290_v48  ;;  %3150 = vmatprep.mubr.bf16.mxu0 %v5293_v49 }
 0x116   : > { %v4415_v60 = vpop.f32.mrf.mxu1  ;;  %v4367_v61 = vpop.f32.mrf.mxu0  ;;  %3421 = vmatpush2.bf16.msra.mxu0 %v5358_v53 }
 0x117   : > { %v4416_v0 = vadd.f32 %v4415_v60, %v4414_v56  ;;  %v6019_v1 = vadd.f32 %v4367_v61, %v4366_v57  ;;  %3422 = vmatprep.subr.bf16.mxu0 %v5470_v14  ;;  %v5304_v60 = vld [vmem:[%s5532_s9 + $0x398] ss:$56 sps:$4 sm:$0xff]  }
 0x118   : > { %v4417_v2 = vpop.f32.mrf.mxu1  ;;  %v4369_v4 = vpop.f32.mrf.mxu0  ;;  %v5307_v61 = vld [vmem:[%s5532_s9 + $0x3a0] ss:$56 sps:$4 sm:$0xff]  }
 0x119   : > { %v6025_v9 = vadd.f32 %v4416_v0, %v5868_v62  ;;  %v5314_v0 = vld [vmem:[%s5532_s9 + $0x40c] ss:$56 sps:$4 sm:$0xff]  }
 0x11a   : > { %v4418_v13 = vpop.f32.mrf.mxu1  ;;  %v4370_v15 = vpop.f32.mrf.mxu0  ;;  %3423 = vmatpush2.bf16.msra.mxu0 %v5365_v63 }
 0x11b   : > { %v4419_v17 = vadd.f32 %v4418_v13, %v4417_v2  ;;  %v6029_v18 = vadd.f32 %v4370_v15, %v4369_v4  ;;  %v5318_v2 = vld [vmem:[%s5532_s9 + $0x414] ss:$56 sps:$4 sm:$0xff]  }
 0x11c   : > { %v4420_v20 = vpop.f32.mrf.mxu1  ;;  %2990 = vmatmul.mubr.bf16.gmra.mxu1 %v5288_v5  ;;  %v4372_v14 = vpop.f32.mrf.mxu0  ;;  %3151 = vmatmul.mubr.bf16.gmra.mxu0 %v5291_v7 }
 0x11d   : > { %v6032_v21 = vadd.f32 %v4419_v17, %v5868_v62  ;;  %2997 = vmatprep.mubr.bf16.mxu1 %v5299_v11  ;;  %3158 = vmatprep.mubr.bf16.mxu0 %v5302_v12 }
 0x11e   : > { %v4421_v23 = vpop.f32.mrf.mxu1  ;;  %v4373_v25 = vpop.f32.mrf.mxu0 }
 0x11f   : > { %v4422_v26 = vadd.f32 %v4421_v23, %v4420_v20  ;;  %v6034_v27 = vadd.f32 %v4373_v25, %v4372_v14  ;;  %v2461_v14 = vadd.f32 %v5878_v6, %v5868_v62 }
 0x120   : > { %v4423_v28 = vpop.f32.mrf.mxu1  ;;  %v4375_v29 = vpop.f32.mrf.mxu0 }
 0x121   : > { %v6039_v36 = vadd.f32 %v4422_v26, %v5868_v62 }
 0x122   : > { %v4424_v39 = vpop.f32.mrf.mxu1  ;;  %v4376_v41 = vpop.f32.mrf.mxu0 }
 0x123   : > { %v4425_v43 = vadd.f32 %v4424_v39, %v4423_v28  ;;  %v6043_v44 = vadd.f32 %v4376_v41, %v4375_v29  ;;  %v5312_v29 = vld [vmem:[%s5532_s9 + $0x408] ss:$56 sps:$4 sm:$0xff]  }
 0x124   : > { %v4426_v45 = vpop.f32.mrf.mxu1  ;;  %2998 = vmatmul.mubr.bf16.gmra.mxu1 %v5297_v32  ;;  %v4378_v48 = vpop.f32.mrf.mxu0  ;;  %3159 = vmatmul.mubr.bf16.gmra.mxu0 %v5300_v33  ;;  %v5316_v32 = vld [vmem:[%s5532_s9 + $0x410] ss:$56 sps:$4 sm:$0xff]  }
 0x125   : > { %v6046_v49 = vadd.f32 %v4425_v43, %v5868_v62  ;;  %3005 = vmatprep.mubr.bf16.mxu1 %v5306_v37  ;;  %3166 = vmatprep.mubr.bf16.mxu0 %v5309_v38  ;;  %v5321_v37 = vld [vmem:[%s5532_s9 + $0x47c] ss:$56 sps:$4 sm:$0xff]   ;;  %v2464_v43 = vadd.f32 %v5895_v19, %v5868_v62  ;;  %v2469_v19 = vadd.f32 %v5912_v31, %v5868_v62 }
 0x126   : > { %v4427_v50 = vpop.f32.mrf.mxu1  ;;  %v4379_v51 = vpop.f32.mrf.mxu0  ;;  %v5324_v38 = vld [vmem:[%s5532_s9 + $0x484] ss:$56 sps:$4 sm:$0xff]  }
 0x127   : > { %v4428_v53 = vadd.f32 %v4427_v50, %v4426_v45  ;;  %v6048_v54 = vadd.f32 %v4379_v51, %v4378_v48 }
 0x128   : > { %v4429_v56 = vpop.f32.mrf.mxu1  ;;  %v4381_v57 = vpop.f32.mrf.mxu0 }
 0x129   : > { %v6053_v63 = vadd.f32 %v4428_v53, %v5868_v62 }
 0x12a   : > { %v4430_v4 = vpop.f32.mrf.mxu1  ;;  %v4382_v5 = vpop.f32.mrf.mxu0 }
 0x12b   : > { %v4431_v7 = vadd.f32 %v4430_v4, %v4429_v56  ;;  %v6057_v11 = vadd.f32 %v4382_v5, %v4381_v57  ;;  %v5319_v5 = vld [vmem:[%s5532_s9 + $0x478] ss:$56 sps:$4 sm:$0xff]  }
 0x12c   : > { %v4448_v12 = vpop.f32.mrf.mxu1  ;;  %3006 = vmatmul.mubr.bf16.gmra.mxu1 %v5304_v60  ;;  %v4560_v13 = vpop.f32.mrf.mxu0  ;;  %3167 = vmatmul.mubr.bf16.gmra.mxu0 %v5307_v61 }
 0x12d   : > { %v6060_v15 = vadd.f32 %v4431_v7, %v5868_v62  ;;  %3013 = vmatprep.mubr.bf16.mxu1 %v5314_v0  ;;  %3174 = vmatprep.mubr.bf16.mxu0 %v5318_v2  ;;  %v5322_v7 = vld [vmem:[%s5532_s9 + $0x480] ss:$56 sps:$4 sm:$0xff]  }
 0x12e   : > { %v4449_v17 = vpop.f32.mrf.mxu1  ;;  %v4561_v20 = vpop.f32.mrf.mxu0 }
 0x12f   : > { %v4450_v23 = vadd.f32 %v4449_v17, %v4448_v12  ;;  %v4562_v25 = vadd.f32 %v4561_v20, %v4560_v13  ;;  %v5330_v13 = vld [vmem:[%s5532_s9 + $0x4ec] ss:$56 sps:$4 sm:$0xff]  }
 0x130   : > { %v4451_v26 = vpop.f32.mrf.mxu1  ;;  %v4563_v28 = vpop.f32.mrf.mxu0  ;;  %v5333_v17 = vld [vmem:[%s5532_s9 + $0x4f4] ss:$56 sps:$4 sm:$0xff]  }
 0x131   : > { %v2622_v33 = vadd.f32 %v4450_v23, %v2461_v14  ;;  %v2472_v23 = vadd.f32 %v5926_v42, %v5868_v62  ;;  %v2477_v42 = vadd.f32 %v5941_v52, %v5868_v62 }
 0x132   : > { %v4452_v39 = vpop.f32.mrf.mxu1  ;;  %v4564_v41 = vpop.f32.mrf.mxu0 }
 0x133   : > { %v6070_v45 = vadd.f32 %v4562_v25, %v2622_v33  ;;  %v4453_v48 = vadd.f32 %v4452_v39, %v4451_v26  ;;  %v4565_v50 = vadd.f32 %v4564_v41, %v4563_v28 }
 0x134   : > { %v4454_v6 = vpop.f32.mrf.mxu1  ;;  %3014 = vmatmul.mubr.bf16.gmra.mxu1 %v5312_v29  ;;  %v4566_v51 = vpop.f32.mrf.mxu0  ;;  %3175 = vmatmul.mubr.bf16.gmra.mxu0 %v5316_v32 }
 0x135   : > { %v2625_v53 = vadd.f32 %v4453_v48, %v2464_v43  ;;  %3021 = vmatprep.mubr.bf16.mxu1 %v5321_v37  ;;  %3182 = vmatprep.mubr.bf16.mxu0 %v5324_v38 }
 0x136   : > { %v4455_v56 = vpop.f32.mrf.mxu1  ;;  %v4567_v57 = vpop.f32.mrf.mxu0 }
 0x137   : > { %v6074_v60 = vadd.f32 %v4565_v50, %v2625_v53  ;;  %v4456_v61 = vadd.f32 %v4455_v56, %v4454_v6  ;;  %v4568_v0 = vadd.f32 %v4567_v57, %v4566_v51  ;;  %v5328_v50 = vld [vmem:[%s5532_s9 + $0x4e8] ss:$56 sps:$4 sm:$0xff]   ;;  %v5337_v53 = vld [vmem:[%s5532_s9 + $0x55c] ss:$56 sps:$4 sm:$0xff]  }
 0x138   : > { %v4457_v2 = vpop.f32.mrf.mxu1  ;;  %v4569_v4 = vpop.f32.mrf.mxu0  ;;  %v5331_v6 = vld [vmem:[%s5532_s9 + $0x4f0] ss:$56 sps:$4 sm:$0xff]   ;;  %v5340_v56 = vld [vmem:[%s5532_s9 + $0x564] ss:$56 sps:$4 sm:$0xff]  }
 0x139   : > { %v2630_v12 = vadd.f32 %v4456_v61, %v2469_v19  ;;  %v2480_v61 = vadd.f32 %v5960_v3, %v5868_v62  ;;  %v2485_v3 = vadd.f32 %v5975_v16, %v5868_v62 }
 0x13a   : > { %v4458_v20 = vpop.f32.mrf.mxu1  ;;  %v4570_v14 = vpop.f32.mrf.mxu0 }
 0x13b   : > { %v6082_v25 = vadd.f32 %v4568_v0, %v2630_v12  ;;  %v4459_v26 = vadd.f32 %v4458_v20, %v4457_v2  ;;  %v4571_v31 = vadd.f32 %v4570_v14, %v4569_v4 }
 0x13c   : > { %v4460_v28 = vpop.f32.mrf.mxu1  ;;  %3022 = vmatmul.mubr.bf16.gmra.mxu1 %v5319_v5  ;;  %v4572_v29 = vpop.f32.mrf.mxu0  ;;  %3183 = vmatmul.mubr.bf16.gmra.mxu0 %v5322_v7 }
 0x13d   : > { %v2633_v32 = vadd.f32 %v4459_v26, %v2472_v23  ;;  %3029 = vmatprep.mubr.bf16.mxu1 %v5330_v13  ;;  %3190 = vmatprep.mubr.bf16.mxu0 %v5333_v17 }
 0x13e   : > { %v4461_v33 = vpop.f32.mrf.mxu1  ;;  %v4573_v37 = vpop.f32.mrf.mxu0 }
 0x13f   : > { %v6086_v38 = vadd.f32 %v4571_v31, %v2633_v32  ;;  %v4462_v39 = vadd.f32 %v4461_v33, %v4460_v28  ;;  %v4574_v41 = vadd.f32 %v4573_v37, %v4572_v29  ;;  %v5335_v31 = vld [vmem:[%s5532_s9 + $0x558] ss:$56 sps:$4 sm:$0xff]   ;;  %v5345_v32 = vld [vmem:[%s5532_s9 + $0x5cc] ss:$56 sps:$4 sm:$0xff]  }
 0x140   : > { %v4463_v43 = vpop.f32.mrf.mxu1  ;;  %v4575_v48 = vpop.f32.mrf.mxu0  ;;  %v5338_v28 = vld [vmem:[%s5532_s9 + $0x560] ss:$56 sps:$4 sm:$0xff]   ;;  %v5349_v33 = vld [vmem:[%s5532_s9 + $0x5d4] ss:$56 sps:$4 sm:$0xff]  }
 0x141   : > { %v2638_v51 = vadd.f32 %v4462_v39, %v2477_v42  ;;  %v2488_v39 = vadd.f32 %v5988_v30, %v5868_v62  ;;  %v2493_v30 = vadd.f32 %v5997_v40, %v5868_v62 }
 0x142   : > { %v4464_v57 = vpop.f32.mrf.mxu1  ;;  %v4576_v19 = vpop.f32.mrf.mxu0 }
 0x143   : > { %v6094_v0 = vadd.f32 %v4574_v41, %v2638_v51  ;;  %v4465_v2 = vadd.f32 %v4464_v57, %v4463_v43  ;;  %v4577_v52 = vadd.f32 %v4576_v19, %v4575_v48 }
 0x144   : > { %v4466_v4 = vpop.f32.mrf.mxu1  ;;  %3030 = vmatmul.mubr.bf16.gmra.mxu1 %v5328_v50  ;;  %v4578_v5 = vpop.f32.mrf.mxu0  ;;  %3191 = vmatmul.mubr.bf16.gmra.mxu0 %v5331_v6 }
 0x145   : > { %v2641_v7 = vadd.f32 %v4465_v2, %v2480_v61  ;;  %3037 = vmatprep.mubr.bf16.mxu1 %v5337_v53  ;;  %3198 = vmatprep.mubr.bf16.mxu0 %v5340_v56 }
 0x146   : > { %v4467_v12 = vpop.f32.mrf.mxu1  ;;  %v4579_v13 = vpop.f32.mrf.mxu0 }
 0x147   : > { %v6098_v17 = vadd.f32 %v4577_v52, %v2641_v7  ;;  %v4468_v20 = vadd.f32 %v4467_v12, %v4466_v4  ;;  %v4580_v14 = vadd.f32 %v4579_v13, %v4578_v5  ;;  %v5343_v52 = vld [vmem:[%s5532_s9 + $0x5c8] ss:$56 sps:$4 sm:$0xff]   ;;  %v5352_v7 = vld [vmem:[%s5532_s9 + $0x63c] ss:$56 sps:$4 sm:$0xff]  }
 0x148   : > { %v4469_v23 = vpop.f32.mrf.mxu1  ;;  %v4581_v26 = vpop.f32.mrf.mxu0  ;;  %v5347_v4 = vld [vmem:[%s5532_s9 + $0x5d0] ss:$56 sps:$4 sm:$0xff]   ;;  %v5355_v12 = vld [vmem:[%s5532_s9 + $0x644] ss:$56 sps:$4 sm:$0xff]  }
 0x149   : > { %v2646_v29 = vadd.f32 %v4468_v20, %v2485_v3  ;;  %v2496_v20 = vadd.f32 %v6010_v55, %v5868_v62  ;;  %v2501_v55 = vadd.f32 %v6019_v1, %v5868_v62 }
 0x14a   : > { %v4470_v37 = vpop.f32.mrf.mxu1  ;;  %v4582_v42 = vpop.f32.mrf.mxu0 }
 0x14b   : > { %v6106_v41 = vadd.f32 %v4580_v14, %v2646_v29  ;;  %v4471_v43 = vadd.f32 %v4470_v37, %v4469_v23  ;;  %v4583_v16 = vadd.f32 %v4582_v42, %v4581_v26 }
 0x14c   : > { %v4472_v48 = vpop.f32.mrf.mxu1  ;;  %3038 = vmatmul.mubr.bf16.gmra.mxu1 %v5335_v31  ;;  %v4584_v50 = vpop.f32.mrf.mxu0  ;;  %3199 = vmatmul.mubr.bf16.gmra.mxu0 %v5338_v28 }
 0x14d   : > { %v2649_v6 = vadd.f32 %v4471_v43, %v2488_v39  ;;  %3045 = vmatprep.mubr.bf16.mxu1 %v5345_v32  ;;  %3206 = vmatprep.mubr.bf16.mxu0 %v5349_v33 }
 0x14e   : > { %v4473_v51 = vpop.f32.mrf.mxu1  ;;  %v4585_v53 = vpop.f32.mrf.mxu0 }
 0x14f   : > { %v6110_v56 = vadd.f32 %v4583_v16, %v2649_v6  ;;  %v4474_v57 = vadd.f32 %v4473_v51, %v4472_v48  ;;  %v4586_v19 = vadd.f32 %v4585_v53, %v4584_v50  ;;  %v5350_v16 = vld [vmem:[%s5532_s9 + $0x638] ss:$56 sps:$4 sm:$0xff]   ;;  %v5361_v6 = vld [vmem:[%s5532_s9 + $0x6ac] ss:$56 sps:$4 sm:$0xff]  }
 0x150   : > { %v4475_v61 = vpop.f32.mrf.mxu1  ;;  %v4587_v2 = vpop.f32.mrf.mxu0  ;;  %v5353_v48 = vld [vmem:[%s5532_s9 + $0x640] ss:$56 sps:$4 sm:$0xff]   ;;  %v5364_v51 = vld [vmem:[%s5532_s9 + $0x6b4] ss:$56 sps:$4 sm:$0xff]  }
 0x151   : > { %v2654_v5 = vadd.f32 %v4474_v57, %v2493_v30  ;;  %v2504_v57 = vadd.f32 %v6029_v18, %v5868_v62  ;;  %v2509_v18 = vadd.f32 %v6034_v27, %v5868_v62 }
 0x152   : > { %v4476_v13 = vpop.f32.mrf.mxu1  ;;  %v4588_v3 = vpop.f32.mrf.mxu0 }
 0x153   : > { %v6118_v14 = vadd.f32 %v4586_v19, %v2654_v5  ;;  %v4477_v23 = vadd.f32 %v4476_v13, %v4475_v61  ;;  %v4589_v40 = vadd.f32 %v4588_v3, %v4587_v2 }
 0x154   : > { %v4478_v26 = vpop.f32.mrf.mxu1  ;;  %3046 = vmatmul.mubr.bf16.gmra.mxu1 %v5343_v52  ;;  %v4590_v31 = vpop.f32.mrf.mxu0  ;;  %3207 = vmatmul.mubr.bf16.gmra.mxu0 %v5347_v4 }
 0x155   : > { %v2657_v28 = vadd.f32 %v4477_v23, %v2496_v20  ;;  %3053 = vmatprep.mubr.bf16.mxu1 %v5352_v7  ;;  %3214 = vmatprep.mubr.bf16.mxu0 %v5355_v12 }
 0x156   : > { %v4479_v29 = vpop.f32.mrf.mxu1  ;;  %v4591_v32 = vpop.f32.mrf.mxu0 }
 0x157   : > { %v6122_v33 = vadd.f32 %v4589_v40, %v2657_v28  ;;  %v4480_v37 = vadd.f32 %v4479_v29, %v4478_v26  ;;  %v4592_v42 = vadd.f32 %v4591_v32, %v4590_v31  ;;  %v5359_v40 = vld [vmem:[%s5532_s9 + $0x6a8] ss:$56 sps:$4 sm:$0xff]   ;;  %v5368_v28 = vld [vmem:[%s5532_s9 + $0x2c] ss:$56 sps:$4 sm:$0xff]  }
 0x158   : > { %v4481_v39 = vpop.f32.mrf.mxu1  ;;  %v4593_v43 = vpop.f32.mrf.mxu0  ;;  %v5362_v26 = vld [vmem:[%s5532_s9 + $0x6b0] ss:$56 sps:$4 sm:$0xff]   ;;  %v5371_v29 = vld [vmem:[%s5532_s9 + $0x34] ss:$56 sps:$4 sm:$0xff]  }
 0x159   : > { %v2662_v50 = vadd.f32 %v4480_v37, %v2501_v55  ;;  %v2512_v37 = vadd.f32 %v6043_v44, %v5868_v62  ;;  %v2517_v44 = vadd.f32 %v6048_v54, %v5868_v62 }
 0x15a   : > { %v4482_v53 = vpop.f32.mrf.mxu1  ;;  %v4594_v30 = vpop.f32.mrf.mxu0 }
 0x15b   : > { %v6130_v19 = vadd.f32 %v4592_v42, %v2662_v50  ;;  %v4483_v61 = vadd.f32 %v4482_v53, %v4481_v39  ;;  %v4595_v1 = vadd.f32 %v4594_v30, %v4593_v43 }
 0x15c   : > { %v4484_v2 = vpop.f32.mrf.mxu1  ;;  %3054 = vmatmul.mubr.bf16.gmra.mxu1 %v5350_v16  ;;  %v4596_v52 = vpop.f32.mrf.mxu0  ;;  %3215 = vmatmul.mubr.bf16.gmra.mxu0 %v5353_v48 }
 0x15d   : > { %v2665_v4 = vadd.f32 %v4483_v61, %v2504_v57  ;;  %3061 = vmatprep.mubr.bf16.mxu1 %v5361_v6  ;;  %3222 = vmatprep.mubr.bf16.mxu0 %v5364_v51 }
 0x15e   : > { %v4485_v5 = vpop.f32.mrf.mxu1  ;;  %v4597_v7 = vpop.f32.mrf.mxu0 }
 0x15f   : > { %v6134_v12 = vadd.f32 %v4595_v1, %v2665_v4  ;;  %v4486_v13 = vadd.f32 %v4485_v5, %v4484_v2  ;;  %v4598_v3 = vadd.f32 %v4597_v7, %v4596_v52  ;;  %v5366_v1 = vld [vmem:[%s5532_s9 + $0x28] ss:$56 sps:$4 sm:$0xff]   ;;  %v5374_v4 = vld [vmem:[%s5532_s9 + $0x9c] ss:$56 sps:$4 sm:$0xff]  }
 0x160   : > { %v4487_v20 = vpop.f32.mrf.mxu1  ;;  %v4599_v23 = vpop.f32.mrf.mxu0  ;;  %v5369_v2 = vld [vmem:[%s5532_s9 + $0x30] ss:$56 sps:$4 sm:$0xff]   ;;  %v5375_v5 = vld [vmem:[%s5532_s9 + $0xa4] ss:$56 sps:$4 sm:$0xff]  }
 0x161   : > { %v2670_v31 = vadd.f32 %v4486_v13, %v2509_v18  ;;  %v2520_v13 = vadd.f32 %v6057_v11, %v5868_v62 }
 0x162   : > { %v4488_v32 = vpop.f32.mrf.mxu1  ;;  %v4600_v55 = vpop.f32.mrf.mxu0 }
 0x163   : > { %v6142_v42 = vadd.f32 %v4598_v3, %v2670_v31  ;;  %v4489_v27 = vadd.f32 %v4488_v32, %v4487_v20  ;;  %v4601_v39 = vadd.f32 %v4600_v55, %v4599_v23 }
 0x164   : > { %v4490_v43 = vpop.f32.mrf.mxu1  ;;  %3062 = vmatmul.mubr.bf16.gmra.mxu1 %v5359_v40  ;;  %v4602_v16 = vpop.f32.mrf.mxu0  ;;  %3223 = vmatmul.mubr.bf16.gmra.mxu0 %v5362_v26 }
 0x165   : > { %v2673_v48 = vadd.f32 %v4489_v27, %v2512_v37  ;;  %3263 = vmatprep.mubr.bf16.mxu1 %v5368_v28  ;;  %4143 = vmatprep.mubr.msk.bf16.mxu0 %vm2377_vm0, %v5371_v29  ;;  %v5372_v37 = vld [vmem:[%s5532_s9 + $0x98] ss:$56 sps:$4 sm:$0xff]  }
 0x166   : > { %v4491_v50 = vpop.f32.mrf.mxu1  ;;  %v4603_v6 = vpop.f32.mrf.mxu0  ;;  %v5377_v27 = vld [vmem:[%s5532_s9 + $0xa0] ss:$56 sps:$4 sm:$0xff]  }
 0x167   : > { %v6147_v51 = vadd.f32 %v4601_v39, %v2673_v48  ;;  %v4492_v53 = vadd.f32 %v4491_v50, %v4490_v43  ;;  %v4604_v30 = vadd.f32 %v4603_v6, %v4602_v16  ;;  %v5380_v43 = vld [vmem:[%s5532_s9 + $0x10c] ss:$56 sps:$4 sm:$0xff]  }
 0x168   : > { %v4493_v57 = vpop.f32.mrf.mxu1  ;;  %v4605_v61 = vpop.f32.mrf.mxu0  ;;  %v5381_v16 = vld [vmem:[%s5532_s9 + $0x114] ss:$56 sps:$4 sm:$0xff]  }
 0x169   : > { %v2678_v52 = vadd.f32 %v4492_v53, %v2517_v44 }
 0x16a   : > { %v4494_v7 = vpop.f32.mrf.mxu1  ;;  %v4606_v18 = vpop.f32.mrf.mxu0 }
 0x16b   : > { %v6155_v3 = vadd.f32 %v4604_v30, %v2678_v52  ;;  %v4495_v20 = vadd.f32 %v4494_v7, %v4493_v57  ;;  %v4607_v54 = vadd.f32 %v4606_v18, %v4605_v61  ;;  %v5378_v18 = vld [vmem:[%s5532_s9 + $0x108] ss:$56 sps:$4 sm:$0xff]  }
 0x16c   : > { %v4496_v23 = vpop.f32.mrf.mxu1  ;;  %3264 = vmatmul.mubr.bf16.vlgmr.msra.gmra.mxu1 %v5366_v1  ;;  %v4608_v40 = vpop.f32.mrf.mxu0  ;;  %3425 = vmatmul.mubr.bf16.vlgmr.msra.gmra.mxu0 %v5369_v2 }
 0x16d   : > { %v2681_v26 = vadd.f32 %v4495_v20, %v2520_v13  ;;  %3271 = vmatprep.mubr.bf16.mxu1 %v5374_v4  ;;  %4144 = vmatprep.mubr.msk.bf16.mxu0 %vm2377_vm0, %v5375_v5  ;;  %v5383_v13 = vld [vmem:[%s5532_s9 + $0x110] ss:$56 sps:$4 sm:$0xff]  }
 0x16e   : > { %v4497_v31 = vpop.f32.mrf.mxu1  ;;  %v4609_v28 = vpop.f32.mrf.mxu0 }
 0x16f   : > { %v6158_v29 = vadd.f32 %v4607_v54, %v2681_v26  ;;  %v4498_v62 = vadd.f32 %v4497_v31, %v4496_v23  ;;  %v4610_v11 = vadd.f32 %v4609_v28, %v4608_v40  ;;  %v5386_v54 = vld [vmem:[%s5532_s9 + $0x17c] ss:$56 sps:$4 sm:$0xff]  }
 0x170   : > { %v4499_v32 = vpop.f32.mrf.mxu1  ;;  %v4611_v55 = vpop.f32.mrf.mxu0  ;;  %v5387_v23 = vld [vmem:[%s5532_s9 + $0x184] ss:$56 sps:$4 sm:$0xff]  }
 0x171   : > { %v2686_v39 = vadd.f32 %v4498_v62, %v5883_v10 }
 0x172   : > { %v4500_v48 = vpop.f32.mrf.mxu1  ;;  %v4612_v50 = vpop.f32.mrf.mxu0 }
 0x173   : > { %v6165_v6 = vadd.f32 %v4610_v11, %v2686_v39  ;;  %v4501_v44 = vadd.f32 %v4500_v48, %v4499_v32  ;;  %v4613_v53 = vadd.f32 %v4612_v50, %v4611_v55  ;;  %v5384_v48 = vld [vmem:[%s5532_s9 + $0x178] ss:$56 sps:$4 sm:$0xff]  }
 0x174   : > { %v4502_v30 = vpop.f32.mrf.mxu1  ;;  %3272 = vmatmul.mubr.bf16.gmra.mxu1 %v5372_v37  ;;  %v4614_v57 = vpop.f32.mrf.mxu0  ;;  %3433 = vmatmul.mubr.bf16.gmra.mxu0 %v5377_v27  ;;  %v5389_v50 = vld [vmem:[%s5532_s9 + $0x180] ss:$56 sps:$4 sm:$0xff]  }
 0x175   : > { %v2689_v61 = vadd.f32 %v4501_v44, %v5905_v24  ;;  %3279 = vmatprep.mubr.bf16.mxu1 %v5380_v43  ;;  %4145 = vmatprep.mubr.msk.bf16.mxu0 %vm2377_vm0, %v5381_v16 }
 0x176   : > { %v4503_v10 = vpop.f32.mrf.mxu1  ;;  %v4615_v1 = vpop.f32.mrf.mxu0 }
 0x177   : > { %v6169_v2 = vadd.f32 %v4613_v53, %v2689_v61  ;;  %v4504_v52 = vadd.f32 %v4503_v10, %v4502_v30  ;;  %v4616_v4 = vadd.f32 %v4615_v1, %v4614_v57  ;;  %v5392_v53 = vld [vmem:[%s5532_s9 + $0x1ec] ss:$56 sps:$4 sm:$0xff]  }
 0x178   : > { %v4505_v5 = vpop.f32.mrf.mxu1  ;;  %v4617_v7 = vpop.f32.mrf.mxu0  ;;  %v5393_v30 = vld [vmem:[%s5532_s9 + $0x1f4] ss:$56 sps:$4 sm:$0xff]  }
 0x179   : > { %v2694_v20 = vadd.f32 %v4504_v52, %v5916_v34 }
 0x17a   : > { %v4506_v40 = vpop.f32.mrf.mxu1  ;;  %v4618_v26 = vpop.f32.mrf.mxu0 }
 0x17b   : > { %v6176_v24 = vadd.f32 %v4616_v4, %v2694_v20  ;;  %v4507_v31 = vadd.f32 %v4506_v40, %v4505_v5  ;;  %v4619_v28 = vadd.f32 %v4618_v26, %v4617_v7  ;;  %v5390_v40 = vld [vmem:[%s5532_s9 + $0x1e8] ss:$56 sps:$4 sm:$0xff]  }
 0x17c   : > { %v4508_v62 = vpop.f32.mrf.mxu1  ;;  %3280 = vmatmul.mubr.bf16.gmra.mxu1 %v5378_v18  ;;  %v4620_v11 = vpop.f32.mrf.mxu0  ;;  %3441 = vmatmul.mubr.bf16.gmra.mxu0 %v5383_v13  ;;  %v5395_v26 = vld [vmem:[%s5532_s9 + $0x1f0] ss:$56 sps:$4 sm:$0xff]  }
 0x17d   : > { %v2697_v32 = vadd.f32 %v4507_v31, %v5933_v46  ;;  %3287 = vmatprep.mubr.bf16.mxu1 %v5386_v54  ;;  %4146 = vmatprep.mubr.msk.bf16.mxu0 %vm2377_vm0, %v5387_v23 }
 0x17e   : > { %v4509_v34 = vpop.f32.mrf.mxu1  ;;  %v4621_v55 = vpop.f32.mrf.mxu0 }
 0x17f   : > { %v6180_v37 = vadd.f32 %v4619_v28, %v2697_v32  ;;  %v4510_v27 = vadd.f32 %v4509_v34, %v4508_v62  ;;  %v4622_v39 = vadd.f32 %v4621_v55, %v4620_v11  ;;  %v5398_v28 = vld [vmem:[%s5532_s9 + $0x25c] ss:$56 sps:$4 sm:$0xff]  }
 0x180   : > { %v4511_v43 = vpop.f32.mrf.mxu1  ;;  %v4623_v16 = vpop.f32.mrf.mxu0  ;;  %v5399_v62 = vld [vmem:[%s5532_s9 + $0x264] ss:$56 sps:$4 sm:$0xff]  }
 0x181   : > { %v2702_v44 = vadd.f32 %v4510_v27, %v5950_v58 }
 0x182   : > { %v4512_v57 = vpop.f32.mrf.mxu1  ;;  %v4624_v61 = vpop.f32.mrf.mxu0 }
 0x183   : > { %v6187_v46 = vadd.f32 %v4622_v39, %v2702_v44  ;;  %v4513_v10 = vadd.f32 %v4512_v57, %v4511_v43  ;;  %v4625_v1 = vadd.f32 %v4624_v61, %v4623_v16  ;;  %v5396_v57 = vld [vmem:[%s5532_s9 + $0x258] ss:$56 sps:$4 sm:$0xff]  }
 0x184   : > { %v4514_v52 = vpop.f32.mrf.mxu1  ;;  %3288 = vmatmul.mubr.bf16.gmra.mxu1 %v5384_v48  ;;  %v4626_v4 = vpop.f32.mrf.mxu0  ;;  %3449 = vmatmul.mubr.bf16.gmra.mxu0 %v5389_v50  ;;  %v5401_v61 = vld [vmem:[%s5532_s9 + $0x260] ss:$56 sps:$4 sm:$0xff]  }
 0x185   : > { %v2705_v5 = vadd.f32 %v4513_v10, %v5967_v8  ;;  %3295 = vmatprep.mubr.bf16.mxu1 %v5392_v53  ;;  %4147 = vmatprep.mubr.msk.bf16.mxu0 %vm2377_vm0, %v5393_v30 }
 0x186   : > { %v4515_v58 = vpop.f32.mrf.mxu1  ;;  %v4627_v7 = vpop.f32.mrf.mxu0 }
 0x187   : > { %v6191_v18 = vadd.f32 %v4625_v1, %v2705_v5  ;;  %v4516_v13 = vadd.f32 %v4515_v58, %v4514_v52  ;;  %v4628_v20 = vadd.f32 %v4627_v7, %v4626_v4  ;;  %v5404_v1 = vld [vmem:[%s5532_s9 + $0x2cc] ss:$56 sps:$4 sm:$0xff]  }
 0x188   : > { %v4517_v54 = vpop.f32.mrf.mxu1  ;;  %v4629_v23 = vpop.f32.mrf.mxu0  ;;  %v5405_v52 = vld [vmem:[%s5532_s9 + $0x2d4] ss:$56 sps:$4 sm:$0xff]  }
 0x189   : > { %v2710_v31 = vadd.f32 %v4516_v13, %v5981_v22 }
 0x18a   : > { %v4518_v11 = vpop.f32.mrf.mxu1  ;;  %v4630_v32 = vpop.f32.mrf.mxu0 }
 0x18b   : > { %v6198_v8 = vadd.f32 %v4628_v20, %v2710_v31  ;;  %v4519_v34 = vadd.f32 %v4518_v11, %v4517_v54  ;;  %v4631_v55 = vadd.f32 %v4630_v32, %v4629_v23  ;;  %v5402_v11 = vld [vmem:[%s5532_s9 + $0x2c8] ss:$56 sps:$4 sm:$0xff]  }
 0x18c   : > { %v4520_v27 = vpop.f32.mrf.mxu1  ;;  %3296 = vmatmul.mubr.bf16.gmra.mxu1 %v5390_v40  ;;  %v4632_v39 = vpop.f32.mrf.mxu0  ;;  %3457 = vmatmul.mubr.bf16.gmra.mxu0 %v5395_v26  ;;  %v5407_v32 = vld [vmem:[%s5532_s9 + $0x2d0] ss:$56 sps:$4 sm:$0xff]  }
 0x18d   : > { %v2713_v43 = vadd.f32 %v4519_v34, %v5992_v35  ;;  %3303 = vmatprep.mubr.bf16.mxu1 %v5398_v28  ;;  %4148 = vmatprep.mubr.msk.bf16.mxu0 %vm2377_vm0, %v5399_v62 }
 0x18e   : > { %v4521_v22 = vpop.f32.mrf.mxu1  ;;  %v4633_v16 = vpop.f32.mrf.mxu0 }
 0x18f   : > { %v6202_v48 = vadd.f32 %v4631_v55, %v2713_v43  ;;  %v4522_v50 = vadd.f32 %v4521_v22, %v4520_v27  ;;  %v4634_v44 = vadd.f32 %v4633_v16, %v4632_v39  ;;  %v5410_v55 = vld [vmem:[%s5532_s9 + $0x33c] ss:$56 sps:$4 sm:$0xff]  }
 0x190   : > { %v4523_v53 = vpop.f32.mrf.mxu1  ;;  %v4635_v30 = vpop.f32.mrf.mxu0  ;;  %v5411_v27 = vld [vmem:[%s5532_s9 + $0x344] ss:$56 sps:$4 sm:$0xff]  }
 0x191   : > { %v2718_v10 = vadd.f32 %v4522_v50, %v6003_v47 }
 0x192   : > { %v4524_v4 = vpop.f32.mrf.mxu1  ;;  %v4636_v5 = vpop.f32.mrf.mxu0 }
 0x193   : > { %v6209_v35 = vadd.f32 %v4634_v44, %v2718_v10  ;;  %v4525_v58 = vadd.f32 %v4524_v4, %v4523_v53  ;;  %v4637_v7 = vadd.f32 %v4636_v5, %v4635_v30  ;;  %v5408_v4 = vld [vmem:[%s5532_s9 + $0x338] ss:$56 sps:$4 sm:$0xff]  }
 0x194   : > { %v4526_v13 = vpop.f32.mrf.mxu1  ;;  %3304 = vmatmul.mubr.bf16.gmra.mxu1 %v5396_v57  ;;  %v4638_v20 = vpop.f32.mrf.mxu0  ;;  %3465 = vmatmul.mubr.bf16.gmra.mxu0 %v5401_v61  ;;  %v5413_v5 = vld [vmem:[%s5532_s9 + $0x340] ss:$56 sps:$4 sm:$0xff]  }
 0x195   : > { %v2721_v54 = vadd.f32 %v4525_v58, %v6014_v59  ;;  %3311 = vmatprep.mubr.bf16.mxu1 %v5404_v1  ;;  %4149 = vmatprep.mubr.msk.bf16.mxu0 %vm2377_vm0, %v5405_v52 }
 0x196   : > { %v4527_v47 = vpop.f32.mrf.mxu1  ;;  %v4639_v23 = vpop.f32.mrf.mxu0 }
 0x197   : > { %v6213_v40 = vadd.f32 %v4637_v7, %v2721_v54  ;;  %v4528_v26 = vadd.f32 %v4527_v47, %v4526_v13  ;;  %v4640_v31 = vadd.f32 %v4639_v23, %v4638_v20  ;;  %v5416_v7 = vld [vmem:[%s5532_s9 + $0x3ac] ss:$56 sps:$4 sm:$0xff]  }
 0x198   : > { %v4529_v28 = vpop.f32.mrf.mxu1  ;;  %v4641_v62 = vpop.f32.mrf.mxu0  ;;  %v5417_v13 = vld [vmem:[%s5532_s9 + $0x3b4] ss:$56 sps:$4 sm:$0xff]  }
 0x199   : > { %v2726_v34 = vadd.f32 %v4528_v26, %v6025_v9 }
 0x19a   : > { %v4530_v39 = vpop.f32.mrf.mxu1  ;;  %v4642_v43 = vpop.f32.mrf.mxu0 }
 0x19b   : > { %v6220_v59 = vadd.f32 %v4640_v31, %v2726_v34  ;;  %v4531_v22 = vadd.f32 %v4530_v39, %v4529_v28  ;;  %v4643_v16 = vadd.f32 %v4642_v43, %v4641_v62  ;;  %v5414_v39 = vld [vmem:[%s5532_s9 + $0x3a8] ss:$56 sps:$4 sm:$0xff]  }
 0x19c   : > { %v4532_v50 = vpop.f32.mrf.mxu1  ;;  %3312 = vmatmul.mubr.bf16.gmra.mxu1 %v5402_v11  ;;  %v4644_v44 = vpop.f32.mrf.mxu0  ;;  %3473 = vmatmul.mubr.bf16.gmra.mxu0 %v5407_v32  ;;  %v5419_v43 = vld [vmem:[%s5532_s9 + $0x3b0] ss:$56 sps:$4 sm:$0xff]  }
 0x19d   : > { %v2729_v53 = vadd.f32 %v4531_v22, %v6032_v21  ;;  %3319 = vmatprep.mubr.bf16.mxu1 %v5410_v55  ;;  %4150 = vmatprep.mubr.msk.bf16.mxu0 %vm2377_vm0, %v5411_v27 }
 0x19e   : > { %v4533_v9 = vpop.f32.mrf.mxu1  ;;  %v4645_v30 = vpop.f32.mrf.mxu0 }
 0x19f   : > { %v6224_v57 = vadd.f32 %v4643_v16, %v2729_v53  ;;  %v4534_v61 = vadd.f32 %v4533_v9, %v4532_v50  ;;  %v4646_v10 = vadd.f32 %v4645_v30, %v4644_v44  ;;  %v5422_v16 = vld [vmem:[%s5532_s9 + $0x41c] ss:$56 sps:$4 sm:$0xff]  }
 0x1a0   : > { %v4535_v1 = vpop.f32.mrf.mxu1  ;;  %v4647_v52 = vpop.f32.mrf.mxu0  ;;  %v5423_v50 = vld [vmem:[%s5532_s9 + $0x424] ss:$56 sps:$4 sm:$0xff]  }
 0x1a1   : > { %v2734_v58 = vadd.f32 %v4534_v61, %v6039_v36 }
 0x1a2   : > { %v4536_v20 = vpop.f32.mrf.mxu1  ;;  %v4648_v54 = vpop.f32.mrf.mxu0 }
 0x1a3   : > { %v6231_v21 = vadd.f32 %v4646_v10, %v2734_v58  ;;  %v4537_v47 = vadd.f32 %v4536_v20, %v4535_v1  ;;  %v4649_v23 = vadd.f32 %v4648_v54, %v4647_v52  ;;  %v5420_v20 = vld [vmem:[%s5532_s9 + $0x418] ss:$56 sps:$4 sm:$0xff]  }
 0x1a4   : > { %v4538_v26 = vpop.f32.mrf.mxu1  ;;  %3320 = vmatmul.mubr.bf16.gmra.mxu1 %v5408_v4  ;;  %v4650_v31 = vpop.f32.mrf.mxu0  ;;  %3481 = vmatmul.mubr.bf16.gmra.mxu0 %v5413_v5  ;;  %v5425_v54 = vld [vmem:[%s5532_s9 + $0x420] ss:$56 sps:$4 sm:$0xff]  }
 0x1a5   : > { %v2737_v28 = vadd.f32 %v4537_v47, %v6046_v49  ;;  %3327 = vmatprep.mubr.bf16.mxu1 %v5416_v7  ;;  %4151 = vmatprep.mubr.msk.bf16.mxu0 %vm2377_vm0, %v5417_v13 }
 0x1a6   : > { %v4539_v36 = vpop.f32.mrf.mxu1  ;;  %v4651_v62 = vpop.f32.mrf.mxu0 }
 0x1a7   : > { %v6235_v11 = vadd.f32 %v4649_v23, %v2737_v28  ;;  %v4540_v32 = vadd.f32 %v4539_v36, %v4538_v26  ;;  %v4652_v34 = vadd.f32 %v4651_v62, %v4650_v31  ;;  %v5428_v23 = vld [vmem:[%s5532_s9 + $0x48c] ss:$56 sps:$4 sm:$0xff]  }
 0x1a8   : > { %v4541_v55 = vpop.f32.mrf.mxu1  ;;  %v4653_v27 = vpop.f32.mrf.mxu0  ;;  %v5429_v26 = vld [vmem:[%s5532_s9 + $0x494] ss:$56 sps:$4 sm:$0xff]  }
 0x1a9   : > { %v2742_v22 = vadd.f32 %v4540_v32, %v6053_v63 }
 0x1aa   : > { %v4542_v44 = vpop.f32.mrf.mxu1  ;;  %v4654_v53 = vpop.f32.mrf.mxu0 }
 0x1ab   : > { %v6242_v49 = vadd.f32 %v4652_v34, %v2742_v22  ;;  %v4543_v9 = vadd.f32 %v4542_v44, %v4541_v55  ;;  %v4655_v30 = vadd.f32 %v4654_v53, %v4653_v27  ;;  %v5426_v44 = vld [vmem:[%s5532_s9 + $0x488] ss:$56 sps:$4 sm:$0xff]  }
 0x1ac   : > { %v4672_v61 = vpop.f32.mrf.mxu1  ;;  %3328 = vmatmul.mubr.bf16.gmra.mxu1 %v5414_v39  ;;  %v4784_v10 = vpop.f32.mrf.mxu0  ;;  %3489 = vmatmul.mubr.bf16.gmra.mxu0 %v5419_v43  ;;  %v5431_v53 = vld [vmem:[%s5532_s9 + $0x490] ss:$56 sps:$4 sm:$0xff]  }
 0x1ad   : > { %v2745_v1 = vadd.f32 %v4543_v9, %v6060_v15  ;;  %3335 = vmatprep.mubr.bf16.mxu1 %v5422_v16  ;;  %4152 = vmatprep.mubr.msk.bf16.mxu0 %vm2377_vm0, %v5423_v50 }
 0x1ae   : > { %v4673_v63 = vpop.f32.mrf.mxu1  ;;  %v4785_v52 = vpop.f32.mrf.mxu0 }
 0x1af   : > { %v6246_v4 = vadd.f32 %v4655_v30, %v2745_v1  ;;  %v4674_v5 = vadd.f32 %v4673_v63, %v4672_v61  ;;  %v4786_v58 = vadd.f32 %v4785_v52, %v4784_v10  ;;  %v5434_v30 = vld [vmem:[%s5532_s9 + $0x4fc] ss:$56 sps:$4 sm:$0xff]  }
 0x1b0   : > { %v4675_v7 = vpop.f32.mrf.mxu1  ;;  %v4787_v13 = vpop.f32.mrf.mxu0  ;;  %v5435_v61 = vld [vmem:[%s5532_s9 + $0x504] ss:$56 sps:$4 sm:$0xff]  }
 0x1b1   : > { %v2944_v47 = vadd.f32 %v4674_v5, %v6070_v45 }
 0x1b2   : > { %v4676_v31 = vpop.f32.mrf.mxu1  ;;  %v4788_v28 = vpop.f32.mrf.mxu0 }
 0x1b3   : > { %v6253_v15 = vadd.f32 %v4786_v58, %v2944_v47  ;;  %v4677_v36 = vadd.f32 %v4676_v31, %v4675_v7  ;;  %v4789_v62 = vadd.f32 %v4788_v28, %v4787_v13  ;;  %v5432_v31 = vld [vmem:[%s5532_s9 + $0x4f8] ss:$56 sps:$4 sm:$0xff]  }
 0x1b4   : > { %v4678_v32 = vpop.f32.mrf.mxu1  ;;  %3336 = vmatmul.mubr.bf16.gmra.mxu1 %v5420_v20  ;;  %v4790_v34 = vpop.f32.mrf.mxu0  ;;  %3497 = vmatmul.mubr.bf16.gmra.mxu0 %v5425_v54  ;;  %v5437_v28 = vld [vmem:[%s5532_s9 + $0x500] ss:$56 sps:$4 sm:$0xff]  }
 0x1b5   : > { %v2947_v55 = vadd.f32 %v4677_v36, %v6074_v60  ;;  %3343 = vmatprep.mubr.bf16.mxu1 %v5428_v23  ;;  %4153 = vmatprep.mubr.msk.bf16.mxu0 %vm2377_vm0, %v5429_v26 }
 0x1b6   : > { %v4679_v45 = vpop.f32.mrf.mxu1  ;;  %v4791_v27 = vpop.f32.mrf.mxu0 }
 0x1b7   : > { %v6257_v39 = vadd.f32 %v4789_v62, %v2947_v55  ;;  %v4680_v43 = vadd.f32 %v4679_v45, %v4678_v32  ;;  %v4792_v22 = vadd.f32 %v4791_v27, %v4790_v34  ;;  %v5440_v62 = vld [vmem:[%s5532_s9 + $0x56c] ss:$56 sps:$4 sm:$0xff]  }
 0x1b8   : > { %v4681_v16 = vpop.f32.mrf.mxu1  ;;  %v4793_v50 = vpop.f32.mrf.mxu0  ;;  %v5441_v32 = vld [vmem:[%s5532_s9 + $0x574] ss:$56 sps:$4 sm:$0xff]  }
 0x1b9   : > { %v2952_v9 = vadd.f32 %v4680_v43, %v6082_v25 }
 0x1ba   : > { %v4682_v10 = vpop.f32.mrf.mxu1  ;;  %v4794_v1 = vpop.f32.mrf.mxu0 }
 0x1bb   : > { %v6264_v60 = vadd.f32 %v4792_v22, %v2952_v9  ;;  %v4683_v63 = vadd.f32 %v4682_v10, %v4681_v16  ;;  %v4795_v52 = vadd.f32 %v4794_v1, %v4793_v50  ;;  %v5438_v10 = vld [vmem:[%s5532_s9 + $0x568] ss:$56 sps:$4 sm:$0xff]  }
 0x1bc   : > { %v4684_v5 = vpop.f32.mrf.mxu1  ;;  %3344 = vmatmul.mubr.bf16.gmra.mxu1 %v5426_v44  ;;  %v4796_v58 = vpop.f32.mrf.mxu0  ;;  %3505 = vmatmul.mubr.bf16.gmra.mxu0 %v5431_v53  ;;  %v5443_v1 = vld [vmem:[%s5532_s9 + $0x570] ss:$56 sps:$4 sm:$0xff]  }
 0x1bd   : > { %v2955_v7 = vadd.f32 %v4683_v63, %v6086_v38  ;;  %3351 = vmatprep.mubr.bf16.mxu1 %v5434_v30  ;;  %4154 = vmatprep.mubr.msk.bf16.mxu0 %vm2377_vm0, %v5435_v61 }
 0x1be   : > { %v4685_v25 = vpop.f32.mrf.mxu1  ;;  %v4797_v13 = vpop.f32.mrf.mxu0 }
 0x1bf   : > { %v6268_v20 = vadd.f32 %v4795_v52, %v2955_v7  ;;  %v4686_v54 = vadd.f32 %v4685_v25, %v4684_v5  ;;  %v4798_v47 = vadd.f32 %v4797_v13, %v4796_v58  ;;  %v5446_v52 = vld [vmem:[%s5532_s9 + $0x5dc] ss:$56 sps:$4 sm:$0xff]  }
 0x1c0   : > { %v4687_v23 = vpop.f32.mrf.mxu1  ;;  %v4799_v26 = vpop.f32.mrf.mxu0  ;;  %v5447_v5 = vld [vmem:[%s5532_s9 + $0x5e4] ss:$56 sps:$4 sm:$0xff]  }
 0x1c1   : > { %v2960_v36 = vadd.f32 %v4686_v54, %v6094_v0 }
 0x1c2   : > { %v4688_v34 = vpop.f32.mrf.mxu1  ;;  %v4800_v55 = vpop.f32.mrf.mxu0 }
 0x1c3   : > { %v6275_v38 = vadd.f32 %v4798_v47, %v2960_v36  ;;  %v4689_v45 = vadd.f32 %v4688_v34, %v4687_v23  ;;  %v4801_v27 = vadd.f32 %v4800_v55, %v4799_v26  ;;  %v5444_v34 = vld [vmem:[%s5532_s9 + $0x5d8] ss:$56 sps:$4 sm:$0xff]  }
 0x1c4   : > { %v4690_v43 = vpop.f32.mrf.mxu1  ;;  %3352 = vmatmul.mubr.bf16.gmra.mxu1 %v5432_v31  ;;  %v4802_v22 = vpop.f32.mrf.mxu0  ;;  %3513 = vmatmul.mubr.bf16.gmra.mxu0 %v5437_v28  ;;  %v5449_v55 = vld [vmem:[%s5532_s9 + $0x5e0] ss:$56 sps:$4 sm:$0xff]  }
 0x1c5   : > { %v2963_v16 = vadd.f32 %v4689_v45, %v6098_v17  ;;  %3359 = vmatprep.mubr.bf16.mxu1 %v5440_v62  ;;  %4155 = vmatprep.mubr.msk.bf16.mxu0 %vm2377_vm0, %v5441_v32 }
 0x1c6   : > { %v4691_v0 = vpop.f32.mrf.mxu1  ;;  %v4803_v50 = vpop.f32.mrf.mxu0 }
 0x1c7   : > { %v6279_v44 = vadd.f32 %v4801_v27, %v2963_v16  ;;  %v4692_v53 = vadd.f32 %v4691_v0, %v4690_v43  ;;  %v4804_v9 = vadd.f32 %v4803_v50, %v4802_v22  ;;  %v5452_v27 = vld [vmem:[%s5532_s9 + $0x64c] ss:$56 sps:$4 sm:$0xff]  }
 0x1c8   : > { %v4693_v30 = vpop.f32.mrf.mxu1  ;;  %v4805_v61 = vpop.f32.mrf.mxu0  ;;  %v5453_v43 = vld [vmem:[%s5532_s9 + $0x654] ss:$56 sps:$4 sm:$0xff]  }
 0x1c9   : > { %v2968_v63 = vadd.f32 %v4692_v53, %v6106_v41 }
 0x1ca   : > { %v4694_v58 = vpop.f32.mrf.mxu1  ;;  %v4806_v7 = vpop.f32.mrf.mxu0 }
 0x1cb   : > { %v6286_v17 = vadd.f32 %v4804_v9, %v2968_v63  ;;  %v4695_v25 = vadd.f32 %v4694_v58, %v4693_v30  ;;  %v4807_v13 = vadd.f32 %v4806_v7, %v4805_v61  ;;  %v5450_v58 = vld [vmem:[%s5532_s9 + $0x648] ss:$56 sps:$4 sm:$0xff]  }
 0x1cc   : > { %v4696_v54 = vpop.f32.mrf.mxu1  ;;  %3360 = vmatmul.mubr.bf16.gmra.mxu1 %v5438_v10  ;;  %v4808_v47 = vpop.f32.mrf.mxu0  ;;  %3521 = vmatmul.mubr.bf16.gmra.mxu0 %v5443_v1  ;;  %v5455_v7 = vld [vmem:[%s5532_s9 + $0x650] ss:$56 sps:$4 sm:$0xff]  }
 0x1cd   : > { %v2971_v23 = vadd.f32 %v4695_v25, %v6110_v56  ;;  %3367 = vmatprep.mubr.bf16.mxu1 %v5446_v52  ;;  %4156 = vmatprep.mubr.msk.bf16.mxu0 %vm2377_vm0, %v5447_v5 }
 0x1ce   : > { %v4697_v41 = vpop.f32.mrf.mxu1  ;;  %v4809_v26 = vpop.f32.mrf.mxu0 }
 0x1cf   : > { %v6290_v31 = vadd.f32 %v4807_v13, %v2971_v23  ;;  %v4698_v28 = vadd.f32 %v4697_v41, %v4696_v54  ;;  %v4810_v36 = vadd.f32 %v4809_v26, %v4808_v47  ;;  %v5458_v13 = vld [vmem:[%s5532_s9 + $0x6bc] ss:$56 sps:$4 sm:$0xff]  }
 0x1d0   : > { %v4699_v62 = vpop.f32.mrf.mxu1  ;;  %v4811_v32 = vpop.f32.mrf.mxu0  ;;  %v5459_v54 = vld [vmem:[%s5532_s9 + $0x6c4] ss:$56 sps:$4 sm:$0xff]  }
 0x1d1   : > { %v2976_v45 = vadd.f32 %v4698_v28, %v6118_v14 }
 0x1d2   : > { %v4700_v22 = vpop.f32.mrf.mxu1  ;;  %v4812_v16 = vpop.f32.mrf.mxu0 }
 0x1d3   : > { %v6297_v56 = vadd.f32 %v4810_v36, %v2976_v45  ;;  %v4701_v0 = vadd.f32 %v4700_v22, %v4699_v62  ;;  %v4813_v50 = vadd.f32 %v4812_v16, %v4811_v32  ;;  %v5456_v22 = vld [vmem:[%s5532_s9 + $0x6b8] ss:$56 sps:$4 sm:$0xff]  }
 0x1d4   : > { %v4702_v53 = vpop.f32.mrf.mxu1  ;;  %3368 = vmatmul.mubr.bf16.gmra.mxu1 %v5444_v34  ;;  %v4814_v9 = vpop.f32.mrf.mxu0  ;;  %3529 = vmatmul.mubr.bf16.gmra.mxu0 %v5449_v55  ;;  %v5461_v16 = vld [vmem:[%s5532_s9 + $0x6c0] ss:$56 sps:$4 sm:$0xff]   ;;  %s3809_s9 = sshll.u32 %s6438_s16, 2 }
 0x1d5   : > { %v2979_v30 = vadd.f32 %v4701_v0, %v6122_v33  ;;  %3375 = vmatprep.mubr.bf16.mxu1 %v5452_v27  ;;  %4157 = vmatprep.mubr.msk.bf16.mxu0 %vm2377_vm0, %v5453_v43  ;;  %s6383_s22 = scalar_lea.vmem %s6436_s3, %s3809_s9 }
 0x1d6   : > { %v4703_v14 = vpop.f32.mrf.mxu1  ;;  %v4815_v61 = vpop.f32.mrf.mxu0 }
 0x1d7   : > { %v6301_v10 = vadd.f32 %v4813_v50, %v2979_v30  ;;  %v4704_v1 = vadd.f32 %v4703_v14, %v4702_v53  ;;  %v4816_v63 = vadd.f32 %v4815_v61, %v4814_v9 }
 0x1d8   : > { %v4705_v52 = vpop.f32.mrf.mxu1  ;;  %v4817_v5 = vpop.f32.mrf.mxu0 }
 0x1d9   : > { %v2984_v25 = vadd.f32 %v4704_v1, %v6130_v19 }
 0x1da   : > { %v4706_v47 = vpop.f32.mrf.mxu1  ;;  %v4818_v23 = vpop.f32.mrf.mxu0 }
 0x1db   : > { %v6308_v33 = vadd.f32 %v4816_v63, %v2984_v25  ;;  %v4707_v41 = vadd.f32 %v4706_v47, %v4705_v52  ;;  %v4819_v26 = vadd.f32 %v4818_v23, %v4817_v5 }
 0x1dc   : > { %v4708_v28 = vpop.f32.mrf.mxu1  ;;  %3376 = vmatmul.mubr.bf16.gmra.mxu1 %v5450_v58  ;;  %v4820_v36 = vpop.f32.mrf.mxu0  ;;  %3537 = vmatmul.mubr.bf16.gmra.mxu0 %v5455_v7 }
 0x1dd   : > { %v2987_v62 = vadd.f32 %v4707_v41, %v6134_v12  ;;  %3383 = vmatprep.mubr.bf16.mxu1 %v5458_v13  ;;  %4158 = vmatprep.mubr.msk.bf16.mxu0 %vm2377_vm0, %v5459_v54 }
 0x1de   : > { %v4709_v19 = vpop.f32.mrf.mxu1  ;;  %v4821_v32 = vpop.f32.mrf.mxu0 }
 0x1df   : > { %v6312_v34 = vadd.f32 %v4819_v26, %v2987_v62  ;;  %v4710_v55 = vadd.f32 %v4709_v19, %v4708_v28  ;;  %v4822_v45 = vadd.f32 %v4821_v32, %v4820_v36 }
 0x1e0   : > { %v4711_v27 = vpop.f32.mrf.mxu1  ;;  %v4823_v43 = vpop.f32.mrf.mxu0 }
 0x1e1   : > { %v2992_v0 = vadd.f32 %v4710_v55, %v6142_v42 }
 0x1e2   : > { %v4712_v50 = vpop.f32.mrf.mxu1  ;;  %v4824_v53 = vpop.f32.mrf.mxu0 }
 0x1e3   : > { %v6317_v9 = vadd.f32 %v4822_v45, %v2992_v0  ;;  %v4713_v12 = vadd.f32 %v4712_v50, %v4711_v27  ;;  %v4825_v30 = vadd.f32 %v4824_v53, %v4823_v43 }
 0x1e4   : > { %v4714_v14 = vpop.f32.mrf.mxu1  ;;  %3384 = vmatmul.mubr.bf16.gmra.mxu1 %v5456_v22  ;;  %v4826_v61 = vpop.f32.mrf.mxu0  ;;  %3545 = vmatmul.mubr.bf16.gmra.mxu0 %v5461_v16 }
 0x1e5   : > { %v2995_v1 = vadd.f32 %v4713_v12, %v6147_v51 }
 0x1e6   : > { %v4715_v63 = vpop.f32.mrf.mxu1  ;;  %v4827_v52 = vpop.f32.mrf.mxu0 }
 0x1e7   : > { %v6320_v5 = vadd.f32 %v4825_v30, %v2995_v1  ;;  %v4716_v58 = vadd.f32 %v4715_v63, %v4714_v14  ;;  %v4828_v7 = vadd.f32 %v4827_v52, %v4826_v61 }
 0x1e8   : > { %v4717_v25 = vpop.f32.mrf.mxu1  ;;  %v4829_v42 = vpop.f32.mrf.mxu0 }
 0x1e9   : > { %v3000_v13 = vadd.f32 %v4716_v58, %v6155_v3 }
 0x1ea   : > { %v4718_v54 = vpop.f32.mrf.mxu1  ;;  %v4830_v47 = vpop.f32.mrf.mxu0 }
 0x1eb   : > { %v6323_v23 = vadd.f32 %v4828_v7, %v3000_v13  ;;  %v4719_v41 = vadd.f32 %v4718_v54, %v4717_v25  ;;  %v4831_v26 = vadd.f32 %v4830_v47, %v4829_v42 }
 0x1ec   : > { %v4720_v28 = vpop.f32.mrf.mxu1  ;;  %v4832_v36 = vpop.f32.mrf.mxu0 }
 0x1ed   : > { %v3003_v51 = vadd.f32 %v4719_v41, %v6158_v29 }
 0x1ee   : > { %v4721_v62 = vpop.f32.mrf.mxu1  ;;  %v4833_v19 = vpop.f32.mrf.mxu0 }
 0x1ef   : > { %v6326_v32 = vadd.f32 %v4831_v26, %v3003_v51  ;;  %v4722_v55 = vadd.f32 %v4721_v62, %v4720_v28  ;;  %v4834_v45 = vadd.f32 %v4833_v19, %v4832_v36 }
 0x1f0   : > { %v4723_v27 = vpop.f32.mrf.mxu1  ;;  %v4835_v43 = vpop.f32.mrf.mxu0 }
 0x1f1   : > { %v3008_v3 = vadd.f32 %v4722_v55, %v6165_v6 }
 0x1f2   : > { %v4724_v22 = vpop.f32.mrf.mxu1  ;;  %v4836_v16 = vpop.f32.mrf.mxu0 }
 0x1f3   : > { %v6329_v0 = vadd.f32 %v4834_v45, %v3008_v3  ;;  %v4725_v50 = vadd.f32 %v4724_v22, %v4723_v27  ;;  %v4837_v53 = vadd.f32 %v4836_v16, %v4835_v43 }
 0x1f4   : > { %v4726_v12 = vpop.f32.mrf.mxu1  ;;  %v4838_v30 = vpop.f32.mrf.mxu0 }
 0x1f5   : > { %v3011_v29 = vadd.f32 %v4725_v50, %v6169_v2 }
 0x1f6   : > { %v4727_v14 = vpop.f32.mrf.mxu1  ;;  %v4839_v61 = vpop.f32.mrf.mxu0 }
 0x1f7   : > { %v6332_v1 = vadd.f32 %v4837_v53, %v3011_v29  ;;  %v4728_v63 = vadd.f32 %v4727_v14, %v4726_v12  ;;  %v4840_v52 = vadd.f32 %v4839_v61, %v4838_v30 }
 0x1f8   : > { %v4729_v58 = vpop.f32.mrf.mxu1  ;;  %v4841_v7 = vpop.f32.mrf.mxu0 }
 0x1f9   : > { %v3016_v6 = vadd.f32 %v4728_v63, %v6176_v24 }
 0x1fa   : > { %v4730_v25 = vpop.f32.mrf.mxu1  ;;  %v4842_v42 = vpop.f32.mrf.mxu0 }
 0x1fb   : > { %v6335_v13 = vadd.f32 %v4840_v52, %v3016_v6  ;;  %v4731_v54 = vadd.f32 %v4730_v25, %v4729_v58  ;;  %v4843_v47 = vadd.f32 %v4842_v42, %v4841_v7 }
 0x1fc   : > { %v4732_v41 = vpop.f32.mrf.mxu1  ;;  %v4844_v26 = vpop.f32.mrf.mxu0 }
 0x1fd   : > { %v3019_v2 = vadd.f32 %v4731_v54, %v6180_v37 }
 0x1fe   : > { %v4733_v28 = vpop.f32.mrf.mxu1  ;;  %v4845_v36 = vpop.f32.mrf.mxu0 }
 0x1ff   : > { %v6338_v51 = vadd.f32 %v4843_v47, %v3019_v2  ;;  %v4734_v62 = vadd.f32 %v4733_v28, %v4732_v41  ;;  %v4846_v19 = vadd.f32 %v4845_v36, %v4844_v26 }
 0x200   : > { %v4735_v55 = vpop.f32.mrf.mxu1  ;;  %v4847_v45 = vpop.f32.mrf.mxu0 }
 0x201   : > { %v3024_v24 = vadd.f32 %v4734_v62, %v6187_v46 }
 0x202   : > { %v4736_v27 = vpop.f32.mrf.mxu1  ;;  %v4848_v43 = vpop.f32.mrf.mxu0 }
 0x203   : > { %v6341_v3 = vadd.f32 %v4846_v19, %v3024_v24  ;;  %v4737_v22 = vadd.f32 %v4736_v27, %v4735_v55  ;;  %v4849_v16 = vadd.f32 %v4848_v43, %v4847_v45 }
 0x204   : > { %v4738_v50 = vpop.f32.mrf.mxu1  ;;  %v4850_v53 = vpop.f32.mrf.mxu0 }
 0x205   : > { %v3027_v37 = vadd.f32 %v4737_v22, %v6191_v18 }
 0x206   : > { %v4739_v12 = vpop.f32.mrf.mxu1  ;;  %v4851_v30 = vpop.f32.mrf.mxu0 }
 0x207   : > { %v6344_v29 = vadd.f32 %v4849_v16, %v3027_v37  ;;  %v4740_v14 = vadd.f32 %v4739_v12, %v4738_v50  ;;  %v4852_v61 = vadd.f32 %v4851_v30, %v4850_v53 }
 0x208   : > { %v4741_v63 = vpop.f32.mrf.mxu1  ;;  %v4853_v52 = vpop.f32.mrf.mxu0 }
 0x209   : > { %v3032_v46 = vadd.f32 %v4740_v14, %v6198_v8 }
 0x20a   : > { %v4742_v58 = vpop.f32.mrf.mxu1  ;;  %v4854_v7 = vpop.f32.mrf.mxu0 }
 0x20b   : > { %v6347_v6 = vadd.f32 %v4852_v61, %v3032_v46  ;;  %v4743_v25 = vadd.f32 %v4742_v58, %v4741_v63  ;;  %v4855_v42 = vadd.f32 %v4854_v7, %v4853_v52 }
 0x20c   : > { %v4744_v54 = vpop.f32.mrf.mxu1  ;;  %v4856_v47 = vpop.f32.mrf.mxu0 }
 0x20d   : > { %v3035_v18 = vadd.f32 %v4743_v25, %v6202_v48 }
 0x20e   : > { %v4745_v41 = vpop.f32.mrf.mxu1  ;;  %v4857_v26 = vpop.f32.mrf.mxu0 }
 0x20f   : > { %v6350_v2 = vadd.f32 %v4855_v42, %v3035_v18  ;;  %v4746_v28 = vadd.f32 %v4745_v41, %v4744_v54  ;;  %v4858_v36 = vadd.f32 %v4857_v26, %v4856_v47 }
 0x210   : > { %v4747_v62 = vpop.f32.mrf.mxu1  ;;  %v4859_v19 = vpop.f32.mrf.mxu0 }
 0x211   : > { %v3040_v8 = vadd.f32 %v4746_v28, %v6209_v35 }
 0x212   : > { %v4748_v55 = vpop.f32.mrf.mxu1  ;;  %v4860_v45 = vpop.f32.mrf.mxu0 }
 0x213   : > { %v6353_v24 = vadd.f32 %v4858_v36, %v3040_v8  ;;  %v4749_v27 = vadd.f32 %v4748_v55, %v4747_v62  ;;  %v4861_v43 = vadd.f32 %v4860_v45, %v4859_v19 }
 0x214   : > { %v4750_v22 = vpop.f32.mrf.mxu1  ;;  %v4862_v16 = vpop.f32.mrf.mxu0 }
 0x215   : > { %v3043_v48 = vadd.f32 %v4749_v27, %v6213_v40 }
 0x216   : > { %v4751_v50 = vpop.f32.mrf.mxu1  ;;  %v4863_v53 = vpop.f32.mrf.mxu0 }
 0x217   : > { %v6356_v37 = vadd.f32 %v4861_v43, %v3043_v48  ;;  %v4752_v12 = vadd.f32 %v4751_v50, %v4750_v22  ;;  %v4864_v30 = vadd.f32 %v4863_v53, %v4862_v16 }
 0x218   : > { %v4753_v14 = vpop.f32.mrf.mxu1  ;;  %v4865_v61 = vpop.f32.mrf.mxu0 }
 0x219   : > { %v3048_v35 = vadd.f32 %v4752_v12, %v6220_v59 }
 0x21a   : > { %v4754_v63 = vpop.f32.mrf.mxu1  ;;  %v4866_v52 = vpop.f32.mrf.mxu0 }
 0x21b   : > { %v6359_v46 = vadd.f32 %v4864_v30, %v3048_v35  ;;  %v4755_v58 = vadd.f32 %v4754_v63, %v4753_v14  ;;  %v4867_v7 = vadd.f32 %v4866_v52, %v4865_v61 }
 0x21c   : > { %v4756_v25 = vpop.f32.mrf.mxu1  ;;  %v4868_v42 = vpop.f32.mrf.mxu0 }
 0x21d   : > { %v3051_v40 = vadd.f32 %v4755_v58, %v6224_v57 }
 0x21e   : > { %v4757_v54 = vpop.f32.mrf.mxu1  ;;  %v4869_v47 = vpop.f32.mrf.mxu0 }
 0x21f   : > { %v6362_v18 = vadd.f32 %v4867_v7, %v3051_v40  ;;  %v4758_v41 = vadd.f32 %v4757_v54, %v4756_v25  ;;  %v4870_v26 = vadd.f32 %v4869_v47, %v4868_v42 }
 0x220   : > { %v4759_v28 = vpop.f32.mrf.mxu1  ;;  %v4871_v36 = vpop.f32.mrf.mxu0 }
 0x221   : > { %v3056_v59 = vadd.f32 %v4758_v41, %v6231_v21 }
 0x222   : > { %v4760_v62 = vpop.f32.mrf.mxu1  ;;  %v4872_v19 = vpop.f32.mrf.mxu0 }
 0x223   : > { %v6365_v8 = vadd.f32 %v4870_v26, %v3056_v59  ;;  %v4761_v55 = vadd.f32 %v4760_v62, %v4759_v28  ;;  %v4873_v45 = vadd.f32 %v4872_v19, %v4871_v36 }
 0x224   : > { %v4762_v27 = vpop.f32.mrf.mxu1  ;;  %v4874_v43 = vpop.f32.mrf.mxu0 }
 0x225   : > { %v3059_v57 = vadd.f32 %v4761_v55, %v6235_v11 }
 0x226   : > { %v4763_v22 = vpop.f32.mrf.mxu1  ;;  %v4875_v16 = vpop.f32.mrf.mxu0 }
 0x227   : > { %v6368_v48 = vadd.f32 %v4873_v45, %v3059_v57  ;;  %v4764_v50 = vadd.f32 %v4763_v22, %v4762_v27  ;;  %v4876_v53 = vadd.f32 %v4875_v16, %v4874_v43 }
 0x228   : > { %v4765_v12 = vpop.f32.mrf.mxu1  ;;  %v4877_v30 = vpop.f32.mrf.mxu0 }
 0x229   : > { %v3064_v21 = vadd.f32 %v4764_v50, %v6242_v49 }
 0x22a   : > { %v4766_v14 = vpop.f32.mrf.mxu1  ;;  %v4878_v61 = vpop.f32.mrf.mxu0 }
 0x22b   : > { %v6371_v35 = vadd.f32 %v4876_v53, %v3064_v21  ;;  %v4767_v63 = vadd.f32 %v4766_v14, %v4765_v12  ;;  %v4879_v52 = vadd.f32 %v4878_v61, %v4877_v30 }
 0x22c   : > { %v4896_v58 = vpop.f32.mrf.mxu1  ;;  %v3426_v7 = vpop.f32.mrf.mxu0 }
 0x22d   : > { %v3067_v11 = vadd.f32 %v4767_v63, %v6246_v4 }
 0x22e   : > { %v4897_v25 = vpop.f32.mrf.mxu1  ;;  %v3428_v42 = vpop.f32.mrf.mxu0 }
 0x22f   : > { %v6374_v40 = vadd.f32 %v4879_v52, %v3067_v11  ;;  %v4898_v54 = vadd.f32 %v4897_v25, %v4896_v58 }
 0x230   : > { %v4899_v47 = vpop.f32.mrf.mxu1  ;;  %v3429_v41 = vpop.f32.mrf.mxu0 }
 0x231   : > { %v3266_v49 = vadd.f32 %v4898_v54, %v6253_v15 }
 0x232   : > { %v4900_v26 = vpop.f32.mrf.mxu1  ;;  %v3431_v28 = vpop.f32.mrf.mxu0 }
 0x233   : > { %v4901_v36 = vadd.f32 %v4900_v26, %v4899_v47  ;;  %v3427_v19 = vadd.f32 %v3426_v7, %v3266_v49 }
 0x234   : > { %v4902_v59 = vpop.f32.mrf.mxu1  ;;  %v3434_v62 = vpop.f32.mrf.mxu0 }
 0x235   : > { %v3269_v55 = vadd.f32 %v4901_v36, %v6257_v39  ;;  %v3553_v16 = vmax.f32 %v3427_v19, 0.0 }
 0x236   : > { %v4903_v45 = vpop.f32.mrf.mxu1  ;;  %v3436_v4 = vpop.f32.mrf.mxu0 }
 0x237   : > { %v3430_v27 = vadd.f32 %v3429_v41, %v3269_v55  ;;  %v4904_v43 = vadd.f32 %v4903_v45, %v4902_v59 }
 0x238   : > { %v4905_v57 = vpop.f32.mrf.mxu1  ;;  %v3437_v22 = vpop.f32.mrf.mxu0 }
 0x239   : > { %v3554_v50 = vmax.f32 %v3430_v27, 0.0  ;;  %v3274_v53 = vadd.f32 %v4904_v43, %v6264_v60 }
 0x23a   : > { %v4906_v15 = vpop.f32.mrf.mxu1  ;;  %v3439_v12 = vpop.f32.mrf.mxu0 }
 0x23b   : > { %v4228_v39 = vpack.c.bf16 %v3554_v50, %v3553_v16  ;;  %v4907_v30 = vadd.f32 %v4906_v15, %v4905_v57  ;;  %v3435_v61 = vadd.f32 %v3434_v62, %v3274_v53 }
 0x23c   : > { %v4908_v21 = vpop.f32.mrf.mxu1  ;;  %v3442_v14 = vpop.f32.mrf.mxu0 }
 0x23d   : > { %4229 = vst [vmem:[%s6383_s22] sm:$0xff] %v4228_v39   ;;  %v3277_v63 = vadd.f32 %v4907_v30, %v6268_v20  ;;  %v3555_v42 = vmax.f32 %v3435_v61, 0.0 }
 0x23e   : > { %v4909_v52 = vpop.f32.mrf.mxu1  ;;  %v3444_v58 = vpop.f32.mrf.mxu0 }
 0x23f   : > { %v3438_v60 = vadd.f32 %v3437_v22, %v3277_v63  ;;  %v4910_v7 = vadd.f32 %v4909_v52, %v4908_v21 }
 0x240   : > { %v4911_v11 = vpop.f32.mrf.mxu1  ;;  %v3445_v25 = vpop.f32.mrf.mxu0 }
 0x241   : > { %v3556_v54 = vmax.f32 %v3438_v60, 0.0  ;;  %v3282_v47 = vadd.f32 %v4910_v7, %v6275_v38 }
 0x242   : > { %v4912_v41 = vpop.f32.mrf.mxu1  ;;  %v3447_v49 = vpop.f32.mrf.mxu0 }
 0x243   : > { %v4233_v26 = vpack.c.bf16 %v3556_v54, %v3555_v42  ;;  %v4913_v28 = vadd.f32 %v4912_v41, %v4911_v11  ;;  %v3443_v62 = vadd.f32 %v3442_v14, %v3282_v47 }
 0x244   : > { %v4914_v36 = vpop.f32.mrf.mxu1  ;;  %v3450_v59 = vpop.f32.mrf.mxu0 }
 0x245   : > { %4305 = vst [vmem:[%s6383_s22 + $0x8] sm:$0xff] %v4233_v26   ;;  %v3285_v20 = vadd.f32 %v4913_v28, %v6279_v44  ;;  %v3557_v57 = vmax.f32 %v3443_v62, 0.0 }
 0x246   : > { %v4915_v19 = vpop.f32.mrf.mxu1  ;;  %v3452_v55 = vpop.f32.mrf.mxu0 }
 0x247   : > { %v3446_v45 = vadd.f32 %v3445_v25, %v3285_v20  ;;  %v4916_v4 = vadd.f32 %v4915_v19, %v4914_v36 }
 0x248   : > { %v4917_v27 = vpop.f32.mrf.mxu1  ;;  %v3453_v43 = vpop.f32.mrf.mxu0 }
 0x249   : > { %v3558_v22 = vmax.f32 %v3446_v45, 0.0  ;;  %v3290_v38 = vadd.f32 %v4916_v4, %v6286_v17 }
 0x24a   : > { %v4918_v16 = vpop.f32.mrf.mxu1  ;;  %v3455_v50 = vpop.f32.mrf.mxu0 }
 0x24b   : > { %v4238_v53 = vpack.c.bf16 %v3558_v22, %v3557_v57  ;;  %v4919_v15 = vadd.f32 %v4918_v16, %v4917_v27  ;;  %v3451_v30 = vadd.f32 %v3450_v59, %v3290_v38 }
 0x24c   : > { %v4920_v12 = vpop.f32.mrf.mxu1  ;;  %v3458_v39 = vpop.f32.mrf.mxu0 }
 0x24d   : > { %4306 = vst [vmem:[%s6383_s22 + $0x10] sm:$0xff] %v4238_v53   ;;  %v3293_v44 = vadd.f32 %v4919_v15, %v6290_v31  ;;  %v3559_v60 = vmax.f32 %v3451_v30, 0.0 }
 0x24e   : > { %v4921_v21 = vpop.f32.mrf.mxu1  ;;  %v3460_v14 = vpop.f32.mrf.mxu0 }
 0x24f   : > { %v3454_v61 = vadd.f32 %v3453_v43, %v3293_v44  ;;  %v4922_v63 = vadd.f32 %v4921_v21, %v4920_v12 }
 0x250   : > { %v4923_v52 = vpop.f32.mrf.mxu1  ;;  %v3461_v58 = vpop.f32.mrf.mxu0 }
 0x251   : > { %v3560_v7 = vmax.f32 %v3454_v61, 0.0  ;;  %v3298_v17 = vadd.f32 %v4922_v63, %v6297_v56 }
 0x252   : > { %v4924_v11 = vpop.f32.mrf.mxu1  ;;  %v3463_v25 = vpop.f32.mrf.mxu0 }
 0x253   : > { %v4243_v42 = vpack.c.bf16 %v3560_v7, %v3559_v60  ;;  %v4925_v54 = vadd.f32 %v4924_v11, %v4923_v52  ;;  %v3459_v49 = vadd.f32 %v3458_v39, %v3298_v17 }
 0x254   : > { %v4926_v47 = vpop.f32.mrf.mxu1  ;;  %v3466_v41 = vpop.f32.mrf.mxu0 }
 0x255   : > { %4307 = vst [vmem:[%s6383_s22 + $0x18] sm:$0xff] %v4243_v42   ;;  %v3301_v31 = vadd.f32 %v4925_v54, %v6301_v10  ;;  %v3561_v19 = vmax.f32 %v3459_v49, 0.0 }
 0x256   : > { %v4927_v26 = vpop.f32.mrf.mxu1  ;;  %v3468_v28 = vpop.f32.mrf.mxu0 }
 0x257   : > { %v3462_v36 = vadd.f32 %v3461_v58, %v3301_v31  ;;  %v4928_v59 = vadd.f32 %v4927_v26, %v4926_v47 }
 0x258   : > { %v4929_v62 = vpop.f32.mrf.mxu1  ;;  %v3469_v20 = vpop.f32.mrf.mxu0 }
 0x259   : > { %v3562_v55 = vmax.f32 %v3462_v36, 0.0  ;;  %v3306_v56 = vadd.f32 %v4928_v59, %v6308_v33 }
 0x25a   : > { %v4930_v45 = vpop.f32.mrf.mxu1  ;;  %v3471_v4 = vpop.f32.mrf.mxu0 }
 0x25b   : > { %v4248_v27 = vpack.c.bf16 %v3562_v55, %v3561_v19  ;;  %v4931_v43 = vadd.f32 %v4930_v45, %v4929_v62  ;;  %v3467_v38 = vadd.f32 %v3466_v41, %v3306_v56 }
 0x25c   : > { %v4932_v57 = vpop.f32.mrf.mxu1  ;;  %v3474_v22 = vpop.f32.mrf.mxu0 }
 0x25d   : > { %4308 = vst [vmem:[%s6383_s22 + $0x20] sm:$0xff] %v4248_v27   ;;  %v3309_v10 = vadd.f32 %v4931_v43, %v6312_v34  ;;  %v3563_v30 = vmax.f32 %v3467_v38, 0.0 }
 0x25e   : > { %v4933_v16 = vpop.f32.mrf.mxu1  ;;  %v3476_v50 = vpop.f32.mrf.mxu0 }
 0x25f   : > { %v3470_v53 = vadd.f32 %v3469_v20, %v3309_v10  ;;  %v4934_v15 = vadd.f32 %v4933_v16, %v4932_v57 }
 0x260   : > { %v4935_v12 = vpop.f32.mrf.mxu1  ;;  %v3477_v39 = vpop.f32.mrf.mxu0 }
 0x261   : > { %v3564_v44 = vmax.f32 %v3470_v53, 0.0  ;;  %v3314_v33 = vadd.f32 %v4934_v15, %v6317_v9 }
 0x262   : > { %v4936_v21 = vpop.f32.mrf.mxu1  ;;  %v3479_v14 = vpop.f32.mrf.mxu0 }
 0x263   : > { %v4253_v61 = vpack.c.bf16 %v3564_v44, %v3563_v30  ;;  %v4937_v63 = vadd.f32 %v4936_v21, %v4935_v12  ;;  %v3475_v60 = vadd.f32 %v3474_v22, %v3314_v33 }
 0x264   : > { %v4938_v52 = vpop.f32.mrf.mxu1  ;;  %v3482_v58 = vpop.f32.mrf.mxu0 }
 0x265   : > { %4309 = vst [vmem:[%s6383_s22 + $0x28] sm:$0xff] %v4253_v61   ;;  %v3317_v34 = vadd.f32 %v4937_v63, %v6320_v5  ;;  %v3565_v47 = vmax.f32 %v3475_v60, 0.0 }
 0x266   : > { %v4939_v7 = vpop.f32.mrf.mxu1  ;;  %v3484_v17 = vpop.f32.mrf.mxu0 }
 0x267   : > { %v3478_v11 = vadd.f32 %v3477_v39, %v3317_v34  ;;  %v4940_v25 = vadd.f32 %v4939_v7, %v4938_v52 }
 0x268   : > { %v4941_v42 = vpop.f32.mrf.mxu1  ;;  %v3485_v54 = vpop.f32.mrf.mxu0 }
 0x269   : > { %v3566_v41 = vmax.f32 %v3478_v11, 0.0  ;;  %v3322_v9 = vadd.f32 %v4940_v25, %v6323_v23 }
 0x26a   : > { %v4942_v49 = vpop.f32.mrf.mxu1  ;;  %v3487_v31 = vpop.f32.mrf.mxu0 }
 0x26b   : > { %v4258_v26 = vpack.c.bf16 %v3566_v41, %v3565_v47  ;;  %v4943_v28 = vadd.f32 %v4942_v49, %v4941_v42  ;;  %v3483_v62 = vadd.f32 %v3482_v58, %v3322_v9 }
 0x26c   : > { %v4944_v36 = vpop.f32.mrf.mxu1  ;;  %v3490_v59 = vpop.f32.mrf.mxu0 }
 0x26d   : > { %4310 = vst [vmem:[%s6383_s22 + $0x30] sm:$0xff] %v4258_v26   ;;  %v3325_v5 = vadd.f32 %v4943_v28, %v6326_v32  ;;  %v3567_v27 = vmax.f32 %v3483_v62, 0.0 }
 0x26e   : > { %v4945_v20 = vpop.f32.mrf.mxu1  ;;  %v3492_v19 = vpop.f32.mrf.mxu0 }
 0x26f   : > { %v3486_v55 = vadd.f32 %v3485_v54, %v3325_v5  ;;  %v4946_v56 = vadd.f32 %v4945_v20, %v4944_v36 }
 0x270   : > { %v4947_v45 = vpop.f32.mrf.mxu1  ;;  %v3493_v4 = vpop.f32.mrf.mxu0 }
 0x271   : > { %v3568_v43 = vmax.f32 %v3486_v55, 0.0  ;;  %v3330_v23 = vadd.f32 %v4946_v56, %v6329_v0 }
 0x272   : > { %v4948_v57 = vpop.f32.mrf.mxu1  ;;  %v3495_v22 = vpop.f32.mrf.mxu0 }
 0x273   : > { %v4263_v38 = vpack.c.bf16 %v3568_v43, %v3567_v27  ;;  %v4949_v10 = vadd.f32 %v4948_v57, %v4947_v45  ;;  %v3491_v53 = vadd.f32 %v3490_v59, %v3330_v23 }
 0x274   : > { %v4950_v16 = vpop.f32.mrf.mxu1  ;;  %v3498_v50 = vpop.f32.mrf.mxu0 }
 0x275   : > { %4311 = vst [vmem:[%s6383_s22 + $0x38] sm:$0xff] %v4263_v38   ;;  %v3333_v32 = vadd.f32 %v4949_v10, %v6332_v1  ;;  %v3569_v21 = vmax.f32 %v3491_v53, 0.0 }
 0x276   : > { %v4951_v15 = vpop.f32.mrf.mxu1  ;;  %v3500_v12 = vpop.f32.mrf.mxu0 }
 0x277   : > { %v3494_v39 = vadd.f32 %v3493_v4, %v3333_v32  ;;  %v4952_v30 = vadd.f32 %v4951_v15, %v4950_v16 }
 0x278   : > { %v4953_v44 = vpop.f32.mrf.mxu1  ;;  %v3501_v33 = vpop.f32.mrf.mxu0 }
 0x279   : > { %v3570_v14 = vmax.f32 %v3494_v39, 0.0  ;;  %v3338_v0 = vadd.f32 %v4952_v30, %v6335_v13 }
 0x27a   : > { %v4954_v61 = vpop.f32.mrf.mxu1  ;;  %v3503_v63 = vpop.f32.mrf.mxu0 }
 0x27b   : > { %v4268_v52 = vpack.c.bf16 %v3570_v14, %v3569_v21  ;;  %v4955_v58 = vadd.f32 %v4954_v61, %v4953_v44  ;;  %v3499_v7 = vadd.f32 %v3498_v50, %v3338_v0 }
 0x27c   : > { %v4956_v60 = vpop.f32.mrf.mxu1  ;;  %v3506_v34 = vpop.f32.mrf.mxu0 }
 0x27d   : > { %4312 = vst [vmem:[%s6383_s22 + $0x40] sm:$0xff] %v4268_v52   ;;  %v3341_v1 = vadd.f32 %v4955_v58, %v6338_v51  ;;  %v3571_v41 = vmax.f32 %v3499_v7, 0.0 }
 0x27e   : > { %v4957_v17 = vpop.f32.mrf.mxu1  ;;  %v3508_v11 = vpop.f32.mrf.mxu0 }
 0x27f   : > { %v3502_v25 = vadd.f32 %v3501_v33, %v3341_v1  ;;  %v4958_v42 = vadd.f32 %v4957_v17, %v4956_v60 }
 0x280   : > { %v4959_v54 = vpop.f32.mrf.mxu1  ;;  %v3509_v47 = vpop.f32.mrf.mxu0 }
 0x281   : > { %v3572_v9 = vmax.f32 %v3502_v25, 0.0  ;;  %v3346_v13 = vadd.f32 %v4958_v42, %v6341_v3 }
 0x282   : > { %v4960_v49 = vpop.f32.mrf.mxu1  ;;  %v3511_v31 = vpop.f32.mrf.mxu0 }
 0x283   : > { %v4273_v26 = vpack.c.bf16 %v3572_v9, %v3571_v41  ;;  %v4961_v28 = vadd.f32 %v4960_v49, %v4959_v54  ;;  %v3507_v62 = vadd.f32 %v3506_v34, %v3346_v13 }
 0x284   : > { %v4962_v36 = vpop.f32.mrf.mxu1  ;;  %v3514_v59 = vpop.f32.mrf.mxu0 }
 0x285   : > { %4313 = vst [vmem:[%s6383_s22 + $0x48] sm:$0xff] %v4273_v26   ;;  %v3349_v51 = vadd.f32 %v4961_v28, %v6344_v29  ;;  %v3573_v4 = vmax.f32 %v3507_v62, 0.0 }
 0x286   : > { %v4963_v5 = vpop.f32.mrf.mxu1  ;;  %v3516_v20 = vpop.f32.mrf.mxu0 }
 0x287   : > { %v3510_v19 = vadd.f32 %v3509_v47, %v3349_v51  ;;  %v4964_v55 = vadd.f32 %v4963_v5, %v4962_v36 }
 0x288   : > { %v4965_v56 = vpop.f32.mrf.mxu1  ;;  %v3517_v45 = vpop.f32.mrf.mxu0 }
 0x289   : > { %v3574_v27 = vmax.f32 %v3510_v19, 0.0  ;;  %v3354_v3 = vadd.f32 %v4964_v55, %v6347_v6 }
 0x28a   : > { %v4966_v43 = vpop.f32.mrf.mxu1  ;;  %v3519_v23 = vpop.f32.mrf.mxu0 }
 0x28b   : > { %v4278_v57 = vpack.c.bf16 %v3574_v27, %v3573_v4  ;;  %v4967_v22 = vadd.f32 %v4966_v43, %v4965_v56  ;;  %v3515_v16 = vadd.f32 %v3514_v59, %v3354_v3 }
 0x28c   : > { %v4968_v38 = vpop.f32.mrf.mxu1  ;;  %v3522_v10 = vpop.f32.mrf.mxu0 }
 0x28d   : > { %4314 = vst [vmem:[%s6383_s22 + $0x50] sm:$0xff] %v4278_v57   ;;  %v3357_v29 = vadd.f32 %v4967_v22, %v6350_v2  ;;  %v3575_v30 = vmax.f32 %v3515_v16, 0.0 }
 0x28e   : > { %v4969_v50 = vpop.f32.mrf.mxu1  ;;  %v3524_v53 = vpop.f32.mrf.mxu0 }
 0x28f   : > { %v3518_v32 = vadd.f32 %v3517_v45, %v3357_v29  ;;  %v4970_v15 = vadd.f32 %v4969_v50, %v4968_v38 }
 0x290   : > { %v4971_v12 = vpop.f32.mrf.mxu1  ;;  %v3525_v39 = vpop.f32.mrf.mxu0 }
 0x291   : > { %v3576_v44 = vmax.f32 %v3518_v32, 0.0  ;;  %v3362_v6 = vadd.f32 %v4970_v15, %v6353_v24 }
 0x292   : > { %v4972_v33 = vpop.f32.mrf.mxu1  ;;  %v3527_v21 = vpop.f32.mrf.mxu0 }
 0x293   : > { %v4283_v14 = vpack.c.bf16 %v3576_v44, %v3575_v30  ;;  %v4973_v0 = vadd.f32 %v4972_v33, %v4971_v12  ;;  %v3523_v52 = vadd.f32 %v3522_v10, %v3362_v6 }
 0x294   : > { %v4974_v61 = vpop.f32.mrf.mxu1  ;;  %v3530_v63 = vpop.f32.mrf.mxu0 }
 0x295   : > { %4315 = vst [vmem:[%s6383_s22 + $0x58] sm:$0xff] %v4283_v14   ;;  %v3365_v2 = vadd.f32 %v4973_v0, %v6356_v37  ;;  %v3577_v11 = vmax.f32 %v3523_v52, 0.0 }
 0x296   : > { %v4975_v58 = vpop.f32.mrf.mxu1  ;;  %v3532_v60 = vpop.f32.mrf.mxu0 }
 0x297   : > { %v3526_v34 = vadd.f32 %v3525_v39, %v3365_v2  ;;  %v4976_v7 = vadd.f32 %v4975_v58, %v4974_v61 }
 0x298   : > { %v4977_v1 = vpop.f32.mrf.mxu1  ;;  %v3533_v17 = vpop.f32.mrf.mxu0 }
 0x299   : > { %v3578_v25 = vmax.f32 %v3526_v34, 0.0  ;;  %v3370_v24 = vadd.f32 %v4976_v7, %v6359_v46 }
 0x29a   : > { %v4978_v42 = vpop.f32.mrf.mxu1  ;;  %v3535_v54 = vpop.f32.mrf.mxu0 }
 0x29b   : > { %v4288_v47 = vpack.c.bf16 %v3578_v25, %v3577_v11  ;;  %v4979_v41 = vadd.f32 %v4978_v42, %v4977_v1  ;;  %v3531_v49 = vadd.f32 %v3530_v63, %v3370_v24 }
 0x29c   : > { %v4980_v9 = vpop.f32.mrf.mxu1  ;;  %v3538_v13 = vpop.f32.mrf.mxu0 }
 0x29d   : > { %4316 = vst [vmem:[%s6383_s22 + $0x60] sm:$0xff] %v4288_v47   ;;  %v3373_v37 = vadd.f32 %v4979_v41, %v6362_v18  ;;  %v3579_v51 = vmax.f32 %v3531_v49, 0.0 }
 0x29e   : > { %v4981_v31 = vpop.f32.mrf.mxu1  ;;  %v3540_v26 = vpop.f32.mrf.mxu0 }
 0x29f   : > { %v3534_v28 = vadd.f32 %v3533_v17, %v3373_v37  ;;  %v4982_v36 = vadd.f32 %v4981_v31, %v4980_v9 }
 0x2a0   : > { %v4983_v59 = vpop.f32.mrf.mxu1  ;;  %v3541_v62 = vpop.f32.mrf.mxu0 }
 0x2a1   : > { %v3580_v5 = vmax.f32 %v3534_v28, 0.0  ;;  %v3378_v46 = vadd.f32 %v4982_v36, %v6365_v8 }
 0x2a2   : > { %v4984_v20 = vpop.f32.mrf.mxu1  ;;  %v3543_v19 = vpop.f32.mrf.mxu0 }
 0x2a3   : > { %v4293_v55 = vpack.c.bf16 %v3580_v5, %v3579_v51  ;;  %v4985_v56 = vadd.f32 %v4984_v20, %v4983_v59  ;;  %v3539_v18 = vadd.f32 %v3538_v13, %v3378_v46 }
 0x2a4   : > { %v4986_v45 = vpop.f32.mrf.mxu1  ;;  %v3546_v4 = vpop.f32.mrf.mxu0 }
 0x2a5   : > { %4317 = vst [vmem:[%s6383_s22 + $0x68] sm:$0xff] %v4293_v55   ;;  %v3381_v27 = vadd.f32 %v4985_v56, %v6368_v48  ;;  %v3581_v10 = vmax.f32 %v3539_v18, 0.0 }
 0x2a6   : > { %v4987_v3 = vpop.f32.mrf.mxu1  ;;  %v3548_v43 = vpop.f32.mrf.mxu0 }
 0x2a7   : > { %v3542_v23 = vadd.f32 %v3541_v62, %v3381_v27  ;;  %v4988_v57 = vadd.f32 %v4987_v3, %v4986_v45 }
 0x2a8   : > { %v4989_v22 = vpop.f32.mrf.mxu1  ;;  %v3549_v38 = vpop.f32.mrf.mxu0 }
 0x2a9   : > { %v3582_v8 = vmax.f32 %v3542_v23, 0.0  ;;  %v3386_v16 = vadd.f32 %v4988_v57, %v6371_v35 }
 0x2aa   : > { %v4990_v29 = vpop.f32.mrf.mxu1  ;;  %v3551_v50 = vpop.f32.mrf.mxu0 }
 0x2ab   : > { %v4298_v53 = vpack.c.bf16 %v3582_v8, %v3581_v10  ;;  %v4991_v32 = vadd.f32 %v4990_v29, %v4989_v22  ;;  %v3547_v15 = vadd.f32 %v3546_v4, %v3386_v16 }
 0x2ad   : > { %4318 = vst [vmem:[%s6383_s22 + $0x70] sm:$0xff] %v4298_v53   ;;  %v3389_v12 = vadd.f32 %v4991_v32, %v6374_v40  ;;  %v3583_v39 = vmax.f32 %v3547_v15, 0.0 }
 0x2af   : > { %v3550_v48 = vadd.f32 %v3549_v38, %v3389_v12 }
 0x2b1   : > { %v3584_v30 = vmax.f32 %v3550_v48, 0.0 }
 0x2b3   : > { %v4303_v44 = vpack.c.bf16 %v3584_v30, %v3583_v39 }
 0x2b5   : > { %4319 = vst [vmem:[%s6383_s22 + $0x78] sm:$0xff] %v4303_v44  }
 0x2b6 PF: > { %s13_s12 = sadd.s32 1, %s5468_s12  }
 0x2b7   : > { %p10_p4 = scmp.ge.s32.totalorder %s13_s12, 6  }
 0x2b9   :  { %12 = sbr.rel (!%p10_p4) target bundleno = 1 (0x1), region = 62 }

// kernel: octree_resblock2.3
= control target key start
LH: loop header
LB: loop body
LE: loop exit
PB: predicated region body
PF: predicated region fallthrough
CT: control target
= control target key end

     0   :  { %s10667_s21 = smov 0   ;;  %s13233_s0 = inlined_call_operand.vmem [shape: bf16[1024,3456], index: 0, kind: input, shape index: {}]   ;;  %s13234_s1 = inlined_call_operand.vmem [shape: bf16[3456,128], index: 1, kind: input, shape index: {}]   ;;  %s13235_s2 = inlined_call_operand.vmem [shape: f32[1,128], index: 2, kind: input, shape index: {}]   ;;  %s13236_s3 = inlined_call_operand.vmem [shape: bf16[1024,64], index: 3, kind: input, shape index: {}]   ;;  %s13237_s4 = inlined_call_operand.vmem [shape: bf16[64,128], index: 4, kind: input, shape index: {}]   ;;  %s13238_s5 = inlined_call_operand.vmem [shape: f32[1,128], index: 5, kind: input, shape index: {}]   ;;  %s13239_s6 = inlined_call_operand.vmem [shape: f32[1024,128], index: 6, kind: output, shape index: {}]  }
   0x1 LB: > { %s7451_s22 = sadd.s32 4294967295, %s10630_s21   ;;  %p7455_p0 = scmp.ge.s32.totalorder %s10630_s21, 1  ;;  %s10630_s21 = sphi %s10667_s21, %s16_s21  }
   0x2   : > { %p225_p1 = scmp.lt.s32.totalorder %s10630_s21, 5 }
   0x4   : > { %p226_p2 = pnand %p7455_p0, %p225_p1 }
   0x6   : > { %229 = sbr.rel (%p226_p2) target bundleno = 1145 (0x479), region = 44 }
   0xb   : > { %v9747_v0 = vld [vmem:[%s13237_s4 + $0x18] sm:$0xff]   ;;  %s7456_s25 = sshll.u32 %s7451_s22, 5  ;;  %v9750_v3 = vld [vmem:[%s13237_s4 + $0x10] sm:$0xff]   ;;  %v9753_v6 = vld [vmem:[%s13237_s4 + $0x8] sm:$0xff]   ;;  %vm1305_vm0 = vcmask 523264  }
   0xc   : > { %v9748_v1 = vld [vmem:[%s13234_s1 + $0x78] sm:$0xff]   ;;  %p262_p3 = scmp.lt.s32.totalorder %s7456_s25, 127  ;;  %9650 = vmatprep.subr.bf16.mxu0 %v9747_v0  ;;  %v9751_v4 = vld [vmem:[%s13234_s1 + $0x70] sm:$0xff]   ;;  %v9754_v7 = vld [vmem:[%s13234_s1 + $0x68] sm:$0xff]  }
   0xd   : > { %v9749_v2 = vld [vmem:[%s13234_s1 + $0x38] sm:$0xff]   ;;  %8170 = vmatprep.subr.bf16.mxu1 %v9748_v1  ;;  %9651 = vmatpush3.bf16.msra.mxu0 %v9747_v0  ;;  %v9752_v5 = vld [vmem:[%s13234_s1 + $0x30] sm:$0xff]   ;;  %v9755_v8 = vld [vmem:[%s13234_s1 + $0x28] sm:$0xff]  }
   0xe   : > { %s13313_s25 = smov (!%p262_p3, %s7456_s25), 127  ;;  %8171 = vmatpush3.bf16.msra.mxu1 %v9749_v2  ;;  %9652 = vmatprep.subr.bf16.mxu0 %v9750_v3  ;;  %v9756_v9 = vld [vmem:[%s13237_s4] sm:$0xff]   ;;  %v9761_v14 = vld [vmem:[%s13234_s1 + $0x58] sm:$0xff]   ;;  %v9763_v16 = vld [vmem:[%s13234_s1 + $0x50] sm:$0xff]  }
   0xf   : > { %8172 = vmatprep.subr.bf16.mxu1 %v9751_v4  ;;  %s7459_s14 = sshll.u32 %s13313_s25, 2  ;;  %v9757_v10 = vld [vmem:[%s13234_s1 + $0x60] sm:$0xff]   ;;  %v9762_v15 = vld [vmem:[%s13234_s1 + $0x18] sm:$0xff]   ;;  %s9738_s12 = smul.u32 108, %s13313_s25  ;;  %v9764_v18 = vld [vmem:[%s13234_s1 + $0x10] sm:$0xff]  }
  0x10   : > { %s10711_s24 = scalar_lea.vmem %s13236_s3, %s7459_s14  ;;  %v9758_v11 = vld [vmem:[%s13234_s1 + $0x20] sm:$0xff]   ;;  %v9767_v19 = vld [vmem:[%s13234_s1 + $0x48] sm:$0xff]   ;;  %v9776_v28 = vld [vmem:[%s13234_s1 + $0x178] sm:$0xff]  }
  0x11   : > { %9653 = vmatpush3.bf16.msra.mxu0 %v9750_v3  ;;  %v9759_v12 = vld [vmem:[%s10711_s24] sm:$0xff]   ;;  %v9760_v13 = vld [vmem:[%s10711_s24 + $0x8] sm:$0xff]   ;;  %v9765_v17 = vld [vmem:[%s10711_s24 + $0x10] sm:$0xff]   ;;  %s10745_s19 = scalar_lea.vmem %s13233_s0, %s9738_s12 }
  0x12   : > { %8173 = vmatpush3.bf16.msra.mxu1 %v9752_v5  ;;  %9654 = vmatprep.subr.bf16.mxu0 %v9753_v6  ;;  %v9766_v20 = vld [vmem:[%s10711_s24 + $0x18] sm:$0xff]   ;;  %v9768_v21 = vld [vmem:[%s13234_s1 + $0x8] sm:$0xff]   ;;  %v9771_v22 = vld [vmem:[%s10711_s24 + $0x20] sm:$0xff]  }
  0x13   : > { %8174 = vmatprep.subr.bf16.mxu1 %v9754_v7  ;;  %9658 = vmatprep.mubr.msk.bf16.mxu0 %vm1305_vm0, %v9759_v12  ;;  %v9769_v23 = vld [vmem:[%s13234_s1 + $0x40] sm:$0xff]   ;;  %v9775_v26 = vld [vmem:[%s10711_s24 + $0x28] sm:$0xff]   ;;  %v9777_v29 = vld [vmem:[%s13234_s1 + $0x138] sm:$0xff]  }
  0x14   : > { %v9774_v24 = vld [vmem:[%s10745_s19 + $0x4] ss:$108 sps:$4 sm:$0xff]   ;;  %v9772_v27 = vld [vmem:[%s10745_s19] ss:$108 sps:$4 sm:$0xff]   ;;  %v9778_v30 = vld [vmem:[%s13234_s1 + $0xf8] sm:$0xff]  }
  0x15   : > { %9655 = vmatpush3.bf16.msra.mxu0 %v9753_v6  ;;  %v9770_v25 = vld [vmem:[%s13234_s1] sm:$0xff]   ;;  %5026 = vmatprep.mubr.bf16.mxu1 %v9774_v24  ;;  %v9779_v31 = vld [vmem:[%s13234_s1 + $0xb8] sm:$0xff]   ;;  %v9780_v32 = vld [vmem:[%s10711_s24 + $0x30] sm:$0xff]  }
  0x16   : > { %8175 = vmatpush3.bf16.msra.mxu1 %v9755_v8  ;;  %9656 = vmatprep.subr.bf16.mxu0 %v9756_v9  ;;  %v9781_v33 = vld [vmem:[%s10745_s19 + $0xdc] ss:$108 sps:$4 sm:$0xff]   ;;  %v9785_v34 = vld [vmem:[%s13234_s1 + $0xf0] sm:$0xff]   ;;  %v9784_v37 = vld [vmem:[%s10745_s19 + $0xd8] ss:$108 sps:$4 sm:$0xff]  }
  0x17   : > { %8176 = vmatprep.subr.bf16.mxu1 %v9757_v10  ;;  %v9786_v35 = vld [vmem:[%s13234_s1 + $0xb0] sm:$0xff]   ;;  %v9783_v36 = vld [vmem:[%s10711_s24 + $0x38] sm:$0xff]   ;;  %v9787_v38 = vld [vmem:[%s10711_s24 + $0x40] sm:$0xff]  }
  0x18   : > { %v9788_v39 = vld [vmem:[%s10745_s19 + $0x1b4] ss:$108 sps:$4 sm:$0xff]   ;;  %v9794_v42 = vld [vmem:[%s13234_s1 + $0xe8] sm:$0xff]   ;;  %v9791_v45 = vld [vmem:[%s10745_s19 + $0x1b0] ss:$108 sps:$4 sm:$0xff]  }
  0x19   : > { %9657 = vmatpush3.bf16.msra.mxu0 %v9756_v9  ;;  %v9792_v40 = vld [vmem:[%s13234_s1 + $0x170] sm:$0xff]   ;;  %v9795_v43 = vld [vmem:[%s13234_s1 + $0xa8] sm:$0xff]   ;;  %v9801_v48 = vld [vmem:[%s13234_s1 + $0xe0] sm:$0xff]  }
  0x1a   : > { %8177 = vmatpush3.bf16.msra.mxu1 %v9758_v11  ;;  %8282 = vmatprep.subr.bf16.mxu0 %v9778_v30  ;;  %v9793_v41 = vld [vmem:[%s13234_s1 + $0x130] sm:$0xff]   ;;  %v9790_v44 = vld [vmem:[%s10711_s24 + $0x48] sm:$0xff]   ;;  %v9802_v49 = vld [vmem:[%s13234_s1 + $0xa0] sm:$0xff]  }
  0x1b   : > { %8178 = vmatprep.subr.bf16.mxu1 %v9761_v14  ;;  %v9796_v46 = vld [vmem:[%s10711_s24 + $0x50] sm:$0xff]   ;;  %v9797_v47 = vld [vmem:[%s10745_s19 + $0x28c] ss:$108 sps:$4 sm:$0xff]   ;;  %v9803_v52 = vld [vmem:[%s10711_s24 + $0x60] sm:$0xff]  }
  0x1c   : > { %9659 = vmatmul.mubr.msk.bf16.vlgmr.msra.gmra.mxu0 %vm1305_vm0, %v9760_v13  ;;  %v9799_v50 = vld [vmem:[%s10711_s24 + $0x58] sm:$0xff]   ;;  %v9800_v51 = vld [vmem:[%s10745_s19 + $0x288] ss:$108 sps:$4 sm:$0xff]   ;;  %v9804_v54 = vld [vmem:[%s10745_s19 + $0x364] ss:$108 sps:$4 sm:$0xff]  }
  0x1d   : > { %9662 = vmatprep.mubr.msk.bf16.mxu0 %vm1305_vm0, %v9765_v17  ;;  %8283 = vmatpush3.bf16.msra.mxu0 %v9779_v31  ;;  %v9808_v53 = vld [vmem:[%s13234_s1 + $0xd8] sm:$0xff]   ;;  %v9809_v55 = vld [vmem:[%s13234_s1 + $0x168] sm:$0xff]   ;;  %v9812_v58 = vld [vmem:[%s13234_s1 + $0xd0] sm:$0xff]  }
  0x1e   : > { %8179 = vmatpush3.bf16.msra.mxu1 %v9762_v15  ;;  %8284 = vmatprep.subr.bf16.mxu0 %v9785_v34  ;;  %v9810_v56 = vld [vmem:[%s13234_s1 + $0x98] sm:$0xff]   ;;  %v9811_v57 = vld [vmem:[%s13234_s1 + $0x128] sm:$0xff]   ;;  %v9813_v59 = vld [vmem:[%s13234_s1 + $0x90] sm:$0xff]  }
  0x1f   : > { %8180 = vmatprep.subr.bf16.mxu1 %v9763_v16  ;;  %v9806_v60 = vld [vmem:[%s10711_s24 + $0x68] sm:$0xff]   ;;  %v9814_v62 = vld [vmem:[%s10711_s24 + $0x70] sm:$0xff]   ;;  %v9821_v2 = vld [vmem:[%s13234_s1 + $0xc0] sm:$0xff]  }
  0x20   : > { %v9807_v61 = vld [vmem:[%s10745_s19 + $0x360] ss:$108 sps:$4 sm:$0xff]   ;;  %v9815_v63 = vld [vmem:[%s10745_s19 + $0x43c] ss:$108 sps:$4 sm:$0xff]   ;;  %v9818_v5 = vld [vmem:[%s10745_s19 + $0x438] ss:$108 sps:$4 sm:$0xff]  }
  0x21   : > { %8285 = vmatpush3.bf16.msra.mxu0 %v9786_v35  ;;  %v9819_v0 = vld [vmem:[%s13234_s1 + $0xc8] sm:$0xff]   ;;  %v9822_v3 = vld [vmem:[%s13234_s1 + $0x80] sm:$0xff]   ;;  %v9817_v4 = vld [vmem:[%s10711_s24 + $0x78] sm:$0xff]   ;;  %s7461_s24 = sshll.u32 %s13313_s25, 3 }
  0x22   : > { %8181 = vmatpush3.bf16.msra.mxu1 %v9764_v18  ;;  %8286 = vmatprep.subr.bf16.mxu0 %v9794_v42  ;;  %v9820_v1 = vld [vmem:[%s13234_s1 + $0x88] sm:$0xff]   ;;  %v9829_v6 = vld [vmem:[%s13234_s1 + $0x160] sm:$0xff]   ;;  %v9843_v11 = vld [vmem:[%s13234_s1 + $0x158] sm:$0xff]   ;;  %s13094_s14 = scalar_lea.vmem %s13239_s6, %s7461_s24 }
  0x23   : > { %8182 = vmatprep.subr.bf16.mxu1 %v9767_v19  ;;  %v9830_v7 = vld [vmem:[%s13234_s1 + $0x120] sm:$0xff]   ;;  %v9827_v8 = vld [vmem:[%s10745_s19 + $0xc] ss:$108 sps:$4 sm:$0xff]   ;;  %v9825_v10 = vld [vmem:[%s10745_s19 + $0x8] ss:$108 sps:$4 sm:$0xff]  }
  0x24   : > { %9663 = vmatmul.mubr.msk.bf16.gmra.mxu0 %vm1305_vm0, %v9766_v20  ;;  %v9823_v9 = vld [vmem:[%s10745_s19 + $0x514] ss:$108 sps:$4 sm:$0xff]   ;;  %v9828_v12 = vld [vmem:[%s10745_s19 + $0x510] ss:$108 sps:$4 sm:$0xff]   ;;  %v9831_v14 = vld [vmem:[%s10745_s19 + $0x5ec] ss:$108 sps:$4 sm:$0xff]  }
  0x25   : > { %9666 = vmatprep.mubr.msk.bf16.mxu0 %vm1305_vm0, %v9771_v22  ;;  %8287 = vmatpush3.bf16.msra.mxu0 %v9795_v43  ;;  %v9844_v13 = vld [vmem:[%s13234_s1 + $0x118] sm:$0xff]   ;;  %v9833_v16 = vld [vmem:[%s10745_s19 + $0xe4] ss:$108 sps:$4 sm:$0xff]   ;;  %v9836_v18 = vld [vmem:[%s10745_s19 + $0xe0] ss:$108 sps:$4 sm:$0xff]  }
  0x26   : > { %8183 = vmatpush3.bf16.msra.mxu1 %v9768_v21  ;;  %8288 = vmatprep.subr.bf16.mxu0 %v9801_v48  ;;  %v9845_v15 = vld [vmem:[%s13234_s1 + $0x1f8] sm:$0xff]   ;;  %v9835_v19 = vld [vmem:[%s10745_s19 + $0x5e8] ss:$108 sps:$4 sm:$0xff]   ;;  %v9837_v21 = vld [vmem:[%s10745_s19 + $0x6c4] ss:$108 sps:$4 sm:$0xff]  }
  0x27   : > { %8184 = vmatprep.subr.bf16.mxu1 %v9769_v23  ;;  %v9846_v17 = vld [vmem:[%s13234_s1 + $0x1b8] sm:$0xff]   ;;  %v9859_v22 = vld [vmem:[%s13234_s1 + $0x150] sm:$0xff]   ;;  %v9875_v30 = vld [vmem:[%s13234_s1 + $0x148] sm:$0xff]  }
  0x28   : > { %v9839_v20 = vld [vmem:[%s10745_s19 + $0x1bc] ss:$108 sps:$4 sm:$0xff]   ;;  %v9860_v23 = vld [vmem:[%s13234_s1 + $0x110] sm:$0xff]   ;;  %v9851_v35 = vld [vmem:[%s10745_s19 + $0x798] ss:$108 sps:$4 sm:$0xff]  }
  0x29   : > { %8289 = vmatpush3.bf16.msra.mxu0 %v9802_v49  ;;  %v9861_v24 = vld [vmem:[%s13234_s1 + $0x1f0] sm:$0xff]   ;;  %v9876_v31 = vld [vmem:[%s13234_s1 + $0x108] sm:$0xff]   ;;  %v9910_v48 = vld [vmem:[%s13234_s1 + $0x198] sm:$0xff]  }
  0x2a   : > { %8185 = vmatpush3.bf16.msra.mxu1 %v9770_v25  ;;  %8290 = vmatprep.subr.bf16.mxu0 %v9808_v53  ;;  %v9862_v25 = vld [vmem:[%s13234_s1 + $0x1b0] sm:$0xff]   ;;  %v9868_v49 = vld [vmem:[%s10745_s19 + $0x440] ss:$108 sps:$4 sm:$0xff]   ;;  %v9874_v53 = vld [vmem:[%s10745_s19 + $0x518] ss:$108 sps:$4 sm:$0xff]  }
  0x2b   : > { %8394 = vmatprep.subr.bf16.mxu1 %v9776_v28  ;;  %v9847_v28 = vld [vmem:[%s10745_s19 + $0x79c] ss:$108 sps:$4 sm:$0xff]  }
  0x2c   : > { %9667 = vmatmul.mubr.msk.bf16.gmra.mxu0 %vm1305_vm0, %v9775_v26  ;;  %v9841_v26 = vld [vmem:[%s10745_s19 + $0x6c0] ss:$108 sps:$4 sm:$0xff]   ;;  %v9852_v34 = vld [vmem:[%s10745_s19 + $0x290] ss:$108 sps:$4 sm:$0xff]   ;;  %v9858_v43 = vld [vmem:[%s10745_s19 + $0x368] ss:$108 sps:$4 sm:$0xff]  }
  0x2d   : > { %5027 = vmatmul.mubr.bf16.vlgmr.msra.gmra.mxu1 %v9772_v27  ;;  %9670 = vmatprep.mubr.msk.bf16.mxu0 %vm1305_vm0, %v9780_v32  ;;  %v9842_v27 = vld [vmem:[%s10745_s19 + $0x1b8] ss:$108 sps:$4 sm:$0xff]   ;;  %v9877_v32 = vld [vmem:[%s13234_s1 + $0x1e8] sm:$0xff]   ;;  %v9857_v42 = vld [vmem:[%s10745_s19 + $0x870] ss:$108 sps:$4 sm:$0xff]  }
  0x2e   : > { %8395 = vmatpush3.bf16.msra.mxu1 %v9777_v29  ;;  %5034 = vmatprep.mubr.bf16.mxu1 %v9781_v33  ;;  %v9849_v29 = vld [vmem:[%s10745_s19 + $0x294] ss:$108 sps:$4 sm:$0xff]   ;;  %v9878_v33 = vld [vmem:[%s13234_s1 + $0x1a8] sm:$0xff]  }
  0x2f   : > { %8396 = vmatprep.subr.bf16.mxu1 %v9792_v40  ;;  %8291 = vmatpush3.bf16.msra.mxu0 %v9810_v56  ;;  %v9893_v40 = vld [vmem:[%s13234_s1 + $0x1e0] sm:$0xff]   ;;  %v9926_v56 = vld [vmem:[%s13234_s1 + $0x190] sm:$0xff]  }
  0x30   : > { %8292 = vmatprep.subr.bf16.mxu0 %v9812_v58  ;;  %v9879_v58 = vld [vmem:[%s10745_s19 + $0xafc] ss:$108 sps:$4 sm:$0xff]  }
  0x32   : > { %8397 = vmatpush3.bf16.msra.mxu1 %v9793_v41  ;;  %v9894_v41 = vld [vmem:[%s13234_s1 + $0x1a0] sm:$0xff]  }
  0x33   : > { %8398 = vmatprep.subr.bf16.mxu1 %v9809_v55  ;;  %8293 = vmatpush3.bf16.msra.mxu0 %v9813_v59  ;;  %v9925_v55 = vld [vmem:[%s13234_s1 + $0x1d0] sm:$0xff]  }
  0x34   : > { %9671 = vmatmul.mubr.msk.bf16.gmra.mxu0 %vm1305_vm0, %v9783_v36  ;;  %8294 = vmatprep.subr.bf16.mxu0 %v9819_v0  ;;  %v9853_v36 = vld [vmem:[%s10745_s19 + $0x874] ss:$108 sps:$4 sm:$0xff]   ;;  %v9884_v59 = vld [vmem:[%s10745_s19 + $0x5f0] ss:$108 sps:$4 sm:$0xff]  }
  0x35   : > { %5035 = vmatmul.mubr.bf16.gmra.mxu1 %v9784_v37  ;;  %9674 = vmatprep.mubr.msk.bf16.mxu0 %vm1305_vm0, %v9787_v38  ;;  %v9855_v37 = vld [vmem:[%s10745_s19 + $0x36c] ss:$108 sps:$4 sm:$0xff]   ;;  %v9891_v38 = vld [vmem:[%s13234_s1 + $0x140] sm:$0xff]  }
  0x36   : > { %5042 = vmatprep.mubr.bf16.mxu1 %v9788_v39  ;;  %8399 = vmatpush3.bf16.msra.mxu1 %v9811_v57  ;;  %v9892_v39 = vld [vmem:[%s13234_s1 + $0x100] sm:$0xff]  }
  0x37   : > { %8295 = vmatpush3.bf16.msra.mxu0 %v9820_v1  ;;  %8400 = vmatprep.subr.bf16.mxu1 %v9829_v6  ;;  %v9881_v57 = vld [vmem:[%s10745_s19 + $0x5f4] ss:$108 sps:$4 sm:$0xff]   ;;  %v9895_v6 = vld [vmem:[%s10745_s19 + $0xcac] ss:$108 sps:$4 sm:$0xff]  }
  0x38   : > { %8296 = vmatprep.subr.bf16.mxu0 %v9821_v2  ;;  %v9885_v0 = vld [vmem:[%s10745_s19 + $0xbd4] ss:$108 sps:$4 sm:$0xff]  }
  0x39   : > { %v9949_v1 = vld [vmem:[%s13234_s1 + $0x1c0] sm:$0xff]  }
  0x3a   : > { %8401 = vmatpush3.bf16.msra.mxu1 %v9830_v7  ;;  %v9950_v2 = vld [vmem:[%s13234_s1 + $0x180] sm:$0xff]   ;;  %v9899_v7 = vld [vmem:[%s10745_s19 + $0xca8] ss:$108 sps:$4 sm:$0xff]  }
  0x3b   : > { %8297 = vmatpush3.bf16.msra.mxu0 %v9822_v3  ;;  %8402 = vmatprep.subr.bf16.mxu1 %v9843_v11  ;;  %v9889_v3 = vld [vmem:[%s10745_s19 + $0xbd0] ss:$108 sps:$4 sm:$0xff]  }
  0x3c   : > { %9675 = vmatmul.mubr.msk.bf16.gmra.mxu0 %vm1305_vm0, %v9790_v44  ;;  %8506 = vmatprep.subr.bf16.mxu0 %v9845_v15  ;;  %v9865_v44 = vld [vmem:[%s10745_s19 + $0x444] ss:$108 sps:$4 sm:$0xff]   ;;  %v9973_v11 = vld [vmem:[%s13234_s1 + $0x2f8] sm:$0xff]   ;;  %v9911_v15 = vld [vmem:[%s10745_s19 + $0x954] ss:$108 sps:$4 sm:$0xff]  }
  0x3d   : > { %5043 = vmatmul.mubr.bf16.gmra.mxu1 %v9791_v45  ;;  %9678 = vmatprep.mubr.msk.bf16.mxu0 %vm1305_vm0, %v9796_v46  ;;  %v9863_v45 = vld [vmem:[%s10745_s19 + $0x94c] ss:$108 sps:$4 sm:$0xff]  }
  0x3e   : > { %5050 = vmatprep.mubr.bf16.mxu1 %v9797_v47  ;;  %8403 = vmatpush3.bf16.msra.mxu1 %v9844_v13  ;;  %v9907_v46 = vld [vmem:[%s13234_s1 + $0x278] sm:$0xff]  }
  0x3f   : > { %8404 = vmatprep.subr.bf16.mxu1 %v9859_v22  ;;  %v9909_v47 = vld [vmem:[%s13234_s1 + $0x1d8] sm:$0xff]  }
  0x40   : > { %v9906_v13 = vld [vmem:[%s10745_s19 + $0x878] ss:$108 sps:$4 sm:$0xff]  }
  0x41   : > { %v9917_v22 = vld [vmem:[%s10745_s19 + $0xa2c] ss:$108 sps:$4 sm:$0xff]  }
  0x42   : > { %8405 = vmatpush3.bf16.msra.mxu1 %v9860_v23  ;;  %v9919_v23 = vld [vmem:[%s10745_s19 + $0x1c4] ss:$108 sps:$4 sm:$0xff]  }
  0x43   : > { %8406 = vmatprep.subr.bf16.mxu1 %v9875_v30  ;;  %v9927_v30 = vld [vmem:[%s10745_s19 + $0xb04] ss:$108 sps:$4 sm:$0xff]  }
  0x44   : > { %9679 = vmatmul.mubr.msk.bf16.gmra.mxu0 %vm1305_vm0, %v9799_v50  ;;  %v9867_v50 = vld [vmem:[%s10745_s19 + $0x948] ss:$108 sps:$4 sm:$0xff]  }
  0x45   : > { %5051 = vmatmul.mubr.bf16.gmra.mxu1 %v9800_v51  ;;  %9682 = vmatprep.mubr.msk.bf16.mxu0 %vm1305_vm0, %v9803_v52  ;;  %v9871_v51 = vld [vmem:[%s10745_s19 + $0x51c] ss:$108 sps:$4 sm:$0xff]   ;;  %v9869_v52 = vld [vmem:[%s10745_s19 + $0xa24] ss:$108 sps:$4 sm:$0xff]  }
  0x46   : > { %5058 = vmatprep.mubr.bf16.mxu1 %v9804_v54  ;;  %8407 = vmatpush3.bf16.msra.mxu1 %v9876_v31  ;;  %v9873_v54 = vld [vmem:[%s10745_s19 + $0xa20] ss:$108 sps:$4 sm:$0xff]   ;;  %v9929_v31 = vld [vmem:[%s10745_s19 + $0x29c] ss:$108 sps:$4 sm:$0xff]  }
  0x47   : > { %8408 = vmatprep.subr.bf16.mxu1 %v9891_v38  ;;  %v9933_v38 = vld [vmem:[%s10745_s19 + $0xbdc] ss:$108 sps:$4 sm:$0xff]  }
  0x4a   : > { %8409 = vmatpush3.bf16.msra.mxu1 %v9892_v39  ;;  %v9935_v39 = vld [vmem:[%s10745_s19 + $0x374] ss:$108 sps:$4 sm:$0xff]  }
  0x4b   : > { %8618 = vmatprep.subr.bf16.mxu1 %v9907_v46  ;;  %v9943_v46 = vld [vmem:[%s10745_s19 + $0xcb4] ss:$108 sps:$4 sm:$0xff]  }
  0x4c   : > { %9683 = vmatmul.mubr.msk.bf16.gmra.mxu0 %vm1305_vm0, %v9806_v60  ;;  %v9883_v60 = vld [vmem:[%s10745_s19 + $0xaf8] ss:$108 sps:$4 sm:$0xff]  }
  0x4d   : > { %5059 = vmatmul.mubr.bf16.gmra.mxu1 %v9807_v61  ;;  %9686 = vmatprep.mubr.msk.bf16.mxu0 %vm1305_vm0, %v9814_v62  ;;  %v9887_v61 = vld [vmem:[%s10745_s19 + $0x6cc] ss:$108 sps:$4 sm:$0xff]  }
  0x4e   : > { %5066 = vmatprep.mubr.bf16.mxu1 %v9815_v63  ;;  %v9941_v62 = vld [vmem:[%s13234_s1 + $0x1c8] sm:$0xff]  }
  0x4f   : > { %v9942_v63 = vld [vmem:[%s13234_s1 + $0x188] sm:$0xff]  }
  0x54   : > { %9687 = vmatmul.mubr.msk.bf16.gmra.mxu0 %vm1305_vm0, %v9817_v4  ;;  %v9890_v4 = vld [vmem:[%s10745_s19 + $0x6c8] ss:$108 sps:$4 sm:$0xff]  }
  0x55   : > { %5067 = vmatmul.mubr.bf16.gmra.mxu1 %v9818_v5  ;;  %5187 = vmatprep.mubr.bf16.mxu0 %v9827_v8  ;;  %v9897_v5 = vld [vmem:[%s10745_s19 + $0x7a4] ss:$108 sps:$4 sm:$0xff]   ;;  %v9900_v8 = vld [vmem:[%s10745_s19 + $0x7a0] ss:$108 sps:$4 sm:$0xff]  }
  0x56   : > { %5074 = vmatprep.mubr.bf16.mxu1 %v9823_v9  ;;  %v9901_v9 = vld [vmem:[%s10745_s19 + $0x87c] ss:$108 sps:$4 sm:$0xff]  }
  0x5c   : > { %5188 = vmatmul.mubr.bf16.vlgmr.msra.gmra.mxu0 %v9825_v10  ;;  %v9905_v10 = vld [vmem:[%s10745_s19 + $0x14] ss:$108 sps:$4 sm:$0xff]  }
  0x5d   : > { %5075 = vmatmul.mubr.bf16.gmra.mxu1 %v9828_v12  ;;  %5195 = vmatprep.mubr.bf16.mxu0 %v9833_v16  ;;  %v9903_v12 = vld [vmem:[%s10745_s19 + $0x10] ss:$108 sps:$4 sm:$0xff]   ;;  %v9913_v16 = vld [vmem:[%s10745_s19 + $0xec] ss:$108 sps:$4 sm:$0xff]  }
  0x5e   : > { %5082 = vmatprep.mubr.bf16.mxu1 %v9831_v14  ;;  %8507 = vmatpush3.bf16.msra.mxu0 %v9846_v17  ;;  %v9908_v14 = vld [vmem:[%s13234_s1 + $0x238] sm:$0xff]   ;;  %v9923_v17 = vld [vmem:[%s13234_s1 + $0x270] sm:$0xff]  }
  0x5f   : > { %8508 = vmatprep.subr.bf16.mxu0 %v9861_v24  ;;  %v9940_v24 = vld [vmem:[%s13234_s1 + $0x228] sm:$0xff]  }
  0x62   : > { %8509 = vmatpush3.bf16.msra.mxu0 %v9862_v25  ;;  %v9957_v25 = vld [vmem:[%s13234_s1 + $0x260] sm:$0xff]  }
  0x63   : > { %8510 = vmatprep.subr.bf16.mxu0 %v9877_v32  ;;  %v9972_v32 = vld [vmem:[%s13234_s1 + $0x218] sm:$0xff]  }
  0x64   : > { %5196 = vmatmul.mubr.bf16.gmra.mxu0 %v9836_v18  ;;  %v9924_v18 = vld [vmem:[%s13234_s1 + $0x230] sm:$0xff]  }
  0x65   : > { %5083 = vmatmul.mubr.bf16.gmra.mxu1 %v9835_v19  ;;  %5203 = vmatprep.mubr.bf16.mxu0 %v9839_v20  ;;  %v9939_v19 = vld [vmem:[%s13234_s1 + $0x268] sm:$0xff]   ;;  %v9915_v20 = vld [vmem:[%s10745_s19 + $0x950] ss:$108 sps:$4 sm:$0xff]  }
  0x66   : > { %5090 = vmatprep.mubr.bf16.mxu1 %v9837_v21  ;;  %8511 = vmatpush3.bf16.msra.mxu0 %v9878_v33  ;;  %v9916_v21 = vld [vmem:[%s10745_s19 + $0xe8] ss:$108 sps:$4 sm:$0xff]  }
  0x67   : > { %8512 = vmatprep.subr.bf16.mxu0 %v9893_v40  ;;  %v9987_v33 = vld [vmem:[%s13234_s1 + $0x250] sm:$0xff]   ;;  %v10004_v40 = vld [vmem:[%s13234_s1 + $0x208] sm:$0xff]  }
  0x6a   : > { %8513 = vmatpush3.bf16.msra.mxu0 %v9894_v41  ;;  %v10019_v41 = vld [vmem:[%s13234_s1 + $0x240] sm:$0xff]  }
  0x6b   : > { %8514 = vmatprep.subr.bf16.mxu0 %v9909_v47  ;;  %v9945_v47 = vld [vmem:[%s10745_s19 + $0x44c] ss:$108 sps:$4 sm:$0xff]  }
  0x6c   : > { %5204 = vmatmul.mubr.bf16.gmra.mxu0 %v9842_v27  ;;  %v9958_v27 = vld [vmem:[%s13234_s1 + $0x220] sm:$0xff]  }
  0x6d   : > { %5091 = vmatmul.mubr.bf16.gmra.mxu1 %v9841_v26  ;;  %5211 = vmatprep.mubr.bf16.mxu0 %v9849_v29  ;;  %v9921_v26 = vld [vmem:[%s10745_s19 + $0xa28] ss:$108 sps:$4 sm:$0xff]   ;;  %v9922_v29 = vld [vmem:[%s10745_s19 + $0x1c0] ss:$108 sps:$4 sm:$0xff]  }
  0x6e   : > { %5098 = vmatprep.mubr.bf16.mxu1 %v9847_v28  ;;  %8515 = vmatpush3.bf16.msra.mxu0 %v9910_v48  ;;  %v9971_v28 = vld [vmem:[%s13234_s1 + $0x258] sm:$0xff]  }
  0x6f   : > { %8516 = vmatprep.subr.bf16.mxu0 %v9925_v55  ;;  %v9947_v48 = vld [vmem:[%s10745_s19 + $0xcb0] ss:$108 sps:$4 sm:$0xff]   ;;  %v9961_v55 = vld [vmem:[%s10745_s19 + $0xf4] ss:$108 sps:$4 sm:$0xff]  }
  0x72   : > { %8517 = vmatpush3.bf16.msra.mxu0 %v9926_v56  ;;  %v9974_v56 = vld [vmem:[%s13234_s1 + $0x2b8] sm:$0xff]  }
  0x73   : > { %8518 = vmatprep.subr.bf16.mxu0 %v9941_v62  ;;  %v10005_v62 = vld [vmem:[%s13234_s1 + $0x2e8] sm:$0xff]  }
  0x74   : > { %5212 = vmatmul.mubr.bf16.gmra.mxu0 %v9852_v34  ;;  %v9931_v34 = vld [vmem:[%s10745_s19 + $0xb00] ss:$108 sps:$4 sm:$0xff]  }
  0x75   : > { %5099 = vmatmul.mubr.bf16.gmra.mxu1 %v9851_v35  ;;  %5219 = vmatprep.mubr.bf16.mxu0 %v9855_v37  ;;  %v9988_v35 = vld [vmem:[%s13234_s1 + $0x210] sm:$0xff]   ;;  %v10003_v37 = vld [vmem:[%s13234_s1 + $0x248] sm:$0xff]  }
  0x76   : > { %5106 = vmatprep.mubr.bf16.mxu1 %v9853_v36  ;;  %8519 = vmatpush3.bf16.msra.mxu0 %v9942_v63  ;;  %v9932_v36 = vld [vmem:[%s10745_s19 + $0x298] ss:$108 sps:$4 sm:$0xff]  }
  0x77   : > { %8520 = vmatprep.subr.bf16.mxu0 %v9949_v1  ;;  %v9967_v1 = vld [vmem:[%s10745_s19 + $0x1cc] ss:$108 sps:$4 sm:$0xff]  }
  0x7a   : > { %8521 = vmatpush3.bf16.msra.mxu0 %v9950_v2 }
  0x7b   : > { %8730 = vmatprep.subr.bf16.mxu0 %v9973_v11 }
  0x7c   : > { %5220 = vmatmul.mubr.bf16.gmra.mxu0 %v9858_v43  ;;  %v10020_v43 = vld [vmem:[%s13234_s1 + $0x200] sm:$0xff]  }
  0x7d   : > { %5107 = vmatmul.mubr.bf16.gmra.mxu1 %v9857_v42  ;;  %5227 = vmatprep.mubr.bf16.mxu0 %v9865_v44  ;;  %v9937_v42 = vld [vmem:[%s10745_s19 + $0xbd8] ss:$108 sps:$4 sm:$0xff]  }
  0x7e   : > { %5114 = vmatprep.mubr.bf16.mxu1 %v9863_v45  ;;  %v10035_v44 = vld [vmem:[%s13234_s1 + $0x378] sm:$0xff]  }
  0x7f   : > { %v9938_v45 = vld [vmem:[%s10745_s19 + $0x370] ss:$108 sps:$4 sm:$0xff]  }
  0x84   : > { %5228 = vmatmul.mubr.bf16.gmra.mxu0 %v9868_v49  ;;  %v9948_v49 = vld [vmem:[%s10745_s19 + $0x448] ss:$108 sps:$4 sm:$0xff]  }
  0x85   : > { %5115 = vmatmul.mubr.bf16.gmra.mxu1 %v9867_v50  ;;  %5235 = vmatprep.mubr.bf16.mxu0 %v9871_v51  ;;  %v9955_v50 = vld [vmem:[%s10745_s19 + $0x1c] ss:$108 sps:$4 sm:$0xff]   ;;  %v9951_v51 = vld [vmem:[%s10745_s19 + $0x524] ss:$108 sps:$4 sm:$0xff]  }
  0x86   : > { %5122 = vmatprep.mubr.bf16.mxu1 %v9869_v52  ;;  %v9953_v52 = vld [vmem:[%s10745_s19 + $0x18] ss:$108 sps:$4 sm:$0xff]  }
  0x8c   : > { %5236 = vmatmul.mubr.bf16.gmra.mxu0 %v9874_v53  ;;  %v9956_v53 = vld [vmem:[%s10745_s19 + $0x520] ss:$108 sps:$4 sm:$0xff]  }
  0x8d   : > { %5123 = vmatmul.mubr.bf16.gmra.mxu1 %v9873_v54  ;;  %5243 = vmatprep.mubr.bf16.mxu0 %v9881_v57  ;;  %v9959_v54 = vld [vmem:[%s10745_s19 + $0x5fc] ss:$108 sps:$4 sm:$0xff]   ;;  %v9989_v57 = vld [vmem:[%s13234_s1 + $0x2f0] sm:$0xff]  }
  0x8e   : > { %5130 = vmatprep.mubr.bf16.mxu1 %v9879_v58 }
  0x94   : > { %5244 = vmatmul.mubr.bf16.gmra.mxu0 %v9884_v59 }
  0x95   : > { %5131 = vmatmul.mubr.bf16.gmra.mxu1 %v9883_v60  ;;  %5251 = vmatprep.mubr.bf16.mxu0 %v9887_v61  ;;  %v9990_v60 = vld [vmem:[%s13234_s1 + $0x2b0] sm:$0xff]   ;;  %v9963_v61 = vld [vmem:[%s10745_s19 + $0x5f8] ss:$108 sps:$4 sm:$0xff]  }
  0x96   : > { %5138 = vmatprep.mubr.bf16.mxu1 %v9885_v0  ;;  %v9964_v0 = vld [vmem:[%s10745_s19 + $0xf0] ss:$108 sps:$4 sm:$0xff]  }
  0x9c   : > { %5252 = vmatmul.mubr.bf16.gmra.mxu0 %v9890_v4  ;;  %v10006_v4 = vld [vmem:[%s13234_s1 + $0x2a8] sm:$0xff]  }
  0x9d   : > { %5139 = vmatmul.mubr.bf16.gmra.mxu1 %v9889_v3  ;;  %5259 = vmatprep.mubr.bf16.mxu0 %v9897_v5  ;;  %v9965_v3 = vld [vmem:[%s10745_s19 + $0x6d4] ss:$108 sps:$4 sm:$0xff]  }
  0x9e   : > { %5146 = vmatprep.mubr.bf16.mxu1 %v9895_v6  ;;  %v10021_v5 = vld [vmem:[%s13234_s1 + $0x2e0] sm:$0xff]  }
  0xa4   : > { %5260 = vmatmul.mubr.bf16.gmra.mxu0 %v9900_v8  ;;  %v10022_v8 = vld [vmem:[%s13234_s1 + $0x2a0] sm:$0xff]  }
  0xa5   : > { %5147 = vmatmul.mubr.bf16.gmra.mxu1 %v9899_v7  ;;  %5267 = vmatprep.mubr.bf16.mxu0 %v9901_v9  ;;  %v9969_v9 = vld [vmem:[%s10745_s19 + $0x6d0] ss:$108 sps:$4 sm:$0xff]  }
  0xa6   : > { %5348 = vmatprep.mubr.bf16.mxu1 %v9905_v10  ;;  %v10037_v10 = vld [vmem:[%s13234_s1 + $0x2d8] sm:$0xff]  }
  0xac   : > { %5268 = vmatmul.mubr.bf16.gmra.mxu0 %v9906_v13  ;;  %v9977_v13 = vld [vmem:[%s10745_s19 + $0x2a4] ss:$108 sps:$4 sm:$0xff]  }
  0xad   : > { %5349 = vmatmul.mubr.bf16.vlgmr.msra.gmra.mxu1 %v9903_v12  ;;  %5275 = vmatprep.mubr.bf16.mxu0 %v9911_v15  ;;  %v9970_v12 = vld [vmem:[%s10745_s19 + $0x1c8] ss:$108 sps:$4 sm:$0xff]   ;;  %v9975_v15 = vld [vmem:[%s10745_s19 + $0x7ac] ss:$108 sps:$4 sm:$0xff]  }
  0xae   : > { %8619 = vmatpush3.bf16.msra.mxu1 %v9908_v14  ;;  %5356 = vmatprep.mubr.bf16.mxu1 %v9913_v16  ;;  %v10038_v16 = vld [vmem:[%s13234_s1 + $0x298] sm:$0xff]  }
  0xaf   : > { %8620 = vmatprep.subr.bf16.mxu1 %v9923_v17  ;;  %v10053_v17 = vld [vmem:[%s13234_s1 + $0x2d0] sm:$0xff]  }
  0xb2   : > { %8621 = vmatpush3.bf16.msra.mxu1 %v9924_v18 }
  0xb3   : > { %8622 = vmatprep.subr.bf16.mxu1 %v9939_v19 }
  0xb4   : > { %5276 = vmatmul.mubr.bf16.gmra.mxu0 %v9915_v20 }
  0xb5   : > { %5357 = vmatmul.mubr.bf16.gmra.mxu1 %v9916_v21  ;;  %5283 = vmatprep.mubr.bf16.mxu0 %v9917_v22  ;;  %v9980_v21 = vld [vmem:[%s10745_s19 + $0x2a0] ss:$108 sps:$4 sm:$0xff]   ;;  %v10054_v22 = vld [vmem:[%s13234_s1 + $0x290] sm:$0xff]  }
  0xb6   : > { %5364 = vmatprep.mubr.bf16.mxu1 %v9919_v23  ;;  %8623 = vmatpush3.bf16.msra.mxu1 %v9940_v24  ;;  %v10069_v23 = vld [vmem:[%s13234_s1 + $0x2c8] sm:$0xff]  }
  0xb7   : > { %8624 = vmatprep.subr.bf16.mxu1 %v9957_v25  ;;  %v9979_v25 = vld [vmem:[%s10745_s19 + $0x7a8] ss:$108 sps:$4 sm:$0xff]  }
  0xba   : > { %8625 = vmatpush3.bf16.msra.mxu1 %v9958_v27 }
  0xbb   : > { %8626 = vmatprep.subr.bf16.mxu1 %v9971_v28 }
  0xbc   : > { %5284 = vmatmul.mubr.bf16.gmra.mxu0 %v9921_v26  ;;  %v9985_v26 = vld [vmem:[%s10745_s19 + $0x37c] ss:$108 sps:$4 sm:$0xff]  }
  0xbd   : > { %5365 = vmatmul.mubr.bf16.gmra.mxu1 %v9922_v29  ;;  %5291 = vmatprep.mubr.bf16.mxu0 %v9927_v30 }
  0xbe   : > { %5372 = vmatprep.mubr.bf16.mxu1 %v9929_v31  ;;  %8627 = vmatpush3.bf16.msra.mxu1 %v9972_v32  ;;  %v9981_v31 = vld [vmem:[%s10745_s19 + $0x884] ss:$108 sps:$4 sm:$0xff]   ;;  %v10070_v32 = vld [vmem:[%s13234_s1 + $0x288] sm:$0xff]  }
  0xbf   : > { %8628 = vmatprep.subr.bf16.mxu1 %v9987_v33 }
  0xc2   : > { %8629 = vmatpush3.bf16.msra.mxu1 %v9988_v35 }
  0xc3   : > { %8630 = vmatprep.subr.bf16.mxu1 %v10003_v37  ;;  %v10078_v37 = vld [vmem:[%s13234_s1 + $0x280] sm:$0xff]  }
  0xc4   : > { %5292 = vmatmul.mubr.bf16.gmra.mxu0 %v9931_v34  ;;  %v10077_v34 = vld [vmem:[%s13234_s1 + $0x2c0] sm:$0xff]  }
  0xc5   : > { %5373 = vmatmul.mubr.bf16.gmra.mxu1 %v9932_v36  ;;  %5299 = vmatprep.mubr.bf16.mxu0 %v9933_v38 }
  0xc6   : > { %5380 = vmatprep.mubr.bf16.mxu1 %v9935_v39  ;;  %8631 = vmatpush3.bf16.msra.mxu1 %v10004_v40  ;;  %v10101_v39 = vld [vmem:[%s13234_s1 + $0x3f8] sm:$0xff]  }
  0xc7   : > { %8632 = vmatprep.subr.bf16.mxu1 %v10019_v41  ;;  %v9983_v41 = vld [vmem:[%s10745_s19 + $0x378] ss:$108 sps:$4 sm:$0xff]  }
  0xca   : > { %8633 = vmatpush3.bf16.msra.mxu1 %v10020_v43  ;;  %v9986_v43 = vld [vmem:[%s10745_s19 + $0x880] ss:$108 sps:$4 sm:$0xff]  }
  0xcb   : > { %8842 = vmatprep.subr.bf16.mxu1 %v10035_v44  ;;  %v9995_v44 = vld [vmem:[%s10745_s19 + $0x454] ss:$108 sps:$4 sm:$0xff]  }
  0xcc   : > { %5300 = vmatmul.mubr.bf16.gmra.mxu0 %v9937_v42 }
  0xcd   : > { %5381 = vmatmul.mubr.bf16.gmra.mxu1 %v9938_v45  ;;  %5307 = vmatprep.mubr.bf16.mxu0 %v9943_v46 }
  0xce   : > { %5388 = vmatprep.mubr.bf16.mxu1 %v9945_v47 }
  0xd4   : > { %5308 = vmatmul.mubr.bf16.gmra.mxu0 %v9947_v48 }
  0xd5   : > { %5389 = vmatmul.mubr.bf16.gmra.mxu1 %v9948_v49  ;;  %5509 = vmatprep.mubr.bf16.mxu0 %v9955_v50  ;;  %v9991_v49 = vld [vmem:[%s10745_s19 + $0x95c] ss:$108 sps:$4 sm:$0xff]  }
  0xd6   : > { %5396 = vmatprep.mubr.bf16.mxu1 %v9951_v51 }
  0xdc   : > { %v11067_v58 = vpop.f32.mrf.mxu0  ;;  %5510 = vmatmul.mubr.bf16.vlgmr.msra.gmra.mxu0 %v9953_v52 }
  0xdd   : > { %5397 = vmatmul.mubr.bf16.gmra.mxu1 %v9956_v53  ;;  %5517 = vmatprep.mubr.bf16.mxu0 %v9961_v55  ;;  %v9993_v55 = vld [vmem:[%s10745_s19 + $0x450] ss:$108 sps:$4 sm:$0xff]  }
  0xde   : > { %v11069_v59 = vpop.f32.mrf.mxu0  ;;  %5404 = vmatprep.mubr.bf16.mxu1 %v9959_v54  ;;  %8731 = vmatpush3.bf16.msra.mxu0 %v9974_v56 }
  0xdf   : > { %8732 = vmatprep.subr.bf16.mxu0 %v9989_v57  ;;  %v9996_v57 = vld [vmem:[%s10745_s19 + $0x958] ss:$108 sps:$4 sm:$0xff]  }
  0xe0   : > { %v11078_v63 = vpop.f32.mrf.mxu0 }
  0xe2   : > { %v11082_v2 = vpop.f32.mrf.mxu0  ;;  %8733 = vmatpush3.bf16.msra.mxu0 %v9990_v60  ;;  %v10002_v60 = vld [vmem:[%s10745_s19 + $0x52c] ss:$108 sps:$4 sm:$0xff]  }
  0xe3   : > { %8734 = vmatprep.subr.bf16.mxu0 %v10005_v62 }
  0xe4   : > { %v11091_v6 = vpop.f32.mrf.mxu0  ;;  %5518 = vmatmul.mubr.bf16.gmra.mxu0 %v9964_v0 }
  0xe5   : > { %5405 = vmatmul.mubr.bf16.gmra.mxu1 %v9963_v61  ;;  %5525 = vmatprep.mubr.bf16.mxu0 %v9967_v1 }
  0xe6   : > { %v11093_v7 = vpop.f32.mrf.mxu0  ;;  %5412 = vmatprep.mubr.bf16.mxu1 %v9965_v3  ;;  %8735 = vmatpush3.bf16.msra.mxu0 %v10006_v4  ;;  %v9999_v3 = vld [vmem:[%s10745_s19 + $0xa34] ss:$108 sps:$4 sm:$0xff]  }
  0xe7   : > { %8736 = vmatprep.subr.bf16.mxu0 %v10021_v5 }
  0xe8   : > { %v11102_v11 = vpop.f32.mrf.mxu0 }
  0xea   : > { %v11106_v14 = vpop.f32.mrf.mxu0  ;;  %8737 = vmatpush3.bf16.msra.mxu0 %v10022_v8 }
  0xeb   : > { %8738 = vmatprep.subr.bf16.mxu0 %v10037_v10 }
  0xec   : > { %v11115_v18 = vpop.f32.mrf.mxu0  ;;  %5526 = vmatmul.mubr.bf16.gmra.mxu0 %v9970_v12  ;;  %v10000_v12 = vld [vmem:[%s10745_s19 + $0x528] ss:$108 sps:$4 sm:$0xff]  }
  0xed   : > { %v8186_v19 = vpop.f32.mrf.mxu1  ;;  %5413 = vmatmul.mubr.bf16.gmra.mxu1 %v9969_v9  ;;  %5533 = vmatprep.mubr.bf16.mxu0 %v9977_v13 }
  0xee   : > { %v11117_v20 = vpop.f32.mrf.mxu0  ;;  %5420 = vmatprep.mubr.bf16.mxu1 %v9975_v15  ;;  %8739 = vmatpush3.bf16.msra.mxu0 %v10038_v16  ;;  %v9997_v15 = vld [vmem:[%s10745_s19 + $0xa30] ss:$108 sps:$4 sm:$0xff]  }
  0xef   : > { %v8187_v24 = vpop.f32.mrf.mxu1  ;;  %8740 = vmatprep.subr.bf16.mxu0 %v10053_v17  ;;  %v10012_v16 = vld [vmem:[%s10745_s19 + $0x604] ss:$108 sps:$4 sm:$0xff]  }
  0xf0   : > { %v11128_v27 = vadd.f32 %v8187_v24, %v8186_v19  ;;  %v11130_v28 = vpop.f32.mrf.mxu0 }
  0xf1   : > { %v8189_v29 = vpop.f32.mrf.mxu1 }
  0xf2   : > { %v11132_v30 = vpop.f32.mrf.mxu0  ;;  %8741 = vmatpush3.bf16.msra.mxu0 %v10054_v22 }
  0xf3   : > { %13240 = vst [vmem:[#allocation2_spill] sm:$0xff] %v11132_v30  ;;  %v8190_v33 = vpop.f32.mrf.mxu1  ;;  %8742 = vmatprep.subr.bf16.mxu0 %v10069_v23  ;;  %v10009_v23 = vld [vmem:[%s10745_s19 + $0xb0c] ss:$108 sps:$4 sm:$0xff]  }
  0xf4   : > { %v11141_v35 = vadd.f32 %v8190_v33, %v8189_v29  ;;  %v11143_v36 = vpop.f32.mrf.mxu0  ;;  %5534 = vmatmul.mubr.bf16.gmra.mxu0 %v9980_v21 }
  0xf5   : > { %13241 = vst [vmem:[#allocation3_spill] sm:$0xff] %v11143_v36  ;;  %v8192_v38 = vpop.f32.mrf.mxu1  ;;  %5421 = vmatmul.mubr.bf16.gmra.mxu1 %v9979_v25  ;;  %5541 = vmatprep.mubr.bf16.mxu0 %v9985_v26  ;;  %v10111_v36 = vld [vmem:[%s10745_s19 + $0x894] ss:$108 sps:$4 sm:$0xff]  }
  0xf6   : > { %v11151_v40 = vpop.f32.mrf.mxu0  ;;  %5428 = vmatprep.mubr.bf16.mxu1 %v9981_v31  ;;  %8743 = vmatpush3.bf16.msra.mxu0 %v10070_v32  ;;  %v10010_v32 = vld [vmem:[%s10745_s19 + $0x600] ss:$108 sps:$4 sm:$0xff]  }
  0xf7   : > { %13242 = vst [vmem:[#allocation4_spill] sm:$0xff] %v11151_v40  ;;  %v8193_v42 = vpop.f32.mrf.mxu1  ;;  %8744 = vmatprep.subr.bf16.mxu0 %v10077_v34  ;;  %v10007_v34 = vld [vmem:[%s10745_s19 + $0xb08] ss:$108 sps:$4 sm:$0xff]  }
  0xf8   : > { %v11156_v45 = vadd.f32 %v8193_v42, %v8192_v38  ;;  %v11158_v46 = vpop.f32.mrf.mxu0  ;;  %v10105_v40 = vld [vmem:[%s10745_s19 + $0x7bc] ss:$108 sps:$4 sm:$0xff]  }
  0xf9   : > { %13243 = vst [vmem:[#allocation5_spill] sm:$0xff] %v11158_v46  ;;  %v8195_v47 = vpop.f32.mrf.mxu1 }
  0xfa   : > { %v11160_v48 = vpop.f32.mrf.mxu0  ;;  %8745 = vmatpush3.bf16.msra.mxu0 %v10078_v37  ;;  %v10018_v37 = vld [vmem:[%s10745_s19 + $0x6dc] ss:$108 sps:$4 sm:$0xff]  }
  0xfb   : > { %13244 = vst [vmem:[#allocation6_spill] sm:$0xff] %v11160_v48  ;;  %v8196_v50 = vpop.f32.mrf.mxu1  ;;  %8954 = vmatprep.subr.bf16.mxu0 %v10101_v39 }
  0xfc   : > { %v11163_v51 = vadd.f32 %v8196_v50, %v8195_v47  ;;  %v11165_v52 = vpop.f32.mrf.mxu0  ;;  %5542 = vmatmul.mubr.bf16.gmra.mxu0 %v9983_v41 }
  0xfd   : > { %13245 = vst [vmem:[#allocation7_spill] sm:$0xff] %v11165_v52  ;;  %v8198_v53 = vpop.f32.mrf.mxu1  ;;  %5429 = vmatmul.mubr.bf16.gmra.mxu1 %v9986_v43  ;;  %5549 = vmatprep.mubr.bf16.mxu0 %v9995_v44  ;;  %v10015_v43 = vld [vmem:[%s10745_s19 + $0xbe4] ss:$108 sps:$4 sm:$0xff]   ;;  %v10134_v52 = vld [vmem:[%s13234_s1 + $0x3a8] sm:$0xff]  }
  0xfe   : > { %v11167_v54 = vpop.f32.mrf.mxu0  ;;  %5436 = vmatprep.mubr.bf16.mxu1 %v9991_v49 }
  0xff   : > { %13246 = vst [vmem:[#allocation8_spill] sm:$0xff] %v11167_v54  ;;  %v8199_v56 = vpop.f32.mrf.mxu1  ;;  %v10095_v54 = vld [vmem:[%s10745_s19 + $0x6e4] ss:$108 sps:$4 sm:$0xff]  }
 0x100   : > { %v11172_v61 = vadd.f32 %v8199_v56, %v8198_v53  ;;  %v11174_v62 = vpop.f32.mrf.mxu0 }
 0x101   : > { %13247 = vst [vmem:[#allocation9_spill] sm:$0xff] %v11174_v62  ;;  %v8201_v0 = vpop.f32.mrf.mxu1 }
 0x102   : > { %v11176_v1 = vpop.f32.mrf.mxu0 }
 0x103   : > { %13248 = vst [vmem:[#allocation10_spill] sm:$0xff] %v11176_v1  ;;  %v8202_v4 = vpop.f32.mrf.mxu1 }
 0x104   : > { %v11179_v5 = vadd.f32 %v8202_v4, %v8201_v0  ;;  %v11181_v8 = vpop.f32.mrf.mxu0  ;;  %5550 = vmatmul.mubr.bf16.gmra.mxu0 %v9993_v55  ;;  %v10016_v55 = vld [vmem:[%s10745_s19 + $0x6d8] ss:$108 sps:$4 sm:$0xff]  }
 0x105   : > { %13249 = vst [vmem:[#allocation11_spill] sm:$0xff] %v11181_v8  ;;  %v8204_v9 = vpop.f32.mrf.mxu1  ;;  %5437 = vmatmul.mubr.bf16.gmra.mxu1 %v9996_v57  ;;  %5557 = vmatprep.mubr.bf16.mxu0 %v10002_v60  ;;  %v10013_v57 = vld [vmem:[%s10745_s19 + $0xbe0] ss:$108 sps:$4 sm:$0xff]  }
 0x106   : > { %v11183_v10 = vpop.f32.mrf.mxu0  ;;  %5444 = vmatprep.mubr.bf16.mxu1 %v9999_v3  ;;  %v10028_v60 = vld [vmem:[%s10745_s19 + $0x7b4] ss:$108 sps:$4 sm:$0xff]  }
 0x107   : > { %13250 = vst [vmem:[#allocation12_spill] sm:$0xff] %v11183_v10  ;;  %v8205_v13 = vpop.f32.mrf.mxu1  ;;  %v10079_v10 = vld [vmem:[%s10745_s19 + $0x530] ss:$108 sps:$4 sm:$0xff]  }
 0x108   : > { %v11188_v17 = vadd.f32 %v8205_v13, %v8204_v9  ;;  %v11190_v19 = vpop.f32.mrf.mxu0  ;;  %v11230_v13 = vld [vmem:[%s13235_s2] ss:$0 sm:$0xff] }
 0x109   : > { %13251 = vst [vmem:[#allocation13_spill] sm:$0xff] %v11190_v19  ;;  %v8207_v21 = vpop.f32.mrf.mxu1 }
 0x10a   : > { %v11192_v22 = vpop.f32.mrf.mxu0 }
 0x10b   : > { %13252 = vst [vmem:[#allocation14_spill] sm:$0xff] %v11192_v22  ;;  %v8208_v24 = vpop.f32.mrf.mxu1  ;;  %v10076_v22 = vld [vmem:[%s10745_s19 + $0x45c] ss:$108 sps:$4 sm:$0xff]  }
 0x10c   : > { %v11195_v25 = vadd.f32 %v8208_v24, %v8207_v21  ;;  %v11197_v26 = vpop.f32.mrf.mxu0  ;;  %5558 = vmatmul.mubr.bf16.gmra.mxu0 %v10000_v12  ;;  %v10025_v12 = vld [vmem:[%s10745_s19 + $0xcbc] ss:$108 sps:$4 sm:$0xff]  }
 0x10d   : > { %13253 = vst [vmem:[#allocation15_spill] sm:$0xff] %v11197_v26  ;;  %v8210_v29 = vpop.f32.mrf.mxu1  ;;  %5445 = vmatmul.mubr.bf16.gmra.mxu1 %v9997_v15  ;;  %5565 = vmatprep.mubr.bf16.mxu0 %v10012_v16 }
 0x10e   : > { %v11199_v31 = vpop.f32.mrf.mxu0  ;;  %5452 = vmatprep.mubr.bf16.mxu1 %v10009_v23 }
 0x10f   : > { %13254 = vst [vmem:[#allocation16_spill] sm:$0xff] %v11199_v31  ;;  %v8211_v33 = vpop.f32.mrf.mxu1  ;;  %v10132_v31 = vld [vmem:[%s13234_s1 + $0x308] sm:$0xff]  }
 0x110   : > { %v11204_v38 = vadd.f32 %v8211_v33, %v8210_v29  ;;  %v11206_v39 = vpop.f32.mrf.mxu0  ;;  %v10026_v29 = vld [vmem:[%s10745_s19 + $0x7b0] ss:$108 sps:$4 sm:$0xff]  }
 0x111   : > { %13255 = vst [vmem:[#allocation17_spill] sm:$0xff] %v11206_v39  ;;  %v8213_v41 = vpop.f32.mrf.mxu1 }
 0x112   : > { %v11208_v42 = vpop.f32.mrf.mxu0 }
 0x113   : > { %13256 = vst [vmem:[#allocation18_spill] sm:$0xff] %v11208_v42  ;;  %v8214_v44 = vpop.f32.mrf.mxu1  ;;  %v10060_v42 = vld [vmem:[%s10745_s19 + $0x2ac] ss:$108 sps:$4 sm:$0xff]  }
 0x114   : > { %v11211_v47 = vadd.f32 %v8214_v44, %v8213_v41  ;;  %v11213_v49 = vpop.f32.mrf.mxu0  ;;  %5566 = vmatmul.mubr.bf16.gmra.mxu0 %v10010_v32  ;;  %v5029_v32 = vadd.f32 %v11128_v27, %v11230_v13  ;;  %v10031_v41 = vld [vmem:[%s10745_s19 + $0x88c] ss:$108 sps:$4 sm:$0xff]  }
 0x115   : > { %13257 = vst [vmem:[#allocation19_spill] sm:$0xff] %v11213_v49  ;;  %v8216_v50 = vpop.f32.mrf.mxu1  ;;  %5453 = vmatmul.mubr.bf16.gmra.mxu1 %v10007_v34  ;;  %5573 = vmatprep.mubr.bf16.mxu0 %v10018_v37  ;;  %v10023_v37 = vld [vmem:[%s10745_s19 + $0xcb8] ss:$108 sps:$4 sm:$0xff]  }
 0x116   : > { %v11215_v53 = vpop.f32.mrf.mxu0  ;;  %5460 = vmatprep.mubr.bf16.mxu1 %v10015_v43 }
 0x117   : > { %13258 = vst [vmem:[#allocation20_spill] sm:$0xff] %v11215_v53  ;;  %v8217_v56 = vpop.f32.mrf.mxu1  ;;  %v10068_v53 = vld [vmem:[%s13234_s1 + $0x328] sm:$0xff]  }
 0x118   : > { %v11220_v0 = vadd.f32 %v8217_v56, %v8216_v50  ;;  %v11222_v3 = vpop.f32.mrf.mxu0 }
 0x119   : > { %13259 = vst [vmem:[#allocation21_spill] sm:$0xff] %v11222_v3  ;;  %v8219_v4 = vpop.f32.mrf.mxu1  ;;  %v10032_v3 = vld [vmem:[%s10745_s19 + $0x20] ss:$108 sps:$4 sm:$0xff]  }
 0x11a   : > { %v11224_v9 = vpop.f32.mrf.mxu0 }
 0x11b   : > { %13260 = vst [vmem:[#allocation22_spill] sm:$0xff] %v11224_v9  ;;  %v8220_v15 = vpop.f32.mrf.mxu1  ;;  %v10050_v9 = vld [vmem:[%s10745_s19 + $0x1d4] ss:$108 sps:$4 sm:$0xff]  }
 0x11c   : > { %v11232_v16 = vadd.f32 %v8220_v15, %v8219_v4  ;;  %v8298_v21 = vpop.f32.mrf.mxu0  ;;  %5574 = vmatmul.mubr.bf16.gmra.mxu0 %v10016_v55 }
 0x11d   : > { %v8222_v23 = vpop.f32.mrf.mxu1  ;;  %5461 = vmatmul.mubr.bf16.gmra.mxu1 %v10013_v57  ;;  %5581 = vmatprep.mubr.bf16.mxu0 %v10028_v60  ;;  %v10034_v57 = vld [vmem:[%s10745_s19 + $0x24] ss:$108 sps:$4 sm:$0xff]   ;;  %v5032_v60 = vadd.f32 %v11141_v35, %v11230_v13  ;;  %v5037_v35 = vadd.f32 %v11156_v45, %v11230_v13  ;;  %v5040_v45 = vadd.f32 %v11163_v51, %v11230_v13  ;;  %v10039_v51 = vld [vmem:[%s10745_s19 + $0x960] ss:$108 sps:$4 sm:$0xff]  }
 0x11e   : > { %v8299_v24 = vpop.f32.mrf.mxu0  ;;  %5468 = vmatprep.mubr.bf16.mxu1 %v10025_v12 }
 0x11f   : > { %v8223_v33 = vpop.f32.mrf.mxu1  ;;  %v8300_v34 = vadd.f32 %v8299_v24, %v8298_v21 }
 0x120   : > { %v11239_v43 = vadd.f32 %v8223_v33, %v8222_v23  ;;  %v8301_v44 = vpop.f32.mrf.mxu0 }
 0x121   : > { %v11241_v50 = vadd.f32 %v8300_v34, %v5029_v32  ;;  %v8225_v55 = vpop.f32.mrf.mxu1  ;;  %v10029_v32 = vld [vmem:[%s10745_s19 + $0x888] ss:$108 sps:$4 sm:$0xff]  }
 0x122   : > { %v8302_v56 = vpop.f32.mrf.mxu0 }
 0x123   : > { %v8226_v4 = vpop.f32.mrf.mxu1  ;;  %v8303_v27 = vadd.f32 %v8302_v56, %v8301_v44  ;;  %v10041_v44 = vld [vmem:[%s10745_s19 + $0x964] ss:$108 sps:$4 sm:$0xff]  }
 0x124   : > { %v11246_v12 = vadd.f32 %v8226_v4, %v8225_v55  ;;  %v8304_v15 = vpop.f32.mrf.mxu0  ;;  %5582 = vmatmul.mubr.bf16.gmra.mxu0 %v10026_v29 }
 0x125   : > { %v11248_v21 = vadd.f32 %v8303_v27, %v5032_v60  ;;  %v8228_v23 = vpop.f32.mrf.mxu1  ;;  %5469 = vmatmul.mubr.bf16.gmra.mxu1 %v10023_v37  ;;  %5589 = vmatprep.mubr.bf16.mxu0 %v10031_v41  ;;  %v10036_v37 = vld [vmem:[%s13234_s1 + $0x338] sm:$0xff]  }
 0x126   : > { %v8305_v24 = vpop.f32.mrf.mxu0  ;;  %5670 = vmatprep.mubr.bf16.mxu1 %v10034_v57  ;;  %v10044_v41 = vld [vmem:[%s10745_s19 + $0xfc] ss:$108 sps:$4 sm:$0xff]  }
 0x127   : > { %v8229_v33 = vpop.f32.mrf.mxu1  ;;  %v8306_v34 = vadd.f32 %v8305_v24, %v8304_v15  ;;  %v10051_v15 = vld [vmem:[%s13234_s1 + $0x370] sm:$0xff]  }
 0x128   : > { %v11255_v55 = vadd.f32 %v8229_v33, %v8228_v23  ;;  %v8307_v56 = vpop.f32.mrf.mxu0 }
 0x129   : > { %v11257_v29 = vadd.f32 %v8306_v34, %v5037_v35  ;;  %v8231_v60 = vpop.f32.mrf.mxu1 }
 0x12a   : > { %v8308_v4 = vpop.f32.mrf.mxu0 }
 0x12b   : > { %v8232_v57 = vpop.f32.mrf.mxu1  ;;  %v8309_v27 = vadd.f32 %v8308_v4, %v8307_v56  ;;  %v10052_v56 = vld [vmem:[%s13234_s1 + $0x330] sm:$0xff]  }
 0x12c   : > { %v11268_v23 = vadd.f32 %v8232_v57, %v8231_v60  ;;  %v8310_v24 = vpop.f32.mrf.mxu0  ;;  %5590 = vmatmul.mubr.bf16.gmra.mxu0 %v10029_v32  ;;  %v10067_v60 = vld [vmem:[%s13234_s1 + $0x368] sm:$0xff]   ;;  %v5045_v32 = vadd.f32 %v11172_v61, %v11230_v13  ;;  %v5048_v61 = vadd.f32 %v11179_v5, %v11230_v13 }
 0x12d   : > { %v11270_v35 = vadd.f32 %v8309_v27, %v5040_v45  ;;  %v8234_v33 = vpop.f32.mrf.mxu1  ;;  %5671 = vmatmul.mubr.bf16.vlgmr.msra.gmra.mxu1 %v10032_v3  ;;  %5597 = vmatprep.mubr.bf16.mxu0 %v10041_v44  ;;  %v10042_v3 = vld [vmem:[%s10745_s19 + $0xf8] ss:$108 sps:$4 sm:$0xff]   ;;  %v10047_v44 = vld [vmem:[%s10745_s19 + $0xa3c] ss:$108 sps:$4 sm:$0xff]  }
 0x12e   : > { %8843 = vmatpush3.bf16.msra.mxu1 %v10036_v37  ;;  %v8311_v34 = vpop.f32.mrf.mxu0  ;;  %5678 = vmatprep.mubr.bf16.mxu1 %v10044_v41 }
 0x12f   : > { %v8235_v4 = vpop.f32.mrf.mxu1  ;;  %v8312_v45 = vadd.f32 %v8311_v34, %v8310_v24  ;;  %8844 = vmatprep.subr.bf16.mxu1 %v10051_v15  ;;  %v10085_v15 = vld [vmem:[%s13234_s1 + $0x360] sm:$0xff]  }
 0x130   : > { %v11283_v37 = vadd.f32 %v8235_v4, %v8234_v33  ;;  %v8313_v57 = vpop.f32.mrf.mxu0 }
 0x131   : > { %v11285_v41 = vadd.f32 %v8312_v45, %v5045_v32  ;;  %v8237_v27 = vpop.f32.mrf.mxu1  ;;  %v10045_v45 = vld [vmem:[%s10745_s19 + $0xa38] ss:$108 sps:$4 sm:$0xff]  }
 0x132   : > { %v8314_v49 = vpop.f32.mrf.mxu0  ;;  %8845 = vmatpush3.bf16.msra.mxu1 %v10052_v56  ;;  %v10086_v56 = vld [vmem:[%s13234_s1 + $0x320] sm:$0xff]  }
 0x133   : > { %v8238_v24 = vpop.f32.mrf.mxu1  ;;  %v8315_v34 = vadd.f32 %v8314_v49, %v8313_v57  ;;  %8846 = vmatprep.subr.bf16.mxu1 %v10067_v60  ;;  %v10099_v49 = vld [vmem:[%s13234_s1 + $0x358] sm:$0xff]  }
 0x134   : > { %v11296_v33 = vadd.f32 %v8238_v24, %v8237_v27  ;;  %v8316_v32 = vpop.f32.mrf.mxu0  ;;  %5598 = vmatmul.mubr.bf16.gmra.mxu0 %v10039_v51  ;;  %v5053_v51 = vadd.f32 %v11188_v17, %v11230_v13  ;;  %v10048_v24 = vld [vmem:[%s10745_s19 + $0x1d0] ss:$108 sps:$4 sm:$0xff]   ;;  %v5056_v17 = vadd.f32 %v11195_v25, %v11230_v13 }
 0x135   : > { %v11301_v4 = vadd.f32 %v8315_v34, %v5048_v61  ;;  %v8240_v5 = vpop.f32.mrf.mxu1  ;;  %5679 = vmatmul.mubr.bf16.gmra.mxu1 %v10042_v3  ;;  %5605 = vmatprep.mubr.bf16.mxu0 %v10047_v44  ;;  %v10057_v61 = vld [vmem:[%s10745_s19 + $0xb14] ss:$108 sps:$4 sm:$0xff]   ;;  %v10055_v25 = vld [vmem:[%s10745_s19 + $0xb10] ss:$108 sps:$4 sm:$0xff]  }
 0x136   : > { %v8317_v60 = vpop.f32.mrf.mxu0  ;;  %5686 = vmatprep.mubr.bf16.mxu1 %v10050_v9  ;;  %8847 = vmatpush3.bf16.msra.mxu1 %v10068_v53  ;;  %v10100_v53 = vld [vmem:[%s13234_s1 + $0x318] sm:$0xff]  }
 0x137   : > { %v8241_v57 = vpop.f32.mrf.mxu1  ;;  %v8318_v27 = vadd.f32 %v8317_v60, %v8316_v32  ;;  %8848 = vmatprep.subr.bf16.mxu1 %v10085_v15  ;;  %v10115_v15 = vld [vmem:[%s13234_s1 + $0x350] sm:$0xff]  }
 0x138   : > { %v11311_v34 = vadd.f32 %v8241_v57, %v8240_v5  ;;  %v8319_v3 = vpop.f32.mrf.mxu0 }
 0x139   : > { %v11313_v44 = vadd.f32 %v8318_v27, %v5053_v51  ;;  %v8243_v39 = vpop.f32.mrf.mxu1 }
 0x13a   : > { %v8320_v26 = vpop.f32.mrf.mxu0  ;;  %8849 = vmatpush3.bf16.msra.mxu1 %v10086_v56 }
 0x13b   : > { %v8244_v9 = vpop.f32.mrf.mxu1  ;;  %v8321_v32 = vadd.f32 %v8320_v26, %v8319_v3  ;;  %8850 = vmatprep.subr.bf16.mxu1 %v10099_v49  ;;  %v10116_v26 = vld [vmem:[%s13234_s1 + $0x310] sm:$0xff]   ;;  %v5061_v49 = vadd.f32 %v11204_v38, %v11230_v13  ;;  %v5064_v38 = vadd.f32 %v11211_v47, %v11230_v13 }
 0x13c   : > { %v11324_v5 = vadd.f32 %v8244_v9, %v8243_v39  ;;  %v8322_v60 = vpop.f32.mrf.mxu0  ;;  %5606 = vmatmul.mubr.bf16.gmra.mxu0 %v10045_v45  ;;  %v10131_v39 = vld [vmem:[%s13234_s1 + $0x348] sm:$0xff]  }
 0x13d   : > { %v11326_v56 = vadd.f32 %v8321_v32, %v5056_v17  ;;  %v8246_v51 = vpop.f32.mrf.mxu1  ;;  %5687 = vmatmul.mubr.bf16.gmra.mxu1 %v10048_v24  ;;  %5613 = vmatprep.mubr.bf16.mxu0 %v10057_v61  ;;  %v10058_v24 = vld [vmem:[%s10745_s19 + $0x2a8] ss:$108 sps:$4 sm:$0xff]   ;;  %v10063_v61 = vld [vmem:[%s10745_s19 + $0xbec] ss:$108 sps:$4 sm:$0xff]   ;;  %v10066_v32 = vld [vmem:[%s10745_s19 + $0x384] ss:$108 sps:$4 sm:$0xff]  }
 0x13e   : > { %v8323_v57 = vpop.f32.mrf.mxu0  ;;  %5694 = vmatprep.mubr.bf16.mxu1 %v10060_v42  ;;  %8851 = vmatpush3.bf16.msra.mxu1 %v10100_v53 }
 0x13f   : > { %v8247_v45 = vpop.f32.mrf.mxu1  ;;  %v8324_v27 = vadd.f32 %v8323_v57, %v8322_v60  ;;  %8852 = vmatprep.subr.bf16.mxu1 %v10115_v15  ;;  %v10147_v15 = vld [vmem:[%s13234_s1 + $0x340] sm:$0xff]  }
 0x140   : > { %v11339_v3 = vadd.f32 %v8247_v45, %v8246_v51  ;;  %v8325_v42 = vpop.f32.mrf.mxu0 }
 0x141   : > { %v11341_v53 = vadd.f32 %v8324_v27, %v5061_v49  ;;  %v8249_v17 = vpop.f32.mrf.mxu1 }
 0x142   : > { %v8326_v9 = vpop.f32.mrf.mxu0  ;;  %8853 = vmatpush3.bf16.msra.mxu1 %v10116_v26  ;;  %v10148_v26 = vld [vmem:[%s13234_s1 + $0x300] sm:$0xff]  }
 0x143   : > { %v8250_v60 = vpop.f32.mrf.mxu1  ;;  %v8327_v57 = vadd.f32 %v8326_v9, %v8325_v42  ;;  %8854 = vmatprep.subr.bf16.mxu1 %v10131_v39  ;;  %v10163_v39 = vld [vmem:[%s13234_s1 + $0x478] sm:$0xff]   ;;  %v10061_v42 = vld [vmem:[%s10745_s19 + $0xbe8] ss:$108 sps:$4 sm:$0xff]  }
 0x144   : > { %v11352_v51 = vadd.f32 %v8250_v60, %v8249_v17  ;;  %v8328_v49 = vpop.f32.mrf.mxu0  ;;  %5614 = vmatmul.mubr.bf16.gmra.mxu0 %v10055_v25  ;;  %v5069_v25 = vadd.f32 %v11220_v0, %v11230_v13  ;;  %v10064_v60 = vld [vmem:[%s10745_s19 + $0x380] ss:$108 sps:$4 sm:$0xff]  }
 0x145   : > { %v11357_v45 = vadd.f32 %v8327_v57, %v5064_v38  ;;  %v8252_v47 = vpop.f32.mrf.mxu1  ;;  %5695 = vmatmul.mubr.bf16.gmra.mxu1 %v10058_v24  ;;  %5621 = vmatprep.mubr.bf16.mxu0 %v10063_v61  ;;  %v10073_v38 = vld [vmem:[%s10745_s19 + $0xcc4] ss:$108 sps:$4 sm:$0xff]  }
 0x146   : > { %v8329_v27 = vpop.f32.mrf.mxu0  ;;  %5702 = vmatprep.mubr.bf16.mxu1 %v10066_v32  ;;  %8855 = vmatpush3.bf16.msra.mxu1 %v10132_v31  ;;  %v5072_v31 = vadd.f32 %v11232_v16, %v11230_v13  ;;  %v5077_v16 = vadd.f32 %v11239_v43, %v11230_v13 }
 0x147   : > { %v8253_v17 = vpop.f32.mrf.mxu1  ;;  %v8330_v9 = vadd.f32 %v8329_v27, %v8328_v49  ;;  %8856 = vmatprep.subr.bf16.mxu1 %v10147_v15 }
 0x148   : > { %v11367_v57 = vadd.f32 %v8253_v17, %v8252_v47  ;;  %v8331_v24 = vpop.f32.mrf.mxu0 }
 0x149   : > { %v11369_v61 = vadd.f32 %v8330_v9, %v5069_v25  ;;  %v8255_v19 = vpop.f32.mrf.mxu1  ;;  %v10074_v9 = vld [vmem:[%s10745_s19 + $0x458] ss:$108 sps:$4 sm:$0xff]  }
 0x14a   : > { %v8332_v8 = vpop.f32.mrf.mxu0  ;;  %8857 = vmatpush3.bf16.msra.mxu1 %v10148_v26  ;;  %v10071_v26 = vld [vmem:[%s10745_s19 + $0xcc0] ss:$108 sps:$4 sm:$0xff]  }
 0x14b   : > { %v8256_v32 = vpop.f32.mrf.mxu1  ;;  %v8333_v0 = vadd.f32 %v8332_v8, %v8331_v24  ;;  %9066 = vmatprep.subr.bf16.mxu1 %v10163_v39  ;;  %v10084_v39 = vld [vmem:[%s10745_s19 + $0x2c] ss:$108 sps:$4 sm:$0xff]  }
 0x14c   : > { %v11374_v49 = vadd.f32 %v8256_v32, %v8255_v19  ;;  %v8334_v15 = vpop.f32.mrf.mxu0  ;;  %5622 = vmatmul.mubr.bf16.gmra.mxu0 %v10061_v42 }
 0x14d   : > { %v11376_v47 = vadd.f32 %v8333_v0, %v5072_v31  ;;  %v8258_v27 = vpop.f32.mrf.mxu1  ;;  %5703 = vmatmul.mubr.bf16.gmra.mxu1 %v10064_v60  ;;  %5629 = vmatprep.mubr.bf16.mxu0 %v10073_v38  ;;  %v10081_v0 = vld [vmem:[%s10745_s19 + $0x534] ss:$108 sps:$4 sm:$0xff]   ;;  %v5080_v60 = vadd.f32 %v11246_v12, %v11230_v13 }
 0x14e   : > { %v8335_v25 = vpop.f32.mrf.mxu0  ;;  %5710 = vmatprep.mubr.bf16.mxu1 %v10076_v22 }
 0x14f   : > { %v8259_v17 = vpop.f32.mrf.mxu1  ;;  %v8336_v8 = vadd.f32 %v8335_v25, %v8334_v15 }
 0x150   : > { %v11383_v19 = vadd.f32 %v8259_v17, %v8258_v27  ;;  %v8337_v24 = vpop.f32.mrf.mxu0  ;;  %v5085_v17 = vadd.f32 %v11255_v55, %v11230_v13  ;;  %v5088_v55 = vadd.f32 %v11268_v23, %v11230_v13  ;;  %v10090_v23 = vld [vmem:[%s10745_s19 + $0x100] ss:$108 sps:$4 sm:$0xff]  }
 0x151   : > { %v11385_v42 = vadd.f32 %v8336_v8, %v5077_v16  ;;  %v8261_v31 = vpop.f32.mrf.mxu1 }
 0x152   : > { %v8338_v32 = vpop.f32.mrf.mxu0 }
 0x153   : > { %v8262_v22 = vpop.f32.mrf.mxu1  ;;  %v8339_v38 = vadd.f32 %v8338_v32, %v8337_v24  ;;  %v10082_v24 = vld [vmem:[%s10745_s19 + $0x28] ss:$108 sps:$4 sm:$0xff]  }
 0x154   : > { %v11390_v43 = vadd.f32 %v8262_v22, %v8261_v31  ;;  %v8340_v15 = vpop.f32.mrf.mxu0  ;;  %5630 = vmatmul.mubr.bf16.gmra.mxu0 %v10071_v26  ;;  %v10092_v22 = vld [vmem:[%s10745_s19 + $0x104] ss:$108 sps:$4 sm:$0xff]  }
 0x155   : > { %v11392_v27 = vadd.f32 %v8339_v38, %v5080_v60  ;;  %v8264_v25 = vpop.f32.mrf.mxu1  ;;  %5711 = vmatmul.mubr.bf16.gmra.mxu1 %v10074_v9  ;;  %5831 = vmatprep.mubr.bf16.mxu0 %v10084_v39  ;;  %v10089_v9 = vld [vmem:[%s10745_s19 + $0x60c] ss:$108 sps:$4 sm:$0xff]  }
 0x156   : > { %v8341_v16 = vpop.f32.mrf.mxu0  ;;  %5718 = vmatprep.mubr.bf16.mxu1 %v10081_v0  ;;  %v10102_v39 = vld [vmem:[%s13234_s1 + $0x3b8] sm:$0xff]  }
 0x157   : > { %v8265_v12 = vpop.f32.mrf.mxu1  ;;  %v8342_v8 = vadd.f32 %v8341_v16, %v8340_v15 }
 0x158   : > { %v11398_v31 = vadd.f32 %v8265_v12, %v8264_v25  ;;  %v8343_v32 = vpop.f32.mrf.mxu0  ;;  %v10117_v25 = vld [vmem:[%s13234_s1 + $0x3f0] sm:$0xff]  }
 0x159   : > { %v11401_v26 = vadd.f32 %v8342_v8, %v5085_v17  ;;  %v8267_v60 = vpop.f32.mrf.mxu1 }
 0x15a   : > { %v8344_v38 = vpop.f32.mrf.mxu0 }
 0x15b   : > { %v8268_v0 = vpop.f32.mrf.mxu1  ;;  %v8345_v15 = vadd.f32 %v8344_v38, %v8343_v32  ;;  %v10118_v32 = vld [vmem:[%s13234_s1 + $0x3b0] sm:$0xff]  }
 0x15c   : > { %v11412_v16 = vadd.f32 %v8268_v0, %v8267_v60  ;;  %v8346_v17 = vpop.f32.mrf.mxu0  ;;  %5832 = vmatmul.mubr.bf16.vlgmr.msra.gmra.mxu0 %v10082_v24  ;;  %v10133_v60 = vld [vmem:[%s13234_s1 + $0x3e8] sm:$0xff]   ;;  %v5093_v24 = vadd.f32 %v11283_v37, %v11230_v13  ;;  %v5096_v37 = vadd.f32 %v11296_v33, %v11230_v13 }
 0x15d   : > { %v11414_v12 = vadd.f32 %v8345_v15, %v5088_v55  ;;  %v8270_v8 = vpop.f32.mrf.mxu1  ;;  %5719 = vmatmul.mubr.bf16.gmra.mxu1 %v10079_v10  ;;  %5839 = vmatprep.mubr.bf16.mxu0 %v10092_v22  ;;  %v10087_v10 = vld [vmem:[%s10745_s19 + $0x608] ss:$108 sps:$4 sm:$0xff]  }
 0x15e   : > { %v8347_v1 = vpop.f32.mrf.mxu0  ;;  %5726 = vmatprep.mubr.bf16.mxu1 %v10089_v9  ;;  %8955 = vmatpush3.bf16.msra.mxu0 %v10102_v39  ;;  %v10098_v22 = vld [vmem:[%s10745_s19 + $0x1dc] ss:$108 sps:$4 sm:$0xff]  }
 0x15f   : > { %v8271_v38 = vpop.f32.mrf.mxu1  ;;  %v8348_v55 = vadd.f32 %v8347_v1, %v8346_v17  ;;  %8956 = vmatprep.subr.bf16.mxu0 %v10117_v25  ;;  %v10149_v25 = vld [vmem:[%s13234_s1 + $0x3e0] sm:$0xff]  }
 0x160   : > { %v11427_v9 = vadd.f32 %v8271_v38, %v8270_v8  ;;  %v8349_v0 = vpop.f32.mrf.mxu0 }
 0x161   : > { %v11429_v39 = vadd.f32 %v8348_v55, %v5093_v24  ;;  %v8273_v15 = vpop.f32.mrf.mxu1  ;;  %v10096_v55 = vld [vmem:[%s10745_s19 + $0x1d8] ss:$108 sps:$4 sm:$0xff]  }
 0x162   : > { %v8350_v62 = vpop.f32.mrf.mxu0  ;;  %8957 = vmatpush3.bf16.msra.mxu0 %v10118_v32  ;;  %v10150_v32 = vld [vmem:[%s13234_s1 + $0x3a0] sm:$0xff]  }
 0x163   : > { %v8274_v1 = vpop.f32.mrf.mxu1  ;;  %v8351_v17 = vadd.f32 %v8350_v62, %v8349_v0  ;;  %8958 = vmatprep.subr.bf16.mxu0 %v10133_v60  ;;  %v10165_v62 = vld [vmem:[%s13234_s1 + $0x3d8] sm:$0xff]  }
 0x164   : > { %v11440_v8 = vadd.f32 %v8274_v1, %v8273_v15  ;;  %v8352_v24 = vpop.f32.mrf.mxu0  ;;  %5840 = vmatmul.mubr.bf16.gmra.mxu0 %v10090_v23  ;;  %v5101_v23 = vadd.f32 %v11311_v34, %v11230_v13  ;;  %v10093_v1 = vld [vmem:[%s10745_s19 + $0x6e0] ss:$108 sps:$4 sm:$0xff]  }
 0x165   : > { %v11445_v38 = vadd.f32 %v8351_v17, %v5096_v37  ;;  %v8276_v33 = vpop.f32.mrf.mxu1  ;;  %5727 = vmatmul.mubr.bf16.gmra.mxu1 %v10087_v10  ;;  %5847 = vmatprep.mubr.bf16.mxu0 %v10098_v22  ;;  %v10108_v37 = vld [vmem:[%s10745_s19 + $0x2b4] ss:$108 sps:$4 sm:$0xff]  }
 0x166   : > { %v8353_v60 = vpop.f32.mrf.mxu0  ;;  %5734 = vmatprep.mubr.bf16.mxu1 %v10095_v54  ;;  %8959 = vmatpush3.bf16.msra.mxu0 %v10134_v52  ;;  %v10166_v52 = vld [vmem:[%s13234_s1 + $0x398] sm:$0xff]   ;;  %v5104_v54 = vadd.f32 %v11324_v5, %v11230_v13 }
 0x167   : > { %v8277_v0 = vpop.f32.mrf.mxu1  ;;  %v8354_v15 = vadd.f32 %v8353_v60, %v8352_v24  ;;  %8960 = vmatprep.subr.bf16.mxu0 %v10149_v25  ;;  %v10181_v25 = vld [vmem:[%s13234_s1 + $0x3d0] sm:$0xff]  }
 0x168   : > { %v11455_v17 = vadd.f32 %v8277_v0, %v8276_v33  ;;  %v8355_v10 = vpop.f32.mrf.mxu0  ;;  %v10106_v5 = vld [vmem:[%s10745_s19 + $0x2b0] ss:$108 sps:$4 sm:$0xff]  }
 0x169   : > { %v11457_v22 = vadd.f32 %v8354_v15, %v5101_v23  ;;  %v8279_v48 = vpop.f32.mrf.mxu1 }
 0x16a   : > { %v8356_v46 = vpop.f32.mrf.mxu0  ;;  %8961 = vmatpush3.bf16.msra.mxu0 %v10150_v32 }
 0x16b   : > { %v8280_v34 = vpop.f32.mrf.mxu1  ;;  %v8357_v24 = vadd.f32 %v8356_v46, %v8355_v10  ;;  %8962 = vmatprep.subr.bf16.mxu0 %v10165_v62  ;;  %v10182_v46 = vld [vmem:[%s13234_s1 + $0x390] sm:$0xff]   ;;  %v5109_v62 = vadd.f32 %v11339_v3, %v11230_v13  ;;  %v10198_v13 = vld [vmem:[%s13234_s1 + $0x388] sm:$0xff]   ;;  %v11495_v3 = vld [vmem:[%s13235_s2] ss:$0 sm:$0xff] }
 0x16c   : > { %v11468_v33 = vadd.f32 %v8280_v34, %v8279_v48  ;;  %v8358_v60 = vpop.f32.mrf.mxu0  ;;  %5848 = vmatmul.mubr.bf16.gmra.mxu0 %v10096_v55  ;;  %v10197_v48 = vld [vmem:[%s13234_s1 + $0x3c8] sm:$0xff]  }
 0x16d   : > { %v11470_v32 = vadd.f32 %v8357_v24, %v5104_v54  ;;  %v8410_v23 = vpop.f32.mrf.mxu1  ;;  %5735 = vmatmul.mubr.bf16.gmra.mxu1 %v10093_v1  ;;  %5855 = vmatprep.mubr.bf16.mxu0 %v10108_v37  ;;  %v10103_v1 = vld [vmem:[%s10745_s19 + $0x7b8] ss:$108 sps:$4 sm:$0xff]  }
 0x16e   : > { %v8359_v0 = vpop.f32.mrf.mxu0  ;;  %5742 = vmatprep.mubr.bf16.mxu1 %v10105_v40  ;;  %8963 = vmatpush3.bf16.msra.mxu0 %v10166_v52  ;;  %v10114_v37 = vld [vmem:[%s10745_s19 + $0x38c] ss:$108 sps:$4 sm:$0xff]  }
 0x16f   : > { %v8360_v55 = vadd.f32 %v8359_v0, %v8358_v60  ;;  %v8411_v15 = vpop.f32.mrf.mxu1  ;;  %8964 = vmatprep.subr.bf16.mxu0 %v10181_v25  ;;  %v5112_v25 = vadd.f32 %v11495_v3, %v11352_v51 }
 0x170   : > { %v8412_v40 = vadd.f32 %v8411_v15, %v8410_v23  ;;  %v8361_v10 = vpop.f32.mrf.mxu0 }
 0x171   : > { %v11483_v54 = vadd.f32 %v8360_v55, %v5109_v62  ;;  %v8413_v52 = vpop.f32.mrf.mxu1  ;;  %v10206_v62 = vld [vmem:[%s13234_s1 + $0x380] sm:$0xff]  }
 0x172   : > { %v11486_v34 = vadd.f32 %v8412_v40, %v11241_v50  ;;  %v8362_v24 = vpop.f32.mrf.mxu0  ;;  %8965 = vmatpush3.bf16.msra.mxu0 %v10182_v46  ;;  %v10205_v50 = vld [vmem:[%s13234_s1 + $0x3c0] sm:$0xff]  }
 0x173   : > { %v8363_v60 = vadd.f32 %v8362_v24, %v8361_v10  ;;  %v8414_v23 = vpop.f32.mrf.mxu1  ;;  %8966 = vmatprep.subr.bf16.mxu0 %v10197_v48  ;;  %v10229_v48 = vld [vmem:[%s13234_s1 + $0x4f8] sm:$0xff]   ;;  %v5117_v10 = vadd.f32 %v11495_v3, %v11367_v57  ;;  %v5120_v57 = vadd.f32 %v11495_v3, %v11374_v49  ;;  %v10122_v49 = vld [vmem:[%s10745_s19 + $0x460] ss:$108 sps:$4 sm:$0xff]  }
 0x174   : > { %v8415_v0 = vadd.f32 %v8414_v23, %v8413_v52  ;;  %v8364_v46 = vpop.f32.mrf.mxu0  ;;  %5856 = vmatmul.mubr.bf16.gmra.mxu0 %v10106_v5  ;;  %v10112_v5 = vld [vmem:[%s10745_s19 + $0x388] ss:$108 sps:$4 sm:$0xff]  }
 0x175   : > { %v11505_v55 = vadd.f32 %v8363_v60, %v5112_v25  ;;  %v8416_v51 = vpop.f32.mrf.mxu1  ;;  %5743 = vmatmul.mubr.bf16.gmra.mxu1 %v10103_v1  ;;  %5863 = vmatprep.mubr.bf16.mxu0 %v10114_v37  ;;  %v10109_v25 = vld [vmem:[%s10745_s19 + $0x890] ss:$108 sps:$4 sm:$0xff]  }
 0x176   : > { %v11511_v15 = vadd.f32 %v8415_v0, %v11248_v21  ;;  %v8365_v40 = vpop.f32.mrf.mxu0  ;;  %5750 = vmatprep.mubr.bf16.mxu1 %v10111_v36  ;;  %8967 = vmatpush3.bf16.msra.mxu0 %v10198_v13  ;;  %v10124_v1 = vld [vmem:[%s10745_s19 + $0x464] ss:$108 sps:$4 sm:$0xff]   ;;  %v10121_v36 = vld [vmem:[%s10745_s19 + $0x96c] ss:$108 sps:$4 sm:$0xff]  }
 0x177   : > { %v8366_v52 = vadd.f32 %v8365_v40, %v8364_v46  ;;  %v8417_v24 = vpop.f32.mrf.mxu1  ;;  %8968 = vmatprep.subr.bf16.mxu0 %v10205_v50 }
 0x178   : > { %v8418_v37 = vadd.f32 %v8417_v24, %v8416_v51  ;;  %v8367_v60 = vpop.f32.mrf.mxu0 }
 0x179   : > { %v11518_v23 = vadd.f32 %v8366_v52, %v5117_v10  ;;  %v8419_v30 = vpop.f32.mrf.mxu1  ;;  %v5125_v52 = vadd.f32 %v11495_v3, %v11383_v19 }
 0x17a   : > { %v11521_v21 = vadd.f32 %v8418_v37, %v11257_v29  ;;  %v8368_v0 = vpop.f32.mrf.mxu0  ;;  %8969 = vmatpush3.bf16.msra.mxu0 %v10206_v62  ;;  %v10130_v37 = vld [vmem:[%s10745_s19 + $0x53c] ss:$108 sps:$4 sm:$0xff]  }
 0x17b   : > { %v8369_v13 = vadd.f32 %v8368_v0, %v8367_v60  ;;  %v8420_v46 = vpop.f32.mrf.mxu1  ;;  %9178 = vmatprep.subr.bf16.mxu0 %v10229_v48 }
 0x17c   : > { %v8421_v50 = vadd.f32 %v8420_v46, %v8419_v30  ;;  %v8370_v51 = vpop.f32.mrf.mxu0  ;;  %5864 = vmatmul.mubr.bf16.gmra.mxu0 %v10112_v5  ;;  %v10119_v30 = vld [vmem:[%s10745_s19 + $0x968] ss:$108 sps:$4 sm:$0xff]  }
 0x17d   : > { %v11526_v40 = vadd.f32 %v8369_v13, %v5120_v57  ;;  %v8422_v10 = vpop.f32.mrf.mxu1  ;;  %5751 = vmatmul.mubr.bf16.gmra.mxu1 %v10109_v25  ;;  %5871 = vmatprep.mubr.bf16.mxu0 %v10124_v1  ;;  %v10127_v57 = vld [vmem:[%s10745_s19 + $0xa44] ss:$108 sps:$4 sm:$0xff]  }
 0x17e   : > { %v11529_v29 = vadd.f32 %v8421_v50, %v11270_v35  ;;  %v8371_v62 = vpop.f32.mrf.mxu0  ;;  %5758 = vmatprep.mubr.bf16.mxu1 %v10121_v36  ;;  %v5128_v36 = vadd.f32 %v11495_v3, %v11390_v43  ;;  %v5133_v43 = vadd.f32 %v11495_v3, %v11398_v31 }
 0x17f   : > { %v8372_v48 = vadd.f32 %v8371_v62, %v8370_v51  ;;  %v8423_v24 = vpop.f32.mrf.mxu1 }
 0x180   : > { %v8424_v5 = vadd.f32 %v8423_v24, %v8422_v10  ;;  %v8373_v60 = vpop.f32.mrf.mxu0 }
 0x181   : > { %v11536_v0 = vadd.f32 %v8372_v48, %v5125_v52  ;;  %v8425_v25 = vpop.f32.mrf.mxu1  ;;  %v10128_v52 = vld [vmem:[%s10745_s19 + $0x538] ss:$108 sps:$4 sm:$0xff]  }
 0x182   : > { %v11539_v1 = vadd.f32 %v8424_v5, %v11285_v41  ;;  %v8374_v35 = vpop.f32.mrf.mxu0  ;;  %v10125_v5 = vld [vmem:[%s10745_s19 + $0xa40] ss:$108 sps:$4 sm:$0xff]  }
 0x183   : > { %v8375_v13 = vadd.f32 %v8374_v35, %v8373_v60  ;;  %v8426_v19 = vpop.f32.mrf.mxu1  ;;  %v10140_v60 = vld [vmem:[%s10745_s19 + $0x614] ss:$108 sps:$4 sm:$0xff]  }
 0x184   : > { %v8427_v46 = vadd.f32 %v8426_v19, %v8425_v25  ;;  %v8376_v50 = vpop.f32.mrf.mxu0  ;;  %5872 = vmatmul.mubr.bf16.gmra.mxu0 %v10122_v49 }
 0x185   : > { %v11544_v51 = vadd.f32 %v8375_v13, %v5128_v36  ;;  %v8428_v10 = vpop.f32.mrf.mxu1  ;;  %5759 = vmatmul.mubr.bf16.gmra.mxu1 %v10119_v30  ;;  %5879 = vmatprep.mubr.bf16.mxu0 %v10130_v37  ;;  %v10137_v36 = vld [vmem:[%s10745_s19 + $0xb1c] ss:$108 sps:$4 sm:$0xff]  }
 0x186   : > { %v11547_v41 = vadd.f32 %v8427_v46, %v11301_v4  ;;  %v8377_v62 = vpop.f32.mrf.mxu0  ;;  %5766 = vmatprep.mubr.bf16.mxu1 %v10127_v57  ;;  %v5136_v57 = vadd.f32 %v11495_v3, %v11412_v16  ;;  %v5141_v16 = vadd.f32 %v11495_v3, %v11427_v9 }
 0x187   : > { %v8378_v48 = vadd.f32 %v8377_v62, %v8376_v50  ;;  %v8429_v24 = vpop.f32.mrf.mxu1 }
 0x188   : > { %v8430_v49 = vadd.f32 %v8429_v24, %v8428_v10  ;;  %v8379_v25 = vpop.f32.mrf.mxu0 }
 0x189   : > { %v11554_v35 = vadd.f32 %v8378_v48, %v5133_v43  ;;  %v8431_v30 = vpop.f32.mrf.mxu1  ;;  %v10138_v43 = vld [vmem:[%s10745_s19 + $0x610] ss:$108 sps:$4 sm:$0xff]  }
 0x18a   : > { %v11557_v37 = vadd.f32 %v8430_v49, %v11313_v44  ;;  %v8380_v4 = vpop.f32.mrf.mxu0  ;;  %v10135_v49 = vld [vmem:[%s10745_s19 + $0xb18] ss:$108 sps:$4 sm:$0xff]  }
 0x18b   : > { %v8381_v13 = vadd.f32 %v8380_v4, %v8379_v25  ;;  %v8432_v31 = vpop.f32.mrf.mxu1  ;;  %v10146_v25 = vld [vmem:[%s10745_s19 + $0x6ec] ss:$108 sps:$4 sm:$0xff]  }
 0x18c   : > { %v8433_v19 = vadd.f32 %v8432_v31, %v8431_v30  ;;  %v8382_v46 = vpop.f32.mrf.mxu0  ;;  %5880 = vmatmul.mubr.bf16.gmra.mxu0 %v10128_v52 }
 0x18d   : > { %v11562_v50 = vadd.f32 %v8381_v13, %v5136_v57  ;;  %v8434_v10 = vpop.f32.mrf.mxu1  ;;  %5767 = vmatmul.mubr.bf16.gmra.mxu1 %v10125_v5  ;;  %5887 = vmatprep.mubr.bf16.mxu0 %v10140_v60  ;;  %v10143_v57 = vld [vmem:[%s10745_s19 + $0xbf4] ss:$108 sps:$4 sm:$0xff]  }
 0x18e   : > { %v11565_v44 = vadd.f32 %v8433_v19, %v11326_v56  ;;  %v8383_v62 = vpop.f32.mrf.mxu0  ;;  %5774 = vmatprep.mubr.bf16.mxu1 %v10137_v36  ;;  %v5144_v36 = vadd.f32 %v11495_v3, %v11440_v8  ;;  %v5149_v8 = vadd.f32 %v11495_v3, %v11455_v17 }
 0x18f   : > { %v8384_v48 = vadd.f32 %v8383_v62, %v8382_v46  ;;  %v8435_v24 = vpop.f32.mrf.mxu1 }
 0x190   : > { %v8436_v52 = vadd.f32 %v8435_v24, %v8434_v10  ;;  %v8385_v30 = vpop.f32.mrf.mxu0 }
 0x191   : > { %v11572_v4 = vadd.f32 %v8384_v48, %v5141_v16  ;;  %v8437_v5 = vpop.f32.mrf.mxu1  ;;  %v10144_v16 = vld [vmem:[%s10745_s19 + $0x6e8] ss:$108 sps:$4 sm:$0xff]  }
 0x192   : > { %v11575_v60 = vadd.f32 %v8436_v52, %v11341_v53  ;;  %v8386_v56 = vpop.f32.mrf.mxu0  ;;  %v10141_v52 = vld [vmem:[%s10745_s19 + $0xbf0] ss:$108 sps:$4 sm:$0xff]  }
 0x193   : > { %v8387_v13 = vadd.f32 %v8386_v56, %v8385_v30  ;;  %v8438_v9 = vpop.f32.mrf.mxu1  ;;  %v10156_v30 = vld [vmem:[%s10745_s19 + $0x7c4] ss:$108 sps:$4 sm:$0xff]  }
 0x194   : > { %v8439_v31 = vadd.f32 %v8438_v9, %v8437_v5  ;;  %v8388_v19 = vpop.f32.mrf.mxu0  ;;  %5888 = vmatmul.mubr.bf16.gmra.mxu0 %v10138_v43 }
 0x195   : > { %v11580_v46 = vadd.f32 %v8387_v13, %v5144_v36  ;;  %v8440_v10 = vpop.f32.mrf.mxu1  ;;  %5775 = vmatmul.mubr.bf16.gmra.mxu1 %v10135_v49  ;;  %5895 = vmatprep.mubr.bf16.mxu0 %v10146_v25  ;;  %v10153_v36 = vld [vmem:[%s10745_s19 + $0xccc] ss:$108 sps:$4 sm:$0xff]  }
 0x196   : > { %v11583_v53 = vadd.f32 %v8439_v31, %v11357_v45  ;;  %v8389_v62 = vpop.f32.mrf.mxu0  ;;  %5782 = vmatprep.mubr.bf16.mxu1 %v10143_v57  ;;  %v5152_v57 = vadd.f32 %v11495_v3, %v11468_v33 }
 0x197   : > { %v8390_v48 = vadd.f32 %v8389_v62, %v8388_v19  ;;  %v8441_v24 = vpop.f32.mrf.mxu1 }
 0x198   : > { %v8442_v43 = vadd.f32 %v8441_v24, %v8440_v10  ;;  %v8391_v5 = vpop.f32.mrf.mxu0  ;;  %v10159_v24 = vld [vmem:[%s10745_s19 + $0x89c] ss:$108 sps:$4 sm:$0xff]  }
 0x199   : > { %v11590_v56 = vadd.f32 %v8390_v48, %v5149_v8  ;;  %v8443_v49 = vpop.f32.mrf.mxu1  ;;  %v10154_v8 = vld [vmem:[%s10745_s19 + $0x7c0] ss:$108 sps:$4 sm:$0xff]   ;;  %v10151_v48 = vld [vmem:[%s10745_s19 + $0xcc8] ss:$108 sps:$4 sm:$0xff]  }
 0x19a   : > { %v11593_v25 = vadd.f32 %v8442_v43, %v11369_v61  ;;  %v8392_v45 = vpop.f32.mrf.mxu0 }
 0x19b   : > { %v8393_v17 = vadd.f32 %v8392_v45, %v8391_v5  ;;  %v8444_v13 = vpop.f32.mrf.mxu1 }
 0x19c   : > { %v8445_v9 = vadd.f32 %v8444_v13, %v8443_v49  ;;  %v8522_v31 = vpop.f32.mrf.mxu0  ;;  %5896 = vmatmul.mubr.bf16.gmra.mxu0 %v10144_v16 }
 0x19d   : > { %v11598_v19 = vadd.f32 %v8393_v17, %v5152_v57  ;;  %v8446_v10 = vpop.f32.mrf.mxu1  ;;  %5783 = vmatmul.mubr.bf16.gmra.mxu1 %v10141_v52  ;;  %5903 = vmatprep.mubr.bf16.mxu0 %v10156_v30 }
 0x19e   : > { %v11601_v61 = vadd.f32 %v8445_v9, %v11376_v47  ;;  %v8523_v62 = vpop.f32.mrf.mxu0  ;;  %5790 = vmatprep.mubr.bf16.mxu1 %v10153_v36  ;;  %v10162_v47 = vld [vmem:[%s10745_s19 + $0x34] ss:$108 sps:$4 sm:$0xff]  }
 0x19f   : > { %v8447_v33 = vpop.f32.mrf.mxu1  ;;  %v8524_v3 = vadd.f32 %v8523_v62, %v8522_v31  ;;  %v10157_v31 = vld [vmem:[%s10745_s19 + $0x898] ss:$108 sps:$4 sm:$0xff]  }
 0x1a0   : > { %v8448_v43 = vadd.f32 %v8447_v33, %v8446_v10  ;;  %v8525_v5 = vpop.f32.mrf.mxu0  ;;  %v10160_v33 = vld [vmem:[%s10745_s19 + $0x30] ss:$108 sps:$4 sm:$0xff]  }
 0x1a1   : > { %v11607_v16 = vadd.f32 %v8524_v3, %v11486_v34  ;;  %v8449_v49 = vpop.f32.mrf.mxu1  ;;  %v10169_v3 = vld [vmem:[%s10745_s19 + $0x974] ss:$108 sps:$4 sm:$0xff]  }
 0x1a2   : > { %v11610_v52 = vadd.f32 %v8448_v43, %v11385_v42  ;;  %v8526_v30 = vpop.f32.mrf.mxu0 }
 0x1a3   : > { %v8450_v45 = vpop.f32.mrf.mxu1  ;;  %v8527_v36 = vadd.f32 %v8526_v30, %v8525_v5 }
 0x1a4   : > { %v8451_v57 = vadd.f32 %v8450_v45, %v8449_v49  ;;  %v8528_v17 = vpop.f32.mrf.mxu0  ;;  %5904 = vmatmul.mubr.bf16.gmra.mxu0 %v10154_v8  ;;  %v10172_v49 = vld [vmem:[%s10745_s19 + $0x10c] ss:$108 sps:$4 sm:$0xff]   ;;  %v10179_v45 = vld [vmem:[%s13234_s1 + $0x470] sm:$0xff]  }
 0x1a5   : > { %v11614_v13 = vadd.f32 %v8527_v36, %v11511_v15  ;;  %v8452_v9 = vpop.f32.mrf.mxu1  ;;  %5791 = vmatmul.mubr.bf16.gmra.mxu1 %v10151_v48  ;;  %5911 = vmatprep.mubr.bf16.mxu0 %v10159_v24 }
 0x1a6   : > { %v11617_v34 = vadd.f32 %v8451_v57, %v11392_v27  ;;  %v8529_v42 = vpop.f32.mrf.mxu0  ;;  %5992 = vmatprep.mubr.bf16.mxu1 %v10162_v47  ;;  %v10164_v27 = vld [vmem:[%s13234_s1 + $0x438] sm:$0xff]  }
 0x1a7   : > { %v8453_v10 = vpop.f32.mrf.mxu1  ;;  %v8530_v62 = vadd.f32 %v8529_v42, %v8528_v17  ;;  %v10167_v42 = vld [vmem:[%s10745_s19 + $0x970] ss:$108 sps:$4 sm:$0xff]  }
 0x1a8   : > { %v8454_v43 = vadd.f32 %v8453_v10, %v8452_v9  ;;  %v8531_v5 = vpop.f32.mrf.mxu0  ;;  %v10180_v10 = vld [vmem:[%s13234_s1 + $0x430] sm:$0xff]  }
 0x1a9   : > { %v11623_v8 = vadd.f32 %v8530_v62, %v11521_v21  ;;  %v8455_v15 = vpop.f32.mrf.mxu1 }
 0x1aa   : > { %v11626_v48 = vadd.f32 %v8454_v43, %v11401_v26  ;;  %v8532_v24 = vpop.f32.mrf.mxu0 }
 0x1ab   : > { %v8456_v30 = vpop.f32.mrf.mxu1  ;;  %v8533_v47 = vadd.f32 %v8532_v24, %v8531_v5 }
 0x1ac   : > { %v8457_v36 = vadd.f32 %v8456_v30, %v8455_v15  ;;  %v8534_v21 = vpop.f32.mrf.mxu0  ;;  %5912 = vmatmul.mubr.bf16.gmra.mxu0 %v10157_v31  ;;  %v10196_v30 = vld [vmem:[%s13234_s1 + $0x428] sm:$0xff]  }
 0x1ad   : > { %v11636_v26 = vadd.f32 %v8533_v47, %v11529_v29  ;;  %v8458_v57 = vpop.f32.mrf.mxu1  ;;  %5993 = vmatmul.mubr.bf16.vlgmr.msra.gmra.mxu1 %v10160_v33  ;;  %5919 = vmatprep.mubr.bf16.mxu0 %v10169_v3  ;;  %v10195_v29 = vld [vmem:[%s13234_s1 + $0x468] sm:$0xff]  }
 0x1ae   : > { %v11639_v17 = vadd.f32 %v8457_v36, %v11414_v12  ;;  %9067 = vmatpush3.bf16.msra.mxu1 %v10164_v27  ;;  %v8535_v9 = vpop.f32.mrf.mxu0  ;;  %6000 = vmatprep.mubr.bf16.mxu1 %v10172_v49  ;;  %v10170_v33 = vld [vmem:[%s10745_s19 + $0x108] ss:$108 sps:$4 sm:$0xff]   ;;  %v10175_v3 = vld [vmem:[%s10745_s19 + $0xa4c] ss:$108 sps:$4 sm:$0xff]   ;;  %v10178_v49 = vld [vmem:[%s10745_s19 + $0x1e4] ss:$108 sps:$4 sm:$0xff]  }
 0x1af   : > { %v8459_v31 = vpop.f32.mrf.mxu1  ;;  %v8536_v62 = vadd.f32 %v8535_v9, %v8534_v21  ;;  %9068 = vmatprep.subr.bf16.mxu1 %v10179_v45 }
 0x1b0   : > { %v8460_v12 = vadd.f32 %v8459_v31, %v8458_v57  ;;  %v8537_v43 = vpop.f32.mrf.mxu0 }
 0x1b1   : > { %v11651_v5 = vadd.f32 %v8536_v62, %v11539_v1  ;;  %v8461_v15 = vpop.f32.mrf.mxu1  ;;  %v10213_v1 = vld [vmem:[%s13234_s1 + $0x460] sm:$0xff]  }
 0x1b2   : > { %v11654_v24 = vadd.f32 %v8460_v12, %v11429_v39  ;;  %v8538_v27 = vpop.f32.mrf.mxu0  ;;  %9069 = vmatpush3.bf16.msra.mxu1 %v10180_v10  ;;  %v10214_v39 = vld [vmem:[%s13234_s1 + $0x420] sm:$0xff]   ;;  %v10227_v10 = vld [vmem:[%s13234_s1 + $0x458] sm:$0xff]  }
 0x1b3   : > { %v8462_v47 = vpop.f32.mrf.mxu1  ;;  %v8539_v36 = vadd.f32 %v8538_v27, %v8537_v43  ;;  %9070 = vmatprep.subr.bf16.mxu1 %v10195_v29  ;;  %v10176_v43 = vld [vmem:[%s10745_s19 + $0x1e0] ss:$108 sps:$4 sm:$0xff]  }
 0x1b4   : > { %v8463_v45 = vadd.f32 %v8462_v47, %v8461_v15  ;;  %v8540_v21 = vpop.f32.mrf.mxu0  ;;  %5920 = vmatmul.mubr.bf16.gmra.mxu0 %v10167_v42  ;;  %v10173_v42 = vld [vmem:[%s10745_s19 + $0xa48] ss:$108 sps:$4 sm:$0xff]  }
 0x1b5   : > { %v11667_v57 = vadd.f32 %v8539_v36, %v11547_v41  ;;  %v8464_v9 = vpop.f32.mrf.mxu1  ;;  %6001 = vmatmul.mubr.bf16.gmra.mxu1 %v10170_v33  ;;  %5927 = vmatprep.mubr.bf16.mxu0 %v10175_v3  ;;  %v10185_v41 = vld [vmem:[%s10745_s19 + $0xb24] ss:$108 sps:$4 sm:$0xff]   ;;  %v10188_v36 = vld [vmem:[%s10745_s19 + $0x2bc] ss:$108 sps:$4 sm:$0xff]  }
 0x1b6   : > { %v11673_v29 = vadd.f32 %v8463_v45, %v11445_v38  ;;  %v8541_v31 = vpop.f32.mrf.mxu0  ;;  %6008 = vmatprep.mubr.bf16.mxu1 %v10178_v49  ;;  %9071 = vmatpush3.bf16.msra.mxu1 %v10196_v30  ;;  %v10228_v49 = vld [vmem:[%s13234_s1 + $0x418] sm:$0xff]  }
 0x1b7   : > { %v8465_v62 = vpop.f32.mrf.mxu1  ;;  %v8542_v12 = vadd.f32 %v8541_v31, %v8540_v21  ;;  %9072 = vmatprep.subr.bf16.mxu1 %v10213_v1 }
 0x1b8   : > { %v8466_v15 = vadd.f32 %v8465_v62, %v8464_v9  ;;  %v8543_v33 = vpop.f32.mrf.mxu0  ;;  %v10244_v62 = vld [vmem:[%s13234_s1 + $0x410] sm:$0xff]  }
 0x1b9   : > { %v11679_v3 = vadd.f32 %v8542_v12, %v11557_v37  ;;  %v8467_v27 = vpop.f32.mrf.mxu1  ;;  %v10243_v37 = vld [vmem:[%s13234_s1 + $0x450] sm:$0xff]  }
 0x1ba   : > { %v11682_v47 = vadd.f32 %v8466_v15, %v11457_v22  ;;  %v8544_v38 = vpop.f32.mrf.mxu0  ;;  %9073 = vmatpush3.bf16.msra.mxu1 %v10214_v39 }
 0x1bb   : > { %v8468_v30 = vpop.f32.mrf.mxu1  ;;  %v8545_v45 = vadd.f32 %v8544_v38, %v8543_v33  ;;  %9074 = vmatprep.subr.bf16.mxu1 %v10227_v10  ;;  %v10183_v10 = vld [vmem:[%s10745_s19 + $0xb20] ss:$108 sps:$4 sm:$0xff]  }
 0x1bc   : > { %v8469_v1 = vadd.f32 %v8468_v30, %v8467_v27  ;;  %v8546_v21 = vpop.f32.mrf.mxu0  ;;  %5928 = vmatmul.mubr.bf16.gmra.mxu0 %v10173_v42  ;;  %v10260_v30 = vld [vmem:[%s13234_s1 + $0x408] sm:$0xff]  }
 0x1bd   : > { %v11692_v22 = vadd.f32 %v8545_v45, %v11565_v44  ;;  %v8470_v39 = vpop.f32.mrf.mxu1  ;;  %6009 = vmatmul.mubr.bf16.gmra.mxu1 %v10176_v43  ;;  %5935 = vmatprep.mubr.bf16.mxu0 %v10185_v41  ;;  %v10259_v44 = vld [vmem:[%s13234_s1 + $0x448] sm:$0xff]   ;;  %v10186_v43 = vld [vmem:[%s10745_s19 + $0x2b8] ss:$108 sps:$4 sm:$0xff]  }
 0x1be   : > { %v11695_v9 = vadd.f32 %v8469_v1, %v11470_v32  ;;  %v8547_v31 = vpop.f32.mrf.mxu0  ;;  %6016 = vmatprep.mubr.bf16.mxu1 %v10188_v36  ;;  %9075 = vmatpush3.bf16.msra.mxu1 %v10228_v49  ;;  %v10191_v41 = vld [vmem:[%s10745_s19 + $0xbfc] ss:$108 sps:$4 sm:$0xff]   ;;  %v10194_v49 = vld [vmem:[%s10745_s19 + $0x394] ss:$108 sps:$4 sm:$0xff]  }
 0x1bf   : > { %v8471_v42 = vpop.f32.mrf.mxu1  ;;  %v8548_v12 = vadd.f32 %v8547_v31, %v8546_v21  ;;  %9076 = vmatprep.subr.bf16.mxu1 %v10243_v37 }
 0x1c0   : > { %v8472_v32 = vadd.f32 %v8471_v42, %v8470_v39  ;;  %v8549_v15 = vpop.f32.mrf.mxu0 }
 0x1c1   : > { %v11707_v33 = vadd.f32 %v8548_v12, %v11575_v60  ;;  %v8473_v27 = vpop.f32.mrf.mxu1  ;;  %v10275_v60 = vld [vmem:[%s13234_s1 + $0x440] sm:$0xff]  }
 0x1c2   : > { %v11710_v38 = vadd.f32 %v8472_v32, %v11483_v54  ;;  %v8550_v36 = vpop.f32.mrf.mxu0  ;;  %9077 = vmatpush3.bf16.msra.mxu1 %v10244_v62  ;;  %v10276_v54 = vld [vmem:[%s13234_s1 + $0x400] sm:$0xff]   ;;  %v10291_v62 = vld [vmem:[%s13234_s1 + $0x578] sm:$0xff]  }
 0x1c3   : > { %v8474_v45 = vpop.f32.mrf.mxu1  ;;  %v8551_v1 = vadd.f32 %v8550_v36, %v8549_v15  ;;  %9078 = vmatprep.subr.bf16.mxu1 %v10259_v44  ;;  %v10192_v15 = vld [vmem:[%s10745_s19 + $0x390] ss:$108 sps:$4 sm:$0xff]  }
 0x1c4   : > { %v8475_v37 = vadd.f32 %v8474_v45, %v8473_v27  ;;  %v8552_v21 = vpop.f32.mrf.mxu0  ;;  %5936 = vmatmul.mubr.bf16.gmra.mxu0 %v10183_v10  ;;  %v10189_v10 = vld [vmem:[%s10745_s19 + $0xbf8] ss:$108 sps:$4 sm:$0xff]  }
 0x1c5   : > { %v11723_v39 = vadd.f32 %v8551_v1, %v11583_v53  ;;  %v8476_v31 = vpop.f32.mrf.mxu1  ;;  %6017 = vmatmul.mubr.bf16.gmra.mxu1 %v10186_v43  ;;  %5943 = vmatprep.mubr.bf16.mxu0 %v10191_v41  ;;  %v10201_v53 = vld [vmem:[%s10745_s19 + $0xcd4] ss:$108 sps:$4 sm:$0xff]   ;;  %v10204_v1 = vld [vmem:[%s10745_s19 + $0x46c] ss:$108 sps:$4 sm:$0xff]  }
 0x1c6   : > { %v11729_v44 = vadd.f32 %v8475_v37, %v11505_v55  ;;  %v8553_v42 = vpop.f32.mrf.mxu0  ;;  %6024 = vmatprep.mubr.bf16.mxu1 %v10194_v49  ;;  %9079 = vmatpush3.bf16.msra.mxu1 %v10260_v30 }
 0x1c7   : > { %v8477_v12 = vpop.f32.mrf.mxu1  ;;  %v8554_v32 = vadd.f32 %v8553_v42, %v8552_v21  ;;  %9080 = vmatprep.subr.bf16.mxu1 %v10275_v60 }
 0x1c8   : > { %v8478_v27 = vadd.f32 %v8477_v12, %v8476_v31  ;;  %v8555_v43 = vpop.f32.mrf.mxu0 }
 0x1c9   : > { %v11735_v41 = vadd.f32 %v8554_v32, %v11593_v25  ;;  %v8479_v36 = vpop.f32.mrf.mxu1 }
 0x1ca   : > { %v11738_v45 = vadd.f32 %v8478_v27, %v11518_v23  ;;  %v8556_v55 = vpop.f32.mrf.mxu0  ;;  %9081 = vmatpush3.bf16.msra.mxu1 %v10276_v54  ;;  %v10199_v54 = vld [vmem:[%s10745_s19 + $0xcd0] ss:$108 sps:$4 sm:$0xff]  }
 0x1cb   : > { %v8480_v49 = vpop.f32.mrf.mxu1  ;;  %v8557_v30 = vadd.f32 %v8556_v55, %v8555_v43  ;;  %9290 = vmatprep.subr.bf16.mxu1 %v10291_v62  ;;  %v10202_v62 = vld [vmem:[%s10745_s19 + $0x468] ss:$108 sps:$4 sm:$0xff]  }
 0x1cc   : > { %v8481_v37 = vadd.f32 %v8480_v49, %v8479_v36  ;;  %v8558_v21 = vpop.f32.mrf.mxu0  ;;  %5944 = vmatmul.mubr.bf16.gmra.mxu0 %v10189_v10  ;;  %v10212_v43 = vld [vmem:[%s10745_s19 + $0x3c] ss:$108 sps:$4 sm:$0xff]   ;;  %v10209_v36 = vld [vmem:[%s10745_s19 + $0x544] ss:$108 sps:$4 sm:$0xff]  }
 0x1cd   : > { %v11742_v60 = vadd.f32 %v8557_v30, %v11601_v61  ;;  %v8482_v25 = vpop.f32.mrf.mxu1  ;;  %6025 = vmatmul.mubr.bf16.gmra.mxu1 %v10192_v15  ;;  %5951 = vmatprep.mubr.bf16.mxu0 %v10201_v53 }
 0x1ce   : > { %v11745_v23 = vadd.f32 %v8481_v37, %v11526_v40  ;;  %v8559_v31 = vpop.f32.mrf.mxu0  ;;  %6032 = vmatprep.mubr.bf16.mxu1 %v10204_v1 }
 0x1cf   : > { %v8483_v42 = vpop.f32.mrf.mxu1  ;;  %v8560_v12 = vadd.f32 %v8559_v31, %v8558_v21 }
 0x1d0   : > { %v8484_v32 = vadd.f32 %v8483_v42, %v8482_v25  ;;  %v8561_v27 = vpop.f32.mrf.mxu0 }
 0x1d1   : > { %v11750_v10 = vadd.f32 %v8560_v12, %v11610_v52  ;;  %v8485_v61 = vpop.f32.mrf.mxu1  ;;  %v10210_v12 = vld [vmem:[%s10745_s19 + $0x38] ss:$108 sps:$4 sm:$0xff]  }
 0x1d2   : > { %v11754_v15 = vadd.f32 %v8484_v32, %v11536_v0  ;;  %v8562_v53 = vpop.f32.mrf.mxu0 }
 0x1d3   : > { %v8486_v40 = vpop.f32.mrf.mxu1  ;;  %v8563_v55 = vadd.f32 %v8562_v53, %v8561_v27  ;;  %v10220_v27 = vld [vmem:[%s10745_s19 + $0x114] ss:$108 sps:$4 sm:$0xff]  }
 0x1d4   : > { %v8487_v49 = vadd.f32 %v8486_v40, %v8485_v61  ;;  %v8564_v1 = vpop.f32.mrf.mxu0  ;;  %5952 = vmatmul.mubr.bf16.gmra.mxu0 %v10199_v54  ;;  %v10245_v40 = vld [vmem:[%s13234_s1 + $0x4f0] sm:$0xff]  }
 0x1d5   : > { %v11758_v30 = vadd.f32 %v8563_v55, %v11617_v34  ;;  %v8488_v52 = vpop.f32.mrf.mxu1  ;;  %6033 = vmatmul.mubr.bf16.gmra.mxu1 %v10202_v62  ;;  %6153 = vmatprep.mubr.bf16.mxu0 %v10212_v43  ;;  %v10207_v34 = vld [vmem:[%s10745_s19 + $0x540] ss:$108 sps:$4 sm:$0xff]   ;;  %v10217_v43 = vld [vmem:[%s10745_s19 + $0x61c] ss:$108 sps:$4 sm:$0xff]  }
 0x1d6   : > { %v11761_v0 = vadd.f32 %v8487_v49, %v11544_v51  ;;  %v8565_v37 = vpop.f32.mrf.mxu0  ;;  %6040 = vmatprep.mubr.bf16.mxu1 %v10209_v36  ;;  %v10230_v51 = vld [vmem:[%s13234_s1 + $0x4b8] sm:$0xff]  }
 0x1d7   : > { %v8489_v21 = vpop.f32.mrf.mxu1  ;;  %v8566_v25 = vadd.f32 %v8565_v37, %v8564_v1  ;;  %v10246_v37 = vld [vmem:[%s13234_s1 + $0x4b0] sm:$0xff]  }
 0x1d8   : > { %v8490_v31 = vadd.f32 %v8489_v21, %v8488_v52  ;;  %v8567_v42 = vpop.f32.mrf.mxu0 }
 0x1d9   : > { %v11765_v54 = vadd.f32 %v8566_v25, %v11626_v48  ;;  %v8491_v32 = vpop.f32.mrf.mxu1 }
 0x1da   : > { %v11770_v62 = vadd.f32 %v8490_v31, %v11554_v35  ;;  %v8568_v61 = vpop.f32.mrf.mxu0 }
 0x1db   : > { %v8492_v53 = vpop.f32.mrf.mxu1  ;;  %v8569_v36 = vadd.f32 %v8568_v61, %v8567_v42 }
 0x1dc   : > { %v8493_v48 = vadd.f32 %v8492_v53, %v8491_v32  ;;  %v8570_v55 = vpop.f32.mrf.mxu0  ;;  %6154 = vmatmul.mubr.bf16.vlgmr.msra.gmra.mxu0 %v10210_v12  ;;  %v10218_v12 = vld [vmem:[%s10745_s19 + $0x110] ss:$108 sps:$4 sm:$0xff]   ;;  %v10262_v53 = vld [vmem:[%s13234_s1 + $0x4a8] sm:$0xff]  }
 0x1dd   : > { %v11780_v49 = vadd.f32 %v8569_v36, %v11639_v17  ;;  %v8494_v35 = vpop.f32.mrf.mxu1  ;;  %6041 = vmatmul.mubr.bf16.gmra.mxu1 %v10207_v34  ;;  %6161 = vmatprep.mubr.bf16.mxu0 %v10220_v27  ;;  %v10261_v17 = vld [vmem:[%s13234_s1 + $0x4e8] sm:$0xff]   ;;  %v10215_v34 = vld [vmem:[%s10745_s19 + $0x618] ss:$108 sps:$4 sm:$0xff]  }
 0x1de   : > { %v11783_v1 = vadd.f32 %v8493_v48, %v11562_v50  ;;  %v8571_v52 = vpop.f32.mrf.mxu0  ;;  %6048 = vmatprep.mubr.bf16.mxu1 %v10217_v43  ;;  %9179 = vmatpush3.bf16.msra.mxu0 %v10230_v51  ;;  %v10226_v27 = vld [vmem:[%s10745_s19 + $0x1ec] ss:$108 sps:$4 sm:$0xff]   ;;  %v10223_v51 = vld [vmem:[%s10745_s19 + $0x6f4] ss:$108 sps:$4 sm:$0xff]  }
 0x1df   : > { %v8495_v21 = vpop.f32.mrf.mxu1  ;;  %v8572_v25 = vadd.f32 %v8571_v52, %v8570_v55  ;;  %9180 = vmatprep.subr.bf16.mxu0 %v10245_v40 }
 0x1e0   : > { %v8496_v31 = vadd.f32 %v8495_v21, %v8494_v35  ;;  %v8573_v42 = vpop.f32.mrf.mxu0  ;;  %v10278_v21 = vld [vmem:[%s13234_s1 + $0x4a0] sm:$0xff]  }
 0x1e1   : > { %v11793_v50 = vadd.f32 %v8572_v25, %v11654_v24  ;;  %v8497_v32 = vpop.f32.mrf.mxu1  ;;  %v10277_v24 = vld [vmem:[%s13234_s1 + $0x4e0] sm:$0xff]  }
 0x1e2   : > { %v11798_v61 = vadd.f32 %v8496_v31, %v11572_v4  ;;  %v8574_v43 = vpop.f32.mrf.mxu0  ;;  %9181 = vmatpush3.bf16.msra.mxu0 %v10246_v37 }
 0x1e3   : > { %v8498_v36 = vpop.f32.mrf.mxu1  ;;  %v8575_v40 = vadd.f32 %v8574_v43, %v8573_v42  ;;  %9182 = vmatprep.subr.bf16.mxu0 %v10261_v17 }
 0x1e4   : > { %v8499_v48 = vadd.f32 %v8498_v36, %v8497_v32  ;;  %v8576_v55 = vpop.f32.mrf.mxu0  ;;  %6162 = vmatmul.mubr.bf16.gmra.mxu0 %v10218_v12  ;;  %v10224_v12 = vld [vmem:[%s10745_s19 + $0x1e8] ss:$108 sps:$4 sm:$0xff]   ;;  %v10294_v36 = vld [vmem:[%s13234_s1 + $0x498] sm:$0xff]  }
 0x1e5   : > { %v11808_v4 = vadd.f32 %v8575_v40, %v11673_v29  ;;  %v8500_v35 = vpop.f32.mrf.mxu1  ;;  %6049 = vmatmul.mubr.bf16.gmra.mxu1 %v10215_v34  ;;  %6169 = vmatprep.mubr.bf16.mxu0 %v10226_v27  ;;  %v10293_v29 = vld [vmem:[%s13234_s1 + $0x4d8] sm:$0xff]   ;;  %v10236_v27 = vld [vmem:[%s10745_s19 + $0x2c4] ss:$108 sps:$4 sm:$0xff]  }
 0x1e6   : > { %v11811_v52 = vadd.f32 %v8499_v48, %v11580_v46  ;;  %v8577_v37 = vpop.f32.mrf.mxu0  ;;  %6056 = vmatprep.mubr.bf16.mxu1 %v10223_v51  ;;  %9183 = vmatpush3.bf16.msra.mxu0 %v10262_v53  ;;  %v10221_v34 = vld [vmem:[%s10745_s19 + $0x6f0] ss:$108 sps:$4 sm:$0xff]   ;;  %v10233_v53 = vld [vmem:[%s10745_s19 + $0x7cc] ss:$108 sps:$4 sm:$0xff]  }
 0x1e7   : > { %v8501_v25 = vpop.f32.mrf.mxu1  ;;  %v8578_v17 = vadd.f32 %v8577_v37, %v8576_v55  ;;  %9184 = vmatprep.subr.bf16.mxu0 %v10277_v24 }
 0x1e8   : > { %v8502_v31 = vadd.f32 %v8501_v25, %v8500_v35  ;;  %v8579_v42 = vpop.f32.mrf.mxu0  ;;  %v10310_v25 = vld [vmem:[%s13234_s1 + $0x490] sm:$0xff]  }
 0x1e9   : > { %v11821_v46 = vadd.f32 %v8578_v17, %v11682_v47  ;;  %v8503_v32 = vpop.f32.mrf.mxu1  ;;  %v10309_v47 = vld [vmem:[%s13234_s1 + $0x4d0] sm:$0xff]  }
 0x1ea   : > { %v11826_v43 = vadd.f32 %v8502_v31, %v11590_v56  ;;  %v8580_v51 = vpop.f32.mrf.mxu0  ;;  %9185 = vmatpush3.bf16.msra.mxu0 %v10278_v21 }
 0x1eb   : > { %v8504_v40 = vpop.f32.mrf.mxu1  ;;  %v8581_v24 = vadd.f32 %v8580_v51, %v8579_v42  ;;  %9186 = vmatprep.subr.bf16.mxu0 %v10293_v29 }
 0x1ec   : > { %v8505_v48 = vadd.f32 %v8504_v40, %v8503_v32  ;;  %v8582_v55 = vpop.f32.mrf.mxu0  ;;  %6170 = vmatmul.mubr.bf16.gmra.mxu0 %v10224_v12  ;;  %v10234_v12 = vld [vmem:[%s10745_s19 + $0x2c0] ss:$108 sps:$4 sm:$0xff]  }
 0x1ed   : > { %v11836_v56 = vadd.f32 %v8581_v24, %v11695_v9  ;;  %v8634_v35 = vpop.f32.mrf.mxu1  ;;  %6057 = vmatmul.mubr.bf16.gmra.mxu1 %v10221_v34  ;;  %6177 = vmatprep.mubr.bf16.mxu0 %v10236_v27  ;;  %v10325_v9 = vld [vmem:[%s13234_s1 + $0x4c8] sm:$0xff]  }
 0x1ee   : > { %v11839_v37 = vadd.f32 %v8505_v48, %v11598_v19  ;;  %v8583_v21 = vpop.f32.mrf.mxu0  ;;  %6064 = vmatprep.mubr.bf16.mxu1 %v10233_v53  ;;  %9187 = vmatpush3.bf16.msra.mxu0 %v10294_v36  ;;  %v10231_v34 = vld [vmem:[%s10745_s19 + $0x7c8] ss:$108 sps:$4 sm:$0xff]   ;;  %v10239_v36 = vld [vmem:[%s10745_s19 + $0x8a4] ss:$108 sps:$4 sm:$0xff]  }
 0x1ef   : > { %v8584_v17 = vadd.f32 %v8583_v21, %v8582_v55  ;;  %v8635_v29 = vpop.f32.mrf.mxu1  ;;  %9188 = vmatprep.subr.bf16.mxu0 %v10309_v47  ;;  %v10242_v27 = vld [vmem:[%s10745_s19 + $0x39c] ss:$108 sps:$4 sm:$0xff]  }
 0x1f0   : > { %v8636_v31 = vadd.f32 %v8635_v29, %v8634_v35  ;;  %v8585_v42 = vpop.f32.mrf.mxu0  ;;  %v10326_v40 = vld [vmem:[%s13234_s1 + $0x488] sm:$0xff]  }
 0x1f1   : > { %v11849_v19 = vadd.f32 %v8584_v17, %v11710_v38  ;;  %v8637_v32 = vpop.f32.mrf.mxu1  ;;  %v10333_v38 = vld [vmem:[%s13234_s1 + $0x4c0] sm:$0xff]  }
 0x1f2   : > { %v11854_v51 = vadd.f32 %v8636_v31, %v11607_v16  ;;  %v8586_v53 = vpop.f32.mrf.mxu0  ;;  %9189 = vmatpush3.bf16.msra.mxu0 %v10310_v25  ;;  %v10334_v17 = vld [vmem:[%s13234_s1 + $0x480] sm:$0xff]  }
 0x1f3   : > { %v8587_v24 = vadd.f32 %v8586_v53, %v8585_v42  ;;  %v8638_v47 = vpop.f32.mrf.mxu1  ;;  %9190 = vmatprep.subr.bf16.mxu0 %v10325_v9 }
 0x1f4   : > { %v8639_v48 = vadd.f32 %v8638_v47, %v8637_v32  ;;  %v8588_v55 = vpop.f32.mrf.mxu0  ;;  %6178 = vmatmul.mubr.bf16.gmra.mxu0 %v10234_v12  ;;  %v10240_v12 = vld [vmem:[%s10745_s19 + $0x398] ss:$108 sps:$4 sm:$0xff]  }
 0x1f5   : > { %v11864_v16 = vadd.f32 %v8587_v24, %v11729_v44  ;;  %v8640_v35 = vpop.f32.mrf.mxu1  ;;  %6065 = vmatmul.mubr.bf16.gmra.mxu1 %v10231_v34  ;;  %6185 = vmatprep.mubr.bf16.mxu0 %v10242_v27  ;;  %v10357_v44 = vld [vmem:[%s13234_s1 + $0x5f8] sm:$0xff]   ;;  %v10237_v34 = vld [vmem:[%s10745_s19 + $0x8a0] ss:$108 sps:$4 sm:$0xff]  }
 0x1f6   : > { %v11867_v21 = vadd.f32 %v8639_v48, %v11614_v13  ;;  %v8589_v25 = vpop.f32.mrf.mxu0  ;;  %6072 = vmatprep.mubr.bf16.mxu1 %v10239_v36  ;;  %9191 = vmatpush3.bf16.msra.mxu0 %v10326_v40  ;;  %v10252_v27 = vld [vmem:[%s10745_s19 + $0x474] ss:$108 sps:$4 sm:$0xff]   ;;  %v10249_v40 = vld [vmem:[%s10745_s19 + $0x97c] ss:$108 sps:$4 sm:$0xff]  }
 0x1f7   : > { %v8590_v29 = vadd.f32 %v8589_v25, %v8588_v55  ;;  %v8641_v9 = vpop.f32.mrf.mxu1  ;;  %9192 = vmatprep.subr.bf16.mxu0 %v10333_v38 }
 0x1f8   : > { %v8642_v31 = vadd.f32 %v8641_v9, %v8640_v35  ;;  %v8591_v42 = vpop.f32.mrf.mxu0 }
 0x1f9   : > { %v11877_v13 = vadd.f32 %v8590_v29, %v11738_v45  ;;  %v8643_v32 = vpop.f32.mrf.mxu1 }
 0x1fa   : > { %v11882_v53 = vadd.f32 %v8642_v31, %v11623_v8  ;;  %v8592_v36 = vpop.f32.mrf.mxu0  ;;  %9193 = vmatpush3.bf16.msra.mxu0 %v10334_v17 }
 0x1fb   : > { %v8593_v24 = vadd.f32 %v8592_v36, %v8591_v42  ;;  %v8644_v47 = vpop.f32.mrf.mxu1  ;;  %9402 = vmatprep.subr.bf16.mxu0 %v10357_v44  ;;  %v10250_v44 = vld [vmem:[%s10745_s19 + $0x470] ss:$108 sps:$4 sm:$0xff]  }
 0x1fc   : > { %v8645_v38 = vadd.f32 %v8644_v47, %v8643_v32  ;;  %v8594_v48 = vpop.f32.mrf.mxu0  ;;  %6186 = vmatmul.mubr.bf16.gmra.mxu0 %v10240_v12  ;;  %v10258_v12 = vld [vmem:[%s10745_s19 + $0x54c] ss:$108 sps:$4 sm:$0xff]  }
 0x1fd   : > { %v11886_v45 = vadd.f32 %v8593_v24, %v11745_v23  ;;  %v8646_v55 = vpop.f32.mrf.mxu1  ;;  %6073 = vmatmul.mubr.bf16.gmra.mxu1 %v10237_v34  ;;  %6193 = vmatprep.mubr.bf16.mxu0 %v10252_v27  ;;  %v10247_v23 = vld [vmem:[%s10745_s19 + $0x978] ss:$108 sps:$4 sm:$0xff]   ;;  %v10255_v27 = vld [vmem:[%s10745_s19 + $0xa54] ss:$108 sps:$4 sm:$0xff]  }
 0x1fe   : > { %v11889_v8 = vadd.f32 %v8645_v38, %v11636_v26  ;;  %v8595_v35 = vpop.f32.mrf.mxu0  ;;  %6080 = vmatprep.mubr.bf16.mxu1 %v10249_v40 }
 0x1ff   : > { %v8596_v25 = vadd.f32 %v8595_v35, %v8594_v48  ;;  %v8647_v17 = vpop.f32.mrf.mxu1 }
 0x200   : > { %v8648_v29 = vadd.f32 %v8647_v17, %v8646_v55  ;;  %v8597_v9 = vpop.f32.mrf.mxu0  ;;  %v10256_v17 = vld [vmem:[%s10745_s19 + $0x548] ss:$108 sps:$4 sm:$0xff]  }
 0x201   : > { %v11893_v31 = vadd.f32 %v8596_v25, %v11754_v15  ;;  %v8649_v42 = vpop.f32.mrf.mxu1 }
 0x202   : > { %v11898_v32 = vadd.f32 %v8648_v29, %v11651_v5  ;;  %v8598_v34 = vpop.f32.mrf.mxu0 }
 0x203   : > { %v8599_v26 = vadd.f32 %v8598_v34, %v8597_v9  ;;  %v8650_v36 = vpop.f32.mrf.mxu1 }
 0x204   : > { %v8651_v40 = vadd.f32 %v8650_v36, %v8649_v42  ;;  %v8600_v24 = vpop.f32.mrf.mxu0  ;;  %6194 = vmatmul.mubr.bf16.gmra.mxu0 %v10250_v44  ;;  %v10268_v44 = vld [vmem:[%s10745_s19 + $0x624] ss:$108 sps:$4 sm:$0xff]  }
 0x205   : > { %v11902_v47 = vadd.f32 %v8599_v26, %v11761_v0  ;;  %v8652_v15 = vpop.f32.mrf.mxu1  ;;  %6081 = vmatmul.mubr.bf16.gmra.mxu1 %v10247_v23  ;;  %6201 = vmatprep.mubr.bf16.mxu0 %v10258_v12  ;;  %v10253_v0 = vld [vmem:[%s10745_s19 + $0xa50] ss:$108 sps:$4 sm:$0xff]   ;;  %v10265_v12 = vld [vmem:[%s10745_s19 + $0xb2c] ss:$108 sps:$4 sm:$0xff]  }
 0x206   : > { %v11905_v5 = vadd.f32 %v8651_v40, %v11667_v57  ;;  %v8601_v38 = vpop.f32.mrf.mxu0  ;;  %6088 = vmatprep.mubr.bf16.mxu1 %v10255_v27 }
 0x207   : > { %v8602_v48 = vadd.f32 %v8601_v38, %v8600_v24  ;;  %v8653_v55 = vpop.f32.mrf.mxu1 }
 0x208   : > { %v8654_v35 = vadd.f32 %v8653_v55, %v8652_v15  ;;  %v8603_v25 = vpop.f32.mrf.mxu0  ;;  %v10266_v55 = vld [vmem:[%s10745_s19 + $0x620] ss:$108 sps:$4 sm:$0xff]  }
 0x209   : > { %v11909_v29 = vadd.f32 %v8602_v48, %v11770_v62  ;;  %v8655_v9 = vpop.f32.mrf.mxu1 }
 0x20a   : > { %v11914_v42 = vadd.f32 %v8654_v35, %v11679_v3  ;;  %v8604_v23 = vpop.f32.mrf.mxu0 }
 0x20b   : > { %v8605_v57 = vadd.f32 %v8604_v23, %v8603_v25  ;;  %v8656_v34 = vpop.f32.mrf.mxu1 }
 0x20c   : > { %v8657_v27 = vadd.f32 %v8656_v34, %v8655_v9  ;;  %v8606_v26 = vpop.f32.mrf.mxu0  ;;  %6202 = vmatmul.mubr.bf16.gmra.mxu0 %v10256_v17  ;;  %v10274_v17 = vld [vmem:[%s10745_s19 + $0x6fc] ss:$108 sps:$4 sm:$0xff]  }
 0x20d   : > { %v11918_v36 = vadd.f32 %v8605_v57, %v11783_v1  ;;  %v8658_v62 = vpop.f32.mrf.mxu1  ;;  %6089 = vmatmul.mubr.bf16.gmra.mxu1 %v10253_v0  ;;  %6209 = vmatprep.mubr.bf16.mxu0 %v10268_v44  ;;  %v10263_v1 = vld [vmem:[%s10745_s19 + $0xb28] ss:$108 sps:$4 sm:$0xff]   ;;  %v10271_v44 = vld [vmem:[%s10745_s19 + $0xc04] ss:$108 sps:$4 sm:$0xff]  }
 0x20e   : > { %v11921_v3 = vadd.f32 %v8657_v27, %v11692_v22  ;;  %v8607_v40 = vpop.f32.mrf.mxu0  ;;  %6096 = vmatprep.mubr.bf16.mxu1 %v10265_v12 }
 0x20f   : > { %v8608_v24 = vadd.f32 %v8607_v40, %v8606_v26  ;;  %v8659_v15 = vpop.f32.mrf.mxu1 }
 0x210   : > { %v8660_v38 = vadd.f32 %v8659_v15, %v8658_v62  ;;  %v8609_v48 = vpop.f32.mrf.mxu0  ;;  %v10272_v15 = vld [vmem:[%s10745_s19 + $0x6f8] ss:$108 sps:$4 sm:$0xff]  }
 0x211   : > { %v11925_v35 = vadd.f32 %v8608_v24, %v11798_v61  ;;  %v8661_v25 = vpop.f32.mrf.mxu1 }
 0x212   : > { %v11930_v9 = vadd.f32 %v8660_v38, %v11707_v33  ;;  %v8610_v0 = vpop.f32.mrf.mxu0 }
 0x213   : > { %v8611_v22 = vadd.f32 %v8610_v0, %v8609_v48  ;;  %v8662_v23 = vpop.f32.mrf.mxu1 }
 0x214   : > { %v8663_v12 = vadd.f32 %v8662_v23, %v8661_v25  ;;  %v8612_v57 = vpop.f32.mrf.mxu0  ;;  %6210 = vmatmul.mubr.bf16.gmra.mxu0 %v10266_v55  ;;  %v10284_v55 = vld [vmem:[%s10745_s19 + $0x7d4] ss:$108 sps:$4 sm:$0xff]  }
 0x215   : > { %v11934_v34 = vadd.f32 %v8611_v22, %v11811_v52  ;;  %v8664_v61 = vpop.f32.mrf.mxu1  ;;  %6097 = vmatmul.mubr.bf16.gmra.mxu1 %v10263_v1  ;;  %6217 = vmatprep.mubr.bf16.mxu0 %v10274_v17  ;;  %v10269_v52 = vld [vmem:[%s10745_s19 + $0xc00] ss:$108 sps:$4 sm:$0xff]   ;;  %v10281_v17 = vld [vmem:[%s10745_s19 + $0xcdc] ss:$108 sps:$4 sm:$0xff]  }
 0x216   : > { %v11937_v33 = vadd.f32 %v8663_v12, %v11723_v39  ;;  %v8613_v27 = vpop.f32.mrf.mxu0  ;;  %6104 = vmatprep.mubr.bf16.mxu1 %v10271_v44 }
 0x217   : > { %v8614_v26 = vadd.f32 %v8613_v27, %v8612_v57  ;;  %v8665_v62 = vpop.f32.mrf.mxu1 }
 0x218   : > { %v8666_v40 = vadd.f32 %v8665_v62, %v8664_v61  ;;  %v8615_v24 = vpop.f32.mrf.mxu0  ;;  %v10282_v62 = vld [vmem:[%s10745_s19 + $0x7d0] ss:$108 sps:$4 sm:$0xff]  }
 0x219   : > { %v11941_v38 = vadd.f32 %v8614_v26, %v11826_v43  ;;  %v8667_v48 = vpop.f32.mrf.mxu1 }
 0x21a   : > { %v11946_v25 = vadd.f32 %v8666_v40, %v11735_v41  ;;  %v8616_v1 = vpop.f32.mrf.mxu0 }
 0x21b   : > { %v8617_v39 = vadd.f32 %v8616_v1, %v8615_v24  ;;  %v8668_v0 = vpop.f32.mrf.mxu1 }
 0x21c   : > { %v8669_v44 = vadd.f32 %v8668_v0, %v8667_v48  ;;  %v8746_v22 = vpop.f32.mrf.mxu0  ;;  %6218 = vmatmul.mubr.bf16.gmra.mxu0 %v10272_v15  ;;  %v10287_v15 = vld [vmem:[%s10745_s19 + $0x8ac] ss:$108 sps:$4 sm:$0xff]  }
 0x21d   : > { %v11950_v23 = vadd.f32 %v8617_v39, %v11839_v37  ;;  %v8670_v43 = vpop.f32.mrf.mxu1  ;;  %6105 = vmatmul.mubr.bf16.gmra.mxu1 %v10269_v52  ;;  %6225 = vmatprep.mubr.bf16.mxu0 %v10284_v55  ;;  %v10279_v37 = vld [vmem:[%s10745_s19 + $0xcd8] ss:$108 sps:$4 sm:$0xff]  }
 0x21e   : > { %v11953_v41 = vadd.f32 %v8669_v44, %v11742_v60  ;;  %v8747_v12 = vpop.f32.mrf.mxu0  ;;  %6112 = vmatprep.mubr.bf16.mxu1 %v10281_v17  ;;  %v10290_v55 = vld [vmem:[%s10745_s19 + $0x44] ss:$108 sps:$4 sm:$0xff]  }
 0x21f   : > { %v8671_v57 = vpop.f32.mrf.mxu1  ;;  %v8748_v61 = vadd.f32 %v8747_v12, %v8746_v22 }
 0x220   : > { %v8672_v27 = vadd.f32 %v8671_v57, %v8670_v43  ;;  %v8749_v26 = vpop.f32.mrf.mxu0 }
 0x221   : > { %v11957_v40 = vadd.f32 %v8748_v61, %v11854_v51  ;;  %v8673_v24 = vpop.f32.mrf.mxu1  ;;  %v10285_v61 = vld [vmem:[%s10745_s19 + $0x8a8] ss:$108 sps:$4 sm:$0xff]  }
 0x222   : > { %v11962_v48 = vadd.f32 %v8672_v27, %v11750_v10  ;;  %v8750_v52 = vpop.f32.mrf.mxu0 }
 0x223   : > { %v8674_v60 = vpop.f32.mrf.mxu1  ;;  %v8751_v1 = vadd.f32 %v8750_v52, %v8749_v26 }
 0x224   : > { %v8675_v17 = vadd.f32 %v8674_v60, %v8673_v24  ;;  %v8752_v39 = vpop.f32.mrf.mxu0  ;;  %6226 = vmatmul.mubr.bf16.gmra.mxu0 %v10282_v62  ;;  %v10297_v62 = vld [vmem:[%s10745_s19 + $0x984] ss:$108 sps:$4 sm:$0xff]  }
 0x225   : > { %v11966_v0 = vadd.f32 %v8751_v1, %v11867_v21  ;;  %v8676_v51 = vpop.f32.mrf.mxu1  ;;  %6113 = vmatmul.mubr.bf16.gmra.mxu1 %v10279_v37  ;;  %6233 = vmatprep.mubr.bf16.mxu0 %v10287_v15  ;;  %v10288_v21 = vld [vmem:[%s10745_s19 + $0x40] ss:$108 sps:$4 sm:$0xff]   ;;  %v10300_v15 = vld [vmem:[%s10745_s19 + $0x11c] ss:$108 sps:$4 sm:$0xff]   ;;  %v10307_v60 = vld [vmem:[%s13234_s1 + $0x570] sm:$0xff]  }
 0x226   : > { %v11969_v10 = vadd.f32 %v8675_v17, %v11758_v30  ;;  %v8753_v44 = vpop.f32.mrf.mxu0  ;;  %6314 = vmatprep.mubr.bf16.mxu1 %v10290_v55  ;;  %v10292_v30 = vld [vmem:[%s13234_s1 + $0x538] sm:$0xff]  }
 0x227   : > { %v8677_v22 = vpop.f32.mrf.mxu1  ;;  %v8754_v43 = vadd.f32 %v8753_v44, %v8752_v39  ;;  %v10308_v44 = vld [vmem:[%s13234_s1 + $0x530] sm:$0xff]  }
 0x228   : > { %v8678_v12 = vadd.f32 %v8677_v22, %v8676_v51  ;;  %v8755_v57 = vpop.f32.mrf.mxu0 }
 0x229   : > { %v11973_v27 = vadd.f32 %v8754_v43, %v11882_v53  ;;  %v8679_v26 = vpop.f32.mrf.mxu1 }
 0x22a   : > { %v11978_v24 = vadd.f32 %v8678_v12, %v11765_v54  ;;  %v8756_v37 = vpop.f32.mrf.mxu0 }
 0x22b   : > { %v8680_v52 = vpop.f32.mrf.mxu1  ;;  %v8757_v55 = vadd.f32 %v8756_v37, %v8755_v57 }
 0x22c   : > { %v8681_v53 = vadd.f32 %v8680_v52, %v8679_v26  ;;  %v8758_v1 = vpop.f32.mrf.mxu0  ;;  %6234 = vmatmul.mubr.bf16.gmra.mxu0 %v10285_v61  ;;  %v10295_v61 = vld [vmem:[%s10745_s19 + $0x980] ss:$108 sps:$4 sm:$0xff]  }
 0x22d   : > { %v11988_v17 = vadd.f32 %v8757_v55, %v11889_v8  ;;  %v8682_v54 = vpop.f32.mrf.mxu1  ;;  %6315 = vmatmul.mubr.bf16.vlgmr.msra.gmra.mxu1 %v10288_v21  ;;  %6241 = vmatprep.mubr.bf16.mxu0 %v10297_v62  ;;  %v10323_v8 = vld [vmem:[%s13234_s1 + $0x568] sm:$0xff]   ;;  %v10298_v21 = vld [vmem:[%s10745_s19 + $0x118] ss:$108 sps:$4 sm:$0xff]  }
 0x22e   : > { %v11991_v39 = vadd.f32 %v8681_v53, %v11780_v49  ;;  %9291 = vmatpush3.bf16.msra.mxu1 %v10292_v30  ;;  %v8759_v51 = vpop.f32.mrf.mxu0  ;;  %6322 = vmatprep.mubr.bf16.mxu1 %v10300_v15  ;;  %v10303_v62 = vld [vmem:[%s10745_s19 + $0xa5c] ss:$108 sps:$4 sm:$0xff]   ;;  %v10306_v15 = vld [vmem:[%s10745_s19 + $0x1f4] ss:$108 sps:$4 sm:$0xff]  }
 0x22f   : > { %v8683_v22 = vpop.f32.mrf.mxu1  ;;  %v8760_v43 = vadd.f32 %v8759_v51, %v8758_v1  ;;  %9292 = vmatprep.subr.bf16.mxu1 %v10307_v60  ;;  %v10324_v52 = vld [vmem:[%s13234_s1 + $0x528] sm:$0xff]  }
 0x230   : > { %v8684_v12 = vadd.f32 %v8683_v22, %v8682_v54  ;;  %v8761_v57 = vpop.f32.mrf.mxu0  ;;  %v10342_v22 = vld [vmem:[%s13234_s1 + $0x520] sm:$0xff]  }
 0x231   : > { %v12001_v49 = vadd.f32 %v8760_v43, %v11898_v32  ;;  %v8685_v26 = vpop.f32.mrf.mxu1  ;;  %v10341_v32 = vld [vmem:[%s13234_s1 + $0x560] sm:$0xff]  }
 0x232   : > { %v12006_v37 = vadd.f32 %v8684_v12, %v11793_v50  ;;  %v8762_v30 = vpop.f32.mrf.mxu0  ;;  %9293 = vmatpush3.bf16.msra.mxu1 %v10308_v44 }
 0x233   : > { %v8686_v55 = vpop.f32.mrf.mxu1  ;;  %v8763_v60 = vadd.f32 %v8762_v30, %v8761_v57  ;;  %9294 = vmatprep.subr.bf16.mxu1 %v10323_v8 }
 0x234   : > { %v8687_v53 = vadd.f32 %v8686_v55, %v8685_v26  ;;  %v8764_v1 = vpop.f32.mrf.mxu0  ;;  %6242 = vmatmul.mubr.bf16.gmra.mxu0 %v10295_v61  ;;  %v10301_v61 = vld [vmem:[%s10745_s19 + $0xa58] ss:$108 sps:$4 sm:$0xff]  }
 0x235   : > { %v12016_v50 = vadd.f32 %v8763_v60, %v11905_v5  ;;  %v8688_v54 = vpop.f32.mrf.mxu1  ;;  %6323 = vmatmul.mubr.bf16.gmra.mxu1 %v10298_v21  ;;  %6249 = vmatprep.mubr.bf16.mxu0 %v10303_v62  ;;  %v10355_v5 = vld [vmem:[%s13234_s1 + $0x558] sm:$0xff]   ;;  %v10313_v62 = vld [vmem:[%s10745_s19 + $0xb34] ss:$108 sps:$4 sm:$0xff]  }
 0x236   : > { %v12019_v51 = vadd.f32 %v8687_v53, %v11808_v4  ;;  %v8765_v44 = vpop.f32.mrf.mxu0  ;;  %6330 = vmatprep.mubr.bf16.mxu1 %v10306_v15  ;;  %9295 = vmatpush3.bf16.msra.mxu1 %v10324_v52  ;;  %v10304_v21 = vld [vmem:[%s10745_s19 + $0x1f0] ss:$108 sps:$4 sm:$0xff]   ;;  %v10316_v52 = vld [vmem:[%s10745_s19 + $0x2cc] ss:$108 sps:$4 sm:$0xff]  }
 0x237   : > { %v8689_v43 = vpop.f32.mrf.mxu1  ;;  %v8766_v8 = vadd.f32 %v8765_v44, %v8764_v1  ;;  %9296 = vmatprep.subr.bf16.mxu1 %v10341_v32  ;;  %v10356_v55 = vld [vmem:[%s13234_s1 + $0x518] sm:$0xff]  }
 0x238   : > { %v8690_v12 = vadd.f32 %v8689_v43, %v8688_v54  ;;  %v8767_v57 = vpop.f32.mrf.mxu0  ;;  %v10372_v43 = vld [vmem:[%s13234_s1 + $0x510] sm:$0xff]  }
 0x239   : > { %v12029_v4 = vadd.f32 %v8766_v8, %v11914_v42  ;;  %v8691_v26 = vpop.f32.mrf.mxu1  ;;  %v10371_v42 = vld [vmem:[%s13234_s1 + $0x550] sm:$0xff]  }
 0x23a   : > { %v12034_v30 = vadd.f32 %v8690_v12, %v11821_v46  ;;  %v8768_v15 = vpop.f32.mrf.mxu0  ;;  %9297 = vmatpush3.bf16.msra.mxu1 %v10342_v22 }
 0x23b   : > { %v8692_v60 = vpop.f32.mrf.mxu1  ;;  %v8769_v32 = vadd.f32 %v8768_v15, %v8767_v57  ;;  %9298 = vmatprep.subr.bf16.mxu1 %v10355_v5 }
 0x23c   : > { %v8693_v53 = vadd.f32 %v8692_v60, %v8691_v26  ;;  %v8770_v1 = vpop.f32.mrf.mxu0  ;;  %6250 = vmatmul.mubr.bf16.gmra.mxu0 %v10301_v61  ;;  %v10311_v61 = vld [vmem:[%s10745_s19 + $0xb30] ss:$108 sps:$4 sm:$0xff]   ;;  %v10388_v60 = vld [vmem:[%s13234_s1 + $0x508] sm:$0xff]  }
 0x23d   : > { %v12044_v46 = vadd.f32 %v8769_v32, %v11921_v3  ;;  %v8694_v54 = vpop.f32.mrf.mxu1  ;;  %6331 = vmatmul.mubr.bf16.gmra.mxu1 %v10304_v21  ;;  %6257 = vmatprep.mubr.bf16.mxu0 %v10313_v62  ;;  %v10387_v3 = vld [vmem:[%s13234_s1 + $0x548] sm:$0xff]  }
 0x23e   : > { %v12047_v44 = vadd.f32 %v8693_v53, %v11836_v56  ;;  %v8771_v22 = vpop.f32.mrf.mxu0  ;;  %6338 = vmatprep.mubr.bf16.mxu1 %v10316_v52  ;;  %9299 = vmatpush3.bf16.msra.mxu1 %v10356_v55  ;;  %v10314_v21 = vld [vmem:[%s10745_s19 + $0x2c8] ss:$108 sps:$4 sm:$0xff]   ;;  %v10319_v62 = vld [vmem:[%s10745_s19 + $0xc0c] ss:$108 sps:$4 sm:$0xff]   ;;  %v10322_v55 = vld [vmem:[%s10745_s19 + $0x3a4] ss:$108 sps:$4 sm:$0xff]  }
 0x23f   : > { %v8695_v8 = vpop.f32.mrf.mxu1  ;;  %v8772_v5 = vadd.f32 %v8771_v22, %v8770_v1  ;;  %9300 = vmatprep.subr.bf16.mxu1 %v10371_v42 }
 0x240   : > { %v8696_v12 = vadd.f32 %v8695_v8, %v8694_v54  ;;  %v8773_v57 = vpop.f32.mrf.mxu0  ;;  %v10404_v8 = vld [vmem:[%s13234_s1 + $0x500] sm:$0xff]  }
 0x241   : > { %v12057_v56 = vadd.f32 %v8772_v5, %v11930_v9  ;;  %v8697_v26 = vpop.f32.mrf.mxu1  ;;  %v10403_v9 = vld [vmem:[%s13234_s1 + $0x540] sm:$0xff]  }
 0x242   : > { %v12062_v15 = vadd.f32 %v8696_v12, %v11849_v19  ;;  %v8774_v52 = vpop.f32.mrf.mxu0  ;;  %9301 = vmatpush3.bf16.msra.mxu1 %v10372_v43 }
 0x243   : > { %v8698_v32 = vpop.f32.mrf.mxu1  ;;  %v8775_v42 = vadd.f32 %v8774_v52, %v8773_v57  ;;  %9302 = vmatprep.subr.bf16.mxu1 %v10387_v3 }
 0x244   : > { %v8699_v53 = vadd.f32 %v8698_v32, %v8697_v26  ;;  %v8776_v1 = vpop.f32.mrf.mxu0  ;;  %6258 = vmatmul.mubr.bf16.gmra.mxu0 %v10311_v61  ;;  %v10317_v61 = vld [vmem:[%s10745_s19 + $0xc08] ss:$108 sps:$4 sm:$0xff]  }
 0x245   : > { %v12072_v19 = vadd.f32 %v8775_v42, %v11937_v33  ;;  %v8700_v54 = vpop.f32.mrf.mxu1  ;;  %6339 = vmatmul.mubr.bf16.gmra.mxu1 %v10314_v21  ;;  %6265 = vmatprep.mubr.bf16.mxu0 %v10319_v62  ;;  %v10419_v33 = vld [vmem:[%s13234_s1 + $0x678] sm:$0xff]   ;;  %v10320_v21 = vld [vmem:[%s10745_s19 + $0x3a0] ss:$108 sps:$4 sm:$0xff]   ;;  %v10329_v62 = vld [vmem:[%s10745_s19 + $0xce4] ss:$108 sps:$4 sm:$0xff]  }
 0x246   : > { %v12075_v22 = vadd.f32 %v8699_v53, %v11864_v16  ;;  %v8777_v43 = vpop.f32.mrf.mxu0  ;;  %6346 = vmatprep.mubr.bf16.mxu1 %v10322_v55  ;;  %9303 = vmatpush3.bf16.msra.mxu1 %v10388_v60  ;;  %v10332_v60 = vld [vmem:[%s10745_s19 + $0x47c] ss:$108 sps:$4 sm:$0xff]  }
 0x247   : > { %v8701_v5 = vpop.f32.mrf.mxu1  ;;  %v8778_v3 = vadd.f32 %v8777_v43, %v8776_v1  ;;  %9304 = vmatprep.subr.bf16.mxu1 %v10403_v9 }
 0x248   : > { %v8702_v12 = vadd.f32 %v8701_v5, %v8700_v54  ;;  %v8779_v57 = vpop.f32.mrf.mxu0 }
 0x249   : > { %v12085_v16 = vadd.f32 %v8778_v3, %v11946_v25  ;;  %v8703_v26 = vpop.f32.mrf.mxu1 }
 0x24a   : > { %v12090_v52 = vadd.f32 %v8702_v12, %v11877_v13  ;;  %v8780_v55 = vpop.f32.mrf.mxu0  ;;  %9305 = vmatpush3.bf16.msra.mxu1 %v10404_v8 }
 0x24b   : > { %v8704_v32 = vpop.f32.mrf.mxu1  ;;  %v8781_v42 = vadd.f32 %v8780_v55, %v8779_v57  ;;  %9514 = vmatprep.subr.bf16.mxu1 %v10419_v33  ;;  %v10327_v33 = vld [vmem:[%s10745_s19 + $0xce0] ss:$108 sps:$4 sm:$0xff]  }
 0x24c   : > { %v8705_v9 = vadd.f32 %v8704_v32, %v8703_v26  ;;  %v8782_v53 = vpop.f32.mrf.mxu0  ;;  %6266 = vmatmul.mubr.bf16.gmra.mxu0 %v10317_v61  ;;  %v10340_v61 = vld [vmem:[%s10745_s19 + $0x4c] ss:$108 sps:$4 sm:$0xff]  }
 0x24d   : > { %v12094_v25 = vadd.f32 %v8781_v42, %v11953_v41  ;;  %v8706_v1 = vpop.f32.mrf.mxu1  ;;  %6347 = vmatmul.mubr.bf16.gmra.mxu1 %v10320_v21  ;;  %6273 = vmatprep.mubr.bf16.mxu0 %v10329_v62  ;;  %v10330_v41 = vld [vmem:[%s10745_s19 + $0x478] ss:$108 sps:$4 sm:$0xff]   ;;  %v10337_v62 = vld [vmem:[%s10745_s19 + $0x554] ss:$108 sps:$4 sm:$0xff]  }
 0x24e   : > { %v12097_v13 = vadd.f32 %v8705_v9, %v11886_v45  ;;  %v8783_v54 = vpop.f32.mrf.mxu0  ;;  %6354 = vmatprep.mubr.bf16.mxu1 %v10332_v60 }
 0x24f   : > { %v8707_v43 = vpop.f32.mrf.mxu1  ;;  %v8784_v8 = vadd.f32 %v8783_v54, %v8782_v53 }
 0x250   : > { %v8708_v5 = vadd.f32 %v8707_v43, %v8706_v1  ;;  %v8785_v3 = vpop.f32.mrf.mxu0 }
 0x251   : > { %v12101_v12 = vadd.f32 %v8784_v8, %v11962_v48  ;;  %v8709_v57 = vpop.f32.mrf.mxu1  ;;  %v10338_v8 = vld [vmem:[%s10745_s19 + $0x48] ss:$108 sps:$4 sm:$0xff]  }
 0x252   : > { %v12106_v26 = vadd.f32 %v8708_v5, %v11893_v31  ;;  %v8786_v21 = vpop.f32.mrf.mxu0 }
 0x253   : > { %v8710_v45 = vpop.f32.mrf.mxu1  ;;  %v8787_v55 = vadd.f32 %v8786_v21, %v8785_v3 }
 0x254   : > { %v8711_v60 = vadd.f32 %v8710_v45, %v8709_v57  ;;  %v8788_v32 = vpop.f32.mrf.mxu0  ;;  %6274 = vmatmul.mubr.bf16.gmra.mxu0 %v10327_v33  ;;  %v10348_v33 = vld [vmem:[%s10745_s19 + $0x124] ss:$108 sps:$4 sm:$0xff]  }
 0x255   : > { %v12110_v42 = vadd.f32 %v8787_v55, %v11969_v10  ;;  %v8712_v48 = vpop.f32.mrf.mxu1  ;;  %6355 = vmatmul.mubr.bf16.gmra.mxu1 %v10330_v41  ;;  %6475 = vmatprep.mubr.bf16.mxu0 %v10340_v61  ;;  %v10335_v10 = vld [vmem:[%s10745_s19 + $0x550] ss:$108 sps:$4 sm:$0xff]   ;;  %v10345_v61 = vld [vmem:[%s10745_s19 + $0x62c] ss:$108 sps:$4 sm:$0xff]  }
 0x256   : > { %v12113_v31 = vadd.f32 %v8711_v60, %v11902_v47  ;;  %v8789_v9 = vpop.f32.mrf.mxu0  ;;  %6362 = vmatprep.mubr.bf16.mxu1 %v10337_v62  ;;  %v10358_v47 = vld [vmem:[%s13234_s1 + $0x5b8] sm:$0xff]   ;;  %v10373_v45 = vld [vmem:[%s13234_s1 + $0x5f0] sm:$0xff]  }
 0x257   : > { %v8713_v53 = vpop.f32.mrf.mxu1  ;;  %v8790_v1 = vadd.f32 %v8789_v9, %v8788_v32  ;;  %v10374_v9 = vld [vmem:[%s13234_s1 + $0x5b0] sm:$0xff]  }
 0x258   : > { %v8714_v54 = vadd.f32 %v8713_v53, %v8712_v48  ;;  %v8791_v43 = vpop.f32.mrf.mxu0 }
 0x259   : > { %v12117_v5 = vadd.f32 %v8790_v1, %v11978_v24  ;;  %v8715_v3 = vpop.f32.mrf.mxu1 }
 0x25a   : > { %v12122_v57 = vadd.f32 %v8714_v54, %v11909_v29  ;;  %v8792_v41 = vpop.f32.mrf.mxu0 }
 0x25b   : > { %v8716_v21 = vpop.f32.mrf.mxu1  ;;  %v8793_v62 = vadd.f32 %v8792_v41, %v8791_v43 }
 0x25c   : > { %v8717_v24 = vadd.f32 %v8716_v21, %v8715_v3  ;;  %v8794_v55 = vpop.f32.mrf.mxu0  ;;  %6476 = vmatmul.mubr.bf16.vlgmr.msra.gmra.mxu0 %v10338_v8  ;;  %v10346_v8 = vld [vmem:[%s10745_s19 + $0x120] ss:$108 sps:$4 sm:$0xff]  }
 0x25d   : > { %v12132_v60 = vadd.f32 %v8793_v62, %v11991_v39  ;;  %v8718_v29 = vpop.f32.mrf.mxu1  ;;  %6363 = vmatmul.mubr.bf16.gmra.mxu1 %v10335_v10  ;;  %6483 = vmatprep.mubr.bf16.mxu0 %v10348_v33  ;;  %v10389_v39 = vld [vmem:[%s13234_s1 + $0x5e8] sm:$0xff]  }
 0x25e   : > { %v12135_v32 = vadd.f32 %v8717_v24, %v11918_v36  ;;  %v8795_v48 = vpop.f32.mrf.mxu0  ;;  %6370 = vmatprep.mubr.bf16.mxu1 %v10345_v61  ;;  %9403 = vmatpush3.bf16.msra.mxu0 %v10358_v47  ;;  %v10343_v10 = vld [vmem:[%s10745_s19 + $0x628] ss:$108 sps:$4 sm:$0xff]   ;;  %v10351_v47 = vld [vmem:[%s10745_s19 + $0x704] ss:$108 sps:$4 sm:$0xff]  }
 0x25f   : > { %v8719_v53 = vpop.f32.mrf.mxu1  ;;  %v8796_v1 = vadd.f32 %v8795_v48, %v8794_v55  ;;  %9404 = vmatprep.subr.bf16.mxu0 %v10373_v45  ;;  %v10354_v33 = vld [vmem:[%s10745_s19 + $0x1fc] ss:$108 sps:$4 sm:$0xff]  }
 0x260   : > { %v8720_v54 = vadd.f32 %v8719_v53, %v8718_v29  ;;  %v8797_v43 = vpop.f32.mrf.mxu0  ;;  %v10390_v21 = vld [vmem:[%s13234_s1 + $0x5a8] sm:$0xff]   ;;  %v10406_v53 = vld [vmem:[%s13234_s1 + $0x5a0] sm:$0xff]  }
 0x261   : > { %v12145_v36 = vadd.f32 %v8796_v1, %v12006_v37  ;;  %v8721_v3 = vpop.f32.mrf.mxu1  ;;  %v10405_v37 = vld [vmem:[%s13234_s1 + $0x5e0] sm:$0xff]  }
 0x262   : > { %v12150_v41 = vadd.f32 %v8720_v54, %v11925_v35  ;;  %v8798_v61 = vpop.f32.mrf.mxu0  ;;  %9405 = vmatpush3.bf16.msra.mxu0 %v10374_v9 }
 0x263   : > { %v8722_v62 = vpop.f32.mrf.mxu1  ;;  %v8799_v45 = vadd.f32 %v8798_v61, %v8797_v43  ;;  %9406 = vmatprep.subr.bf16.mxu0 %v10389_v39 }
 0x264   : > { %v8723_v24 = vadd.f32 %v8722_v62, %v8721_v3  ;;  %v8800_v55 = vpop.f32.mrf.mxu0  ;;  %6484 = vmatmul.mubr.bf16.gmra.mxu0 %v10346_v8  ;;  %v10352_v8 = vld [vmem:[%s10745_s19 + $0x1f8] ss:$108 sps:$4 sm:$0xff]  }
 0x265   : > { %v12160_v35 = vadd.f32 %v8799_v45, %v12019_v51  ;;  %v8724_v29 = vpop.f32.mrf.mxu1  ;;  %6371 = vmatmul.mubr.bf16.gmra.mxu1 %v10343_v10  ;;  %6491 = vmatprep.mubr.bf16.mxu0 %v10354_v33  ;;  %v10421_v51 = vld [vmem:[%s13234_s1 + $0x5d8] sm:$0xff]   ;;  %v10349_v10 = vld [vmem:[%s10745_s19 + $0x700] ss:$108 sps:$4 sm:$0xff]  }
 0x266   : > { %v12163_v48 = vadd.f32 %v8723_v24, %v11934_v34  ;;  %v8801_v9 = vpop.f32.mrf.mxu0  ;;  %6378 = vmatprep.mubr.bf16.mxu1 %v10351_v47  ;;  %9407 = vmatpush3.bf16.msra.mxu0 %v10390_v21  ;;  %v10364_v33 = vld [vmem:[%s10745_s19 + $0x2d4] ss:$108 sps:$4 sm:$0xff]   ;;  %v10361_v21 = vld [vmem:[%s10745_s19 + $0x7dc] ss:$108 sps:$4 sm:$0xff]  }
 0x267   : > { %v8725_v1 = vpop.f32.mrf.mxu1  ;;  %v8802_v39 = vadd.f32 %v8801_v9, %v8800_v55  ;;  %9408 = vmatprep.subr.bf16.mxu0 %v10405_v37  ;;  %v10422_v62 = vld [vmem:[%s13234_s1 + $0x598] sm:$0xff]  }
 0x268   : > { %v8726_v54 = vadd.f32 %v8725_v1, %v8724_v29  ;;  %v8803_v43 = vpop.f32.mrf.mxu0  ;;  %v10438_v1 = vld [vmem:[%s13234_s1 + $0x590] sm:$0xff]  }
 0x269   : > { %v12173_v34 = vadd.f32 %v8802_v39, %v12034_v30  ;;  %v8727_v3 = vpop.f32.mrf.mxu1  ;;  %v10437_v30 = vld [vmem:[%s13234_s1 + $0x5d0] sm:$0xff]  }
 0x26a   : > { %v12178_v61 = vadd.f32 %v8726_v54, %v11941_v38  ;;  %v8804_v47 = vpop.f32.mrf.mxu0  ;;  %9409 = vmatpush3.bf16.msra.mxu0 %v10406_v53 }
 0x26b   : > { %v8728_v45 = vpop.f32.mrf.mxu1  ;;  %v8805_v37 = vadd.f32 %v8804_v47, %v8803_v43  ;;  %9410 = vmatprep.subr.bf16.mxu0 %v10421_v51 }
 0x26c   : > { %v8729_v24 = vadd.f32 %v8728_v45, %v8727_v3  ;;  %v8806_v55 = vpop.f32.mrf.mxu0  ;;  %6492 = vmatmul.mubr.bf16.gmra.mxu0 %v10352_v8  ;;  %v10362_v8 = vld [vmem:[%s10745_s19 + $0x2d0] ss:$108 sps:$4 sm:$0xff]   ;;  %v10454_v45 = vld [vmem:[%s13234_s1 + $0x588] sm:$0xff]  }
 0x26d   : > { %v12188_v38 = vadd.f32 %v8805_v37, %v12047_v44  ;;  %v8858_v29 = vpop.f32.mrf.mxu1  ;;  %6379 = vmatmul.mubr.bf16.gmra.mxu1 %v10349_v10  ;;  %6499 = vmatprep.mubr.bf16.mxu0 %v10364_v33  ;;  %v10453_v44 = vld [vmem:[%s13234_s1 + $0x5c8] sm:$0xff]   ;;  %v10359_v10 = vld [vmem:[%s10745_s19 + $0x7d8] ss:$108 sps:$4 sm:$0xff]  }
 0x26e   : > { %v12191_v9 = vadd.f32 %v8729_v24, %v11950_v23  ;;  %v8807_v53 = vpop.f32.mrf.mxu0  ;;  %6386 = vmatprep.mubr.bf16.mxu1 %v10361_v21  ;;  %9411 = vmatpush3.bf16.msra.mxu0 %v10422_v62  ;;  %v10370_v33 = vld [vmem:[%s10745_s19 + $0x3ac] ss:$108 sps:$4 sm:$0xff]   ;;  %v10367_v62 = vld [vmem:[%s10745_s19 + $0x8b4] ss:$108 sps:$4 sm:$0xff]  }
 0x26f   : > { %v8808_v39 = vadd.f32 %v8807_v53, %v8806_v55  ;;  %v8859_v51 = vpop.f32.mrf.mxu1  ;;  %9412 = vmatprep.subr.bf16.mxu0 %v10437_v30 }
 0x270   : > { %v8860_v54 = vadd.f32 %v8859_v51, %v8858_v29  ;;  %v8809_v43 = vpop.f32.mrf.mxu0 }
 0x271   : > { %v12201_v23 = vadd.f32 %v8808_v39, %v12062_v15  ;;  %v8861_v3 = vpop.f32.mrf.mxu1  ;;  %v10461_v15 = vld [vmem:[%s13234_s1 + $0x5c0] sm:$0xff]  }
 0x272   : > { %v12206_v47 = vadd.f32 %v8860_v54, %v11957_v40  ;;  %v8810_v21 = vpop.f32.mrf.mxu0  ;;  %9413 = vmatpush3.bf16.msra.mxu0 %v10438_v1  ;;  %v10462_v39 = vld [vmem:[%s13234_s1 + $0x580] sm:$0xff]  }
 0x273   : > { %v8811_v37 = vadd.f32 %v8810_v21, %v8809_v43  ;;  %v8862_v30 = vpop.f32.mrf.mxu1  ;;  %9414 = vmatprep.subr.bf16.mxu0 %v10453_v44 }
 0x274   : > { %v8863_v24 = vadd.f32 %v8862_v30, %v8861_v3  ;;  %v8812_v55 = vpop.f32.mrf.mxu0  ;;  %6500 = vmatmul.mubr.bf16.gmra.mxu0 %v10362_v8 }
 0x275   : > { %v12216_v40 = vadd.f32 %v8811_v37, %v12075_v22  ;;  %v8864_v29 = vpop.f32.mrf.mxu1  ;;  %6387 = vmatmul.mubr.bf16.gmra.mxu1 %v10359_v10  ;;  %6507 = vmatprep.mubr.bf16.mxu0 %v10370_v33  ;;  %v12227_v22 = vld [vmem:[%s13234_s1 + $0x6b8] sm:$0xff]   ;;  %v10380_v33 = vld [vmem:[%s10745_s19 + $0x484] ss:$108 sps:$4 sm:$0xff]  }
 0x276   : > { %v12219_v53 = vadd.f32 %v8863_v24, %v11966_v0  ;;  %v8813_v1 = vpop.f32.mrf.mxu0  ;;  %6394 = vmatprep.mubr.bf16.mxu1 %v10367_v62  ;;  %9415 = vmatpush3.bf16.msra.mxu0 %v10454_v45  ;;  %v10368_v0 = vld [vmem:[%s10745_s19 + $0x3a8] ss:$108 sps:$4 sm:$0xff]   ;;  %v10365_v10 = vld [vmem:[%s10745_s19 + $0x8b0] ss:$108 sps:$4 sm:$0xff]   ;;  %v10377_v45 = vld [vmem:[%s10745_s19 + $0x98c] ss:$108 sps:$4 sm:$0xff]  }
 0x277   : > { %v8814_v51 = vadd.f32 %v8813_v1, %v8812_v55  ;;  %v8865_v44 = vpop.f32.mrf.mxu1  ;;  %9416 = vmatprep.subr.bf16.mxu0 %v10461_v15 }
 0x278   : > { %v8866_v54 = vadd.f32 %v8865_v44, %v8864_v29  ;;  %v8815_v43 = vpop.f32.mrf.mxu0 }
 0x279   : > { %v12231_v8 = vadd.f32 %v8814_v51, %v12090_v52  ;;  %v8867_v3 = vpop.f32.mrf.mxu1 }
 0x27a   : > { %v12236_v21 = vadd.f32 %v8866_v54, %v11973_v27  ;;  %v8816_v62 = vpop.f32.mrf.mxu0  ;;  %9417 = vmatpush3.bf16.msra.mxu0 %v10462_v39  ;;  %v10378_v54 = vld [vmem:[%s10745_s19 + $0x480] ss:$108 sps:$4 sm:$0xff]  }
 0x27b   : > { %v8817_v37 = vadd.f32 %v8816_v62, %v8815_v43  ;;  %v8868_v30 = vpop.f32.mrf.mxu1  ;;  %9690 = vmatprep.subr.bf16.mxu0 %v12227_v22  ;;  %v10383_v62 = vld [vmem:[%s10745_s19 + $0xa64] ss:$108 sps:$4 sm:$0xff]  }
 0x27c   : > { %v8869_v15 = vadd.f32 %v8868_v30, %v8867_v3  ;;  %v8818_v24 = vpop.f32.mrf.mxu0  ;;  %6508 = vmatmul.mubr.bf16.gmra.mxu0 %v10368_v0  ;;  %v10386_v3 = vld [vmem:[%s10745_s19 + $0x55c] ss:$108 sps:$4 sm:$0xff]  }
 0x27d   : > { %v12241_v52 = vadd.f32 %v8817_v37, %v12097_v13  ;;  %v8870_v55 = vpop.f32.mrf.mxu1  ;;  %6395 = vmatmul.mubr.bf16.gmra.mxu1 %v10365_v10  ;;  %6515 = vmatprep.mubr.bf16.mxu0 %v10380_v33  ;;  %v10375_v13 = vld [vmem:[%s10745_s19 + $0x988] ss:$108 sps:$4 sm:$0xff]  }
 0x27e   : > { %v12244_v27 = vadd.f32 %v8869_v15, %v11988_v17  ;;  %v8819_v29 = vpop.f32.mrf.mxu0  ;;  %6402 = vmatprep.mubr.bf16.mxu1 %v10377_v45 }
 0x27f   : > { %v8820_v1 = vadd.f32 %v8819_v29, %v8818_v24  ;;  %v8871_v39 = vpop.f32.mrf.mxu1 }
 0x280   : > { %v8872_v51 = vadd.f32 %v8871_v39, %v8870_v55  ;;  %v8821_v44 = vpop.f32.mrf.mxu0 }
 0x281   : > { %v12248_v43 = vadd.f32 %v8820_v1, %v12106_v26  ;;  %v8873_v0 = vpop.f32.mrf.mxu1 }
 0x282   : > { %v12253_v10 = vadd.f32 %v8872_v51, %v12001_v49  ;;  %v8822_v33 = vpop.f32.mrf.mxu0  ;;  %v10384_v51 = vld [vmem:[%s10745_s19 + $0x558] ss:$108 sps:$4 sm:$0xff]  }
 0x283   : > { %v8823_v17 = vadd.f32 %v8822_v33, %v8821_v44  ;;  %v8874_v37 = vpop.f32.mrf.mxu1  ;;  %v10393_v33 = vld [vmem:[%s10745_s19 + $0xb3c] ss:$108 sps:$4 sm:$0xff]  }
 0x284   : > { %v8875_v45 = vadd.f32 %v8874_v37, %v8873_v0  ;;  %v8824_v30 = vpop.f32.mrf.mxu0  ;;  %6516 = vmatmul.mubr.bf16.gmra.mxu0 %v10378_v54  ;;  %v10396_v0 = vld [vmem:[%s10745_s19 + $0x634] ss:$108 sps:$4 sm:$0xff]  }
 0x285   : > { %v12257_v15 = vadd.f32 %v8823_v17, %v12113_v31  ;;  %v8876_v26 = vpop.f32.mrf.mxu1  ;;  %6403 = vmatmul.mubr.bf16.gmra.mxu1 %v10375_v13  ;;  %6523 = vmatprep.mubr.bf16.mxu0 %v10386_v3  ;;  %v10381_v31 = vld [vmem:[%s10745_s19 + $0xa60] ss:$108 sps:$4 sm:$0xff]  }
 0x286   : > { %v12260_v49 = vadd.f32 %v8875_v45, %v12016_v50  ;;  %v8825_v24 = vpop.f32.mrf.mxu0  ;;  %6410 = vmatprep.mubr.bf16.mxu1 %v10383_v62 }
 0x287   : > { %v8826_v55 = vadd.f32 %v8825_v24, %v8824_v30  ;;  %v8877_v29 = vpop.f32.mrf.mxu1 }
 0x288   : > { %v8878_v1 = vadd.f32 %v8877_v29, %v8876_v26  ;;  %v8827_v39 = vpop.f32.mrf.mxu0 }
 0x289   : > { %v12264_v44 = vadd.f32 %v8826_v55, %v12122_v57  ;;  %v8879_v54 = vpop.f32.mrf.mxu1 }
 0x28a   : > { %v12269_v13 = vadd.f32 %v8878_v1, %v12029_v4  ;;  %v8828_v3 = vpop.f32.mrf.mxu0  ;;  %v10394_v1 = vld [vmem:[%s10745_s19 + $0x630] ss:$108 sps:$4 sm:$0xff]  }
 0x28b   : > { %v8829_v50 = vadd.f32 %v8828_v3, %v8827_v39  ;;  %v8880_v17 = vpop.f32.mrf.mxu1  ;;  %v10399_v3 = vld [vmem:[%s10745_s19 + $0xc14] ss:$108 sps:$4 sm:$0xff]  }
 0x28c   : > { %v8881_v62 = vadd.f32 %v8880_v17, %v8879_v54  ;;  %v8830_v37 = vpop.f32.mrf.mxu0  ;;  %6524 = vmatmul.mubr.bf16.gmra.mxu0 %v10384_v51  ;;  %v10402_v54 = vld [vmem:[%s10745_s19 + $0x70c] ss:$108 sps:$4 sm:$0xff]  }
 0x28d   : > { %v12273_v45 = vadd.f32 %v8829_v50, %v12135_v32  ;;  %v8882_v57 = vpop.f32.mrf.mxu1  ;;  %6411 = vmatmul.mubr.bf16.gmra.mxu1 %v10381_v31  ;;  %6531 = vmatprep.mubr.bf16.mxu0 %v10396_v0  ;;  %v10391_v32 = vld [vmem:[%s10745_s19 + $0xb38] ss:$108 sps:$4 sm:$0xff]  }
 0x28e   : > { %v12276_v4 = vadd.f32 %v8881_v62, %v12044_v46  ;;  %v8831_v30 = vpop.f32.mrf.mxu0  ;;  %6418 = vmatprep.mubr.bf16.mxu1 %v10393_v33 }
 0x28f   : > { %v8832_v26 = vadd.f32 %v8831_v30, %v8830_v37  ;;  %v8883_v24 = vpop.f32.mrf.mxu1 }
 0x290   : > { %v8884_v55 = vadd.f32 %v8883_v24, %v8882_v57  ;;  %v8833_v29 = vpop.f32.mrf.mxu0 }
 0x291   : > { %v12280_v39 = vadd.f32 %v8832_v26, %v12150_v41  ;;  %v8885_v51 = vpop.f32.mrf.mxu1 }
 0x292   : > { %v12285_v31 = vadd.f32 %v8884_v55, %v12057_v56  ;;  %v8834_v0 = vpop.f32.mrf.mxu0  ;;  %v10400_v55 = vld [vmem:[%s10745_s19 + $0x708] ss:$108 sps:$4 sm:$0xff]  }
 0x293   : > { %v8835_v46 = vadd.f32 %v8834_v0, %v8833_v29  ;;  %v8886_v50 = vpop.f32.mrf.mxu1  ;;  %v10409_v0 = vld [vmem:[%s10745_s19 + $0xcec] ss:$108 sps:$4 sm:$0xff]  }
 0x294   : > { %v8887_v33 = vadd.f32 %v8886_v50, %v8885_v51  ;;  %v8836_v17 = vpop.f32.mrf.mxu0  ;;  %6532 = vmatmul.mubr.bf16.gmra.mxu0 %v10394_v1  ;;  %v10412_v51 = vld [vmem:[%s10745_s19 + $0x7e4] ss:$108 sps:$4 sm:$0xff]  }
 0x295   : > { %v12289_v62 = vadd.f32 %v8835_v46, %v12163_v48  ;;  %v8888_v41 = vpop.f32.mrf.mxu1  ;;  %6419 = vmatmul.mubr.bf16.gmra.mxu1 %v10391_v32  ;;  %6539 = vmatprep.mubr.bf16.mxu0 %v10402_v54  ;;  %v10397_v48 = vld [vmem:[%s10745_s19 + $0xc10] ss:$108 sps:$4 sm:$0xff]  }
 0x296   : > { %v12292_v56 = vadd.f32 %v8887_v33, %v12072_v19  ;;  %v8837_v37 = vpop.f32.mrf.mxu0  ;;  %6426 = vmatprep.mubr.bf16.mxu1 %v10399_v3 }
 0x297   : > { %v8838_v57 = vadd.f32 %v8837_v37, %v8836_v17  ;;  %v8889_v30 = vpop.f32.mrf.mxu1 }
 0x298   : > { %v8890_v26 = vadd.f32 %v8889_v30, %v8888_v41  ;;  %v8839_v24 = vpop.f32.mrf.mxu0 }
 0x299   : > { %v12296_v29 = vadd.f32 %v8838_v57, %v12178_v61  ;;  %v8891_v1 = vpop.f32.mrf.mxu1 }
 0x29a   : > { %v12301_v32 = vadd.f32 %v8890_v26, %v12085_v16  ;;  %v8840_v54 = vpop.f32.mrf.mxu0  ;;  %v10410_v26 = vld [vmem:[%s10745_s19 + $0x7e0] ss:$108 sps:$4 sm:$0xff]  }
 0x29b   : > { %v8841_v19 = vadd.f32 %v8840_v54, %v8839_v24  ;;  %v8892_v46 = vpop.f32.mrf.mxu1  ;;  %v10418_v54 = vld [vmem:[%s10745_s19 + $0x54] ss:$108 sps:$4 sm:$0xff]  }
 0x29c   : > { %v8893_v3 = vadd.f32 %v8892_v46, %v8891_v1  ;;  %v8970_v50 = vpop.f32.mrf.mxu0  ;;  %6540 = vmatmul.mubr.bf16.gmra.mxu0 %v10400_v55  ;;  %v10415_v1 = vld [vmem:[%s10745_s19 + $0x8bc] ss:$108 sps:$4 sm:$0xff]  }
 0x29d   : > { %v12305_v33 = vadd.f32 %v8841_v19, %v12191_v9  ;;  %v8894_v61 = vpop.f32.mrf.mxu1  ;;  %6427 = vmatmul.mubr.bf16.gmra.mxu1 %v10397_v48  ;;  %6547 = vmatprep.mubr.bf16.mxu0 %v10412_v51  ;;  %v10407_v9 = vld [vmem:[%s10745_s19 + $0xce8] ss:$108 sps:$4 sm:$0xff]  }
 0x29e   : > { %v12308_v16 = vadd.f32 %v8893_v3, %v12094_v25  ;;  %v8971_v17 = vpop.f32.mrf.mxu0  ;;  %6434 = vmatprep.mubr.bf16.mxu1 %v10409_v0 }
 0x29f   : > { %v8895_v41 = vpop.f32.mrf.mxu1  ;;  %v8972_v37 = vadd.f32 %v8971_v17, %v8970_v50 }
 0x2a0   : > { %v8896_v57 = vadd.f32 %v8895_v41, %v8894_v61  ;;  %v8973_v30 = vpop.f32.mrf.mxu0 }
 0x2a1   : > { %v12312_v24 = vadd.f32 %v8972_v37, %v12206_v47  ;;  %v8897_v55 = vpop.f32.mrf.mxu1 }
 0x2a2   : > { %v12317_v48 = vadd.f32 %v8896_v57, %v12101_v12  ;;  %v8974_v51 = vpop.f32.mrf.mxu0  ;;  %v10413_v57 = vld [vmem:[%s10745_s19 + $0x8b8] ss:$108 sps:$4 sm:$0xff]  }
 0x2a3   : > { %v8898_v25 = vpop.f32.mrf.mxu1  ;;  %v8975_v19 = vadd.f32 %v8974_v51, %v8973_v30  ;;  %v10428_v51 = vld [vmem:[%s10745_s19 + $0x12c] ss:$108 sps:$4 sm:$0xff]  }
 0x2a4   : > { %v8899_v0 = vadd.f32 %v8898_v25, %v8897_v55  ;;  %v8976_v46 = vpop.f32.mrf.mxu0  ;;  %6548 = vmatmul.mubr.bf16.gmra.mxu0 %v10410_v26  ;;  %v10425_v55 = vld [vmem:[%s10745_s19 + $0x994] ss:$108 sps:$4 sm:$0xff]  }
 0x2a5   : > { %v12321_v3 = vadd.f32 %v8975_v19, %v12219_v53  ;;  %v8900_v47 = vpop.f32.mrf.mxu1  ;;  %6435 = vmatmul.mubr.bf16.gmra.mxu1 %v10407_v9  ;;  %6555 = vmatprep.mubr.bf16.mxu0 %v10415_v1  ;;  %v10416_v53 = vld [vmem:[%s10745_s19 + $0x50] ss:$108 sps:$4 sm:$0xff]  }
 0x2a6   : > { %v12324_v12 = vadd.f32 %v8899_v0, %v12110_v42  ;;  %v8977_v50 = vpop.f32.mrf.mxu0  ;;  %6636 = vmatprep.mubr.bf16.mxu1 %v10418_v54  ;;  %v10420_v42 = vld [vmem:[%s13234_s1 + $0x638] sm:$0xff]   ;;  %v10435_v19 = vld [vmem:[%s13234_s1 + $0x670] sm:$0xff]  }
 0x2a7   : > { %v8901_v61 = vpop.f32.mrf.mxu1  ;;  %v8978_v17 = vadd.f32 %v8977_v50, %v8976_v46 }
 0x2a8   : > { %v8902_v41 = vadd.f32 %v8901_v61, %v8900_v47  ;;  %v8979_v37 = vpop.f32.mrf.mxu0  ;;  %v10436_v61 = vld [vmem:[%s13234_s1 + $0x630] sm:$0xff]  }
 0x2a9   : > { %v12328_v30 = vadd.f32 %v8978_v17, %v12236_v21  ;;  %v8903_v26 = vpop.f32.mrf.mxu1 }
 0x2aa   : > { %v12333_v9 = vadd.f32 %v8902_v41, %v12117_v5  ;;  %v8980_v1 = vpop.f32.mrf.mxu0 }
 0x2ab   : > { %v8904_v54 = vpop.f32.mrf.mxu1  ;;  %v8981_v25 = vadd.f32 %v8980_v1, %v8979_v37  ;;  %v10431_v1 = vld [vmem:[%s10745_s19 + $0xa6c] ss:$108 sps:$4 sm:$0xff]  }
 0x2ac   : > { %v8905_v21 = vadd.f32 %v8904_v54, %v8903_v26  ;;  %v8982_v0 = vpop.f32.mrf.mxu0  ;;  %6556 = vmatmul.mubr.bf16.gmra.mxu0 %v10413_v57  ;;  %v10423_v26 = vld [vmem:[%s10745_s19 + $0x990] ss:$108 sps:$4 sm:$0xff]  }
 0x2ad   : > { %v12343_v46 = vadd.f32 %v8981_v25, %v12244_v27  ;;  %v8906_v5 = vpop.f32.mrf.mxu1  ;;  %6637 = vmatmul.mubr.bf16.vlgmr.msra.gmra.mxu1 %v10416_v53  ;;  %6563 = vmatprep.mubr.bf16.mxu0 %v10425_v55  ;;  %v10451_v27 = vld [vmem:[%s13234_s1 + $0x668] sm:$0xff]   ;;  %v10434_v54 = vld [vmem:[%s10745_s19 + $0x204] ss:$108 sps:$4 sm:$0xff]  }
 0x2ae   : > { %v12346_v47 = vadd.f32 %v8905_v21, %v12132_v60  ;;  %9515 = vmatpush3.bf16.msra.mxu1 %v10420_v42  ;;  %v8983_v50 = vpop.f32.mrf.mxu0  ;;  %6644 = vmatprep.mubr.bf16.mxu1 %v10428_v51  ;;  %v10426_v55 = vld [vmem:[%s10745_s19 + $0x128] ss:$108 sps:$4 sm:$0xff]  }
 0x2af   : > { %v8907_v17 = vpop.f32.mrf.mxu1  ;;  %v8984_v41 = vadd.f32 %v8983_v50, %v8982_v0  ;;  %9516 = vmatprep.subr.bf16.mxu1 %v10435_v19  ;;  %v10452_v25 = vld [vmem:[%s13234_s1 + $0x628] sm:$0xff]  }
 0x2b0   : > { %v8908_v37 = vadd.f32 %v8907_v17, %v8906_v5  ;;  %v8985_v57 = vpop.f32.mrf.mxu0 }
 0x2b1   : > { %v12356_v60 = vadd.f32 %v8984_v41, %v12253_v10  ;;  %v8909_v53 = vpop.f32.mrf.mxu1  ;;  %v10469_v10 = vld [vmem:[%s13234_s1 + $0x660] sm:$0xff]  }
 0x2b2   : > { %v12361_v42 = vadd.f32 %v8908_v37, %v12145_v36  ;;  %v8986_v51 = vpop.f32.mrf.mxu0  ;;  %9517 = vmatpush3.bf16.msra.mxu1 %v10436_v61  ;;  %v10470_v41 = vld [vmem:[%s13234_s1 + $0x620] sm:$0xff]  }
 0x2b3   : > { %v8910_v19 = vpop.f32.mrf.mxu1  ;;  %v8987_v21 = vadd.f32 %v8986_v51, %v8985_v57  ;;  %9518 = vmatprep.subr.bf16.mxu1 %v10451_v27  ;;  %v10441_v51 = vld [vmem:[%s10745_s19 + $0xb44] ss:$108 sps:$4 sm:$0xff]  }
 0x2b4   : > { %v8911_v0 = vadd.f32 %v8910_v19, %v8909_v53  ;;  %v8988_v5 = vpop.f32.mrf.mxu0  ;;  %6564 = vmatmul.mubr.bf16.gmra.mxu0 %v10423_v26  ;;  %v10429_v53 = vld [vmem:[%s10745_s19 + $0xa68] ss:$108 sps:$4 sm:$0xff]  }
 0x2b5   : > { %v12371_v36 = vadd.f32 %v8987_v21, %v12260_v49  ;;  %v8912_v50 = vpop.f32.mrf.mxu1  ;;  %6645 = vmatmul.mubr.bf16.gmra.mxu1 %v10426_v55  ;;  %6571 = vmatprep.mubr.bf16.mxu0 %v10431_v1  ;;  %v10483_v49 = vld [vmem:[%s13234_s1 + $0x658] sm:$0xff]   ;;  %v10432_v1 = vld [vmem:[%s10745_s19 + $0x200] ss:$108 sps:$4 sm:$0xff]  }
 0x2b6   : > { %v12374_v61 = vadd.f32 %v8911_v0, %v12160_v35  ;;  %v8989_v17 = vpop.f32.mrf.mxu0  ;;  %6652 = vmatprep.mubr.bf16.mxu1 %v10434_v54  ;;  %9519 = vmatpush3.bf16.msra.mxu1 %v10452_v25  ;;  %v10444_v19 = vld [vmem:[%s10745_s19 + $0x2dc] ss:$108 sps:$4 sm:$0xff]  }
 0x2b7   : > { %v8913_v27 = vpop.f32.mrf.mxu1  ;;  %v8990_v37 = vadd.f32 %v8989_v17, %v8988_v5  ;;  %9520 = vmatprep.subr.bf16.mxu1 %v10469_v10  ;;  %v10484_v21 = vld [vmem:[%s13234_s1 + $0x618] sm:$0xff]  }
 0x2b8   : > { %v8914_v57 = vadd.f32 %v8913_v27, %v8912_v50  ;;  %v8991_v26 = vpop.f32.mrf.mxu0 }
 0x2b9   : > { %v12384_v35 = vadd.f32 %v8990_v37, %v12269_v13  ;;  %v8915_v55 = vpop.f32.mrf.mxu1  ;;  %v10498_v13 = vld [vmem:[%s13234_s1 + $0x650] sm:$0xff]  }
 0x2ba   : > { %v12389_v54 = vadd.f32 %v8914_v57, %v12173_v34  ;;  %v8992_v25 = vpop.f32.mrf.mxu0  ;;  %9521 = vmatpush3.bf16.msra.mxu1 %v10470_v41  ;;  %v10499_v37 = vld [vmem:[%s13234_s1 + $0x610] sm:$0xff]  }
 0x2bb   : > { %v8916_v10 = vpop.f32.mrf.mxu1  ;;  %v8993_v0 = vadd.f32 %v8992_v25, %v8991_v26  ;;  %9522 = vmatprep.subr.bf16.mxu1 %v10483_v49  ;;  %v10447_v25 = vld [vmem:[%s10745_s19 + $0xc1c] ss:$108 sps:$4 sm:$0xff]  }
 0x2bc   : > { %v8917_v5 = vadd.f32 %v8916_v10, %v8915_v55  ;;  %v8994_v50 = vpop.f32.mrf.mxu0  ;;  %6572 = vmatmul.mubr.bf16.gmra.mxu0 %v10429_v53  ;;  %v10439_v55 = vld [vmem:[%s10745_s19 + $0xb40] ss:$108 sps:$4 sm:$0xff]  }
 0x2bd   : > { %v12399_v34 = vadd.f32 %v8993_v0, %v12276_v4  ;;  %v8918_v17 = vpop.f32.mrf.mxu1  ;;  %6653 = vmatmul.mubr.bf16.gmra.mxu1 %v10432_v1  ;;  %6579 = vmatprep.mubr.bf16.mxu0 %v10441_v51  ;;  %v10513_v4 = vld [vmem:[%s13234_s1 + $0x648] sm:$0xff]   ;;  %v10442_v51 = vld [vmem:[%s10745_s19 + $0x2d8] ss:$108 sps:$4 sm:$0xff]   ;;  %v10450_v10 = vld [vmem:[%s10745_s19 + $0x3b4] ss:$108 sps:$4 sm:$0xff]  }
 0x2be   : > { %v12402_v41 = vadd.f32 %v8917_v5, %v12188_v38  ;;  %v8995_v27 = vpop.f32.mrf.mxu0  ;;  %6660 = vmatprep.mubr.bf16.mxu1 %v10444_v19  ;;  %9523 = vmatpush3.bf16.msra.mxu1 %v10484_v21  ;;  %v10514_v0 = vld [vmem:[%s13234_s1 + $0x608] sm:$0xff]  }
 0x2bf   : > { %v8919_v49 = vpop.f32.mrf.mxu1  ;;  %v8996_v57 = vadd.f32 %v8995_v27, %v8994_v50  ;;  %9524 = vmatprep.subr.bf16.mxu1 %v10498_v13 }
 0x2c0   : > { %v8920_v26 = vadd.f32 %v8919_v49, %v8918_v17  ;;  %v8997_v53 = vpop.f32.mrf.mxu0 }
 0x2c1   : > { %v12412_v38 = vadd.f32 %v8996_v57, %v12285_v31  ;;  %v8921_v1 = vpop.f32.mrf.mxu1  ;;  %v10528_v31 = vld [vmem:[%s13234_s1 + $0x640] sm:$0xff]  }
 0x2c2   : > { %v12417_v19 = vadd.f32 %v8920_v26, %v12201_v23  ;;  %v8998_v21 = vpop.f32.mrf.mxu0  ;;  %9525 = vmatpush3.bf16.msra.mxu1 %v10499_v37  ;;  %v10529_v57 = vld [vmem:[%s13234_s1 + $0x600] sm:$0xff]  }
 0x2c3   : > { %v8922_v13 = vpop.f32.mrf.mxu1  ;;  %v8999_v5 = vadd.f32 %v8998_v21, %v8997_v53  ;;  %9526 = vmatprep.subr.bf16.mxu1 %v10513_v4 }
 0x2c4   : > { %v8923_v50 = vadd.f32 %v8922_v13, %v8921_v1  ;;  %v9000_v17 = vpop.f32.mrf.mxu0  ;;  %6580 = vmatmul.mubr.bf16.gmra.mxu0 %v10439_v55  ;;  %v10445_v55 = vld [vmem:[%s10745_s19 + $0xc18] ss:$108 sps:$4 sm:$0xff]  }
 0x2c5   : > { %v12427_v23 = vadd.f32 %v8999_v5, %v12292_v56  ;;  %v8924_v27 = vpop.f32.mrf.mxu1  ;;  %6661 = vmatmul.mubr.bf16.gmra.mxu1 %v10442_v51  ;;  %6587 = vmatprep.mubr.bf16.mxu0 %v10447_v25  ;;  %v10457_v25 = vld [vmem:[%s10745_s19 + $0xcf4] ss:$108 sps:$4 sm:$0xff]  }
 0x2c6   : > { %v12430_v37 = vadd.f32 %v8923_v50, %v12216_v40  ;;  %v9001_v49 = vpop.f32.mrf.mxu0  ;;  %6668 = vmatprep.mubr.bf16.mxu1 %v10450_v10  ;;  %9527 = vmatpush3.bf16.msra.mxu1 %v10514_v0  ;;  %v10448_v40 = vld [vmem:[%s10745_s19 + $0x3b0] ss:$108 sps:$4 sm:$0xff]   ;;  %v10460_v0 = vld [vmem:[%s10745_s19 + $0x48c] ss:$108 sps:$4 sm:$0xff]  }
 0x2c7   : > { %v8925_v4 = vpop.f32.mrf.mxu1  ;;  %v9002_v26 = vadd.f32 %v9001_v49, %v9000_v17  ;;  %9528 = vmatprep.subr.bf16.mxu1 %v10528_v31 }
 0x2c8   : > { %v8926_v56 = vadd.f32 %v8925_v4, %v8924_v27  ;;  %v9003_v53 = vpop.f32.mrf.mxu0 }
 0x2c9   : > { %v12437_v1 = vadd.f32 %v9002_v26, %v12301_v32  ;;  %v8927_v51 = vpop.f32.mrf.mxu1 }
 0x2ca   : > { %v12442_v21 = vadd.f32 %v8926_v56, %v12231_v8  ;;  %v9004_v10 = vpop.f32.mrf.mxu0  ;;  %9529 = vmatpush3.bf16.msra.mxu1 %v10529_v57  ;;  %v10455_v56 = vld [vmem:[%s10745_s19 + $0xcf0] ss:$108 sps:$4 sm:$0xff]  }
 0x2cb   : > { %v8928_v13 = vpop.f32.mrf.mxu1  ;;  %v9005_v5 = vadd.f32 %v9004_v10, %v9003_v53  ;;  %v10465_v10 = vld [vmem:[%s10745_s19 + $0x564] ss:$108 sps:$4 sm:$0xff]  }
 0x2cc   : > { %v8929_v50 = vadd.f32 %v8928_v13, %v8927_v51  ;;  %v9006_v31 = vpop.f32.mrf.mxu0  ;;  %6588 = vmatmul.mubr.bf16.gmra.mxu0 %v10445_v55  ;;  %v10468_v51 = vld [vmem:[%s10745_s19 + $0x5c] ss:$108 sps:$4 sm:$0xff]  }
 0x2cd   : > { %v12446_v32 = vadd.f32 %v9005_v5, %v12308_v16  ;;  %v8930_v17 = vpop.f32.mrf.mxu1  ;;  %6669 = vmatmul.mubr.bf16.gmra.mxu1 %v10448_v40  ;;  %6595 = vmatprep.mubr.bf16.mxu0 %v10457_v25  ;;  %v10458_v16 = vld [vmem:[%s10745_s19 + $0x488] ss:$108 sps:$4 sm:$0xff]  }
 0x2ce   : > { %v12449_v8 = vadd.f32 %v8929_v50, %v12241_v52  ;;  %v9007_v27 = vpop.f32.mrf.mxu0  ;;  %6676 = vmatprep.mubr.bf16.mxu1 %v10460_v0 }
 0x2cf   : > { %v8931_v49 = vpop.f32.mrf.mxu1  ;;  %v9008_v57 = vadd.f32 %v9007_v27, %v9006_v31 }
 0x2d0   : > { %v8932_v4 = vadd.f32 %v8931_v49, %v8930_v17  ;;  %v9009_v26 = vpop.f32.mrf.mxu0 }
 0x2d1   : > { %v12453_v53 = vadd.f32 %v9008_v57, %v12317_v48  ;;  %v8933_v55 = vpop.f32.mrf.mxu1 }
 0x2d2   : > { %v12458_v40 = vadd.f32 %v8932_v4, %v12248_v43  ;;  %v9010_v25 = vpop.f32.mrf.mxu0  ;;  %v10466_v4 = vld [vmem:[%s10745_s19 + $0x58] ss:$108 sps:$4 sm:$0xff]  }
 0x2d3   : > { %v8934_v52 = vpop.f32.mrf.mxu1  ;;  %v9011_v13 = vadd.f32 %v9010_v25, %v9009_v26  ;;  %v10473_v25 = vld [vmem:[%s10745_s19 + $0x63c] ss:$108 sps:$4 sm:$0xff]  }
 0x2d4   : > { %v8935_v0 = vadd.f32 %v8934_v52, %v8933_v55  ;;  %v9012_v5 = vpop.f32.mrf.mxu0  ;;  %6596 = vmatmul.mubr.bf16.gmra.mxu0 %v10455_v56  ;;  %v10476_v55 = vld [vmem:[%s10745_s19 + $0x134] ss:$108 sps:$4 sm:$0xff]  }
 0x2d5   : > { %v12462_v50 = vadd.f32 %v9011_v13, %v12324_v12  ;;  %v8936_v48 = vpop.f32.mrf.mxu1  ;;  %6677 = vmatmul.mubr.bf16.gmra.mxu1 %v10458_v16  ;;  %6797 = vmatprep.mubr.bf16.mxu0 %v10468_v51  ;;  %v10463_v12 = vld [vmem:[%s10745_s19 + $0x560] ss:$108 sps:$4 sm:$0xff]  }
 0x2d6   : > { %v12465_v43 = vadd.f32 %v8935_v0, %v12257_v15  ;;  %v9013_v31 = vpop.f32.mrf.mxu0  ;;  %6684 = vmatprep.mubr.bf16.mxu1 %v10465_v10  ;;  %v10500_v10 = vld [vmem:[%s13234_s1 + $0x6b0] sm:$0xff]  }
 0x2d7   : > { %v8937_v17 = vpop.f32.mrf.mxu1  ;;  %v9014_v27 = vadd.f32 %v9013_v31, %v9012_v5 }
 0x2d8   : > { %v8938_v49 = vadd.f32 %v8937_v17, %v8936_v48  ;;  %v9015_v57 = vpop.f32.mrf.mxu0 }
 0x2d9   : > { %v12469_v26 = vadd.f32 %v9014_v27, %v12333_v9  ;;  %v8939_v56 = vpop.f32.mrf.mxu1 }
 0x2da   : > { %v12474_v16 = vadd.f32 %v8938_v49, %v12264_v44  ;;  %v9016_v51 = vpop.f32.mrf.mxu0 }
 0x2db   : > { %v8940_v15 = vpop.f32.mrf.mxu1  ;;  %v9017_v52 = vadd.f32 %v9016_v51, %v9015_v57  ;;  %v10474_v57 = vld [vmem:[%s10745_s19 + $0x130] ss:$108 sps:$4 sm:$0xff]   ;;  %v10479_v51 = vld [vmem:[%s10745_s19 + $0x714] ss:$108 sps:$4 sm:$0xff]  }
 0x2dc   : > { %v8941_v13 = vadd.f32 %v8940_v15, %v8939_v56  ;;  %v9018_v0 = vpop.f32.mrf.mxu0  ;;  %6798 = vmatmul.mubr.bf16.vlgmr.msra.gmra.mxu0 %v10466_v4  ;;  %v10471_v56 = vld [vmem:[%s10745_s19 + $0x638] ss:$108 sps:$4 sm:$0xff]  }
 0x2dd   : > { %v12481_v9 = vadd.f32 %v9017_v52, %v12346_v47  ;;  %v8942_v5 = vpop.f32.mrf.mxu1  ;;  %6685 = vmatmul.mubr.bf16.gmra.mxu1 %v10463_v12  ;;  %6805 = vmatprep.mubr.bf16.mxu0 %v10476_v55  ;;  %v10515_v47 = vld [vmem:[%s13234_s1 + $0x6a8] sm:$0xff]   ;;  %v10530_v52 = vld [vmem:[%s13234_s1 + $0x6a0] sm:$0xff]  }
 0x2de   : > { %v12484_v44 = vadd.f32 %v8941_v13, %v12273_v45  ;;  %v9019_v48 = vpop.f32.mrf.mxu0  ;;  %6692 = vmatprep.mubr.bf16.mxu1 %v10473_v25  ;;  %9691 = vmatpush3.bf16.msra.mxu0 %v12227_v22  ;;  %v10482_v12 = vld [vmem:[%s10745_s19 + $0x20c] ss:$108 sps:$4 sm:$0xff]  }
 0x2df   : > { %v8943_v31 = vpop.f32.mrf.mxu1  ;;  %v9020_v17 = vadd.f32 %v9019_v48, %v9018_v0  ;;  %9692 = vmatprep.subr.bf16.mxu0 %v10500_v10 }
 0x2e0   : > { %v8944_v27 = vadd.f32 %v8943_v31, %v8942_v5  ;;  %v9021_v49 = vpop.f32.mrf.mxu0 }
 0x2e1   : > { %v12492_v4 = vadd.f32 %v9020_v17, %v12361_v42  ;;  %v8945_v45 = vpop.f32.mrf.mxu1 }
 0x2e2   : > { %v12497_v55 = vadd.f32 %v8944_v27, %v12280_v39  ;;  %v9022_v22 = vpop.f32.mrf.mxu0  ;;  %9693 = vmatpush3.bf16.msra.mxu0 %v10500_v10 }
 0x2e3   : > { %v8946_v25 = vpop.f32.mrf.mxu1  ;;  %v9023_v15 = vadd.f32 %v9022_v22, %v9021_v49  ;;  %9694 = vmatprep.subr.bf16.mxu0 %v10515_v47  ;;  %v10480_v49 = vld [vmem:[%s10745_s19 + $0x208] ss:$108 sps:$4 sm:$0xff]   ;;  %v10488_v22 = vld [vmem:[%s10745_s19 + $0x7ec] ss:$108 sps:$4 sm:$0xff]  }
 0x2e4   : > { %v8947_v13 = vadd.f32 %v8946_v25, %v8945_v45  ;;  %v9024_v0 = vpop.f32.mrf.mxu0  ;;  %6806 = vmatmul.mubr.bf16.gmra.mxu0 %v10474_v57 }
 0x2e5   : > { %v12504_v42 = vadd.f32 %v9023_v15, %v12374_v61  ;;  %v8948_v5 = vpop.f32.mrf.mxu1  ;;  %6693 = vmatmul.mubr.bf16.gmra.mxu1 %v10471_v56  ;;  %6813 = vmatprep.mubr.bf16.mxu0 %v10482_v12  ;;  %v10543_v61 = vld [vmem:[%s13234_s1 + $0x698] sm:$0xff]   ;;  %v10491_v56 = vld [vmem:[%s10745_s19 + $0x2e4] ss:$108 sps:$4 sm:$0xff]  }
 0x2e6   : > { %v12507_v39 = vadd.f32 %v8947_v13, %v12289_v62  ;;  %v9025_v10 = vpop.f32.mrf.mxu0  ;;  %6700 = vmatprep.mubr.bf16.mxu1 %v10479_v51  ;;  %9695 = vmatpush3.bf16.msra.mxu0 %v10515_v47  ;;  %v10477_v62 = vld [vmem:[%s10745_s19 + $0x710] ss:$108 sps:$4 sm:$0xff]  }
 0x2e7   : > { %v8949_v48 = vpop.f32.mrf.mxu1  ;;  %v9026_v31 = vadd.f32 %v9025_v10, %v9024_v0  ;;  %9696 = vmatprep.subr.bf16.mxu0 %v10530_v52  ;;  %v10556_v15 = vld [vmem:[%s13234_s1 + $0x690] sm:$0xff]  }
 0x2e8   : > { %v8950_v17 = vadd.f32 %v8949_v48, %v8948_v5  ;;  %v9027_v27 = vpop.f32.mrf.mxu0 }
 0x2e9   : > { %v12514_v57 = vadd.f32 %v9026_v31, %v12389_v54  ;;  %v8951_v45 = vpop.f32.mrf.mxu1 }
 0x2ea   : > { %v12519_v12 = vadd.f32 %v8950_v17, %v12296_v29  ;;  %v9028_v47 = vpop.f32.mrf.mxu0  ;;  %9697 = vmatpush3.bf16.msra.mxu0 %v10530_v52 }
 0x2eb   : > { %v8952_v51 = vpop.f32.mrf.mxu1  ;;  %v9029_v25 = vadd.f32 %v9028_v47, %v9027_v27  ;;  %9698 = vmatprep.subr.bf16.mxu0 %v10543_v61  ;;  %v10489_v27 = vld [vmem:[%s10745_s19 + $0x2e0] ss:$108 sps:$4 sm:$0xff]   ;;  %v10494_v47 = vld [vmem:[%s10745_s19 + $0x8c4] ss:$108 sps:$4 sm:$0xff]  }
 0x2ec   : > { %v8953_v13 = vadd.f32 %v8952_v51, %v8951_v45  ;;  %v9030_v0 = vpop.f32.mrf.mxu0  ;;  %6814 = vmatmul.mubr.bf16.gmra.mxu0 %v10480_v49 }
 0x2ed   : > { %v12526_v54 = vadd.f32 %v9029_v25, %v12402_v41  ;;  %v9082_v5 = vpop.f32.mrf.mxu1  ;;  %6701 = vmatmul.mubr.bf16.gmra.mxu1 %v10477_v62  ;;  %6821 = vmatprep.mubr.bf16.mxu0 %v10491_v56  ;;  %v10569_v41 = vld [vmem:[%s13234_s1 + $0x688] sm:$0xff]   ;;  %v10576_v25 = vld [vmem:[%s13234_s1 + $0x680] sm:$0xff]  }
 0x2ee   : > { %v12529_v29 = vadd.f32 %v8953_v13, %v12305_v33  ;;  %v9031_v52 = vpop.f32.mrf.mxu0  ;;  %6708 = vmatprep.mubr.bf16.mxu1 %v10488_v22  ;;  %9699 = vmatpush3.bf16.msra.mxu0 %v10543_v61  ;;  %v10486_v33 = vld [vmem:[%s10745_s19 + $0x7e8] ss:$108 sps:$4 sm:$0xff]  }
 0x2ef   : > { %v9032_v10 = vadd.f32 %v9031_v52, %v9030_v0  ;;  %v9083_v48 = vpop.f32.mrf.mxu1  ;;  %9700 = vmatprep.subr.bf16.mxu0 %v10556_v15  ;;  %v10497_v62 = vld [vmem:[%s10745_s19 + $0x3bc] ss:$108 sps:$4 sm:$0xff]  }
 0x2f0   : > { %v9084_v31 = vadd.f32 %v9083_v48, %v9082_v5  ;;  %v9033_v17 = vpop.f32.mrf.mxu0 }
 0x2f1   : > { %v12536_v49 = vadd.f32 %v9032_v10, %v12417_v19  ;;  %v9085_v45 = vpop.f32.mrf.mxu1 }
 0x2f2   : > { %v12541_v56 = vadd.f32 %v9084_v31, %v12312_v24  ;;  %v9034_v61 = vpop.f32.mrf.mxu0  ;;  %9701 = vmatpush3.bf16.msra.mxu0 %v10556_v15 }
 0x2f3   : > { %v9035_v22 = vadd.f32 %v9034_v61, %v9033_v17  ;;  %v9086_v51 = vpop.f32.mrf.mxu1  ;;  %9702 = vmatprep.subr.bf16.mxu0 %v10569_v41  ;;  %v10495_v17 = vld [vmem:[%s10745_s19 + $0x3b8] ss:$108 sps:$4 sm:$0xff]   ;;  %v10503_v61 = vld [vmem:[%s10745_s19 + $0x99c] ss:$108 sps:$4 sm:$0xff]  }
 0x2f4   : > { %v9087_v13 = vadd.f32 %v9086_v51, %v9085_v45  ;;  %v9036_v19 = vpop.f32.mrf.mxu0  ;;  %6822 = vmatmul.mubr.bf16.gmra.mxu0 %v10489_v27  ;;  %v10492_v45 = vld [vmem:[%s10745_s19 + $0x8c0] ss:$108 sps:$4 sm:$0xff]  }
 0x2f5   : > { %v12548_v0 = vadd.f32 %v9035_v22, %v12430_v37  ;;  %v9088_v24 = vpop.f32.mrf.mxu1  ;;  %6709 = vmatmul.mubr.bf16.gmra.mxu1 %v10486_v33  ;;  %6829 = vmatprep.mubr.bf16.mxu0 %v10497_v62  ;;  %v10506_v33 = vld [vmem:[%s10745_s19 + $0x494] ss:$108 sps:$4 sm:$0xff]  }
 0x2f6   : > { %v12551_v15 = vadd.f32 %v9087_v13, %v12321_v3  ;;  %v9037_v5 = vpop.f32.mrf.mxu0  ;;  %6716 = vmatprep.mubr.bf16.mxu1 %v10494_v47  ;;  %9703 = vmatpush3.bf16.msra.mxu0 %v10569_v41 }
 0x2f7   : > { %v9038_v52 = vadd.f32 %v9037_v5, %v9036_v19  ;;  %v9089_v10 = vpop.f32.mrf.mxu1  ;;  %9704 = vmatprep.subr.bf16.mxu0 %v10576_v25 }
 0x2f8   : > { %v9090_v48 = vadd.f32 %v9089_v10, %v9088_v24  ;;  %v9039_v31 = vpop.f32.mrf.mxu0  ;;  %v10504_v10 = vld [vmem:[%s10745_s19 + $0x490] ss:$108 sps:$4 sm:$0xff]  }
 0x2f9   : > { %v12555_v37 = vadd.f32 %v9038_v52, %v12442_v21  ;;  %v9091_v27 = vpop.f32.mrf.mxu1 }
 0x2fa   : > { %v12560_v62 = vadd.f32 %v9090_v48, %v12328_v30  ;;  %v9040_v3 = vpop.f32.mrf.mxu0  ;;  %9705 = vmatpush3.bf16.msra.mxu0 %v10576_v25 }
 0x2fb   : > { %v9041_v47 = vadd.f32 %v9040_v3, %v9039_v31  ;;  %v9092_v41 = vpop.f32.mrf.mxu1 }
 0x2fc   : > { %v9093_v22 = vadd.f32 %v9092_v41, %v9091_v27  ;;  %v9042_v51 = vpop.f32.mrf.mxu0  ;;  %6830 = vmatmul.mubr.bf16.gmra.mxu0 %v10495_v17  ;;  %v10512_v17 = vld [vmem:[%s10745_s19 + $0x56c] ss:$108 sps:$4 sm:$0xff]  }
 0x2fd   : > { %v12564_v21 = vadd.f32 %v9041_v47, %v12449_v8  ;;  %v9094_v13 = vpop.f32.mrf.mxu1  ;;  %6717 = vmatmul.mubr.bf16.gmra.mxu1 %v10492_v45  ;;  %6837 = vmatprep.mubr.bf16.mxu0 %v10506_v33  ;;  %v10501_v8 = vld [vmem:[%s10745_s19 + $0x998] ss:$108 sps:$4 sm:$0xff]   ;;  %v10509_v33 = vld [vmem:[%s10745_s19 + $0xa74] ss:$108 sps:$4 sm:$0xff]  }
 0x2fe   : > { %v12567_v30 = vadd.f32 %v9093_v22, %v12343_v46  ;;  %v9043_v19 = vpop.f32.mrf.mxu0  ;;  %6724 = vmatprep.mubr.bf16.mxu1 %v10503_v61 }
 0x2ff   : > { %v9044_v25 = vadd.f32 %v9043_v19, %v9042_v51  ;;  %v9095_v24 = vpop.f32.mrf.mxu1 }
 0x300   : > { %v9096_v5 = vadd.f32 %v9095_v24, %v9094_v13  ;;  %v9045_v52 = vpop.f32.mrf.mxu0  ;;  %v10510_v24 = vld [vmem:[%s10745_s19 + $0x568] ss:$108 sps:$4 sm:$0xff]  }
 0x301   : > { %v12571_v48 = vadd.f32 %v9044_v25, %v12458_v40  ;;  %v9097_v31 = vpop.f32.mrf.mxu1 }
 0x302   : > { %v12576_v27 = vadd.f32 %v9096_v5, %v12356_v60  ;;  %v9046_v45 = vpop.f32.mrf.mxu0 }
 0x303   : > { %v9047_v46 = vadd.f32 %v9046_v45, %v9045_v52  ;;  %v9098_v3 = vpop.f32.mrf.mxu1 }
 0x304   : > { %v9099_v61 = vadd.f32 %v9098_v3, %v9097_v31  ;;  %v9048_v47 = vpop.f32.mrf.mxu0  ;;  %6838 = vmatmul.mubr.bf16.gmra.mxu0 %v10504_v10  ;;  %v10521_v10 = vld [vmem:[%s10745_s19 + $0x644] ss:$108 sps:$4 sm:$0xff]  }
 0x305   : > { %v12580_v41 = vadd.f32 %v9047_v46, %v12465_v43  ;;  %v9100_v40 = vpop.f32.mrf.mxu1  ;;  %6725 = vmatmul.mubr.bf16.gmra.mxu1 %v10501_v8  ;;  %6845 = vmatprep.mubr.bf16.mxu0 %v10512_v17  ;;  %v10507_v43 = vld [vmem:[%s10745_s19 + $0xa70] ss:$108 sps:$4 sm:$0xff]   ;;  %v10518_v17 = vld [vmem:[%s10745_s19 + $0xb4c] ss:$108 sps:$4 sm:$0xff]  }
 0x306   : > { %v12583_v60 = vadd.f32 %v9099_v61, %v12371_v36  ;;  %v9049_v22 = vpop.f32.mrf.mxu0  ;;  %6732 = vmatprep.mubr.bf16.mxu1 %v10509_v33 }
 0x307   : > { %v9050_v51 = vadd.f32 %v9049_v22, %v9048_v47  ;;  %v9101_v13 = vpop.f32.mrf.mxu1 }
 0x308   : > { %v9102_v19 = vadd.f32 %v9101_v13, %v9100_v40  ;;  %v9051_v25 = vpop.f32.mrf.mxu0  ;;  %v10519_v13 = vld [vmem:[%s10745_s19 + $0x640] ss:$108 sps:$4 sm:$0xff]  }
 0x309   : > { %v12587_v5 = vadd.f32 %v9050_v51, %v12474_v16  ;;  %v9103_v52 = vpop.f32.mrf.mxu1 }
 0x30a   : > { %v12592_v31 = vadd.f32 %v9102_v19, %v12384_v35  ;;  %v9052_v8 = vpop.f32.mrf.mxu0 }
 0x30b   : > { %v9053_v36 = vadd.f32 %v9052_v8, %v9051_v25  ;;  %v9104_v45 = vpop.f32.mrf.mxu1 }
 0x30c   : > { %v9105_v33 = vadd.f32 %v9104_v45, %v9103_v52  ;;  %v9054_v46 = vpop.f32.mrf.mxu0  ;;  %6846 = vmatmul.mubr.bf16.gmra.mxu0 %v10510_v24  ;;  %v10527_v24 = vld [vmem:[%s10745_s19 + $0x71c] ss:$108 sps:$4 sm:$0xff]  }
 0x30d   : > { %v12596_v3 = vadd.f32 %v9053_v36, %v12484_v44  ;;  %v9106_v16 = vpop.f32.mrf.mxu1  ;;  %6733 = vmatmul.mubr.bf16.gmra.mxu1 %v10507_v43  ;;  %6853 = vmatprep.mubr.bf16.mxu0 %v10521_v10  ;;  %v10516_v44 = vld [vmem:[%s10745_s19 + $0xb48] ss:$108 sps:$4 sm:$0xff]   ;;  %v10524_v10 = vld [vmem:[%s10745_s19 + $0xc24] ss:$108 sps:$4 sm:$0xff]  }
 0x30e   : > { %v12599_v35 = vadd.f32 %v9105_v33, %v12399_v34  ;;  %v9055_v61 = vpop.f32.mrf.mxu0  ;;  %6740 = vmatprep.mubr.bf16.mxu1 %v10518_v17 }
 0x30f   : > { %v9056_v47 = vadd.f32 %v9055_v61, %v9054_v46  ;;  %v9107_v40 = vpop.f32.mrf.mxu1 }
 0x310   : > { %v9108_v22 = vadd.f32 %v9107_v40, %v9106_v16  ;;  %v9057_v51 = vpop.f32.mrf.mxu0  ;;  %v10525_v40 = vld [vmem:[%s10745_s19 + $0x718] ss:$108 sps:$4 sm:$0xff]  }
 0x311   : > { %v12603_v19 = vadd.f32 %v9056_v47, %v12497_v55  ;;  %v9109_v25 = vpop.f32.mrf.mxu1 }
 0x312   : > { %v12608_v52 = vadd.f32 %v9108_v22, %v12412_v38  ;;  %v9058_v43 = vpop.f32.mrf.mxu0 }
 0x313   : > { %v9059_v34 = vadd.f32 %v9058_v43, %v9057_v51  ;;  %v9110_v8 = vpop.f32.mrf.mxu1 }
 0x314   : > { %v9111_v17 = vadd.f32 %v9110_v8, %v9109_v25  ;;  %v9060_v36 = vpop.f32.mrf.mxu0  ;;  %6854 = vmatmul.mubr.bf16.gmra.mxu0 %v10519_v13  ;;  %v10536_v13 = vld [vmem:[%s10745_s19 + $0x7f4] ss:$108 sps:$4 sm:$0xff]  }
 0x315   : > { %v12612_v45 = vadd.f32 %v9059_v34, %v12507_v39  ;;  %v9112_v55 = vpop.f32.mrf.mxu1  ;;  %6741 = vmatmul.mubr.bf16.gmra.mxu1 %v10516_v44  ;;  %6861 = vmatprep.mubr.bf16.mxu0 %v10527_v24  ;;  %v10522_v39 = vld [vmem:[%s10745_s19 + $0xc20] ss:$108 sps:$4 sm:$0xff]   ;;  %v10533_v24 = vld [vmem:[%s10745_s19 + $0xcfc] ss:$108 sps:$4 sm:$0xff]  }
 0x316   : > { %v12615_v38 = vadd.f32 %v9111_v17, %v12427_v23  ;;  %v9061_v33 = vpop.f32.mrf.mxu0  ;;  %6748 = vmatprep.mubr.bf16.mxu1 %v10524_v10 }
 0x317   : > { %v9062_v46 = vadd.f32 %v9061_v33, %v9060_v36  ;;  %v9113_v16 = vpop.f32.mrf.mxu1 }
 0x318   : > { %v9114_v61 = vadd.f32 %v9113_v16, %v9112_v55  ;;  %v9063_v47 = vpop.f32.mrf.mxu0  ;;  %v10534_v16 = vld [vmem:[%s10745_s19 + $0x7f0] ss:$108 sps:$4 sm:$0xff]  }
 0x319   : > { %v12619_v22 = vadd.f32 %v9062_v46, %v12519_v12  ;;  %v9115_v51 = vpop.f32.mrf.mxu1 }
 0x31a   : > { %v12624_v25 = vadd.f32 %v9114_v61, %v12437_v1  ;;  %v9064_v44 = vpop.f32.mrf.mxu0 }
 0x31b   : > { %v9065_v23 = vadd.f32 %v9064_v44, %v9063_v47  ;;  %v9116_v43 = vpop.f32.mrf.mxu1 }
 0x31c   : > { %v9117_v10 = vadd.f32 %v9116_v43, %v9115_v51  ;;  %v9194_v34 = vpop.f32.mrf.mxu0  ;;  %6862 = vmatmul.mubr.bf16.gmra.mxu0 %v10525_v40  ;;  %v10539_v40 = vld [vmem:[%s10745_s19 + $0x8cc] ss:$108 sps:$4 sm:$0xff]  }
 0x31d   : > { %v12628_v8 = vadd.f32 %v9065_v23, %v12529_v29  ;;  %v9118_v12 = vpop.f32.mrf.mxu1  ;;  %6749 = vmatmul.mubr.bf16.gmra.mxu1 %v10522_v39  ;;  %6869 = vmatprep.mubr.bf16.mxu0 %v10536_v13  ;;  %v10531_v29 = vld [vmem:[%s10745_s19 + $0xcf8] ss:$108 sps:$4 sm:$0xff]  }
 0x31e   : > { %v12631_v1 = vadd.f32 %v9117_v10, %v12446_v32  ;;  %v9195_v17 = vpop.f32.mrf.mxu0  ;;  %6756 = vmatprep.mubr.bf16.mxu1 %v10533_v24  ;;  %v10542_v13 = vld [vmem:[%s10745_s19 + $0x64] ss:$108 sps:$4 sm:$0xff]  }
 0x31f   : > { %v9119_v36 = vpop.f32.mrf.mxu1  ;;  %v9196_v55 = vadd.f32 %v9195_v17, %v9194_v34 }
 0x320   : > { %v9120_v33 = vadd.f32 %v9119_v36, %v9118_v12  ;;  %v9197_v46 = vpop.f32.mrf.mxu0 }
 0x321   : > { %v12635_v61 = vadd.f32 %v9196_v55, %v12541_v56  ;;  %v9121_v47 = vpop.f32.mrf.mxu1  ;;  %v10537_v55 = vld [vmem:[%s10745_s19 + $0x8c8] ss:$108 sps:$4 sm:$0xff]  }
 0x322   : > { %v12640_v51 = vadd.f32 %v9120_v33, %v12453_v53  ;;  %v9198_v39 = vpop.f32.mrf.mxu0 }
 0x323   : > { %v9122_v32 = vpop.f32.mrf.mxu1  ;;  %v9199_v44 = vadd.f32 %v9198_v39, %v9197_v46 }
 0x324   : > { %v9123_v24 = vadd.f32 %v9122_v32, %v9121_v47  ;;  %v9200_v23 = vpop.f32.mrf.mxu0  ;;  %6870 = vmatmul.mubr.bf16.gmra.mxu0 %v10534_v16  ;;  %v10546_v16 = vld [vmem:[%s10745_s19 + $0x9a4] ss:$108 sps:$4 sm:$0xff]  }
 0x325   : > { %v12644_v43 = vadd.f32 %v9199_v44, %v12551_v15  ;;  %v9124_v56 = vpop.f32.mrf.mxu1  ;;  %6757 = vmatmul.mubr.bf16.gmra.mxu1 %v10531_v29  ;;  %6877 = vmatprep.mubr.bf16.mxu0 %v10539_v40  ;;  %v10540_v15 = vld [vmem:[%s10745_s19 + $0x60] ss:$108 sps:$4 sm:$0xff]   ;;  %v10549_v40 = vld [vmem:[%s10745_s19 + $0x13c] ss:$108 sps:$4 sm:$0xff]  }
 0x326   : > { %v12647_v53 = vadd.f32 %v9123_v24, %v12462_v50  ;;  %v9201_v10 = vpop.f32.mrf.mxu0  ;;  %6958 = vmatprep.mubr.bf16.mxu1 %v10542_v13 }
 0x327   : > { %v9125_v34 = vpop.f32.mrf.mxu1  ;;  %v9202_v12 = vadd.f32 %v9201_v10, %v9200_v23 }
 0x328   : > { %v9126_v17 = vadd.f32 %v9125_v34, %v9124_v56  ;;  %v9203_v36 = vpop.f32.mrf.mxu0 }
 0x329   : > { %v12651_v33 = vadd.f32 %v9202_v12, %v12560_v62  ;;  %v9127_v46 = vpop.f32.mrf.mxu1  ;;  %v10544_v12 = vld [vmem:[%s10745_s19 + $0x9a0] ss:$108 sps:$4 sm:$0xff]  }
 0x32a   : > { %v12656_v47 = vadd.f32 %v9126_v17, %v12469_v26  ;;  %v9204_v29 = vpop.f32.mrf.mxu0 }
 0x32b   : > { %v9128_v50 = vpop.f32.mrf.mxu1  ;;  %v9205_v39 = vadd.f32 %v9204_v29, %v9203_v36 }
 0x32c   : > { %v9129_v13 = vadd.f32 %v9128_v50, %v9127_v46  ;;  %v9206_v32 = vpop.f32.mrf.mxu0  ;;  %6878 = vmatmul.mubr.bf16.gmra.mxu0 %v10537_v55  ;;  %v10552_v55 = vld [vmem:[%s10745_s19 + $0xa7c] ss:$108 sps:$4 sm:$0xff]  }
 0x32d   : > { %v12660_v44 = vadd.f32 %v9205_v39, %v12567_v30  ;;  %v9130_v62 = vpop.f32.mrf.mxu1  ;;  %6959 = vmatmul.mubr.bf16.vlgmr.msra.gmra.mxu1 %v10540_v15  ;;  %6885 = vmatprep.mubr.bf16.mxu0 %v10546_v16  ;;  %v10547_v30 = vld [vmem:[%s10745_s19 + $0x138] ss:$108 sps:$4 sm:$0xff]   ;;  %v10555_v16 = vld [vmem:[%s10745_s19 + $0x214] ss:$108 sps:$4 sm:$0xff]  }
 0x32e   : > { %v12663_v26 = vadd.f32 %v9129_v13, %v12481_v9  ;;  %v9207_v24 = vpop.f32.mrf.mxu0  ;;  %6966 = vmatprep.mubr.bf16.mxu1 %v10549_v40 }
 0x32f   : > { %v9131_v23 = vpop.f32.mrf.mxu1  ;;  %v9208_v56 = vadd.f32 %v9207_v24, %v9206_v32 }
 0x330   : > { %v9132_v10 = vadd.f32 %v9131_v23, %v9130_v62  ;;  %v9209_v34 = vpop.f32.mrf.mxu0 }
 0x331   : > { %v12667_v17 = vadd.f32 %v9208_v56, %v12576_v27  ;;  %v9133_v36 = vpop.f32.mrf.mxu1  ;;  %v10550_v56 = vld [vmem:[%s10745_s19 + $0xa78] ss:$108 sps:$4 sm:$0xff]  }
 0x332   : > { %v12672_v46 = vadd.f32 %v9132_v10, %v12492_v4  ;;  %v9210_v15 = vpop.f32.mrf.mxu0 }
 0x333   : > { %v9134_v9 = vpop.f32.mrf.mxu1  ;;  %v9211_v29 = vadd.f32 %v9210_v15, %v9209_v34 }
 0x334   : > { %v9135_v40 = vadd.f32 %v9134_v9, %v9133_v36  ;;  %v9212_v50 = vpop.f32.mrf.mxu0  ;;  %6886 = vmatmul.mubr.bf16.gmra.mxu0 %v10544_v12  ;;  %v10559_v12 = vld [vmem:[%s10745_s19 + $0xb54] ss:$108 sps:$4 sm:$0xff]  }
 0x335   : > { %v12676_v39 = vadd.f32 %v9211_v29, %v12583_v60  ;;  %v9136_v27 = vpop.f32.mrf.mxu1  ;;  %6967 = vmatmul.mubr.bf16.gmra.mxu1 %v10547_v30  ;;  %6893 = vmatprep.mubr.bf16.mxu0 %v10552_v55  ;;  %v10553_v60 = vld [vmem:[%s10745_s19 + $0x210] ss:$108 sps:$4 sm:$0xff]   ;;  %v10562_v55 = vld [vmem:[%s10745_s19 + $0x2ec] ss:$108 sps:$4 sm:$0xff]  }
 0x336   : > { %v12679_v4 = vadd.f32 %v9135_v40, %v12504_v42  ;;  %v9213_v13 = vpop.f32.mrf.mxu0  ;;  %6974 = vmatprep.mubr.bf16.mxu1 %v10555_v16 }
 0x337   : > { %v9137_v32 = vpop.f32.mrf.mxu1  ;;  %v9214_v62 = vadd.f32 %v9213_v13, %v9212_v50 }
 0x338   : > { %v9138_v24 = vadd.f32 %v9137_v32, %v9136_v27  ;;  %v9215_v23 = vpop.f32.mrf.mxu0 }
 0x339   : > { %v12683_v10 = vadd.f32 %v9214_v62, %v12592_v31  ;;  %v9139_v34 = vpop.f32.mrf.mxu1  ;;  %v10557_v62 = vld [vmem:[%s10745_s19 + $0xb50] ss:$108 sps:$4 sm:$0xff]  }
 0x33a   : > { %v12688_v36 = vadd.f32 %v9138_v24, %v12514_v57  ;;  %v9216_v30 = vpop.f32.mrf.mxu0 }
 0x33b   : > { %v9140_v42 = vpop.f32.mrf.mxu1  ;;  %v9217_v15 = vadd.f32 %v9216_v30, %v9215_v23 }
 0x33c   : > { %v9141_v16 = vadd.f32 %v9140_v42, %v9139_v34  ;;  %v9218_v9 = vpop.f32.mrf.mxu0  ;;  %6894 = vmatmul.mubr.bf16.gmra.mxu0 %v10550_v56  ;;  %v10565_v56 = vld [vmem:[%s10745_s19 + $0xc2c] ss:$108 sps:$4 sm:$0xff]  }
 0x33d   : > { %v12692_v29 = vadd.f32 %v9217_v15, %v12599_v35  ;;  %v9142_v31 = vpop.f32.mrf.mxu1  ;;  %6975 = vmatmul.mubr.bf16.gmra.mxu1 %v10553_v60  ;;  %6901 = vmatprep.mubr.bf16.mxu0 %v10559_v12  ;;  %v10560_v35 = vld [vmem:[%s10745_s19 + $0x2e8] ss:$108 sps:$4 sm:$0xff]   ;;  %v10568_v12 = vld [vmem:[%s10745_s19 + $0x3c4] ss:$108 sps:$4 sm:$0xff]  }
 0x33e   : > { %v12695_v57 = vadd.f32 %v9141_v16, %v12526_v54  ;;  %v9219_v40 = vpop.f32.mrf.mxu0  ;;  %6982 = vmatprep.mubr.bf16.mxu1 %v10562_v55 }
 0x33f   : > { %v9143_v50 = vpop.f32.mrf.mxu1  ;;  %v9220_v27 = vadd.f32 %v9219_v40, %v9218_v9 }
 0x340   : > { %v9144_v13 = vadd.f32 %v9143_v50, %v9142_v31  ;;  %v9221_v32 = vpop.f32.mrf.mxu0 }
 0x341   : > { %v12699_v24 = vadd.f32 %v9220_v27, %v12608_v52  ;;  %v9145_v23 = vpop.f32.mrf.mxu1  ;;  %v10563_v27 = vld [vmem:[%s10745_s19 + $0xc28] ss:$108 sps:$4 sm:$0xff]  }
 0x342   : > { %v12704_v34 = vadd.f32 %v9144_v13, %v12536_v49  ;;  %v9222_v60 = vpop.f32.mrf.mxu0 }
 0x343   : > { %v9146_v54 = vpop.f32.mrf.mxu1  ;;  %v9223_v30 = vadd.f32 %v9222_v60, %v9221_v32 }
 0x344   : > { %v9147_v55 = vadd.f32 %v9146_v54, %v9145_v23  ;;  %v9224_v42 = vpop.f32.mrf.mxu0  ;;  %6902 = vmatmul.mubr.bf16.gmra.mxu0 %v10557_v62  ;;  %v10572_v62 = vld [vmem:[%s10745_s19 + $0xd04] ss:$108 sps:$4 sm:$0xff]  }
 0x345   : > { %v12708_v15 = vadd.f32 %v9223_v30, %v12615_v38  ;;  %v9148_v52 = vpop.f32.mrf.mxu1  ;;  %6983 = vmatmul.mubr.bf16.gmra.mxu1 %v10560_v35  ;;  %6909 = vmatprep.mubr.bf16.mxu0 %v10565_v56  ;;  %v10566_v38 = vld [vmem:[%s10745_s19 + $0x3c0] ss:$108 sps:$4 sm:$0xff]   ;;  %v10575_v56 = vld [vmem:[%s10745_s19 + $0x49c] ss:$108 sps:$4 sm:$0xff]  }
 0x346   : > { %v12711_v49 = vadd.f32 %v9147_v55, %v12548_v0  ;;  %v9225_v16 = vpop.f32.mrf.mxu0  ;;  %6990 = vmatprep.mubr.bf16.mxu1 %v10568_v12 }
 0x347   : > { %v9149_v9 = vpop.f32.mrf.mxu1  ;;  %v9226_v31 = vadd.f32 %v9225_v16, %v9224_v42 }
 0x348   : > { %v9150_v40 = vadd.f32 %v9149_v9, %v9148_v52  ;;  %v9227_v50 = vpop.f32.mrf.mxu0 }
 0x349   : > { %v12715_v13 = vadd.f32 %v9226_v31, %v12624_v25  ;;  %v9151_v32 = vpop.f32.mrf.mxu1  ;;  %v10570_v31 = vld [vmem:[%s10745_s19 + $0xd00] ss:$108 sps:$4 sm:$0xff]  }
 0x34a   : > { %v12720_v23 = vadd.f32 %v9150_v40, %v12555_v37  ;;  %v9228_v35 = vpop.f32.mrf.mxu0 }
 0x34b   : > { %v9152_v0 = vpop.f32.mrf.mxu1  ;;  %v9229_v60 = vadd.f32 %v9228_v35, %v9227_v50 }
 0x34c   : > { %v9153_v12 = vadd.f32 %v9152_v0, %v9151_v32  ;;  %v9230_v54 = vpop.f32.mrf.mxu0  ;;  %6910 = vmatmul.mubr.bf16.gmra.mxu0 %v10563_v27  ;;  %v10580_v27 = vld [vmem:[%s10745_s19 + $0x68] ss:$108 sps:$4 sm:$0xff]  }
 0x34d   : > { %v12724_v30 = vadd.f32 %v9229_v60, %v12631_v1  ;;  %v9154_v25 = vpop.f32.mrf.mxu1  ;;  %6991 = vmatmul.mubr.bf16.gmra.mxu1 %v10566_v38  ;;  %6917 = vmatprep.mubr.bf16.mxu0 %v10572_v62  ;;  %v10573_v1 = vld [vmem:[%s10745_s19 + $0x498] ss:$108 sps:$4 sm:$0xff]   ;;  %v10579_v62 = vld [vmem:[%s10745_s19 + $0x574] ss:$108 sps:$4 sm:$0xff]  }
 0x34e   : > { %v12727_v37 = vadd.f32 %v9153_v12, %v12564_v21  ;;  %v9231_v55 = vpop.f32.mrf.mxu0  ;;  %6998 = vmatprep.mubr.bf16.mxu1 %v10575_v56 }
 0x34f   : > { %v9155_v42 = vpop.f32.mrf.mxu1  ;;  %v9232_v52 = vadd.f32 %v9231_v55, %v9230_v54 }
 0x350   : > { %v9156_v16 = vadd.f32 %v9155_v42, %v9154_v25  ;;  %v9233_v9 = vpop.f32.mrf.mxu0 }
 0x351   : > { %v12731_v40 = vadd.f32 %v9232_v52, %v12640_v51  ;;  %v9157_v50 = vpop.f32.mrf.mxu1  ;;  %v10581_v52 = vld [vmem:[%s10745_s19 + $0x140] ss:$108 sps:$4 sm:$0xff]  }
 0x352   : > { %v12736_v32 = vadd.f32 %v9156_v16, %v12571_v48  ;;  %v9234_v38 = vpop.f32.mrf.mxu0 }
 0x353   : > { %v9158_v21 = vpop.f32.mrf.mxu1  ;;  %v9235_v35 = vadd.f32 %v9234_v38, %v9233_v9 }
 0x354   : > { %v9159_v56 = vadd.f32 %v9158_v21, %v9157_v50  ;;  %v9236_v0 = vpop.f32.mrf.mxu0  ;;  %6918 = vmatmul.mubr.bf16.gmra.mxu0 %v10570_v31  ;;  %v10585_v31 = vld [vmem:[%s10745_s19 + $0x218] ss:$108 sps:$4 sm:$0xff]  }
 0x355   : > { %v12740_v60 = vadd.f32 %v9235_v35, %v12647_v53  ;;  %v9160_v51 = vpop.f32.mrf.mxu1  ;;  %6999 = vmatmul.mubr.bf16.gmra.mxu1 %v10573_v1  ;;  %9706 = vmatprep.mubr.bf16.mxu0 %v10580_v27  ;;  %v10577_v53 = vld [vmem:[%s10745_s19 + $0x570] ss:$108 sps:$4 sm:$0xff]   ;;  %v10584_v27 = vld [vmem:[%s10745_s19 + $0x64c] ss:$108 sps:$4 sm:$0xff]  }
 0x356   : > { %v12743_v48 = vadd.f32 %v9159_v56, %v12580_v41  ;;  %v9237_v12 = vpop.f32.mrf.mxu0  ;;  %7006 = vmatprep.mubr.bf16.mxu1 %v10579_v62 }
 0x357   : > { %v9161_v54 = vpop.f32.mrf.mxu1  ;;  %v9238_v25 = vadd.f32 %v9237_v12, %v9236_v0 }
 0x358   : > { %v9162_v55 = vadd.f32 %v9161_v54, %v9160_v51  ;;  %v9239_v42 = vpop.f32.mrf.mxu0 }
 0x359   : > { %v12747_v16 = vadd.f32 %v9238_v25, %v12656_v47  ;;  %v9163_v9 = vpop.f32.mrf.mxu1  ;;  %v10586_v25 = vld [vmem:[%s10745_s19 + $0x2f0] ss:$108 sps:$4 sm:$0xff]  }
 0x35a   : > { %v12752_v50 = vadd.f32 %v9162_v55, %v12587_v5  ;;  %v9240_v1 = vpop.f32.mrf.mxu0 }
 0x35b   : > { %v9164_v41 = vpop.f32.mrf.mxu1  ;;  %v9241_v38 = vadd.f32 %v9240_v1, %v9239_v42 }
 0x35c   : > { %v9165_v62 = vadd.f32 %v9164_v41, %v9163_v9  ;;  %v9242_v21 = vpop.f32.mrf.mxu0  ;;  %9707 = vmatmul.mubr.bf16.vlgmr.msra.gmra.mxu0 %v10581_v52  ;;  %v10590_v52 = vld [vmem:[%s10745_s19 + $0x3c8] ss:$108 sps:$4 sm:$0xff]  }
 0x35d   : > { %v12756_v35 = vadd.f32 %v9241_v38, %v12663_v26  ;;  %v9166_v47 = vpop.f32.mrf.mxu1  ;;  %7007 = vmatmul.mubr.bf16.gmra.mxu1 %v10577_v53  ;;  %9710 = vmatprep.mubr.bf16.mxu0 %v10585_v31  ;;  %v10582_v26 = vld [vmem:[%s10745_s19 + $0x648] ss:$108 sps:$4 sm:$0xff]   ;;  %v10589_v31 = vld [vmem:[%s10745_s19 + $0x724] ss:$108 sps:$4 sm:$0xff]  }
 0x35e   : > { %v12759_v5 = vadd.f32 %v9165_v62, %v12596_v3  ;;  %v9243_v56 = vpop.f32.mrf.mxu0  ;;  %7014 = vmatprep.mubr.bf16.mxu1 %v10584_v27 }
 0x35f   : > { %v9167_v0 = vpop.f32.mrf.mxu1  ;;  %v9244_v51 = vadd.f32 %v9243_v56, %v9242_v21 }
 0x360   : > { %v9168_v12 = vadd.f32 %v9167_v0, %v9166_v47  ;;  %v9245_v54 = vpop.f32.mrf.mxu0 }
 0x361   : > { %v12763_v55 = vadd.f32 %v9244_v51, %v12672_v46  ;;  %v9169_v42 = vpop.f32.mrf.mxu1  ;;  %v10591_v51 = vld [vmem:[%s10745_s19 + $0x4a0] ss:$108 sps:$4 sm:$0xff]  }
 0x362   : > { %v12768_v9 = vadd.f32 %v9168_v12, %v12603_v19  ;;  %v9246_v53 = vpop.f32.mrf.mxu0 }
 0x363   : > { %v9170_v3 = vpop.f32.mrf.mxu1  ;;  %v9247_v1 = vadd.f32 %v9246_v53, %v9245_v54 }
 0x364   : > { %v9171_v27 = vadd.f32 %v9170_v3, %v9169_v42  ;;  %v9248_v41 = vpop.f32.mrf.mxu0  ;;  %9711 = vmatmul.mubr.bf16.gmra.mxu0 %v10586_v25  ;;  %v10595_v25 = vld [vmem:[%s10745_s19 + $0x578] ss:$108 sps:$4 sm:$0xff]  }
 0x365   : > { %v12772_v38 = vadd.f32 %v9247_v1, %v12679_v4  ;;  %v9172_v46 = vpop.f32.mrf.mxu1  ;;  %7015 = vmatmul.mubr.bf16.gmra.mxu1 %v10582_v26  ;;  %9714 = vmatprep.mubr.bf16.mxu0 %v10590_v52  ;;  %v10587_v4 = vld [vmem:[%s10745_s19 + $0x720] ss:$108 sps:$4 sm:$0xff]   ;;  %v10594_v52 = vld [vmem:[%s10745_s19 + $0x7fc] ss:$108 sps:$4 sm:$0xff]  }
 0x366   : > { %v12775_v19 = vadd.f32 %v9171_v27, %v12612_v45  ;;  %v9249_v62 = vpop.f32.mrf.mxu0  ;;  %7022 = vmatprep.mubr.bf16.mxu1 %v10589_v31 }
 0x367   : > { %v9173_v21 = vpop.f32.mrf.mxu1  ;;  %v9250_v47 = vadd.f32 %v9249_v62, %v9248_v41 }
 0x368   : > { %v9174_v56 = vadd.f32 %v9173_v21, %v9172_v46  ;;  %v9251_v0 = vpop.f32.mrf.mxu0 }
 0x369   : > { %v12779_v12 = vadd.f32 %v9250_v47, %v12688_v36  ;;  %v9175_v54 = vpop.f32.mrf.mxu1  ;;  %v10596_v47 = vld [vmem:[%s10745_s19 + $0x650] ss:$108 sps:$4 sm:$0xff]  }
 0x36a   : > { %v12784_v42 = vadd.f32 %v9174_v56, %v12619_v22  ;;  %v9252_v26 = vpop.f32.mrf.mxu0 }
 0x36b   : > { %v9176_v45 = vpop.f32.mrf.mxu1  ;;  %v9253_v53 = vadd.f32 %v9252_v26, %v9251_v0 }
 0x36c   : > { %v9177_v31 = vadd.f32 %v9176_v45, %v9175_v54  ;;  %v9254_v3 = vpop.f32.mrf.mxu0  ;;  %9715 = vmatmul.mubr.bf16.gmra.mxu0 %v10591_v51  ;;  %v10600_v51 = vld [vmem:[%s10745_s19 + $0x728] ss:$108 sps:$4 sm:$0xff]  }
 0x36d   : > { %v12788_v1 = vadd.f32 %v9253_v53, %v12695_v57  ;;  %v9306_v36 = vpop.f32.mrf.mxu1  ;;  %7023 = vmatmul.mubr.bf16.gmra.mxu1 %v10587_v4  ;;  %9718 = vmatprep.mubr.bf16.mxu0 %v10595_v25  ;;  %v10592_v57 = vld [vmem:[%s10745_s19 + $0x7f8] ss:$108 sps:$4 sm:$0xff]   ;;  %v10599_v25 = vld [vmem:[%s10745_s19 + $0x8d4] ss:$108 sps:$4 sm:$0xff]  }
 0x36e   : > { %v12791_v22 = vadd.f32 %v9177_v31, %v12628_v8  ;;  %v9255_v27 = vpop.f32.mrf.mxu0  ;;  %7030 = vmatprep.mubr.bf16.mxu1 %v10594_v52 }
 0x36f   : > { %v9256_v41 = vadd.f32 %v9255_v27, %v9254_v3  ;;  %v9307_v46 = vpop.f32.mrf.mxu1 }
 0x370   : > { %v9308_v62 = vadd.f32 %v9307_v46, %v9306_v36  ;;  %v9257_v21 = vpop.f32.mrf.mxu0  ;;  %v10601_v46 = vld [vmem:[%s10745_s19 + $0x800] ss:$108 sps:$4 sm:$0xff]  }
 0x371   : > { %v12795_v56 = vadd.f32 %v9256_v41, %v12704_v34  ;;  %v9309_v0 = vpop.f32.mrf.mxu1 }
 0x372   : > { %v12800_v54 = vadd.f32 %v9308_v62, %v12635_v61  ;;  %v9258_v4 = vpop.f32.mrf.mxu0 }
 0x373   : > { %v9259_v8 = vadd.f32 %v9258_v4, %v9257_v21  ;;  %v9310_v26 = vpop.f32.mrf.mxu1 }
 0x374   : > { %v9311_v52 = vadd.f32 %v9310_v26, %v9309_v0  ;;  %v9260_v45 = vpop.f32.mrf.mxu0  ;;  %9719 = vmatmul.mubr.bf16.gmra.mxu0 %v10596_v47  ;;  %v10605_v47 = vld [vmem:[%s10745_s19 + $0x8d8] ss:$108 sps:$4 sm:$0xff]  }
 0x375   : > { %v12804_v53 = vadd.f32 %v9259_v8, %v12711_v49  ;;  %v9312_v34 = vpop.f32.mrf.mxu1  ;;  %7031 = vmatmul.mubr.bf16.gmra.mxu1 %v10592_v57  ;;  %9722 = vmatprep.mubr.bf16.mxu0 %v10600_v51  ;;  %v10597_v49 = vld [vmem:[%s10745_s19 + $0x8d0] ss:$108 sps:$4 sm:$0xff]   ;;  %v10604_v51 = vld [vmem:[%s10745_s19 + $0x9ac] ss:$108 sps:$4 sm:$0xff]  }
 0x376   : > { %v12807_v61 = vadd.f32 %v9311_v52, %v12644_v43  ;;  %v9261_v31 = vpop.f32.mrf.mxu0  ;;  %7038 = vmatprep.mubr.bf16.mxu1 %v10599_v25 }
 0x377   : > { %v9262_v3 = vadd.f32 %v9261_v31, %v9260_v45  ;;  %v9313_v36 = vpop.f32.mrf.mxu1 }
 0x378   : > { %v9314_v27 = vadd.f32 %v9313_v36, %v9312_v34  ;;  %v9263_v41 = vpop.f32.mrf.mxu0  ;;  %v10606_v36 = vld [vmem:[%s10745_s19 + $0x9b0] ss:$108 sps:$4 sm:$0xff]  }
 0x379   : > { %v12811_v62 = vadd.f32 %v9262_v3, %v12720_v23  ;;  %v9315_v21 = vpop.f32.mrf.mxu1 }
 0x37a   : > { %v12816_v0 = vadd.f32 %v9314_v27, %v12651_v33  ;;  %v9264_v57 = vpop.f32.mrf.mxu0 }
 0x37b   : > { %v9265_v43 = vadd.f32 %v9264_v57, %v9263_v41  ;;  %v9316_v4 = vpop.f32.mrf.mxu1 }
 0x37c   : > { %v9317_v25 = vadd.f32 %v9316_v4, %v9315_v21  ;;  %v9266_v8 = vpop.f32.mrf.mxu0  ;;  %9723 = vmatmul.mubr.bf16.gmra.mxu0 %v10601_v46  ;;  %v10610_v46 = vld [vmem:[%s10745_s19 + $0xa88] ss:$108 sps:$4 sm:$0xff]  }
 0x37d   : > { %v12820_v26 = vadd.f32 %v9265_v43, %v12727_v37  ;;  %v9318_v23 = vpop.f32.mrf.mxu1  ;;  %7039 = vmatmul.mubr.bf16.gmra.mxu1 %v10597_v49  ;;  %9726 = vmatprep.mubr.bf16.mxu0 %v10605_v47  ;;  %v10602_v37 = vld [vmem:[%s10745_s19 + $0x9a8] ss:$108 sps:$4 sm:$0xff]   ;;  %v10609_v47 = vld [vmem:[%s10745_s19 + $0xa84] ss:$108 sps:$4 sm:$0xff]  }
 0x37e   : > { %v12823_v33 = vadd.f32 %v9317_v25, %v12660_v44  ;;  %v9267_v52 = vpop.f32.mrf.mxu0  ;;  %7046 = vmatprep.mubr.bf16.mxu1 %v10604_v51 }
 0x37f   : > { %v9268_v45 = vadd.f32 %v9267_v52, %v9266_v8  ;;  %v9319_v34 = vpop.f32.mrf.mxu1 }
 0x380   : > { %v9320_v31 = vadd.f32 %v9319_v34, %v9318_v23  ;;  %v9269_v3 = vpop.f32.mrf.mxu0  ;;  %v10611_v34 = vld [vmem:[%s10745_s19 + $0xb60] ss:$108 sps:$4 sm:$0xff]  }
 0x381   : > { %v12827_v27 = vadd.f32 %v9268_v45, %v12736_v32  ;;  %v9321_v41 = vpop.f32.mrf.mxu1 }
 0x382   : > { %v12832_v21 = vadd.f32 %v9320_v31, %v12667_v17  ;;  %v9270_v49 = vpop.f32.mrf.mxu0 }
 0x383   : > { %v9271_v44 = vadd.f32 %v9270_v49, %v9269_v3  ;;  %v9322_v57 = vpop.f32.mrf.mxu1 }
 0x384   : > { %v9323_v51 = vadd.f32 %v9322_v57, %v9321_v41  ;;  %v9272_v43 = vpop.f32.mrf.mxu0  ;;  %9727 = vmatmul.mubr.bf16.gmra.mxu0 %v10606_v36  ;;  %v10618_v36 = vld [vmem:[%s10745_s19 + $0xc38] ss:$108 sps:$4 sm:$0xff]  }
 0x385   : > { %v12836_v4 = vadd.f32 %v9271_v44, %v12743_v48  ;;  %v9324_v32 = vpop.f32.mrf.mxu1  ;;  %7047 = vmatmul.mubr.bf16.gmra.mxu1 %v10602_v37  ;;  %9730 = vmatprep.mubr.bf16.mxu0 %v10610_v46  ;;  %v10607_v48 = vld [vmem:[%s10745_s19 + $0xa80] ss:$108 sps:$4 sm:$0xff]   ;;  %v10614_v46 = vld [vmem:[%s10745_s19 + $0xb5c] ss:$108 sps:$4 sm:$0xff]  }
 0x386   : > { %v12839_v17 = vadd.f32 %v9323_v51, %v12676_v39  ;;  %v9273_v25 = vpop.f32.mrf.mxu0  ;;  %7054 = vmatprep.mubr.bf16.mxu1 %v10609_v47 }
 0x387   : > { %v9274_v8 = vadd.f32 %v9273_v25, %v9272_v43  ;;  %v9325_v23 = vpop.f32.mrf.mxu1 }
 0x388   : > { %v9326_v52 = vadd.f32 %v9325_v23, %v9324_v32  ;;  %v9275_v45 = vpop.f32.mrf.mxu0  ;;  %v10619_v23 = vld [vmem:[%s10745_s19 + $0xd10] ss:$108 sps:$4 sm:$0xff]  }
 0x389   : > { %v12843_v31 = vadd.f32 %v9274_v8, %v12752_v50  ;;  %v9327_v3 = vpop.f32.mrf.mxu1 }
 0x38a   : > { %v12848_v41 = vadd.f32 %v9326_v52, %v12683_v10  ;;  %v9276_v37 = vpop.f32.mrf.mxu0 }
 0x38b   : > { %v9277_v39 = vadd.f32 %v9276_v37, %v9275_v45  ;;  %v9328_v49 = vpop.f32.mrf.mxu1 }
 0x38c   : > { %v9329_v47 = vadd.f32 %v9328_v49, %v9327_v3  ;;  %v9278_v44 = vpop.f32.mrf.mxu0  ;;  %9731 = vmatmul.mubr.bf16.gmra.mxu0 %v10611_v34 }
 0x38d   : > { %v12852_v57 = vadd.f32 %v9277_v39, %v12759_v5  ;;  %v9330_v50 = vpop.f32.mrf.mxu1  ;;  %7055 = vmatmul.mubr.bf16.gmra.mxu1 %v10607_v48  ;;  %9734 = vmatprep.mubr.bf16.mxu0 %v10618_v36  ;;  %v10612_v5 = vld [vmem:[%s10745_s19 + $0xb58] ss:$108 sps:$4 sm:$0xff]   ;;  %v10617_v48 = vld [vmem:[%s10745_s19 + $0xc34] ss:$108 sps:$4 sm:$0xff]  }
 0x38e   : > { %v12855_v51 = vadd.f32 %v9329_v47, %v12692_v29  ;;  %v9279_v10 = vpop.f32.mrf.mxu0  ;;  %7062 = vmatprep.mubr.bf16.mxu1 %v10614_v46 }
 0x38f   : > { %v9280_v43 = vadd.f32 %v9279_v10, %v9278_v44  ;;  %v9331_v32 = vpop.f32.mrf.mxu1 }
 0x390   : > { %v9332_v25 = vadd.f32 %v9331_v32, %v9330_v50  ;;  %v9281_v8 = vpop.f32.mrf.mxu0 }
 0x391   : > { %v12859_v52 = vadd.f32 %v9280_v43, %v12768_v9  ;;  %v9333_v45 = vpop.f32.mrf.mxu1 }
 0x392   : > { %v12863_v34 = vadd.f32 %v9332_v25, %v12699_v24  ;;  %v9282_v3 = vpop.f32.mrf.mxu0  ;;  %v10615_v25 = vld [vmem:[%s10745_s19 + $0xc30] ss:$108 sps:$4 sm:$0xff]  }
 0x393   : > { %v9283_v36 = vadd.f32 %v9282_v3, %v9281_v8  ;;  %v9334_v29 = vpop.f32.mrf.mxu1 }
 0x394   : > { %v9335_v37 = vadd.f32 %v9334_v29, %v9333_v45  ;;  %v9284_v46 = vpop.f32.mrf.mxu0  ;;  %9735 = vmatmul.mubr.bf16.gmra.mxu0 %v10619_v23  ;;  %v10622_v23 = vld [vmem:[%s10745_s19 + $0xd0c] ss:$108 sps:$4 sm:$0xff]  }
 0x395   : > { %v12867_v39 = vadd.f32 %v9283_v36, %v12775_v19  ;;  %v9336_v49 = vpop.f32.mrf.mxu1  ;;  %7063 = vmatmul.mubr.bf16.gmra.mxu1 %v10612_v5 }
 0x396   : > { %v12870_v9 = vadd.f32 %v9335_v37, %v12708_v15  ;;  %v9285_v47 = vpop.f32.mrf.mxu0  ;;  %7070 = vmatprep.mubr.bf16.mxu1 %v10617_v48 }
 0x397   : > { %v9286_v24 = vadd.f32 %v9285_v47, %v9284_v46  ;;  %v9337_v44 = vpop.f32.mrf.mxu1 }
 0x398   : > { %v9338_v50 = vadd.f32 %v9337_v44, %v9336_v49  ;;  %v9287_v10 = vpop.f32.mrf.mxu0  ;;  %v10620_v44 = vld [vmem:[%s10745_s19 + $0xd08] ss:$108 sps:$4 sm:$0xff]  }
 0x399   : > { %v12873_v43 = vadd.f32 %v9286_v24, %v12784_v42  ;;  %v9339_v32 = vpop.f32.mrf.mxu1 }
 0x39a   : > { %v12877_v8 = vadd.f32 %v9338_v50, %v12715_v13  ;;  %v9288_v19 = vpop.f32.mrf.mxu0 }
 0x39b   : > { %v9289_v45 = vadd.f32 %v9288_v19, %v9287_v10  ;;  %v9340_v15 = vpop.f32.mrf.mxu1 }
 0x39c   : > { %v9341_v5 = vadd.f32 %v9340_v15, %v9339_v32  ;;  %v9418_v3 = vpop.f32.mrf.mxu0 }
 0x39d   : > { %v12881_v48 = vadd.f32 %v9289_v45, %v12791_v22  ;;  %v9342_v36 = vpop.f32.mrf.mxu1  ;;  %7071 = vmatmul.mubr.bf16.gmra.mxu1 %v10615_v25 }
 0x39e   : > { %v12884_v42 = vadd.f32 %v9341_v5, %v12724_v30  ;;  %v9419_v29 = vpop.f32.mrf.mxu0  ;;  %7078 = vmatprep.mubr.bf16.mxu1 %v10622_v23 }
 0x39f   : > { %v9343_v37 = vpop.f32.mrf.mxu1  ;;  %v9420_v13 = vadd.f32 %v9419_v29, %v9418_v3 }
 0x3a0   : > { %v9344_v46 = vadd.f32 %v9343_v37, %v9342_v36  ;;  %v9421_v49 = vpop.f32.mrf.mxu0 }
 0x3a1   : > { %v12887_v47 = vadd.f32 %v9420_v13, %v12800_v54  ;;  %v9345_v24 = vpop.f32.mrf.mxu1 }
 0x3a2   : > { %v12891_v50 = vadd.f32 %v9344_v46, %v12731_v40  ;;  %v9422_v22 = vpop.f32.mrf.mxu0 }
 0x3a3   : > { %v9346_v10 = vpop.f32.mrf.mxu1  ;;  %v9423_v32 = vadd.f32 %v9422_v22, %v9421_v49 }
 0x3a4   : > { %v9347_v25 = vadd.f32 %v9346_v10, %v9345_v24  ;;  %v9424_v30 = vpop.f32.mrf.mxu0 }
 0x3a5   : > { %v12894_v19 = vadd.f32 %v9423_v32, %v12807_v61  ;;  %v9348_v23 = vpop.f32.mrf.mxu1  ;;  %7079 = vmatmul.mubr.bf16.gmra.mxu1 %v10620_v44 }
 0x3a6   : > { %v12897_v45 = vadd.f32 %v9347_v25, %v12740_v60  ;;  %v9425_v54 = vpop.f32.mrf.mxu0 }
 0x3a7   : > { %v9349_v15 = vpop.f32.mrf.mxu1  ;;  %v9426_v5 = vadd.f32 %v9425_v54, %v9424_v30 }
 0x3a8   : > { %v9350_v3 = vadd.f32 %v9349_v15, %v9348_v23  ;;  %v9427_v36 = vpop.f32.mrf.mxu0 }
 0x3a9   : > { %v12900_v40 = vadd.f32 %v9426_v5, %v12816_v0  ;;  %v9351_v29 = vpop.f32.mrf.mxu1 }
 0x3aa   : > { %v12903_v37 = vadd.f32 %v9350_v3, %v12747_v16  ;;  %v9428_v13 = vpop.f32.mrf.mxu0 }
 0x3ab   : > { %v9352_v61 = vpop.f32.mrf.mxu1  ;;  %v9429_v46 = vadd.f32 %v9428_v13, %v9427_v36 }
 0x3ac   : > { %v9353_v49 = vadd.f32 %v9352_v61, %v9351_v29  ;;  %v9430_v24 = vpop.f32.mrf.mxu0 }
 0x3ad   : > { %v12906_v60 = vadd.f32 %v9429_v46, %v12823_v33  ;;  %v9354_v44 = vpop.f32.mrf.mxu1 }
 0x3ae   : > { %v12909_v22 = vadd.f32 %v9353_v49, %v12756_v35  ;;  %v9431_v10 = vpop.f32.mrf.mxu0 }
 0x3af   : > { %v9355_v32 = vpop.f32.mrf.mxu1  ;;  %v9432_v0 = vadd.f32 %v9431_v10, %v9430_v24 }
 0x3b0   : > { %v9356_v25 = vadd.f32 %v9355_v32, %v9354_v44  ;;  %v9433_v30 = vpop.f32.mrf.mxu0 }
 0x3b1   : > { %v12912_v16 = vadd.f32 %v9432_v0, %v12832_v21  ;;  %v9357_v23 = vpop.f32.mrf.mxu1 }
 0x3b2   : > { %v12915_v54 = vadd.f32 %v9356_v25, %v12763_v55  ;;  %v9434_v15 = vpop.f32.mrf.mxu0 }
 0x3b3   : > { %v9358_v5 = vpop.f32.mrf.mxu1  ;;  %v9435_v33 = vadd.f32 %v9434_v15, %v9433_v30 }
 0x3b4   : > { %v9359_v3 = vadd.f32 %v9358_v5, %v9357_v23  ;;  %v9436_v36 = vpop.f32.mrf.mxu0 }
 0x3b5   : > { %v12918_v35 = vadd.f32 %v9435_v33, %v12839_v17  ;;  %v9360_v29 = vpop.f32.mrf.mxu1 }
 0x3b6   : > { %v12921_v13 = vadd.f32 %v9359_v3, %v12772_v38  ;;  %v9437_v61 = vpop.f32.mrf.mxu0 }
 0x3b7   : > { %v9361_v46 = vpop.f32.mrf.mxu1  ;;  %v9438_v21 = vadd.f32 %v9437_v61, %v9436_v36 }
 0x3b8   : > { %v9362_v49 = vadd.f32 %v9361_v46, %v9360_v29  ;;  %v9439_v24 = vpop.f32.mrf.mxu0 }
 0x3b9   : > { %v12924_v55 = vadd.f32 %v9438_v21, %v12848_v41  ;;  %v9363_v44 = vpop.f32.mrf.mxu1 }
 0x3ba   : > { %v12927_v10 = vadd.f32 %v9362_v49, %v12779_v12  ;;  %v9440_v32 = vpop.f32.mrf.mxu0 }
 0x3bb   : > { %v9364_v0 = vpop.f32.mrf.mxu1  ;;  %v9441_v17 = vadd.f32 %v9440_v32, %v9439_v24 }
 0x3bc   : > { %v9365_v25 = vadd.f32 %v9364_v0, %v9363_v44  ;;  %v9442_v30 = vpop.f32.mrf.mxu0 }
 0x3bd   : > { %v12930_v38 = vadd.f32 %v9441_v17, %v12855_v51  ;;  %v9366_v23 = vpop.f32.mrf.mxu1 }
 0x3be   : > { %v12933_v15 = vadd.f32 %v9365_v25, %v12788_v1  ;;  %v9443_v5 = vpop.f32.mrf.mxu0 }
 0x3bf   : > { %v9367_v33 = vpop.f32.mrf.mxu1  ;;  %v9444_v41 = vadd.f32 %v9443_v5, %v9442_v30 }
 0x3c0   : > { %v9368_v3 = vadd.f32 %v9367_v33, %v9366_v23  ;;  %v9445_v36 = vpop.f32.mrf.mxu0 }
 0x3c1   : > { %v12936_v12 = vadd.f32 %v9444_v41, %v12863_v34  ;;  %v9369_v29 = vpop.f32.mrf.mxu1 }
 0x3c2   : > { %v12939_v61 = vadd.f32 %v9368_v3, %v12795_v56  ;;  %v9446_v46 = vpop.f32.mrf.mxu0 }
 0x3c3   : > { %v9370_v21 = vpop.f32.mrf.mxu1  ;;  %v9447_v51 = vadd.f32 %v9446_v46, %v9445_v36 }
 0x3c4   : > { %v9371_v49 = vadd.f32 %v9370_v21, %v9369_v29  ;;  %v9448_v24 = vpop.f32.mrf.mxu0 }
 0x3c5   : > { %v12942_v1 = vadd.f32 %v9447_v51, %v12870_v9  ;;  %v9372_v44 = vpop.f32.mrf.mxu1 }
 0x3c6   : > { %v12945_v32 = vadd.f32 %v9371_v49, %v12804_v53  ;;  %v9449_v0 = vpop.f32.mrf.mxu0 }
 0x3c7   : > { %v9373_v17 = vpop.f32.mrf.mxu1  ;;  %v9450_v34 = vadd.f32 %v9449_v0, %v9448_v24 }
 0x3c8   : > { %v9374_v25 = vadd.f32 %v9373_v17, %v9372_v44  ;;  %v9451_v30 = vpop.f32.mrf.mxu0 }
 0x3c9   : > { %v12948_v56 = vadd.f32 %v9450_v34, %v12877_v8  ;;  %v9375_v23 = vpop.f32.mrf.mxu1 }
 0x3ca   : > { %v12951_v5 = vadd.f32 %v9374_v25, %v12811_v62  ;;  %v9452_v33 = vpop.f32.mrf.mxu0 }
 0x3cb   : > { %v9376_v41 = vpop.f32.mrf.mxu1  ;;  %v9453_v9 = vadd.f32 %v9452_v33, %v9451_v30 }
 0x3cc   : > { %v9377_v3 = vadd.f32 %v9376_v41, %v9375_v23  ;;  %v9454_v36 = vpop.f32.mrf.mxu0 }
 0x3cd   : > { %v12954_v53 = vadd.f32 %v9453_v9, %v12884_v42  ;;  %v9378_v29 = vpop.f32.mrf.mxu1 }
 0x3ce   : > { %v12957_v46 = vadd.f32 %v9377_v3, %v12820_v26  ;;  %v9455_v21 = vpop.f32.mrf.mxu0 }
 0x3cf   : > { %v9379_v51 = vpop.f32.mrf.mxu1  ;;  %v9456_v8 = vadd.f32 %v9455_v21, %v9454_v36 }
 0x3d0   : > { %v9380_v49 = vadd.f32 %v9379_v51, %v9378_v29  ;;  %v9457_v24 = vpop.f32.mrf.mxu0 }
 0x3d1   : > { %v12960_v62 = vadd.f32 %v9456_v8, %v12891_v50  ;;  %v9381_v44 = vpop.f32.mrf.mxu1 }
 0x3d2   : > { %v12963_v0 = vadd.f32 %v9380_v49, %v12827_v27  ;;  %v9458_v17 = vpop.f32.mrf.mxu0 }
 0x3d3   : > { %v9382_v34 = vpop.f32.mrf.mxu1  ;;  %v9459_v42 = vadd.f32 %v9458_v17, %v9457_v24 }
 0x3d4   : > { %v9383_v25 = vadd.f32 %v9382_v34, %v9381_v44  ;;  %v9460_v30 = vpop.f32.mrf.mxu0 }
 0x3d5   : > { %v12966_v26 = vadd.f32 %v9459_v42, %v12897_v45  ;;  %v9384_v23 = vpop.f32.mrf.mxu1 }
 0x3d6   : > { %v12969_v33 = vadd.f32 %v9383_v25, %v12836_v4  ;;  %v9461_v41 = vpop.f32.mrf.mxu0 }
 0x3d7   : > { %13261 = vst [vmem:[#allocation23_spill] sm:$0xff] %v12966_v26  ;;  %v9385_v9 = vpop.f32.mrf.mxu1  ;;  %v9462_v50 = vadd.f32 %v9461_v41, %v9460_v30 }
 0x3d8   : > { %v9386_v3 = vadd.f32 %v9385_v9, %v9384_v23  ;;  %v9463_v36 = vpop.f32.mrf.mxu0 }
 0x3d9   : > { %v12972_v27 = vadd.f32 %v9462_v50, %v12903_v37  ;;  %v9387_v29 = vpop.f32.mrf.mxu1 }
 0x3da   : > { %v12975_v21 = vadd.f32 %v9386_v3, %v12843_v31  ;;  %v9464_v51 = vpop.f32.mrf.mxu0 }
 0x3db   : > { %v9388_v8 = vpop.f32.mrf.mxu1  ;;  %v9465_v45 = vadd.f32 %v9464_v51, %v9463_v36 }
 0x3dc   : > { %v9389_v49 = vadd.f32 %v9388_v8, %v9387_v29  ;;  %v9466_v24 = vpop.f32.mrf.mxu0 }
 0x3dd   : > { %v12978_v4 = vadd.f32 %v9465_v45, %v12909_v22  ;;  %v9390_v44 = vpop.f32.mrf.mxu1 }
 0x3de   : > { %v12981_v17 = vadd.f32 %v9389_v49, %v12852_v57  ;;  %v9467_v34 = vpop.f32.mrf.mxu0 }
 0x3df   : > { %v9391_v42 = vpop.f32.mrf.mxu1  ;;  %v9468_v37 = vadd.f32 %v9467_v34, %v9466_v24 }
 0x3e0   : > { %v9392_v25 = vadd.f32 %v9391_v42, %v9390_v44  ;;  %v9469_v30 = vpop.f32.mrf.mxu0 }
 0x3e1   : > { %v12984_v31 = vadd.f32 %v9468_v37, %v12915_v54  ;;  %v9393_v23 = vpop.f32.mrf.mxu1 }
 0x3e2   : > { %v12987_v41 = vadd.f32 %v9392_v25, %v12859_v52  ;;  %v9470_v9 = vpop.f32.mrf.mxu0 }
 0x3e3   : > { %13262 = vst [vmem:[#allocation24_spill] sm:$0xff] %v12984_v31  ;;  %v9394_v50 = vpop.f32.mrf.mxu1  ;;  %v9471_v22 = vadd.f32 %v9470_v9, %v9469_v30 }
 0x3e4   : > { %v9395_v3 = vadd.f32 %v9394_v50, %v9393_v23  ;;  %v9472_v36 = vpop.f32.mrf.mxu0 }
 0x3e5   : > { %v12990_v57 = vadd.f32 %v9471_v22, %v12921_v13  ;;  %v9396_v29 = vpop.f32.mrf.mxu1 }
 0x3e6   : > { %v12993_v51 = vadd.f32 %v9395_v3, %v12867_v39  ;;  %v9473_v8 = vpop.f32.mrf.mxu0 }
 0x3e7   : > { %13263 = vst [vmem:[#allocation25_spill] sm:$0xff] %v12990_v57  ;;  %v9397_v45 = vpop.f32.mrf.mxu1  ;;  %v9474_v54 = vadd.f32 %v9473_v8, %v9472_v36 }
 0x3e8   : > { %v9398_v49 = vadd.f32 %v9397_v45, %v9396_v29  ;;  %v9475_v24 = vpop.f32.mrf.mxu0 }
 0x3e9   : > { %v12996_v52 = vadd.f32 %v9474_v54, %v12927_v10  ;;  %v9399_v44 = vpop.f32.mrf.mxu1 }
 0x3ea   : > { %v12999_v34 = vadd.f32 %v9398_v49, %v12873_v43  ;;  %v9476_v42 = vpop.f32.mrf.mxu0 }
 0x3eb   : > { %13264 = vst [vmem:[#allocation26_spill] sm:$0xff] %v12996_v52  ;;  %v9400_v37 = vpop.f32.mrf.mxu1  ;;  %v9477_v13 = vadd.f32 %v9476_v42, %v9475_v24 }
 0x3ec   : > { %v9401_v25 = vadd.f32 %v9400_v37, %v9399_v44  ;;  %v9478_v30 = vpop.f32.mrf.mxu0 }
 0x3ed   : > { %v13002_v39 = vadd.f32 %v9477_v13, %v12933_v15  ;;  %v13004_v23 = vpop.f32.mrf.mxu1 }
 0x3ee   : > { %v13007_v9 = vadd.f32 %v9401_v25, %v12881_v48  ;;  %v9479_v50 = vpop.f32.mrf.mxu0 }
 0x3ef   : > { %13265 = vst [vmem:[#allocation27_spill] sm:$0xff] %v13002_v39  ;;  %v9480_v10 = vadd.f32 %v9479_v50, %v9478_v30  ;;  %v13009_v22 = vpop.f32.mrf.mxu1 }
 0x3f0   : > { %v9481_v3 = vpop.f32.mrf.mxu0 }
 0x3f1   : > { %v13012_v43 = vadd.f32 %v9480_v10, %v12939_v61  ;;  %v13014_v36 = vpop.f32.mrf.mxu1 }
 0x3f2   : > { %v9482_v29 = vpop.f32.mrf.mxu0 }
 0x3f3   : > { %13266 = vst [vmem:[#allocation28_spill] sm:$0xff] %v13012_v43  ;;  %v9483_v8 = vadd.f32 %v9482_v29, %v9481_v3  ;;  %v13016_v45 = vpop.f32.mrf.mxu1 }
 0x3f4   : > { %v9484_v15 = vpop.f32.mrf.mxu0 }
 0x3f5   : > { %v13019_v54 = vadd.f32 %v9483_v8, %v12945_v32  ;;  %v9536_v48 = vpop.f32.mrf.mxu1 }
 0x3f6   : > { %v9485_v49 = vpop.f32.mrf.mxu0 }
 0x3f7   : > { %13267 = vst [vmem:[#allocation29_spill] sm:$0xff] %v13019_v54  ;;  %v9486_v24 = vadd.f32 %v9485_v49, %v9484_v15  ;;  %v9537_v44 = vpop.f32.mrf.mxu1 }
 0x3f8   : > { %v9487_v42 = vpop.f32.mrf.mxu0  ;;  %v9538_v31 = vadd.f32 %v9537_v44, %v9536_v48  ;;  %v9535_v48 = vadd.f32 %v13016_v45, %v13014_v36 }
 0x3f9   : > { %v13022_v37 = vadd.f32 %v9486_v24, %v12951_v5  ;;  %v9539_v61 = vpop.f32.mrf.mxu1 }
 0x3fa   : > { %v9488_v13 = vpop.f32.mrf.mxu0 }
 0x3fb   : > { %13268 = vst [vmem:[#allocation30_spill] sm:$0xff] %v13022_v37  ;;  %v9489_v25 = vadd.f32 %v9488_v13, %v9487_v42  ;;  %v9540_v30 = vpop.f32.mrf.mxu1 }
 0x3fc   : > { %v9490_v50 = vpop.f32.mrf.mxu0 }
 0x3fd   : > { %v13025_v10 = vadd.f32 %v9489_v25, %v12957_v46  ;;  %v13027_v3 = vpop.f32.mrf.mxu1 }
 0x3fe   : > { %v9491_v32 = vpop.f32.mrf.mxu0 }
 0x3ff   : > { %13269 = vst [vmem:[#allocation31_spill] sm:$0xff] %v13025_v10  ;;  %v9492_v29 = vadd.f32 %v9491_v32, %v9490_v50  ;;  %v9543_v8 = vpop.f32.mrf.mxu1 }
 0x400   : > { %v9493_v54 = vpop.f32.mrf.mxu0 }
 0x401   : > { %v13030_v15 = vadd.f32 %v9492_v29, %v12963_v0  ;;  %v13032_v49 = vpop.f32.mrf.mxu1 }
 0x402   : > { %v9494_v5 = vpop.f32.mrf.mxu0 }
 0x403   : > { %13270 = vst [vmem:[#allocation32_spill] sm:$0xff] %v13030_v15  ;;  %v9495_v24 = vadd.f32 %v9494_v5, %v9493_v54  ;;  %v13034_v37 = vpop.f32.mrf.mxu1 }
 0x404   : > { %v9496_v42 = vpop.f32.mrf.mxu0 }
 0x405   : > { %v13037_v13 = vadd.f32 %v9495_v24, %v12969_v33  ;;  %v9548_v46 = vpop.f32.mrf.mxu1 }
 0x406   : > { %v9497_v25 = vpop.f32.mrf.mxu0 }
 0x407   : > { %13271 = vst [vmem:[#allocation33_spill] sm:$0xff] %v13037_v13  ;;  %v9498_v10 = vadd.f32 %v9497_v25, %v9496_v42  ;;  %v9549_v43 = vpop.f32.mrf.mxu1 }
 0x408   : > { %v9499_v50 = vpop.f32.mrf.mxu0 }
 0x409   : > { %v13040_v32 = vadd.f32 %v9498_v10, %v12975_v21  ;;  %v9551_v0 = vpop.f32.mrf.mxu1 }
 0x40a   : > { %v9500_v29 = vpop.f32.mrf.mxu0 }
 0x40b   : > { %13272 = vst [vmem:[#allocation34_spill] sm:$0xff] %v13040_v32  ;;  %v9501_v15 = vadd.f32 %v9500_v29, %v9499_v50  ;;  %v9552_v57 = vpop.f32.mrf.mxu1 }
 0x40c   : > { %v9502_v39 = vpop.f32.mrf.mxu0 }
 0x40d   : > { %v13043_v54 = vadd.f32 %v9501_v15, %v12981_v17  ;;  %v13045_v5 = vpop.f32.mrf.mxu1 }
 0x40e   : > { %v9503_v33 = vpop.f32.mrf.mxu0 }
 0x40f   : > { %13273 = vst [vmem:[#allocation35_spill] sm:$0xff] %v13043_v54  ;;  %v9504_v24 = vadd.f32 %v9503_v33, %v9502_v39  ;;  %v13047_v13 = vpop.f32.mrf.mxu1 }
 0x410   : > { %v9505_v42 = vpop.f32.mrf.mxu0 }
 0x411   : > { %v13050_v25 = vadd.f32 %v9504_v24, %v12987_v41  ;;  %v13052_v21 = vpop.f32.mrf.mxu1  ;;  %v9532_v41 = vadd.f32 %v13009_v22, %v13004_v23 }
 0x412   : > { %v9506_v10 = vpop.f32.mrf.mxu0 }
 0x413   : > { %13274 = vst [vmem:[#allocation36_spill] sm:$0xff] %v13050_v25  ;;  %v9507_v32 = vadd.f32 %v9506_v10, %v9505_v42  ;;  %v13054_v50 = vpop.f32.mrf.mxu1  ;;  %v9541_v25 = vadd.f32 %v9540_v30, %v9539_v61  ;;  %v6961_v22 = vadd.f32 %v9532_v41, %v12887_v47 }
 0x414   : > { %v9508_v29 = vpop.f32.mrf.mxu0 }
 0x415   : > { %v13057_v17 = vadd.f32 %v9507_v32, %v12993_v51  ;;  %v9560_v15 = vpop.f32.mrf.mxu1  ;;  %v6969_v32 = vadd.f32 %v9538_v31, %v12900_v40 }
 0x416   : > { %v9509_v54 = vpop.f32.mrf.mxu0 }
 0x417   : > { %13275 = vst [vmem:[#allocation37_spill] sm:$0xff] %v13057_v17  ;;  %v9510_v39 = vadd.f32 %v9509_v54, %v9508_v29  ;;  %v9561_v33 = vpop.f32.mrf.mxu1  ;;  %v9550_v54 = vadd.f32 %v9549_v43, %v9548_v46  ;;  %v6964_v29 = vadd.f32 %v9535_v48, %v12894_v19  ;;  %v9547_v19 = vadd.f32 %v13034_v37, %v13032_v49 }
 0x418   : > { %v9511_v52 = vpop.f32.mrf.mxu0 }
 0x419   : > { %v13062_v24 = vadd.f32 %v9510_v39, %v12999_v34  ;;  %v13064_v42 = vpop.f32.mrf.mxu1 }
 0x41a   : > { %v9512_v10 = vpop.f32.mrf.mxu0 }
 0x41b   : > { %v9513_v26 = vadd.f32 %v9512_v10, %v9511_v52  ;;  %v9564_v51 = vpop.f32.mrf.mxu1  ;;  %v13078_v52 = vld [vmem:[%s13238_s5] ss:$0 sm:$0xff] }
 0x41c   : > { %v9708_v17 = vpop.f32.mrf.mxu0 }
 0x41d   : > { %v13070_v44 = vadd.f32 %v9513_v26, %v13007_v9  ;;  %v13072_v23 = vpop.f32.mrf.mxu1  ;;  %v7130_v34 = vadd.f32 %v9708_v17, %v6969_v32  ;;  %v6972_v26 = vadd.f32 %v9541_v25, %v12906_v60  ;;  %v9544_v9 = vadd.f32 %v9543_v8, %v13027_v3 }
 0x41e   : > { %v7121_v61 = vpop.f32.mrf.mxu0  ;;  %v9553_v17 = vadd.f32 %v9552_v57, %v9551_v0  ;;  %v6985_v60 = vadd.f32 %v9550_v54, %v12924_v55 }
 0x41f   : > { %v7250_v40 = vadd.f32 %v11067_v58, %v7130_v34  ;;  %v13082_v31 = vpop.f32.mrf.mxu1  ;;  %v7122_v36 = vadd.f32 %v7121_v61, %v6961_v22  ;;  %v6977_v0 = vadd.f32 %v9544_v9, %v12912_v16  ;;  %v9562_v34 = vadd.f32 %v9561_v33, %v9560_v15 }
 0x420   : > { %v9709_v45 = vpop.f32.mrf.mxu0  ;;  %v6988_v22 = vadd.f32 %v9553_v17, %v12930_v38 }
 0x421   : > { %v7289_v47 = vadd.f32 %v13078_v52, %v7250_v40  ;;  %v7248_v43 = vadd.f32 %v7122_v36, %v11069_v59  ;;  %v13088_v30 = vpop.f32.mrf.mxu1  ;;  %v7133_v46 = vadd.f32 %v9709_v45, %v6972_v26  ;;  %v9556_v40 = vadd.f32 %v13047_v13, %v13045_v5 }
 0x422   : > { %v7124_v58 = vpop.f32.mrf.mxu0  ;;  %v9565_v45 = vadd.f32 %v9564_v51, %v13064_v42 }
 0x423   : > { %v7321_v3 = vmax.f32 %v7289_v47, 0.0  ;;  %v7287_v8 = vadd.f32 %v13078_v52, %v7248_v43  ;;  %v7251_v59 = vadd.f32 %v11078_v63, %v7133_v46  ;;  %v13099_v25 = vpop.f32.mrf.mxu1  ;;  %v7125_v39 = vadd.f32 %v7124_v58, %v6964_v29 }
 0x424   : > { %v9712_v57 = vpop.f32.mrf.mxu0  ;;  %v7001_v47 = vadd.f32 %v9562_v34, %v12948_v56  ;;  %v9559_v29 = vadd.f32 %v13054_v50, %v13052_v21  ;;  %v6993_v17 = vadd.f32 %v9556_v40, %v12936_v12 }
 0x425   : > { %7353 = vst [vmem:[%s13094_s14 + $0x10] sm:$0xff] %v7321_v3  ;;  %v7319_v41 = vmax.f32 %v7287_v8, 0.0  ;;  %v7290_v10 = vadd.f32 %v13078_v52, %v7251_v59  ;;  %v7249_v55 = vadd.f32 %v7125_v39, %v11082_v2  ;;  %v9572_v32 = vpop.f32.mrf.mxu1  ;;  %v7146_v48 = vadd.f32 %v9712_v57, %v6985_v60 }
 0x426   : > { %v7137_v63 = vpop.f32.mrf.mxu0  ;;  %v6980_v2 = vadd.f32 %v9547_v19, %v12918_v35  ;;  %v9568_v19 = vadd.f32 %v13082_v31, %v13072_v23 }
 0x427   : > { %7351 = vst [vmem:[%s13094_s14] sm:$0xff] %v7319_v41  ;;  %v7322_v54 = vmax.f32 %v7290_v10, 0.0  ;;  %v7288_v37 = vadd.f32 %v13078_v52, %v7249_v55  ;;  %v7254_v16 = vadd.f32 %v11091_v6, %v7146_v48  ;;  %v9573_v49 = vpop.f32.mrf.mxu1  ;;  %v7138_v61 = vadd.f32 %v7137_v63, %v6977_v0 }
 0x428   : > { %v9713_v36 = vpop.f32.mrf.mxu0  ;;  %v9574_v3 = vadd.f32 %v9573_v49, %v9572_v32 }
 0x429   : > { %7354 = vst [vmem:[%s13094_s14 + $0x18] sm:$0xff] %v7322_v54  ;;  %v7320_v15 = vmax.f32 %v7288_v37, 0.0  ;;  %v7293_v33 = vadd.f32 %v13078_v52, %v7254_v16  ;;  %v7252_v38 = vadd.f32 %v7138_v61, %v11093_v7  ;;  %v9575_v26 = vpop.f32.mrf.mxu1  ;;  %v7149_v9 = vadd.f32 %v9713_v36, %v6988_v22 }
 0x42a   : > { %v7140_v6 = vpop.f32.mrf.mxu0  ;;  %v9571_v22 = vadd.f32 %v13099_v25, %v13088_v30  ;;  %v13277_v30 = vld [vmem:[#allocation3_spill] sm:$0xff] }
 0x42b   : > { %7352 = vst [vmem:[%s13094_s14 + $0x8] sm:$0xff] %v7320_v15  ;;  %v7325_v43 = vmax.f32 %v7293_v33, 0.0  ;;  %v7291_v13 = vadd.f32 %v13078_v52, %v7252_v38  ;;  %v7255_v35 = vadd.f32 %v11102_v11, %v7149_v9  ;;  %v9576_v5 = vpop.f32.mrf.mxu1  ;;  %v7141_v46 = vadd.f32 %v7140_v6, %v6980_v2 }
 0x42c   : > { %v9716_v7 = vpop.f32.mrf.mxu0  ;;  %v7004_v11 = vadd.f32 %v9565_v45, %v12954_v53  ;;  %v9577_v32 = vadd.f32 %v9576_v5, %v9575_v26  ;;  %v13278_v45 = vld [vmem:[#allocation23_spill] sm:$0xff] }
 0x42d   : > { %7357 = vst [vmem:[%s13094_s14 + $0x30] sm:$0xff] %v7325_v43  ;;  %v7323_v42 = vmax.f32 %v7291_v13, 0.0  ;;  %v7294_v51 = vadd.f32 %v13078_v52, %v7255_v35  ;;  %v7253_v56 = vadd.f32 %v7141_v46, %v11106_v14  ;;  %v9578_v58 = vpop.f32.mrf.mxu1  ;;  %v7162_v60 = vadd.f32 %v9716_v7, %v7001_v47  ;;  %v13279_v13 = vld [vmem:[#allocation4_spill] sm:$0xff] }
 0x42e   : > { %v7153_v8 = vpop.f32.mrf.mxu0  ;;  %v6996_v14 = vadd.f32 %v9559_v29, %v12942_v1  ;;  %v7012_v6 = vadd.f32 %v9571_v22, %v13278_v45  ;;  %v13280_v29 = vld [vmem:[#allocation26_spill] sm:$0xff] }
 0x42f   : > { %7355 = vst [vmem:[%s13094_s14 + $0x20] sm:$0xff] %v7323_v42  ;;  %v7326_v59 = vmax.f32 %v7294_v51, 0.0  ;;  %v7292_v21 = vadd.f32 %v13078_v52, %v7253_v56  ;;  %v7258_v12 = vadd.f32 %v11115_v18, %v7162_v60  ;;  %v9579_v50 = vpop.f32.mrf.mxu1  ;;  %v7154_v39 = vadd.f32 %v7153_v8, %v6993_v17  ;;  %v13281_v51 = vld [vmem:[#allocation5_spill] sm:$0xff] }
 0x430   : > { %v9717_v57 = vpop.f32.mrf.mxu0  ;;  %v7017_v18 = vadd.f32 %v9574_v3, %v12972_v27  ;;  %v13276_v27 = vld [vmem:[#allocation2_spill] sm:$0xff]  ;;  %v9580_v38 = vadd.f32 %v9579_v50, %v9578_v58 }
 0x431   : > { %7358 = vst [vmem:[%s13094_s14 + $0x38] sm:$0xff] %v7326_v59  ;;  %v7324_v0 = vmax.f32 %v7292_v21, 0.0  ;;  %v7297_v41 = vadd.f32 %v13078_v52, %v7258_v12  ;;  %v7256_v53 = vadd.f32 %v7154_v39, %v11117_v20  ;;  %v9581_v10 = vpop.f32.mrf.mxu1  ;;  %v7165_v55 = vadd.f32 %v9717_v57, %v7004_v11  ;;  %v13282_v59 = vld [vmem:[#allocation24_spill] sm:$0xff]  ;;  %v13283_v39 = vld [vmem:[#allocation6_spill] sm:$0xff] }
 0x432   : > { %v7156_v48 = vpop.f32.mrf.mxu0  ;;  %v7009_v20 = vadd.f32 %v9568_v19, %v12960_v62  ;;  %v7025_v21 = vadd.f32 %v9580_v38, %v13282_v59 }
 0x433   : > { %7356 = vst [vmem:[%s13094_s14 + $0x28] sm:$0xff] %v7324_v0  ;;  %v7329_v34 = vmax.f32 %v7297_v41, 0.0  ;;  %v7295_v23 = vadd.f32 %v13078_v52, %v7256_v53  ;;  %v7259_v1 = vadd.f32 %v11130_v28, %v7165_v55  ;;  %v9582_v31 = vpop.f32.mrf.mxu1  ;;  %v7157_v63 = vadd.f32 %v7156_v48, %v6996_v14  ;;  %v13284_v41 = vld [vmem:[#allocation27_spill] sm:$0xff] }
 0x434   : > { %v9720_v54 = vpop.f32.mrf.mxu0  ;;  %v7020_v28 = vadd.f32 %v9577_v32, %v12978_v4  ;;  %v9583_v3 = vadd.f32 %v9582_v31, %v9581_v10  ;;  %v13285_v32 = vld [vmem:[#allocation7_spill] sm:$0xff]  ;;  %v13286_v31 = vld [vmem:[#allocation25_spill] sm:$0xff] }
 0x435   : > { %7361 = vst [vmem:[%s13094_s14 + $0x50] sm:$0xff] %v7329_v34  ;;  %v7327_v37 = vmax.f32 %v7295_v23, 0.0  ;;  %v7298_v16 = vadd.f32 %v13078_v52, %v7259_v1  ;;  %v7257_v49 = vadd.f32 %v7157_v63, %v13276_v27  ;;  %v9584_v61 = vpop.f32.mrf.mxu1  ;;  %v7178_v40 = vadd.f32 %v9720_v54, %v7017_v18 }
 0x436   : > { %v7169_v36 = vpop.f32.mrf.mxu0  ;;  %v7028_v63 = vadd.f32 %v9583_v3, %v13286_v31 }
 0x437   : > { %7359 = vst [vmem:[%s13094_s14 + $0x40] sm:$0xff] %v7327_v37  ;;  %v7330_v2 = vmax.f32 %v7298_v16, 0.0  ;;  %v7296_v15 = vadd.f32 %v13078_v52, %v7257_v49  ;;  %v7262_v25 = vadd.f32 %v13277_v30, %v7178_v40  ;;  %v9585_v62 = vpop.f32.mrf.mxu1  ;;  %v7170_v33 = vadd.f32 %v7169_v36, %v7009_v20  ;;  %v13287_v20 = vld [vmem:[#allocation8_spill] sm:$0xff]  ;;  %v13288_v36 = vld [vmem:[#allocation9_spill] sm:$0xff] }
 0x438   : > { %v9586_v26 = vadd.f32 %v9585_v62, %v9584_v61  ;;  %v9721_v9 = vpop.f32.mrf.mxu0 }
 0x439   : > { %7362 = vst [vmem:[%s13094_s14 + $0x58] sm:$0xff] %v7330_v2  ;;  %v7328_v47 = vmax.f32 %v7296_v15, 0.0  ;;  %v7301_v43 = vadd.f32 %v13078_v52, %v7262_v25  ;;  %v7260_v4 = vadd.f32 %v7170_v33, %v13279_v13  ;;  %v9587_v35 = vpop.f32.mrf.mxu1  ;;  %v7181_v5 = vadd.f32 %v9721_v9, %v7020_v28  ;;  %v13289_v25 = vld [vmem:[#allocation28_spill] sm:$0xff]  ;;  %v13290_v9 = vld [vmem:[#allocation10_spill] sm:$0xff] }
 0x43a   : > { %v7172_v46 = vpop.f32.mrf.mxu0  ;;  %v7033_v7 = vadd.f32 %v9586_v26, %v13280_v29 }
 0x43b   : > { %7360 = vst [vmem:[%s13094_s14 + $0x48] sm:$0xff] %v7328_v47  ;;  %v7333_v17 = vmax.f32 %v7301_v43, 0.0  ;;  %v7299_v42 = vadd.f32 %v13078_v52, %v7260_v4  ;;  %v7263_v56 = vadd.f32 %v13281_v51, %v7181_v5  ;;  %v9588_v58 = vpop.f32.mrf.mxu1  ;;  %v7173_v60 = vadd.f32 %v7172_v46, %v7012_v6  ;;  %v13292_v51 = vld [vmem:[#allocation29_spill] sm:$0xff] }
 0x43c   : > { %v9589_v8 = vadd.f32 %v9588_v58, %v9587_v35  ;;  %v9724_v11 = vpop.f32.mrf.mxu0  ;;  %v13293_v58 = vld [vmem:[#allocation30_spill] sm:$0xff] }
 0x43d   : > { %7365 = vst [vmem:[%s13094_s14 + $0x70] sm:$0xff] %v7333_v17  ;;  %v7331_v12 = vmax.f32 %v7299_v42, 0.0  ;;  %v7302_v50 = vadd.f32 %v13078_v52, %v7263_v56  ;;  %v7261_v19 = vadd.f32 %v7173_v60, %v13283_v39  ;;  %v9590_v57 = vpop.f32.mrf.mxu1  ;;  %v7194_v14 = vadd.f32 %v9724_v11, %v7033_v7  ;;  %v13291_v7 = vld [vmem:[#allocation12_spill] sm:$0xff] }
 0x43e   : > { %v7185_v0 = vpop.f32.mrf.mxu0  ;;  %v7036_v53 = vadd.f32 %v9589_v8, %v13284_v41 }
 0x43f   : > { %7363 = vst [vmem:[%s13094_s14 + $0x60] sm:$0xff] %v7331_v12  ;;  %v7334_v55 = vmax.f32 %v7302_v50, 0.0  ;;  %v7300_v10 = vadd.f32 %v13078_v52, %v7261_v19  ;;  %v7266_v48 = vadd.f32 %v13285_v32, %v7194_v14  ;;  %v9591_v18 = vpop.f32.mrf.mxu1  ;;  %v7186_v34 = vadd.f32 %v7185_v0, %v7025_v21  ;;  %v13294_v19 = vld [vmem:[#allocation14_spill] sm:$0xff]  ;;  %v13295_v0 = vld [vmem:[#allocation11_spill] sm:$0xff] }
 0x440   : > { %v9592_v23 = vadd.f32 %v9591_v18, %v9590_v57  ;;  %v9725_v1 = vpop.f32.mrf.mxu0 }
 0x441   : > { %7366 = vst [vmem:[%s13094_s14 + $0x78] sm:$0xff] %v7334_v55  ;;  %v7332_v22 = vmax.f32 %v7300_v10, 0.0  ;;  %v7305_v54 = vadd.f32 %v13078_v52, %v7266_v48  ;;  %v7264_v37 = vadd.f32 %v7186_v34, %v13287_v20  ;;  %v9593_v16 = vpop.f32.mrf.mxu1  ;;  %v7197_v27 = vadd.f32 %v9725_v1, %v7036_v53  ;;  %v13296_v53 = vld [vmem:[#allocation31_spill] sm:$0xff] }
 0x442   : > { %v7188_v49 = vpop.f32.mrf.mxu0  ;;  %v7041_v62 = vadd.f32 %v9592_v23, %v13289_v25  ;;  %v13300_v25 = vld [vmem:[#allocation33_spill] sm:$0xff] }
 0x443   : > { %7364 = vst [vmem:[%s13094_s14 + $0x68] sm:$0xff] %v7332_v22  ;;  %v7337_v61 = vmax.f32 %v7305_v54, 0.0  ;;  %v7303_v40 = vadd.f32 %v13078_v52, %v7264_v37  ;;  %v7267_v28 = vadd.f32 %v13288_v36, %v7197_v27  ;;  %v9594_v2 = vpop.f32.mrf.mxu1  ;;  %v7189_v15 = vadd.f32 %v7188_v49, %v7028_v63  ;;  %v13297_v54 = vld [vmem:[#allocation13_spill] sm:$0xff]  ;;  %v13298_v37 = vld [vmem:[#allocation32_spill] sm:$0xff] }
 0x444   : > { %v9728_v30 = vpop.f32.mrf.mxu0  ;;  %v9595_v26 = vadd.f32 %v9594_v2, %v9593_v16 }
 0x445   : > { %7369 = vst [vmem:[%s13094_s14 + $0x90] sm:$0xff] %v7337_v61  ;;  %v7335_v33 = vmax.f32 %v7303_v40, 0.0  ;;  %v7306_v38 = vadd.f32 %v13078_v52, %v7267_v28  ;;  %v7265_v45 = vadd.f32 %v7189_v15, %v13290_v9  ;;  %v9596_v6 = vpop.f32.mrf.mxu1  ;;  %v13299_v15 = vld [vmem:[#allocation16_spill] sm:$0xff] }
 0x446   : > { %v7201_v47 = vpop.f32.mrf.mxu0  ;;  %v7044_v56 = vadd.f32 %v9595_v26, %v13292_v51  ;;  %v13303_v51 = vld [vmem:[#allocation15_spill] sm:$0xff] }
 0x447   : > { %7367 = vst [vmem:[%s13094_s14 + $0x80] sm:$0xff] %v7335_v33  ;;  %v7338_v43 = vmax.f32 %v7306_v38, 0.0  ;;  %v7304_v13 = vadd.f32 %v13078_v52, %v7265_v45  ;;  %v9597_v4 = vpop.f32.mrf.mxu1  ;;  %v7202_v35 = vadd.f32 %v7201_v47, %v7041_v62 }
 0x448   : > { %v9598_v5 = vadd.f32 %v9597_v4, %v9596_v6  ;;  %v9729_v46 = vpop.f32.mrf.mxu0  ;;  %v13302_v4 = vld [vmem:[#allocation18_spill] sm:$0xff] }
 0x449   : > { %7370 = vst [vmem:[%s13094_s14 + $0x98] sm:$0xff] %v7338_v43  ;;  %v7336_v29 = vmax.f32 %v7304_v13, 0.0  ;;  %v7268_v17 = vadd.f32 %v7202_v35, %v13291_v7  ;;  %v9599_v42 = vpop.f32.mrf.mxu1  ;;  %v13301_v43 = vld [vmem:[#allocation34_spill] sm:$0xff] }
 0x44a   : > { %v7049_v60 = vadd.f32 %v9598_v5, %v13293_v58  ;;  %v7204_v3 = vpop.f32.mrf.mxu0 }
 0x44b   : > { %7368 = vst [vmem:[%s13094_s14 + $0x88] sm:$0xff] %v7336_v29  ;;  %v7307_v8 = vadd.f32 %v13078_v52, %v7268_v17  ;;  %v9600_v11 = vpop.f32.mrf.mxu1  ;;  %v7205_v59 = vadd.f32 %v7204_v3, %v7044_v56 }
 0x44c   : > { %v7210_v21 = vadd.f32 %v9728_v30, %v7049_v60  ;;  %v9601_v12 = vadd.f32 %v9600_v11, %v9599_v42  ;;  %v9732_v50 = vpop.f32.mrf.mxu0  ;;  %v13304_v60 = vld [vmem:[#allocation35_spill] sm:$0xff] }
 0x44d   : > { %v7339_v39 = vmax.f32 %v7307_v8, 0.0  ;;  %v7269_v57 = vadd.f32 %v7205_v59, %v13294_v19  ;;  %v9602_v14 = vpop.f32.mrf.mxu1  ;;  %v13305_v19 = vld [vmem:[#allocation17_spill] sm:$0xff] }
 0x44e   : > { %v7270_v41 = vadd.f32 %v13295_v0, %v7210_v21  ;;  %v7052_v55 = vadd.f32 %v9601_v12, %v13296_v53  ;;  %v7217_v10 = vpop.f32.mrf.mxu0 }
 0x44f   : > { %7371 = vst [vmem:[%s13094_s14 + $0xa0] sm:$0xff] %v7339_v39  ;;  %v7308_v32 = vadd.f32 %v13078_v52, %v7269_v57  ;;  %v9603_v48 = vpop.f32.mrf.mxu1 }
 0x450   : > { %v7309_v18 = vadd.f32 %v13078_v52, %v7270_v41  ;;  %v7213_v34 = vadd.f32 %v9729_v46, %v7052_v55  ;;  %v9604_v23 = vadd.f32 %v9603_v48, %v9602_v14  ;;  %v9733_v63 = vpop.f32.mrf.mxu0  ;;  %v13306_v14 = vld [vmem:[#allocation36_spill] sm:$0xff] }
 0x451   : > { %v7340_v1 = vmax.f32 %v7308_v32, 0.0  ;;  %v9605_v31 = vpop.f32.mrf.mxu1 }
 0x452   : > { %v7341_v22 = vmax.f32 %v7309_v18, 0.0  ;;  %v7271_v20 = vadd.f32 %v13297_v54, %v7213_v34  ;;  %v7057_v16 = vadd.f32 %v9604_v23, %v13298_v37  ;;  %v7220_v28 = vpop.f32.mrf.mxu0  ;;  %v13307_v34 = vld [vmem:[#allocation20_spill] sm:$0xff] }
 0x453   : > { %7372 = vst [vmem:[%s13094_s14 + $0xa8] sm:$0xff] %v7340_v1  ;;  %v9606_v27 = vpop.f32.mrf.mxu1  ;;  %v13308_v1 = vld [vmem:[#allocation37_spill] sm:$0xff] }
 0x454   : > { %7373 = vst [vmem:[%s13094_s14 + $0xb0] sm:$0xff] %v7341_v22  ;;  %v7310_v49 = vadd.f32 %v13078_v52, %v7271_v20  ;;  %v9607_v61 = vadd.f32 %v9606_v27, %v9605_v31  ;;  %v7218_v40 = vadd.f32 %v7217_v10, %v7057_v16  ;;  %v9736_v6 = vpop.f32.mrf.mxu0 }
 0x455   : > { %v9608_v36 = vpop.f32.mrf.mxu1 }
 0x456   : > { %v7342_v2 = vmax.f32 %v7310_v49, 0.0  ;;  %v7272_v30 = vadd.f32 %v7218_v40, %v13299_v15  ;;  %v7060_v62 = vadd.f32 %v9607_v61, %v13300_v25  ;;  %v7233_v42 = vpop.f32.mrf.mxu0  ;;  %v13309_v49 = vld [vmem:[#allocation22_spill] sm:$0xff]  ;;  %v13310_v15 = vld [vmem:[#allocation19_spill] sm:$0xff] }
 0x457   : > { %v9609_v33 = vpop.f32.mrf.mxu1 }
 0x458   : > { %7374 = vst [vmem:[%s13094_s14 + $0xb8] sm:$0xff] %v7342_v2  ;;  %v7311_v38 = vadd.f32 %v13078_v52, %v7272_v30  ;;  %v9610_v26 = vadd.f32 %v9609_v33, %v9608_v36  ;;  %v7221_v9 = vadd.f32 %v7220_v28, %v7060_v62 }
 0x459   : > { %v9611_v45 = vpop.f32.mrf.mxu1 }
 0x45a   : > { %v7343_v47 = vmax.f32 %v7311_v38, 0.0  ;;  %v7065_v13 = vadd.f32 %v9610_v26, %v13301_v43  ;;  %v7273_v35 = vadd.f32 %v7221_v9, %v13302_v4 }
 0x45b   : > { %v9612_v5 = vpop.f32.mrf.mxu1 }
 0x45c   : > { %7375 = vst [vmem:[%s13094_s14 + $0xc0] sm:$0xff] %v7343_v47  ;;  %v7226_v46 = vadd.f32 %v9732_v50, %v7065_v13  ;;  %v7312_v29 = vadd.f32 %v13078_v52, %v7273_v35  ;;  %v9613_v7 = vadd.f32 %v9612_v5, %v9611_v45  ;;  %v9737_v50 = vpop.f32.mrf.mxu0 }
 0x45d   : > { %v9614_v17 = vpop.f32.mrf.mxu1 }
 0x45e   : > { %v7274_v56 = vadd.f32 %v13303_v51, %v7226_v46  ;;  %v7344_v58 = vmax.f32 %v7312_v29, 0.0  ;;  %v7068_v3 = vadd.f32 %v9613_v7, %v13304_v60  ;;  %v7236_v48 = vpop.f32.mrf.mxu0 }
 0x45f   : > { %v9615_v8 = vpop.f32.mrf.mxu1 }
 0x460   : > { %v7313_v11 = vadd.f32 %v13078_v52, %v7274_v56  ;;  %7376 = vst [vmem:[%s13094_s14 + $0xc8] sm:$0xff] %v7344_v58  ;;  %v7229_v59 = vadd.f32 %v9733_v63, %v7068_v3  ;;  %v9616_v21 = vadd.f32 %v9615_v8, %v9614_v17 }
 0x461   : > { %v9617_v12 = vpop.f32.mrf.mxu1 }
 0x462   : > { %v7345_v39 = vmax.f32 %v7313_v11, 0.0  ;;  %v7275_v57 = vadd.f32 %v13305_v19, %v7229_v59  ;;  %v7073_v0 = vadd.f32 %v9616_v21, %v13306_v14 }
 0x463   : > { %v9618_v41 = vpop.f32.mrf.mxu1 }
 0x464   : > { %7377 = vst [vmem:[%s13094_s14 + $0xd0] sm:$0xff] %v7345_v39  ;;  %v7314_v53 = vadd.f32 %v13078_v52, %v7275_v57  ;;  %v9619_v55 = vadd.f32 %v9618_v41, %v9617_v12  ;;  %v7234_v10 = vadd.f32 %v7233_v42, %v7073_v0 }
 0x465   : > { %v9620_v32 = vpop.f32.mrf.mxu1 }
 0x466   : > { %v7346_v18 = vmax.f32 %v7314_v53, 0.0  ;;  %v7276_v23 = vadd.f32 %v7234_v10, %v13307_v34  ;;  %v7076_v31 = vadd.f32 %v9619_v55, %v13308_v1 }
 0x467   : > { %v9621_v63 = vpop.f32.mrf.mxu1 }
 0x468   : > { %7378 = vst [vmem:[%s13094_s14 + $0xd8] sm:$0xff] %v7346_v18  ;;  %v7315_v22 = vadd.f32 %v13078_v52, %v7276_v23  ;;  %v9622_v54 = vadd.f32 %v9621_v63, %v9620_v32  ;;  %v7237_v20 = vadd.f32 %v7236_v48, %v7076_v31 }
 0x469   : > { %v9623_v37 = vpop.f32.mrf.mxu1 }
 0x46a   : > { %v7347_v16 = vmax.f32 %v7315_v22, 0.0  ;;  %v7081_v27 = vadd.f32 %v9622_v54, %v13062_v24  ;;  %v7277_v61 = vadd.f32 %v7237_v20, %v13309_v49  ;;  %v13311_v24 = vld [vmem:[#allocation21_spill] sm:$0xff] }
 0x46b   : > { %v9624_v40 = vpop.f32.mrf.mxu1 }
 0x46c   : > { %7379 = vst [vmem:[%s13094_s14 + $0xe0] sm:$0xff] %v7347_v16  ;;  %v7242_v36 = vadd.f32 %v9736_v6, %v7081_v27  ;;  %v7316_v28 = vadd.f32 %v13078_v52, %v7277_v61  ;;  %v9625_v2 = vadd.f32 %v9624_v40, %v9623_v37 }
 0x46e   : > { %v7278_v30 = vadd.f32 %v13310_v15, %v7242_v36  ;;  %v7348_v25 = vmax.f32 %v7316_v28, 0.0  ;;  %v7084_v62 = vadd.f32 %v9625_v2, %v13070_v44 }
 0x470   : > { %v7317_v33 = vadd.f32 %v13078_v52, %v7278_v30  ;;  %7380 = vst [vmem:[%s13094_s14 + $0xe8] sm:$0xff] %v7348_v25  ;;  %v7245_v38 = vadd.f32 %v9737_v50, %v7084_v62 }
 0x472   : > { %v7349_v26 = vmax.f32 %v7317_v33, 0.0  ;;  %v7279_v9 = vadd.f32 %v13311_v24, %v7245_v38 }
 0x474   : > { %7381 = vst [vmem:[%s13094_s14 + $0xf0] sm:$0xff] %v7349_v26  ;;  %v7318_v45 = vadd.f32 %v13078_v52, %v7279_v9 }
 0x476   : > { %v7350_v47 = vmax.f32 %v7318_v45, 0.0 }
 0x478   : > { %7382 = vst [vmem:[%s13094_s14 + $0xf8] sm:$0xff] %v7350_v47 }
 0x479 PF: > { %s16_s21 = sadd.s32 1, %s10630_s21  }
 0x47a   : > { %p13_p4 = scmp.ge.s32.totalorder %s16_s21, 6  }
 0x47c   :  { %15 = sbr.rel (!%p13_p4) target bundleno = 1 (0x1), region = 77 }

</bundles_post_ra>
